<compile_context>
chip_gen: v7x
topology: tpu7x:2x2x1
jax: 0.10.0
libtpu: 0.0.40
codegen_flags: <defaults>
</compile_context>

<pallas_src>
import functools

import jax
import jax.numpy as jnp
from jax.experimental import pallas as pl
from jax.experimental.pallas import tpu as pltpu

ACT_DTYPE = jnp.bfloat16          # inter-layer activation dtype (halves HBM traffic)
GN_EPS = 1e-5
LRELU_SLOPE = 0.2
VMEM_LIMIT = 48 * 1024 * 1024     # explicit scoped-VMEM budget (headroom on v7x 64 MiB)


# -----------------------------------------------------------------------------
# Pallas kernel: fused direct stride-1 conv (+ bias + GroupNorm + LeakyReLU
#                + optional inception branch-sum add), OW-dense store.
# -----------------------------------------------------------------------------
def _fused_conv_kernel(*refs, M, OH, OW, Wp, G, Cin_g, KH, KW,
                       with_gn, with_mask, with_add, inv_n, eps, slope):
    it = iter(refs)
    x_ref = next(it)                  # (1, L, Cin)             bf16, flat padded rows
    w_ref = next(it)                  # (G, KH, KW*Cin_g, Cog)  bf16
    b_ref = next(it)                  # (1, Cout)               f32
    gm_ref = gmt_ref = gamma_ref = beta_ref = vmask_ref = add_ref = None
    if with_gn:
        gm_ref = next(it)             # (Cout, Gn) one-hot channel->group membership
        gmt_ref = next(it)            # (Gn, Cout)
        gamma_ref = next(it)          # (1, Cout)
        beta_ref = next(it)           # (1, Cout)
        if with_mask:
            vmask_ref = next(it)      # (M, 1) 1.0 for valid rows, 0.0 for garbage
    if with_add:
        add_ref = next(it)            # previous branch sum (bf16)
    o_ref = next(it)

    # --- conv: per kernel-row tap gather (KW slices) + MXU dot, f32 accumulate ---
    cols = []
    for g in range(G):
        c0 = g * Cin_g
        acc = None
        for di in range(KH):
            base = di * Wp
            pieces = [x_ref[0, base + dj:base + dj + M, c0:c0 + Cin_g]
                      for dj in range(KW)]
            a = pieces[0] if KW == 1 else jnp.concatenate(pieces, axis=-1)
            d = jnp.dot(a, w_ref[g, di], preferred_element_type=jnp.float32)
            acc = d if acc is None else acc + d
        cols.append(acc)
    y = cols[0] if G == 1 else jnp.concatenate(cols, axis=-1)      # (M, Cout) f32
    y = y + b_ref[...]

    # --- fused GroupNorm + LeakyReLU epilogue --------------------------------
    if with_gn:
        xm = y * vmask_ref[...] if with_mask else y                # mask garbage cols
        s = jnp.sum(xm, axis=0, keepdims=True)                     # (1, Cout)
        sq = jnp.sum(xm * xm, axis=0, keepdims=True)               # (1, Cout)
        gs = jnp.dot(s, gm_ref[...], preferred_element_type=jnp.float32)
        gsq = jnp.dot(sq, gm_ref[...], preferred_element_type=jnp.float32)
        mean_g = gs * inv_n
        var_g = jnp.maximum(gsq * inv_n - mean_g * mean_g, 0.0)    # clamp >= 0
        inv_g = jax.lax.rsqrt(var_g + eps)
        mean = jnp.dot(mean_g, gmt_ref[...], preferred_element_type=jnp.float32)
        inv = jnp.dot(inv_g, gmt_ref[...], preferred_element_type=jnp.float32)
        y = (y - mean) * inv * gamma_ref[...] + beta_ref[...]
        y = jnp.where(y >= 0, y, slope * y)

    # --- OW-dense store (+ optional branch-sum add) --------------------------
    if OW == Wp:
        out = y
        if with_add:
            out = out + add_ref[0].astype(jnp.float32)
        o_ref[0] = out.astype(o_ref.dtype)
    else:
        for oh in range(OH):
            row = y[oh * Wp:oh * Wp + OW, :]
            if with_add:
                row = row + add_ref[0, oh].astype(jnp.float32)
            o_ref[0, oh] = row.astype(o_ref.dtype)


def fused_conv(x, cp, gn=None, add_to=None, padding=0, out_dtype=ACT_DTYPE):
    """Stride-1 NHWC (grouped) conv with optional fused GroupNorm+LeakyReLU and
    optional fused branch-sum add.  x: (N, H, W, Cin); cp/gn: packed params."""
    N, H, W, Cin = x.shape
    KH, KW = cp["KH"], cp["KW"]
    G, Cin_g, Cog, Cout = cp["G"], cp["Cin_g"], cp["Cog"], cp["Cout"]
    assert Cin == G * Cin_g, (Cin, G, Cin_g)
    OH = H + 2 * padding - KH + 1
    OW = W + 2 * padding - KW + 1
    Wp = W + 2 * padding
    extra = 1 if KW > 1 else 0        # spare zero row so flat-row reads stay in bounds
    Hp = H + 2 * padding + extra
    xq = x.astype(ACT_DTYPE)
    if padding or extra:
        xq = jnp.pad(xq, ((0, 0), (padding, padding + extra),
                          (padding, padding), (0, 0)))
    L = Hp * Wp
    xflat = xq.reshape(N, L, Cin)
    M = OH * Wp
    flat_out = (OW == Wp)
    with_gn = gn is not None
    with_mask = with_gn and (OW != Wp)
    with_add = add_to is not None

    inputs = [xflat, cp["wr"], cp["br"]]
    in_specs = [
        pl.BlockSpec((1, L, Cin), lambda n: (n, 0, 0)),
        # TODO(synk): pipeline_mode=pl.Buffered(1) on the grid-invariant operands
        # (weights / bias / GN tables) to drop their second pipeline buffer.
        pl.BlockSpec(cp["wr"].shape, lambda n: (0, 0, 0, 0)),
        pl.BlockSpec((1, Cout), lambda n: (0, 0)),
    ]
    inv_n = 1.0
    if with_gn:
        inv_n = 1.0 / float(OH * OW * (Cout // gn["num_groups"]))
        inputs += [gn["gm"], gn["gmt"], gn["gamma"], gn["beta"]]
        in_specs += [
            pl.BlockSpec(gn["gm"].shape, lambda n: (0, 0)),
            pl.BlockSpec(gn["gmt"].shape, lambda n: (0, 0)),
            pl.BlockSpec((1, Cout), lambda n: (0, 0)),
            pl.BlockSpec((1, Cout), lambda n: (0, 0)),
        ]
        if with_mask:
            row_ids = jnp.arange(M, dtype=jnp.int32) % Wp
            vmask = (row_ids < OW).astype(jnp.float32).reshape(M, 1)
            inputs.append(vmask)
            in_specs.append(pl.BlockSpec((M, 1), lambda n: (0, 0)))
    if with_add:
        if flat_out:
            inputs.append(add_to.astype(ACT_DTYPE).reshape(N, OH * OW, Cout))
            in_specs.append(pl.BlockSpec((1, OH * OW, Cout), lambda n: (n, 0, 0)))
        else:
            inputs.append(add_to.astype(ACT_DTYPE))
            in_specs.append(pl.BlockSpec((1, OH, OW, Cout), lambda n: (n, 0, 0, 0)))

    if flat_out:
        out_shape = jax.ShapeDtypeStruct((N, OH * OW, Cout), out_dtype)
        out_spec = pl.BlockSpec((1, OH * OW, Cout), lambda n: (n, 0, 0))
    else:
        out_shape = jax.ShapeDtypeStruct((N, OH, OW, Cout), out_dtype)
        out_spec = pl.BlockSpec((1, OH, OW, Cout), lambda n: (n, 0, 0, 0))

    kernel = functools.partial(
        _fused_conv_kernel, M=M, OH=OH, OW=OW, Wp=Wp, G=G, Cin_g=Cin_g,
        KH=KH, KW=KW, with_gn=with_gn, with_mask=with_mask, with_add=with_add,
        inv_n=inv_n, eps=GN_EPS, slope=LRELU_SLOPE)

    # TODO(synk): add an M-row / group "parallel" grid axis (feeds v7x's second
    # TensorCore, bounds VMEM for very large frames); whole frames fit easily at
    # SimVP sizes so grid=(batch,) is used here.
    out = pl.pallas_call(
        kernel,
        out_shape=out_shape,
        grid=(N,),
        in_specs=in_specs,
        out_specs=out_spec,
        compiler_params=pltpu.CompilerParams(
            dimension_semantics=("parallel",),
            vmem_limit_bytes=VMEM_LIMIT),
    )(*inputs)
    if flat_out:
        out = out.reshape(N, OH, OW, Cout)
    return out


# -----------------------------------------------------------------------------
# Weight / GN packing (done ONCE at init, not inside the jitted forward)
# -----------------------------------------------------------------------------
def pack_conv(w, b, groups=1):
    """PyTorch-layout conv weight (Cout, Cin/groups, KH, KW) -> kernel layout."""
    Cout, Cin_g, KH, KW = map(int, w.shape)
    G = groups
    Cog = Cout // G
    wr = (w.reshape(G, Cog, Cin_g, KH, KW)
           .transpose(0, 3, 4, 2, 1)                 # (G, KH, KW, Cin_g, Cog)
           .reshape(G, KH, KW * Cin_g, Cog)
           .astype(jnp.bfloat16))
    br = b.reshape(1, Cout).astype(jnp.float32)
    return {"wr": wr, "br": br, "G": G, "KH": KH, "KW": KW,
            "Cin_g": Cin_g, "Cog": Cog, "Cout": Cout}


def pack_gn(gamma, beta, gidx, num_groups):
    """GroupNorm affine params + one-hot channel->group membership matrices."""
    C = int(gamma.shape[0])
    gm = (gidx[:, None] == jnp.arange(num_groups)[None, :]).astype(jnp.float32)
    return {"gm": gm, "gmt": gm.T,
            "gamma": gamma.reshape(1, C).astype(jnp.float32),
            "beta": beta.reshape(1, C).astype(jnp.float32),
            "num_groups": num_groups}


def polyphase_pack(w):
    """stride-2 pad-1 3x3 conv weight (Cout,Cin,3,3) -> equivalent stride-1 2x2
    conv weight (Cout, 4*Cin, 2, 2) over the space-to-channel input layout."""
    Cout, Cin = int(w.shape[0]), int(w.shape[1])
    wph = jnp.zeros((Cout, 4 * Cin, 2, 2), jnp.float32)
    for pi in range(2):
        for pj in range(2):
            for e in range(2):
                for f in range(2):
                    di, dj = 2 * e + pi, 2 * f + pj
                    if di < 3 and dj < 3:
                        ph = 2 * pi + pj
                        wph = wph.at[:, ph * Cin:(ph + 1) * Cin, e, f].set(
                            w[:, :, di, dj])
    return wph


def subpixel_pack(w, b):
    """ConvTranspose2d(k=3,s=2,p=1,op=1) weight (Cin,Cout,3,3) -> stride-1 2x2
    conv weight (4*Cout, Cin, 2, 2) producing the 4 output phases."""
    Cin, Cout = int(w.shape[0]), int(w.shape[1])
    tap = {(0, 0): 1, (1, 0): 2, (1, 1): 0}           # (phase, delta) -> kernel idx
    wsub = jnp.zeros((4 * Cout, Cin, 2, 2), jnp.float32)
    for pi in range(2):
        for pj in range(2):
            for dq in range(2):
                for dr in range(2):
                    kh = tap.get((pi, dq))
                    kw_ = tap.get((pj, dr))
                    if kh is None or kw_ is None:
                        continue
                    ph = 2 * pi + pj
                    wsub = wsub.at[ph * Cout:(ph + 1) * Cout, :, dq, dr].set(
                        jnp.transpose(w[:, :, kh, kw_], (1, 0)))
    return wsub, jnp.tile(b, 4)


def space_to_channel(x):
    """pad-1 + 2x2 space-to-depth; channel index = (2*pi+pj)*Cin + ci."""
    # TODO(synk): fold this reorg into the conv kernel via a BlockSpec index_map
    # to save one activation HBM round trip per stride-2 layer.
    N, H, W, Cin = x.shape
    xp = jnp.pad(x, ((0, 0), (1, 1), (1, 1), (0, 0)))
    Hp, Wp = H + 2, W + 2
    return (xp.reshape(N, Hp // 2, 2, Wp // 2, 2, Cin)
              .transpose(0, 1, 3, 2, 4, 5)
              .reshape(N, Hp // 2, Wp // 2, 4 * Cin))


def depth_to_space(y, cout):
    """(N,H,W,4*Cout) phase layout -> (N,2H,2W,Cout)."""
    # TODO(synk): fold into the conv kernel's store (phase-indexed out BlockSpec).
    N, H, W, _ = y.shape
    return (y.reshape(N, H, W, 2, 2, cout)
             .transpose(0, 1, 3, 2, 4, 5)
             .reshape(N, 2 * H, 2 * W, cout))


# -----------------------------------------------------------------------------
# Parameter init (deterministic, synthetic) + module applies
# -----------------------------------------------------------------------------
def stride_generator(N, reverse=False):
    strides = [1, 2] * 10
    return list(reversed(strides[:N])) if reverse else strides[:N]


def _rand_conv(key, cout, cin_g, k):
    kw_, kb_ = jax.random.split(key)
    fan = cin_g * k * k
    w = jax.random.normal(kw_, (cout, cin_g, k, k), jnp.float32) / jnp.sqrt(fan)
    b = jax.random.normal(kb_, (cout,), jnp.float32) * 0.01
    return w, b


# ---- ConvSC / BasicConv2d (kernel 3, padding 1, act_norm=True, GroupNorm(2)) ----
def init_convsc(key, cin, cout, stride, transpose):
    if stride == 1:
        transpose = False
    gamma = jnp.ones((cout,), jnp.float32)
    beta = jnp.zeros((cout,), jnp.float32)
    if transpose:
        kw_, kb_ = jax.random.split(key)
        w = jax.random.normal(kw_, (cin, cout, 3, 3), jnp.float32) / jnp.sqrt(cin * 9)
        b = jax.random.normal(kb_, (cout,), jnp.float32) * 0.01
        wsub, bsub = subpixel_pack(w, b)
        conv = pack_conv(wsub, bsub, groups=1)
        gidx = (jnp.arange(4 * cout) % cout) // (cout // 2)
        gn = pack_gn(jnp.tile(gamma, 4), jnp.tile(beta, 4), gidx, 2)
        return {"mode": "up", "conv": conv, "gn": gn, "cout": cout}
    w, b = _rand_conv(key, cout, cin, 3)
    gidx = jnp.arange(cout) // (cout // 2)
    gn = pack_gn(gamma, beta, gidx, 2)
    if stride == 2:
        return {"mode": "down", "conv": pack_conv(polyphase_pack(w), b, groups=1),
                "gn": gn, "cout": cout}
    return {"mode": "s1", "conv": pack_conv(w, b, groups=1), "gn": gn, "cout": cout}


def apply_convsc(p, x):
    if p["mode"] == "s1":
        return fused_conv(x, p["conv"], gn=p["gn"], padding=1)
    if p["mode"] == "down":
        return fused_conv(space_to_channel(x), p["conv"], gn=p["gn"], padding=0)
    # "up": sub-pixel ConvTranspose2d(k=3, s=2, p=1, op=1) + fused GN/LeakyReLU
    xpad = jnp.pad(x.astype(ACT_DTYPE), ((0, 0), (0, 1), (0, 1), (0, 0)))
    y = fused_conv(xpad, p["conv"], gn=p["gn"], padding=0)
    return depth_to_space(y, p["cout"])


# ---- GroupConv2d (act_norm=True) ----
def init_groupconv(key, cin, cout, k, groups):
    if cin % groups != 0:
        groups = 1
    w, b = _rand_conv(key, cout, cin // groups, k)
    gidx = jnp.arange(cout) // (cout // groups)
    gn = pack_gn(jnp.ones((cout,), jnp.float32), jnp.zeros((cout,), jnp.float32),
                 gidx, groups)
    return {"conv": pack_conv(w, b, groups=groups), "gn": gn, "pad": k // 2}


def apply_groupconv(p, x, add_to=None):
    return fused_conv(x, p["conv"], gn=p["gn"], add_to=add_to, padding=p["pad"])


# ---- Inception ----
def init_inception(key, cin, chid, cout, incep_ker, groups):
    keys = jax.random.split(key, len(incep_ker) + 1)
    w1, b1 = _rand_conv(keys[0], chid, cin, 1)
    return {"conv1": pack_conv(w1, b1, groups=1),
            "layers": [init_groupconv(keys[i + 1], chid, cout, k, groups)
                       for i, k in enumerate(incep_ker)]}


def apply_inception(p, x):
    x = fused_conv(x, p["conv1"], padding=0)          # 1x1, no act_norm
    y = None
    for lp in p["layers"]:
        y = apply_groupconv(lp, x, add_to=y)          # branch sum fused into kernel
    return y


# ---- Encoder ----
def init_encoder(key, cin, chid, ns):
    strides = stride_generator(ns)
    keys = jax.random.split(key, ns)
    layers = [init_convsc(keys[0], cin, chid, strides[0], False)]
    for i in range(1, ns):
        layers.append(init_convsc(keys[i], chid, chid, strides[i], False))
    return layers


def apply_encoder(layers, x):
    enc1 = apply_convsc(layers[0], x)
    latent = enc1
    for p in layers[1:]:
        latent = apply_convsc(p, latent)
    return latent, enc1


# ---- Decoder ----
def init_decoder(key, chid, cout, ns):
    strides = stride_generator(ns, reverse=True)
    keys = jax.random.split(key, ns + 1)
    layers = [init_convsc(keys[i], chid, chid, strides[i], True)
              for i in range(ns - 1)]
    layers.append(init_convsc(keys[ns - 1], 2 * chid, chid, strides[-1], True))
    wr_, br_ = _rand_conv(keys[ns], cout, chid, 1)
    return {"dec": layers, "readout": pack_conv(wr_, br_, groups=1)}


def apply_decoder(p, hid, enc1):
    for lp in p["dec"][:-1]:
        hid = apply_convsc(lp, hid)
    y = apply_convsc(p["dec"][-1], jnp.concatenate([hid, enc1], axis=-1))
    return fused_conv(y, p["readout"], padding=0, out_dtype=jnp.float32)


# ---- Mid_Xnet ----
def init_midxnet(key, cin, chid, nt, incep_ker, groups):
    keys = jax.random.split(key, 2 * nt)
    enc = [init_inception(keys[0], cin, chid // 2, chid, incep_ker, groups)]
    for i in range(1, nt - 1):
        enc.append(init_inception(keys[i], chid, chid // 2, chid, incep_ker, groups))
    enc.append(init_inception(keys[nt - 1], chid, chid // 2, chid, incep_ker, groups))
    dec = [init_inception(keys[nt], chid, chid // 2, chid, incep_ker, groups)]
    for i in range(1, nt - 1):
        dec.append(init_inception(keys[nt + i], 2 * chid, chid // 2, chid,
                                  incep_ker, groups))
    dec.append(init_inception(keys[2 * nt - 1], 2 * chid, chid // 2, cin,
                              incep_ker, groups))
    return {"enc": enc, "dec": dec, "nt": nt}


def apply_midxnet(p, x):
    # x: (B, H, W, T*C) channels-last, channel index = t*C + c (PyTorch reshape order)
    nt = p["nt"]
    skips = []
    z = x
    for i in range(nt):
        z = apply_inception(p["enc"][i], z)
        if i < nt - 1:
            skips.append(z)
    z = apply_inception(p["dec"][0], z)
    for i in range(1, nt):
        z = apply_inception(p["dec"][i], jnp.concatenate([z, skips[-i]], axis=-1))
    return z


# ---- SimVP ----
def init_simvp(key, shape_in, hid_S=16, hid_T=256, N_S=4, N_T=8,
               incep_ker=(3, 5, 7, 11), groups=8):
    T, C, H, W = shape_in
    k1, k2, k3 = jax.random.split(key, 3)
    return {"enc": init_encoder(k1, C, hid_S, N_S),
            "hid": init_midxnet(k2, T * hid_S, hid_T, N_T, list(incep_ker), groups),
            "dec": init_decoder(k3, hid_S, C, N_S)}


def apply_simvp(params, x_raw):
    # x_raw follows PyTorch convention: (B, T, C, H, W)
    B, T, C, H, W = x_raw.shape
    x = x_raw.reshape(B * T, C, H, W).transpose(0, 2, 3, 1)            # NHWC
    embed, skip = apply_encoder(params["enc"], x)
    _, H_, W_, C_ = embed.shape
    z = (embed.reshape(B, T, H_, W_, C_)
              .transpose(0, 2, 3, 1, 4)
              .reshape(B, H_, W_, T * C_))
    hid = apply_midxnet(params["hid"], z)
    hid = (hid.reshape(B, H_, W_, T, C_)
              .transpose(0, 3, 1, 2, 4)
              .reshape(B * T, H_, W_, C_))
    Y = apply_decoder(params["dec"], hid, skip)                        # (B*T,H,W,C) f32
    return Y.transpose(0, 3, 1, 2).reshape(B, T, C, H, W)


# -----------------------------------------------------------------------------
# Tolerance-asserted self checks against lax.conv references
# -----------------------------------------------------------------------------
def _ref_gn_lrelu(y, gamma, beta, groups, eps=GN_EPS, slope=LRELU_SLOPE):
    N, H, W, C = y.shape
    yg = y.reshape(N, H, W, groups, C // groups)
    mean = jnp.mean(yg, axis=(1, 2, 4), keepdims=True)
    var = jnp.var(yg, axis=(1, 2, 4), keepdims=True)
    yn = ((yg - mean) / jnp.sqrt(var + eps)).reshape(N, H, W, C)
    yn = yn * gamma + beta
    return jnp.where(yn >= 0, yn, slope * yn)


def _self_checks(key):
    ks = jax.random.split(key, 10)
    tol = dict(atol=3e-2, rtol=3e-2)
    dn = ("NHWC", "OIHW", "NHWC")

    # (a) grouped stride-1 conv + fused GroupNorm/LeakyReLU + fused branch add
    N, H, W, Cin, Cout, k, G = 2, 12, 12, 16, 32, 5, 4
    x = jax.random.normal(ks[0], (N, H, W, Cin), jnp.float32)
    w = jax.random.normal(ks[1], (Cout, Cin // G, k, k), jnp.float32) / k
    b = jax.random.normal(ks[2], (Cout,), jnp.float32) * 0.1
    gamma = 1.0 + 0.1 * jax.random.normal(ks[3], (Cout,), jnp.float32)
    beta = 0.1 * jax.random.normal(ks[4], (Cout,), jnp.float32)
    prev = jax.random.normal(ks[5], (N, H, W, Cout), ACT_DTYPE)
    xb = x.astype(ACT_DTYPE).astype(jnp.float32)
    wb = w.astype(ACT_DTYPE).astype(jnp.float32)
    cp = pack_conv(w, b, groups=G)
    gnp = pack_gn(gamma, beta, jnp.arange(Cout) // (Cout // G), G)
    got = fused_conv(x, cp, gn=gnp, add_to=prev, padding=k // 2,
                     out_dtype=jnp.float32)
    conv_ref = jax.lax.conv_general_dilated(
        xb, wb, (1, 1), ((k // 2, k // 2), (k // 2, k // 2)),
        feature_group_count=G, dimension_numbers=dn) + b
    ref = _ref_gn_lrelu(conv_ref, gamma, beta, G) + prev.astype(jnp.float32)
    assert bool(jnp.allclose(got, ref, **tol)), "grouped conv + fused GN mismatch"

    # (b) stride-2 conv via polyphase decomposition
    N, H, W, Cin, Cout = 2, 16, 16, 8, 8
    x = jax.random.normal(ks[6], (N, H, W, Cin), jnp.float32)
    w = jax.random.normal(ks[7], (Cout, Cin, 3, 3), jnp.float32) / 3.0
    b = jnp.zeros((Cout,), jnp.float32)
    xb = x.astype(ACT_DTYPE).astype(jnp.float32)
    wb = w.astype(ACT_DTYPE).astype(jnp.float32)
    cp = pack_conv(polyphase_pack(w), b, groups=1)
    got = fused_conv(space_to_channel(x), cp, padding=0, out_dtype=jnp.float32)
    ref = jax.lax.conv_general_dilated(xb, wb, (2, 2), ((1, 1), (1, 1)),
                                       dimension_numbers=dn)
    assert bool(jnp.allclose(got, ref, **tol)), "polyphase stride-2 conv mismatch"

    # (c) ConvTranspose2d(k=3, s=2, p=1, op=1) via sub-pixel decomposition
    wt = jax.random.normal(ks[8], (Cin, Cout, 3, 3), jnp.float32) / 3.0
    wsub, bsub = subpixel_pack(wt, b)
    cp = pack_conv(wsub, bsub, groups=1)
    xpad = jnp.pad(x.astype(ACT_DTYPE), ((0, 0), (0, 1), (0, 1), (0, 0)))
    got = depth_to_space(fused_conv(xpad, cp, padding=0, out_dtype=jnp.float32),
                         Cout)
    wf = jnp.transpose(wt, (1, 0, 2, 3))[:, :, ::-1, ::-1]       # OIHW, flipped
    wfb = wf.astype(ACT_DTYPE).astype(jnp.float32)
    ref = jax.lax.conv_general_dilated(
        xb, wfb, (1, 1), ((1, 2), (1, 2)), lhs_dilation=(2, 2),
        dimension_numbers=dn)
    assert bool(jnp.allclose(got, ref, **tol)), "sub-pixel ConvTranspose2d mismatch"


# -----------------------------------------------------------------------------
if __name__ == "__main__":
    root = jax.random.PRNGKey(0)
    kcheck, kparam, kx = jax.random.split(root, 3)

    _self_checks(kcheck)

    # Small, forward-consistent SimVP config.
    B, T, C, H, W = 2, 4, 2, 16, 16
    hid_S, hid_T, N_S, N_T = 8, 32, 2, 2
    incep_ker, groups = (3, 5), 4

    params = init_simvp(kparam, (T, C, H, W), hid_S=hid_S, hid_T=hid_T,
                        N_S=N_S, N_T=N_T, incep_ker=incep_ker, groups=groups)
    x_raw = jax.random.normal(kx, (B, T, C, H, W), jnp.float32)

    fwd = jax.jit(lambda xr: apply_simvp(params, xr))
    y = jax.block_until_ready(fwd(x_raw))
    assert y.shape == (B, T, C, H, W), y.shape
    assert bool(jnp.all(jnp.isfinite(y)))
    print("KERNEL_OK")
</pallas_src>

<mosaic_0001>
module attributes {stable_mosaic.version = 11 : i64} {
  func.func @_fused_conv_kernel(%arg0: i32, %arg1: memref<1x272x16xbf16, #tpu.memory_space<vmem>>, %arg2: memref<4x5x20x8xbf16, #tpu.memory_space<vmem>>, %arg3: memref<1x32xf32, #tpu.memory_space<vmem>>, %arg4: memref<32x4xf32, #tpu.memory_space<vmem>>, %arg5: memref<4x32xf32, #tpu.memory_space<vmem>>, %arg6: memref<1x32xf32, #tpu.memory_space<vmem>>, %arg7: memref<1x32xf32, #tpu.memory_space<vmem>>, %arg8: memref<192x1xf32, #tpu.memory_space<vmem>>, %arg9: memref<1x12x12x32xbf16, #tpu.memory_space<vmem>>, %arg10: memref<1x12x12x32xf32, #tpu.memory_space<vmem>>) attributes {dimension_semantics = [#tpu.dimension_semantics<parallel>], iteration_bounds = array<i64: 2>, scalar_prefetch = 0 : i64, scratch_operands = 0 : i64, tpu.core_type = #tpu.core_type<tc>, window_params = [{transform_indices = @transform_0, window_bounds = array<i64: 1, 272, 16>}, {pipeline_mode = #tpu.pipeline_mode<synchronous>, transform_indices = @transform_1, window_bounds = array<i64: 4, 5, 20, 8>}, {pipeline_mode = #tpu.pipeline_mode<synchronous>, transform_indices = @transform_2, window_bounds = array<i64: 1, 32>}, {pipeline_mode = #tpu.pipeline_mode<synchronous>, transform_indices = @transform_3, window_bounds = array<i64: 32, 4>}, {pipeline_mode = #tpu.pipeline_mode<synchronous>, transform_indices = @transform_4, window_bounds = array<i64: 4, 32>}, {pipeline_mode = #tpu.pipeline_mode<synchronous>, transform_indices = @transform_5, window_bounds = array<i64: 1, 32>}, {pipeline_mode = #tpu.pipeline_mode<synchronous>, transform_indices = @transform_6, window_bounds = array<i64: 1, 32>}, {pipeline_mode = #tpu.pipeline_mode<synchronous>, transform_indices = @transform_7, window_bounds = array<i64: 192, 1>}, {transform_indices = @transform_8, window_bounds = array<i64: 1, 12, 12, 32>}, {transform_indices = @transform_9, window_bounds = array<i64: 1, 12, 12, 32>}]} {
    %c0 = arith.constant 0 : index
    %c0_0 = arith.constant 0 : index
    %c0_1 = arith.constant 0 : index
    %0 = vector.load %arg1[%c0, %c0_0, %c0_1] : memref<1x272x16xbf16, #tpu.memory_space<vmem>>, vector<1x192x4xbf16>
    %1 = vector.shape_cast %0 : vector<1x192x4xbf16> to vector<192x4xbf16>
    %c0_2 = arith.constant 0 : index
    %c1 = arith.constant 1 : index
    %c0_3 = arith.constant 0 : index
    %2 = vector.load %arg1[%c0_2, %c1, %c0_3] : memref<1x272x16xbf16, #tpu.memory_space<vmem>>, vector<1x192x4xbf16>
    %3 = vector.shape_cast %2 : vector<1x192x4xbf16> to vector<192x4xbf16>
    %c0_4 = arith.constant 0 : index
    %c2 = arith.constant 2 : index
    %c0_5 = arith.constant 0 : index
    %4 = vector.load %arg1[%c0_4, %c2, %c0_5] : memref<1x272x16xbf16, #tpu.memory_space<vmem>>, vector<1x192x4xbf16>
    %5 = vector.shape_cast %4 : vector<1x192x4xbf16> to vector<192x4xbf16>
    %c0_6 = arith.constant 0 : index
    %c3 = arith.constant 3 : index
    %c0_7 = arith.constant 0 : index
    %6 = vector.load %arg1[%c0_6, %c3, %c0_7] : memref<1x272x16xbf16, #tpu.memory_space<vmem>>, vector<1x192x4xbf16>
    %7 = vector.shape_cast %6 : vector<1x192x4xbf16> to vector<192x4xbf16>
    %c0_8 = arith.constant 0 : index
    %c4 = arith.constant 4 : index
    %c0_9 = arith.constant 0 : index
    %8 = vector.load %arg1[%c0_8, %c4, %c0_9] : memref<1x272x16xbf16, #tpu.memory_space<vmem>>, vector<1x192x4xbf16>
    %9 = vector.shape_cast %8 : vector<1x192x4xbf16> to vector<192x4xbf16>
    %10 = tpu.concatenate %1, %3, %5, %7, %9 in 1 : vector<192x4xbf16>, vector<192x4xbf16>, vector<192x4xbf16>, vector<192x4xbf16>, vector<192x4xbf16> -> vector<192x20xbf16>
    %c0_10 = arith.constant 0 : index
    %c0_11 = arith.constant 0 : index
    %c0_12 = arith.constant 0 : index
    %c0_13 = arith.constant 0 : index
    %11 = vector.load %arg2[%c0_10, %c0_11, %c0_12, %c0_13] : memref<4x5x20x8xbf16, #tpu.memory_space<vmem>>, vector<1x1x20x8xbf16>
    %12 = vector.shape_cast %11 : vector<1x1x20x8xbf16> to vector<20x8xbf16>
    %cst = arith.constant dense<0.000000e+00> : vector<192x8xf32>
    %13 = tpu.matmul %10, %12, %cst {dimension_numbers = #tpu.dot_dimension_numbers<[1], [0], [0], [1], [0, 0, 1, 1], [], []>} : vector<192x20xbf16>, vector<20x8xbf16>, vector<192x8xf32> -> vector<192x8xf32>
    %c0_14 = arith.constant 0 : index
    %c16 = arith.constant 16 : index
    %c0_15 = arith.constant 0 : index
    %14 = vector.load %arg1[%c0_14, %c16, %c0_15] : memref<1x272x16xbf16, #tpu.memory_space<vmem>>, vector<1x192x4xbf16>
    %15 = vector.shape_cast %14 : vector<1x192x4xbf16> to vector<192x4xbf16>
    %c0_16 = arith.constant 0 : index
    %c17 = arith.constant 17 : index
    %c0_17 = arith.constant 0 : index
    %16 = vector.load %arg1[%c0_16, %c17, %c0_17] : memref<1x272x16xbf16, #tpu.memory_space<vmem>>, vector<1x192x4xbf16>
    %17 = vector.shape_cast %16 : vector<1x192x4xbf16> to vector<192x4xbf16>
    %c0_18 = arith.constant 0 : index
    %c18 = arith.constant 18 : index
    %c0_19 = arith.constant 0 : index
    %18 = vector.load %arg1[%c0_18, %c18, %c0_19] : memref<1x272x16xbf16, #tpu.memory_space<vmem>>, vector<1x192x4xbf16>
    %19 = vector.shape_cast %18 : vector<1x192x4xbf16> to vector<192x4xbf16>
    %c0_20 = arith.constant 0 : index
    %c19 = arith.constant 19 : index
    %c0_21 = arith.constant 0 : index
    %20 = vector.load %arg1[%c0_20, %c19, %c0_21] : memref<1x272x16xbf16, #tpu.memory_space<vmem>>, vector<1x192x4xbf16>
    %21 = vector.shape_cast %20 : vector<1x192x4xbf16> to vector<192x4xbf16>
    %c0_22 = arith.constant 0 : index
    %c20 = arith.constant 20 : index
    %c0_23 = arith.constant 0 : index
    %22 = vector.load %arg1[%c0_22, %c20, %c0_23] : memref<1x272x16xbf16, #tpu.memory_space<vmem>>, vector<1x192x4xbf16>
    %23 = vector.shape_cast %22 : vector<1x192x4xbf16> to vector<192x4xbf16>
    %24 = tpu.concatenate %15, %17, %19, %21, %23 in 1 : vector<192x4xbf16>, vector<192x4xbf16>, vector<192x4xbf16>, vector<192x4xbf16>, vector<192x4xbf16> -> vector<192x20xbf16>
    %c0_24 = arith.constant 0 : index
    %c1_25 = arith.constant 1 : index
    %c0_26 = arith.constant 0 : index
    %c0_27 = arith.constant 0 : index
    %25 = vector.load %arg2[%c0_24, %c1_25, %c0_26, %c0_27] : memref<4x5x20x8xbf16, #tpu.memory_space<vmem>>, vector<1x1x20x8xbf16>
    %26 = vector.shape_cast %25 : vector<1x1x20x8xbf16> to vector<20x8xbf16>
    %cst_28 = arith.constant dense<0.000000e+00> : vector<192x8xf32>
    %27 = tpu.matmul %24, %26, %cst_28 {dimension_numbers = #tpu.dot_dimension_numbers<[1], [0], [0], [1], [0, 0, 1, 1], [], []>} : vector<192x20xbf16>, vector<20x8xbf16>, vector<192x8xf32> -> vector<192x8xf32>
    %28 = arith.addf %13, %27 : vector<192x8xf32>
    %c0_29 = arith.constant 0 : index
    %c32 = arith.constant 32 : index
    %c0_30 = arith.constant 0 : index
    %29 = vector.load %arg1[%c0_29, %c32, %c0_30] : memref<1x272x16xbf16, #tpu.memory_space<vmem>>, vector<1x192x4xbf16>
    %30 = vector.shape_cast %29 : vector<1x192x4xbf16> to vector<192x4xbf16>
    %c0_31 = arith.constant 0 : index
    %c33 = arith.constant 33 : index
    %c0_32 = arith.constant 0 : index
    %31 = vector.load %arg1[%c0_31, %c33, %c0_32] : memref<1x272x16xbf16, #tpu.memory_space<vmem>>, vector<1x192x4xbf16>
    %32 = vector.shape_cast %31 : vector<1x192x4xbf16> to vector<192x4xbf16>
    %c0_33 = arith.constant 0 : index
    %c34 = arith.constant 34 : index
    %c0_34 = arith.constant 0 : index
    %33 = vector.load %arg1[%c0_33, %c34, %c0_34] : memref<1x272x16xbf16, #tpu.memory_space<vmem>>, vector<1x192x4xbf16>
    %34 = vector.shape_cast %33 : vector<1x192x4xbf16> to vector<192x4xbf16>
    %c0_35 = arith.constant 0 : index
    %c35 = arith.constant 35 : index
    %c0_36 = arith.constant 0 : index
    %35 = vector.load %arg1[%c0_35, %c35, %c0_36] : memref<1x272x16xbf16, #tpu.memory_space<vmem>>, vector<1x192x4xbf16>
    %36 = vector.shape_cast %35 : vector<1x192x4xbf16> to vector<192x4xbf16>
    %c0_37 = arith.constant 0 : index
    %c36 = arith.constant 36 : index
    %c0_38 = arith.constant 0 : index
    %37 = vector.load %arg1[%c0_37, %c36, %c0_38] : memref<1x272x16xbf16, #tpu.memory_space<vmem>>, vector<1x192x4xbf16>
    %38 = vector.shape_cast %37 : vector<1x192x4xbf16> to vector<192x4xbf16>
    %39 = tpu.concatenate %30, %32, %34, %36, %38 in 1 : vector<192x4xbf16>, vector<192x4xbf16>, vector<192x4xbf16>, vector<192x4xbf16>, vector<192x4xbf16> -> vector<192x20xbf16>
    %c0_39 = arith.constant 0 : index
    %c2_40 = arith.constant 2 : index
    %c0_41 = arith.constant 0 : index
    %c0_42 = arith.constant 0 : index
    %40 = vector.load %arg2[%c0_39, %c2_40, %c0_41, %c0_42] : memref<4x5x20x8xbf16, #tpu.memory_space<vmem>>, vector<1x1x20x8xbf16>
    %41 = vector.shape_cast %40 : vector<1x1x20x8xbf16> to vector<20x8xbf16>
    %cst_43 = arith.constant dense<0.000000e+00> : vector<192x8xf32>
    %42 = tpu.matmul %39, %41, %cst_43 {dimension_numbers = #tpu.dot_dimension_numbers<[1], [0], [0], [1], [0, 0, 1, 1], [], []>} : vector<192x20xbf16>, vector<20x8xbf16>, vector<192x8xf32> -> vector<192x8xf32>
    %43 = arith.addf %28, %42 : vector<192x8xf32>
    %c0_44 = arith.constant 0 : index
    %c48 = arith.constant 48 : index
    %c0_45 = arith.constant 0 : index
    %44 = vector.load %arg1[%c0_44, %c48, %c0_45] : memref<1x272x16xbf16, #tpu.memory_space<vmem>>, vector<1x192x4xbf16>
    %45 = vector.shape_cast %44 : vector<1x192x4xbf16> to vector<192x4xbf16>
    %c0_46 = arith.constant 0 : index
    %c49 = arith.constant 49 : index
    %c0_47 = arith.constant 0 : index
    %46 = vector.load %arg1[%c0_46, %c49, %c0_47] : memref<1x272x16xbf16, #tpu.memory_space<vmem>>, vector<1x192x4xbf16>
    %47 = vector.shape_cast %46 : vector<1x192x4xbf16> to vector<192x4xbf16>
    %c0_48 = arith.constant 0 : index
    %c50 = arith.constant 50 : index
    %c0_49 = arith.constant 0 : index
    %48 = vector.load %arg1[%c0_48, %c50, %c0_49] : memref<1x272x16xbf16, #tpu.memory_space<vmem>>, vector<1x192x4xbf16>
    %49 = vector.shape_cast %48 : vector<1x192x4xbf16> to vector<192x4xbf16>
    %c0_50 = arith.constant 0 : index
    %c51 = arith.constant 51 : index
    %c0_51 = arith.constant 0 : index
    %50 = vector.load %arg1[%c0_50, %c51, %c0_51] : memref<1x272x16xbf16, #tpu.memory_space<vmem>>, vector<1x192x4xbf16>
    %51 = vector.shape_cast %50 : vector<1x192x4xbf16> to vector<192x4xbf16>
    %c0_52 = arith.constant 0 : index
    %c52 = arith.constant 52 : index
    %c0_53 = arith.constant 0 : index
    %52 = vector.load %arg1[%c0_52, %c52, %c0_53] : memref<1x272x16xbf16, #tpu.memory_space<vmem>>, vector<1x192x4xbf16>
    %53 = vector.shape_cast %52 : vector<1x192x4xbf16> to vector<192x4xbf16>
    %54 = tpu.concatenate %45, %47, %49, %51, %53 in 1 : vector<192x4xbf16>, vector<192x4xbf16>, vector<192x4xbf16>, vector<192x4xbf16>, vector<192x4xbf16> -> vector<192x20xbf16>
    %c0_54 = arith.constant 0 : index
    %c3_55 = arith.constant 3 : index
    %c0_56 = arith.constant 0 : index
    %c0_57 = arith.constant 0 : index
    %55 = vector.load %arg2[%c0_54, %c3_55, %c0_56, %c0_57] : memref<4x5x20x8xbf16, #tpu.memory_space<vmem>>, vector<1x1x20x8xbf16>
    %56 = vector.shape_cast %55 : vector<1x1x20x8xbf16> to vector<20x8xbf16>
    %cst_58 = arith.constant dense<0.000000e+00> : vector<192x8xf32>
    %57 = tpu.matmul %54, %56, %cst_58 {dimension_numbers = #tpu.dot_dimension_numbers<[1], [0], [0], [1], [0, 0, 1, 1], [], []>} : vector<192x20xbf16>, vector<20x8xbf16>, vector<192x8xf32> -> vector<192x8xf32>
    %58 = arith.addf %43, %57 : vector<192x8xf32>
    %c0_59 = arith.constant 0 : index
    %c64 = arith.constant 64 : index
    %c0_60 = arith.constant 0 : index
    %59 = vector.load %arg1[%c0_59, %c64, %c0_60] : memref<1x272x16xbf16, #tpu.memory_space<vmem>>, vector<1x192x4xbf16>
    %60 = vector.shape_cast %59 : vector<1x192x4xbf16> to vector<192x4xbf16>
    %c0_61 = arith.constant 0 : index
    %c65 = arith.constant 65 : index
    %c0_62 = arith.constant 0 : index
    %61 = vector.load %arg1[%c0_61, %c65, %c0_62] : memref<1x272x16xbf16, #tpu.memory_space<vmem>>, vector<1x192x4xbf16>
    %62 = vector.shape_cast %61 : vector<1x192x4xbf16> to vector<192x4xbf16>
    %c0_63 = arith.constant 0 : index
    %c66 = arith.constant 66 : index
    %c0_64 = arith.constant 0 : index
    %63 = vector.load %arg1[%c0_63, %c66, %c0_64] : memref<1x272x16xbf16, #tpu.memory_space<vmem>>, vector<1x192x4xbf16>
    %64 = vector.shape_cast %63 : vector<1x192x4xbf16> to vector<192x4xbf16>
    %c0_65 = arith.constant 0 : index
    %c67 = arith.constant 67 : index
    %c0_66 = arith.constant 0 : index
    %65 = vector.load %arg1[%c0_65, %c67, %c0_66] : memref<1x272x16xbf16, #tpu.memory_space<vmem>>, vector<1x192x4xbf16>
    %66 = vector.shape_cast %65 : vector<1x192x4xbf16> to vector<192x4xbf16>
    %c0_67 = arith.constant 0 : index
    %c68 = arith.constant 68 : index
    %c0_68 = arith.constant 0 : index
    %67 = vector.load %arg1[%c0_67, %c68, %c0_68] : memref<1x272x16xbf16, #tpu.memory_space<vmem>>, vector<1x192x4xbf16>
    %68 = vector.shape_cast %67 : vector<1x192x4xbf16> to vector<192x4xbf16>
    %69 = tpu.concatenate %60, %62, %64, %66, %68 in 1 : vector<192x4xbf16>, vector<192x4xbf16>, vector<192x4xbf16>, vector<192x4xbf16>, vector<192x4xbf16> -> vector<192x20xbf16>
    %c0_69 = arith.constant 0 : index
    %c4_70 = arith.constant 4 : index
    %c0_71 = arith.constant 0 : index
    %c0_72 = arith.constant 0 : index
    %70 = vector.load %arg2[%c0_69, %c4_70, %c0_71, %c0_72] : memref<4x5x20x8xbf16, #tpu.memory_space<vmem>>, vector<1x1x20x8xbf16>
    %71 = vector.shape_cast %70 : vector<1x1x20x8xbf16> to vector<20x8xbf16>
    %cst_73 = arith.constant dense<0.000000e+00> : vector<192x8xf32>
    %72 = tpu.matmul %69, %71, %cst_73 {dimension_numbers = #tpu.dot_dimension_numbers<[1], [0], [0], [1], [0, 0, 1, 1], [], []>} : vector<192x20xbf16>, vector<20x8xbf16>, vector<192x8xf32> -> vector<192x8xf32>
    %73 = arith.addf %58, %72 : vector<192x8xf32>
    %c0_74 = arith.constant 0 : index
    %c0_75 = arith.constant 0 : index
    %c4_76 = arith.constant 4 : index
    %74 = vector.load %arg1[%c0_74, %c0_75, %c4_76] : memref<1x272x16xbf16, #tpu.memory_space<vmem>>, vector<1x192x4xbf16>
    %75 = vector.shape_cast %74 : vector<1x192x4xbf16> to vector<192x4xbf16>
    %c0_77 = arith.constant 0 : index
    %c1_78 = arith.constant 1 : index
    %c4_79 = arith.constant 4 : index
    %76 = vector.load %arg1[%c0_77, %c1_78, %c4_79] : memref<1x272x16xbf16, #tpu.memory_space<vmem>>, vector<1x192x4xbf16>
    %77 = vector.shape_cast %76 : vector<1x192x4xbf16> to vector<192x4xbf16>
    %c0_80 = arith.constant 0 : index
    %c2_81 = arith.constant 2 : index
    %c4_82 = arith.constant 4 : index
    %78 = vector.load %arg1[%c0_80, %c2_81, %c4_82] : memref<1x272x16xbf16, #tpu.memory_space<vmem>>, vector<1x192x4xbf16>
    %79 = vector.shape_cast %78 : vector<1x192x4xbf16> to vector<192x4xbf16>
    %c0_83 = arith.constant 0 : index
    %c3_84 = arith.constant 3 : index
    %c4_85 = arith.constant 4 : index
    %80 = vector.load %arg1[%c0_83, %c3_84, %c4_85] : memref<1x272x16xbf16, #tpu.memory_space<vmem>>, vector<1x192x4xbf16>
    %81 = vector.shape_cast %80 : vector<1x192x4xbf16> to vector<192x4xbf16>
    %c0_86 = arith.constant 0 : index
    %c4_87 = arith.constant 4 : index
    %c4_88 = arith.constant 4 : index
    %82 = vector.load %arg1[%c0_86, %c4_87, %c4_88] : memref<1x272x16xbf16, #tpu.memory_space<vmem>>, vector<1x192x4xbf16>
    %83 = vector.shape_cast %82 : vector<1x192x4xbf16> to vector<192x4xbf16>
    %84 = tpu.concatenate %75, %77, %79, %81, %83 in 1 : vector<192x4xbf16>, vector<192x4xbf16>, vector<192x4xbf16>, vector<192x4xbf16>, vector<192x4xbf16> -> vector<192x20xbf16>
    %c1_89 = arith.constant 1 : index
    %c0_90 = arith.constant 0 : index
    %c0_91 = arith.constant 0 : index
    %c0_92 = arith.constant 0 : index
    %85 = vector.load %arg2[%c1_89, %c0_90, %c0_91, %c0_92] : memref<4x5x20x8xbf16, #tpu.memory_space<vmem>>, vector<1x1x20x8xbf16>
    %86 = vector.shape_cast %85 : vector<1x1x20x8xbf16> to vector<20x8xbf16>
    %cst_93 = arith.constant dense<0.000000e+00> : vector<192x8xf32>
    %87 = tpu.matmul %84, %86, %cst_93 {dimension_numbers = #tpu.dot_dimension_numbers<[1], [0], [0], [1], [0, 0, 1, 1], [], []>} : vector<192x20xbf16>, vector<20x8xbf16>, vector<192x8xf32> -> vector<192x8xf32>
    %c0_94 = arith.constant 0 : index
    %c16_95 = arith.constant 16 : index
    %c4_96 = arith.constant 4 : index
    %88 = vector.load %arg1[%c0_94, %c16_95, %c4_96] : memref<1x272x16xbf16, #tpu.memory_space<vmem>>, vector<1x192x4xbf16>
    %89 = vector.shape_cast %88 : vector<1x192x4xbf16> to vector<192x4xbf16>
    %c0_97 = arith.constant 0 : index
    %c17_98 = arith.constant 17 : index
    %c4_99 = arith.constant 4 : index
    %90 = vector.load %arg1[%c0_97, %c17_98, %c4_99] : memref<1x272x16xbf16, #tpu.memory_space<vmem>>, vector<1x192x4xbf16>
    %91 = vector.shape_cast %90 : vector<1x192x4xbf16> to vector<192x4xbf16>
    %c0_100 = arith.constant 0 : index
    %c18_101 = arith.constant 18 : index
    %c4_102 = arith.constant 4 : index
    %92 = vector.load %arg1[%c0_100, %c18_101, %c4_102] : memref<1x272x16xbf16, #tpu.memory_space<vmem>>, vector<1x192x4xbf16>
    %93 = vector.shape_cast %92 : vector<1x192x4xbf16> to vector<192x4xbf16>
    %c0_103 = arith.constant 0 : index
    %c19_104 = arith.constant 19 : index
    %c4_105 = arith.constant 4 : index
    %94 = vector.load %arg1[%c0_103, %c19_104, %c4_105] : memref<1x272x16xbf16, #tpu.memory_space<vmem>>, vector<1x192x4xbf16>
    %95 = vector.shape_cast %94 : vector<1x192x4xbf16> to vector<192x4xbf16>
    %c0_106 = arith.constant 0 : index
    %c20_107 = arith.constant 20 : index
    %c4_108 = arith.constant 4 : index
    %96 = vector.load %arg1[%c0_106, %c20_107, %c4_108] : memref<1x272x16xbf16, #tpu.memory_space<vmem>>, vector<1x192x4xbf16>
    %97 = vector.shape_cast %96 : vector<1x192x4xbf16> to vector<192x4xbf16>
    %98 = tpu.concatenate %89, %91, %93, %95, %97 in 1 : vector<192x4xbf16>, vector<192x4xbf16>, vector<192x4xbf16>, vector<192x4xbf16>, vector<192x4xbf16> -> vector<192x20xbf16>
    %c1_109 = arith.constant 1 : index
    %c1_110 = arith.constant 1 : index
    %c0_111 = arith.constant 0 : index
    %c0_112 = arith.constant 0 : index
    %99 = vector.load %arg2[%c1_109, %c1_110, %c0_111, %c0_112] : memref<4x5x20x8xbf16, #tpu.memory_space<vmem>>, vector<1x1x20x8xbf16>
    %100 = vector.shape_cast %99 : vector<1x1x20x8xbf16> to vector<20x8xbf16>
    %cst_113 = arith.constant dense<0.000000e+00> : vector<192x8xf32>
    %101 = tpu.matmul %98, %100, %cst_113 {dimension_numbers = #tpu.dot_dimension_numbers<[1], [0], [0], [1], [0, 0, 1, 1], [], []>} : vector<192x20xbf16>, vector<20x8xbf16>, vector<192x8xf32> -> vector<192x8xf32>
    %102 = arith.addf %87, %101 : vector<192x8xf32>
    %c0_114 = arith.constant 0 : index
    %c32_115 = arith.constant 32 : index
    %c4_116 = arith.constant 4 : index
    %103 = vector.load %arg1[%c0_114, %c32_115, %c4_116] : memref<1x272x16xbf16, #tpu.memory_space<vmem>>, vector<1x192x4xbf16>
    %104 = vector.shape_cast %103 : vector<1x192x4xbf16> to vector<192x4xbf16>
    %c0_117 = arith.constant 0 : index
    %c33_118 = arith.constant 33 : index
    %c4_119 = arith.constant 4 : index
    %105 = vector.load %arg1[%c0_117, %c33_118, %c4_119] : memref<1x272x16xbf16, #tpu.memory_space<vmem>>, vector<1x192x4xbf16>
    %106 = vector.shape_cast %105 : vector<1x192x4xbf16> to vector<192x4xbf16>
    %c0_120 = arith.constant 0 : index
    %c34_121 = arith.constant 34 : index
    %c4_122 = arith.constant 4 : index
    %107 = vector.load %arg1[%c0_120, %c34_121, %c4_122] : memref<1x272x16xbf16, #tpu.memory_space<vmem>>, vector<1x192x4xbf16>
    %108 = vector.shape_cast %107 : vector<1x192x4xbf16> to vector<192x4xbf16>
    %c0_123 = arith.constant 0 : index
    %c35_124 = arith.constant 35 : index
    %c4_125 = arith.constant 4 : index
    %109 = vector.load %arg1[%c0_123, %c35_124, %c4_125] : memref<1x272x16xbf16, #tpu.memory_space<vmem>>, vector<1x192x4xbf16>
    %110 = vector.shape_cast %109 : vector<1x192x4xbf16> to vector<192x4xbf16>
    %c0_126 = arith.constant 0 : index
    %c36_127 = arith.constant 36 : index
    %c4_128 = arith.constant 4 : index
    %111 = vector.load %arg1[%c0_126, %c36_127, %c4_128] : memref<1x272x16xbf16, #tpu.memory_space<vmem>>, vector<1x192x4xbf16>
    %112 = vector.shape_cast %111 : vector<1x192x4xbf16> to vector<192x4xbf16>
    %113 = tpu.concatenate %104, %106, %108, %110, %112 in 1 : vector<192x4xbf16>, vector<192x4xbf16>, vector<192x4xbf16>, vector<192x4xbf16>, vector<192x4xbf16> -> vector<192x20xbf16>
    %c1_129 = arith.constant 1 : index
    %c2_130 = arith.constant 2 : index
    %c0_131 = arith.constant 0 : index
    %c0_132 = arith.constant 0 : index
    %114 = vector.load %arg2[%c1_129, %c2_130, %c0_131, %c0_132] : memref<4x5x20x8xbf16, #tpu.memory_space<vmem>>, vector<1x1x20x8xbf16>
    %115 = vector.shape_cast %114 : vector<1x1x20x8xbf16> to vector<20x8xbf16>
    %cst_133 = arith.constant dense<0.000000e+00> : vector<192x8xf32>
    %116 = tpu.matmul %113, %115, %cst_133 {dimension_numbers = #tpu.dot_dimension_numbers<[1], [0], [0], [1], [0, 0, 1, 1], [], []>} : vector<192x20xbf16>, vector<20x8xbf16>, vector<192x8xf32> -> vector<192x8xf32>
    %117 = arith.addf %102, %116 : vector<192x8xf32>
    %c0_134 = arith.constant 0 : index
    %c48_135 = arith.constant 48 : index
    %c4_136 = arith.constant 4 : index
    %118 = vector.load %arg1[%c0_134, %c48_135, %c4_136] : memref<1x272x16xbf16, #tpu.memory_space<vmem>>, vector<1x192x4xbf16>
    %119 = vector.shape_cast %118 : vector<1x192x4xbf16> to vector<192x4xbf16>
    %c0_137 = arith.constant 0 : index
    %c49_138 = arith.constant 49 : index
    %c4_139 = arith.constant 4 : index
    %120 = vector.load %arg1[%c0_137, %c49_138, %c4_139] : memref<1x272x16xbf16, #tpu.memory_space<vmem>>, vector<1x192x4xbf16>
    %121 = vector.shape_cast %120 : vector<1x192x4xbf16> to vector<192x4xbf16>
    %c0_140 = arith.constant 0 : index
    %c50_141 = arith.constant 50 : index
    %c4_142 = arith.constant 4 : index
    %122 = vector.load %arg1[%c0_140, %c50_141, %c4_142] : memref<1x272x16xbf16, #tpu.memory_space<vmem>>, vector<1x192x4xbf16>
    %123 = vector.shape_cast %122 : vector<1x192x4xbf16> to vector<192x4xbf16>
    %c0_143 = arith.constant 0 : index
    %c51_144 = arith.constant 51 : index
    %c4_145 = arith.constant 4 : index
    %124 = vector.load %arg1[%c0_143, %c51_144, %c4_145] : memref<1x272x16xbf16, #tpu.memory_space<vmem>>, vector<1x192x4xbf16>
    %125 = vector.shape_cast %124 : vector<1x192x4xbf16> to vector<192x4xbf16>
    %c0_146 = arith.constant 0 : index
    %c52_147 = arith.constant 52 : index
    %c4_148 = arith.constant 4 : index
    %126 = vector.load %arg1[%c0_146, %c52_147, %c4_148] : memref<1x272x16xbf16, #tpu.memory_space<vmem>>, vector<1x192x4xbf16>
    %127 = vector.shape_cast %126 : vector<1x192x4xbf16> to vector<192x4xbf16>
    %128 = tpu.concatenate %119, %121, %123, %125, %127 in 1 : vector<192x4xbf16>, vector<192x4xbf16>, vector<192x4xbf16>, vector<192x4xbf16>, vector<192x4xbf16> -> vector<192x20xbf16>
    %c1_149 = arith.constant 1 : index
    %c3_150 = arith.constant 3 : index
    %c0_151 = arith.constant 0 : index
    %c0_152 = arith.constant 0 : index
    %129 = vector.load %arg2[%c1_149, %c3_150, %c0_151, %c0_152] : memref<4x5x20x8xbf16, #tpu.memory_space<vmem>>, vector<1x1x20x8xbf16>
    %130 = vector.shape_cast %129 : vector<1x1x20x8xbf16> to vector<20x8xbf16>
    %cst_153 = arith.constant dense<0.000000e+00> : vector<192x8xf32>
    %131 = tpu.matmul %128, %130, %cst_153 {dimension_numbers = #tpu.dot_dimension_numbers<[1], [0], [0], [1], [0, 0, 1, 1], [], []>} : vector<192x20xbf16>, vector<20x8xbf16>, vector<192x8xf32> -> vector<192x8xf32>
    %132 = arith.addf %117, %131 : vector<192x8xf32>
    %c0_154 = arith.constant 0 : index
    %c64_155 = arith.constant 64 : index
    %c4_156 = arith.constant 4 : index
    %133 = vector.load %arg1[%c0_154, %c64_155, %c4_156] : memref<1x272x16xbf16, #tpu.memory_space<vmem>>, vector<1x192x4xbf16>
    %134 = vector.shape_cast %133 : vector<1x192x4xbf16> to vector<192x4xbf16>
    %c0_157 = arith.constant 0 : index
    %c65_158 = arith.constant 65 : index
    %c4_159 = arith.constant 4 : index
    %135 = vector.load %arg1[%c0_157, %c65_158, %c4_159] : memref<1x272x16xbf16, #tpu.memory_space<vmem>>, vector<1x192x4xbf16>
    %136 = vector.shape_cast %135 : vector<1x192x4xbf16> to vector<192x4xbf16>
    %c0_160 = arith.constant 0 : index
    %c66_161 = arith.constant 66 : index
    %c4_162 = arith.constant 4 : index
    %137 = vector.load %arg1[%c0_160, %c66_161, %c4_162] : memref<1x272x16xbf16, #tpu.memory_space<vmem>>, vector<1x192x4xbf16>
    %138 = vector.shape_cast %137 : vector<1x192x4xbf16> to vector<192x4xbf16>
    %c0_163 = arith.constant 0 : index
    %c67_164 = arith.constant 67 : index
    %c4_165 = arith.constant 4 : index
    %139 = vector.load %arg1[%c0_163, %c67_164, %c4_165] : memref<1x272x16xbf16, #tpu.memory_space<vmem>>, vector<1x192x4xbf16>
    %140 = vector.shape_cast %139 : vector<1x192x4xbf16> to vector<192x4xbf16>
    %c0_166 = arith.constant 0 : index
    %c68_167 = arith.constant 68 : index
    %c4_168 = arith.constant 4 : index
    %141 = vector.load %arg1[%c0_166, %c68_167, %c4_168] : memref<1x272x16xbf16, #tpu.memory_space<vmem>>, vector<1x192x4xbf16>
    %142 = vector.shape_cast %141 : vector<1x192x4xbf16> to vector<192x4xbf16>
    %143 = tpu.concatenate %134, %136, %138, %140, %142 in 1 : vector<192x4xbf16>, vector<192x4xbf16>, vector<192x4xbf16>, vector<192x4xbf16>, vector<192x4xbf16> -> vector<192x20xbf16>
    %c1_169 = arith.constant 1 : index
    %c4_170 = arith.constant 4 : index
    %c0_171 = arith.constant 0 : index
    %c0_172 = arith.constant 0 : index
    %144 = vector.load %arg2[%c1_169, %c4_170, %c0_171, %c0_172] : memref<4x5x20x8xbf16, #tpu.memory_space<vmem>>, vector<1x1x20x8xbf16>
    %145 = vector.shape_cast %144 : vector<1x1x20x8xbf16> to vector<20x8xbf16>
    %cst_173 = arith.constant dense<0.000000e+00> : vector<192x8xf32>
    %146 = tpu.matmul %143, %145, %cst_173 {dimension_numbers = #tpu.dot_dimension_numbers<[1], [0], [0], [1], [0, 0, 1, 1], [], []>} : vector<192x20xbf16>, vector<20x8xbf16>, vector<192x8xf32> -> vector<192x8xf32>
    %147 = arith.addf %132, %146 : vector<192x8xf32>
    %c0_174 = arith.constant 0 : index
    %c0_175 = arith.constant 0 : index
    %c8 = arith.constant 8 : index
    %148 = vector.load %arg1[%c0_174, %c0_175, %c8] : memref<1x272x16xbf16, #tpu.memory_space<vmem>>, vector<1x192x4xbf16>
    %149 = vector.shape_cast %148 : vector<1x192x4xbf16> to vector<192x4xbf16>
    %c0_176 = arith.constant 0 : index
    %c1_177 = arith.constant 1 : index
    %c8_178 = arith.constant 8 : index
    %150 = vector.load %arg1[%c0_176, %c1_177, %c8_178] : memref<1x272x16xbf16, #tpu.memory_space<vmem>>, vector<1x192x4xbf16>
    %151 = vector.shape_cast %150 : vector<1x192x4xbf16> to vector<192x4xbf16>
    %c0_179 = arith.constant 0 : index
    %c2_180 = arith.constant 2 : index
    %c8_181 = arith.constant 8 : index
    %152 = vector.load %arg1[%c0_179, %c2_180, %c8_181] : memref<1x272x16xbf16, #tpu.memory_space<vmem>>, vector<1x192x4xbf16>
    %153 = vector.shape_cast %152 : vector<1x192x4xbf16> to vector<192x4xbf16>
    %c0_182 = arith.constant 0 : index
    %c3_183 = arith.constant 3 : index
    %c8_184 = arith.constant 8 : index
    %154 = vector.load %arg1[%c0_182, %c3_183, %c8_184] : memref<1x272x16xbf16, #tpu.memory_space<vmem>>, vector<1x192x4xbf16>
    %155 = vector.shape_cast %154 : vector<1x192x4xbf16> to vector<192x4xbf16>
    %c0_185 = arith.constant 0 : index
    %c4_186 = arith.constant 4 : index
    %c8_187 = arith.constant 8 : index
    %156 = vector.load %arg1[%c0_185, %c4_186, %c8_187] : memref<1x272x16xbf16, #tpu.memory_space<vmem>>, vector<1x192x4xbf16>
    %157 = vector.shape_cast %156 : vector<1x192x4xbf16> to vector<192x4xbf16>
    %158 = tpu.concatenate %149, %151, %153, %155, %157 in 1 : vector<192x4xbf16>, vector<192x4xbf16>, vector<192x4xbf16>, vector<192x4xbf16>, vector<192x4xbf16> -> vector<192x20xbf16>
    %c2_188 = arith.constant 2 : index
    %c0_189 = arith.constant 0 : index
    %c0_190 = arith.constant 0 : index
    %c0_191 = arith.constant 0 : index
    %159 = vector.load %arg2[%c2_188, %c0_189, %c0_190, %c0_191] : memref<4x5x20x8xbf16, #tpu.memory_space<vmem>>, vector<1x1x20x8xbf16>
    %160 = vector.shape_cast %159 : vector<1x1x20x8xbf16> to vector<20x8xbf16>
    %cst_192 = arith.constant dense<0.000000e+00> : vector<192x8xf32>
    %161 = tpu.matmul %158, %160, %cst_192 {dimension_numbers = #tpu.dot_dimension_numbers<[1], [0], [0], [1], [0, 0, 1, 1], [], []>} : vector<192x20xbf16>, vector<20x8xbf16>, vector<192x8xf32> -> vector<192x8xf32>
    %c0_193 = arith.constant 0 : index
    %c16_194 = arith.constant 16 : index
    %c8_195 = arith.constant 8 : index
    %162 = vector.load %arg1[%c0_193, %c16_194, %c8_195] : memref<1x272x16xbf16, #tpu.memory_space<vmem>>, vector<1x192x4xbf16>
    %163 = vector.shape_cast %162 : vector<1x192x4xbf16> to vector<192x4xbf16>
    %c0_196 = arith.constant 0 : index
    %c17_197 = arith.constant 17 : index
    %c8_198 = arith.constant 8 : index
    %164 = vector.load %arg1[%c0_196, %c17_197, %c8_198] : memref<1x272x16xbf16, #tpu.memory_space<vmem>>, vector<1x192x4xbf16>
    %165 = vector.shape_cast %164 : vector<1x192x4xbf16> to vector<192x4xbf16>
    %c0_199 = arith.constant 0 : index
    %c18_200 = arith.constant 18 : index
    %c8_201 = arith.constant 8 : index
    %166 = vector.load %arg1[%c0_199, %c18_200, %c8_201] : memref<1x272x16xbf16, #tpu.memory_space<vmem>>, vector<1x192x4xbf16>
    %167 = vector.shape_cast %166 : vector<1x192x4xbf16> to vector<192x4xbf16>
    %c0_202 = arith.constant 0 : index
    %c19_203 = arith.constant 19 : index
    %c8_204 = arith.constant 8 : index
    %168 = vector.load %arg1[%c0_202, %c19_203, %c8_204] : memref<1x272x16xbf16, #tpu.memory_space<vmem>>, vector<1x192x4xbf16>
    %169 = vector.shape_cast %168 : vector<1x192x4xbf16> to vector<192x4xbf16>
    %c0_205 = arith.constant 0 : index
    %c20_206 = arith.constant 20 : index
    %c8_207 = arith.constant 8 : index
    %170 = vector.load %arg1[%c0_205, %c20_206, %c8_207] : memref<1x272x16xbf16, #tpu.memory_space<vmem>>, vector<1x192x4xbf16>
    %171 = vector.shape_cast %170 : vector<1x192x4xbf16> to vector<192x4xbf16>
    %172 = tpu.concatenate %163, %165, %167, %169, %171 in 1 : vector<192x4xbf16>, vector<192x4xbf16>, vector<192x4xbf16>, vector<192x4xbf16>, vector<192x4xbf16> -> vector<192x20xbf16>
    %c2_208 = arith.constant 2 : index
    %c1_209 = arith.constant 1 : index
    %c0_210 = arith.constant 0 : index
    %c0_211 = arith.constant 0 : index
    %173 = vector.load %arg2[%c2_208, %c1_209, %c0_210, %c0_211] : memref<4x5x20x8xbf16, #tpu.memory_space<vmem>>, vector<1x1x20x8xbf16>
    %174 = vector.shape_cast %173 : vector<1x1x20x8xbf16> to vector<20x8xbf16>
    %cst_212 = arith.constant dense<0.000000e+00> : vector<192x8xf32>
    %175 = tpu.matmul %172, %174, %cst_212 {dimension_numbers = #tpu.dot_dimension_numbers<[1], [0], [0], [1], [0, 0, 1, 1], [], []>} : vector<192x20xbf16>, vector<20x8xbf16>, vector<192x8xf32> -> vector<192x8xf32>
    %176 = arith.addf %161, %175 : vector<192x8xf32>
    %c0_213 = arith.constant 0 : index
    %c32_214 = arith.constant 32 : index
    %c8_215 = arith.constant 8 : index
    %177 = vector.load %arg1[%c0_213, %c32_214, %c8_215] : memref<1x272x16xbf16, #tpu.memory_space<vmem>>, vector<1x192x4xbf16>
    %178 = vector.shape_cast %177 : vector<1x192x4xbf16> to vector<192x4xbf16>
    %c0_216 = arith.constant 0 : index
    %c33_217 = arith.constant 33 : index
    %c8_218 = arith.constant 8 : index
    %179 = vector.load %arg1[%c0_216, %c33_217, %c8_218] : memref<1x272x16xbf16, #tpu.memory_space<vmem>>, vector<1x192x4xbf16>
    %180 = vector.shape_cast %179 : vector<1x192x4xbf16> to vector<192x4xbf16>
    %c0_219 = arith.constant 0 : index
    %c34_220 = arith.constant 34 : index
    %c8_221 = arith.constant 8 : index
    %181 = vector.load %arg1[%c0_219, %c34_220, %c8_221] : memref<1x272x16xbf16, #tpu.memory_space<vmem>>, vector<1x192x4xbf16>
    %182 = vector.shape_cast %181 : vector<1x192x4xbf16> to vector<192x4xbf16>
    %c0_222 = arith.constant 0 : index
    %c35_223 = arith.constant 35 : index
    %c8_224 = arith.constant 8 : index
    %183 = vector.load %arg1[%c0_222, %c35_223, %c8_224] : memref<1x272x16xbf16, #tpu.memory_space<vmem>>, vector<1x192x4xbf16>
    %184 = vector.shape_cast %183 : vector<1x192x4xbf16> to vector<192x4xbf16>
    %c0_225 = arith.constant 0 : index
    %c36_226 = arith.constant 36 : index
    %c8_227 = arith.constant 8 : index
    %185 = vector.load %arg1[%c0_225, %c36_226, %c8_227] : memref<1x272x16xbf16, #tpu.memory_space<vmem>>, vector<1x192x4xbf16>
    %186 = vector.shape_cast %185 : vector<1x192x4xbf16> to vector<192x4xbf16>
    %187 = tpu.concatenate %178, %180, %182, %184, %186 in 1 : vector<192x4xbf16>, vector<192x4xbf16>, vector<192x4xbf16>, vector<192x4xbf16>, vector<192x4xbf16> -> vector<192x20xbf16>
    %c2_228 = arith.constant 2 : index
    %c2_229 = arith.constant 2 : index
    %c0_230 = arith.constant 0 : index
    %c0_231 = arith.constant 0 : index
    %188 = vector.load %arg2[%c2_228, %c2_229, %c0_230, %c0_231] : memref<4x5x20x8xbf16, #tpu.memory_space<vmem>>, vector<1x1x20x8xbf16>
    %189 = vector.shape_cast %188 : vector<1x1x20x8xbf16> to vector<20x8xbf16>
    %cst_232 = arith.constant dense<0.000000e+00> : vector<192x8xf32>
    %190 = tpu.matmul %187, %189, %cst_232 {dimension_numbers = #tpu.dot_dimension_numbers<[1], [0], [0], [1], [0, 0, 1, 1], [], []>} : vector<192x20xbf16>, vector<20x8xbf16>, vector<192x8xf32> -> vector<192x8xf32>
    %191 = arith.addf %176, %190 : vector<192x8xf32>
    %c0_233 = arith.constant 0 : index
    %c48_234 = arith.constant 48 : index
    %c8_235 = arith.constant 8 : index
    %192 = vector.load %arg1[%c0_233, %c48_234, %c8_235] : memref<1x272x16xbf16, #tpu.memory_space<vmem>>, vector<1x192x4xbf16>
    %193 = vector.shape_cast %192 : vector<1x192x4xbf16> to vector<192x4xbf16>
    %c0_236 = arith.constant 0 : index
    %c49_237 = arith.constant 49 : index
    %c8_238 = arith.constant 8 : index
    %194 = vector.load %arg1[%c0_236, %c49_237, %c8_238] : memref<1x272x16xbf16, #tpu.memory_space<vmem>>, vector<1x192x4xbf16>
    %195 = vector.shape_cast %194 : vector<1x192x4xbf16> to vector<192x4xbf16>
    %c0_239 = arith.constant 0 : index
    %c50_240 = arith.constant 50 : index
    %c8_241 = arith.constant 8 : index
    %196 = vector.load %arg1[%c0_239, %c50_240, %c8_241] : memref<1x272x16xbf16, #tpu.memory_space<vmem>>, vector<1x192x4xbf16>
    %197 = vector.shape_cast %196 : vector<1x192x4xbf16> to vector<192x4xbf16>
    %c0_242 = arith.constant 0 : index
    %c51_243 = arith.constant 51 : index
    %c8_244 = arith.constant 8 : index
    %198 = vector.load %arg1[%c0_242, %c51_243, %c8_244] : memref<1x272x16xbf16, #tpu.memory_space<vmem>>, vector<1x192x4xbf16>
    %199 = vector.shape_cast %198 : vector<1x192x4xbf16> to vector<192x4xbf16>
    %c0_245 = arith.constant 0 : index
    %c52_246 = arith.constant 52 : index
    %c8_247 = arith.constant 8 : index
    %200 = vector.load %arg1[%c0_245, %c52_246, %c8_247] : memref<1x272x16xbf16, #tpu.memory_space<vmem>>, vector<1x192x4xbf16>
    %201 = vector.shape_cast %200 : vector<1x192x4xbf16> to vector<192x4xbf16>
    %202 = tpu.concatenate %193, %195, %197, %199, %201 in 1 : vector<192x4xbf16>, vector<192x4xbf16>, vector<192x4xbf16>, vector<192x4xbf16>, vector<192x4xbf16> -> vector<192x20xbf16>
    %c2_248 = arith.constant 2 : index
    %c3_249 = arith.constant 3 : index
    %c0_250 = arith.constant 0 : index
    %c0_251 = arith.constant 0 : index
    %203 = vector.load %arg2[%c2_248, %c3_249, %c0_250, %c0_251] : memref<4x5x20x8xbf16, #tpu.memory_space<vmem>>, vector<1x1x20x8xbf16>
    %204 = vector.shape_cast %203 : vector<1x1x20x8xbf16> to vector<20x8xbf16>
    %cst_252 = arith.constant dense<0.000000e+00> : vector<192x8xf32>
    %205 = tpu.matmul %202, %204, %cst_252 {dimension_numbers = #tpu.dot_dimension_numbers<[1], [0], [0], [1], [0, 0, 1, 1], [], []>} : vector<192x20xbf16>, vector<20x8xbf16>, vector<192x8xf32> -> vector<192x8xf32>
    %206 = arith.addf %191, %205 : vector<192x8xf32>
    %c0_253 = arith.constant 0 : index
    %c64_254 = arith.constant 64 : index
    %c8_255 = arith.constant 8 : index
    %207 = vector.load %arg1[%c0_253, %c64_254, %c8_255] : memref<1x272x16xbf16, #tpu.memory_space<vmem>>, vector<1x192x4xbf16>
    %208 = vector.shape_cast %207 : vector<1x192x4xbf16> to vector<192x4xbf16>
    %c0_256 = arith.constant 0 : index
    %c65_257 = arith.constant 65 : index
    %c8_258 = arith.constant 8 : index
    %209 = vector.load %arg1[%c0_256, %c65_257, %c8_258] : memref<1x272x16xbf16, #tpu.memory_space<vmem>>, vector<1x192x4xbf16>
    %210 = vector.shape_cast %209 : vector<1x192x4xbf16> to vector<192x4xbf16>
    %c0_259 = arith.constant 0 : index
    %c66_260 = arith.constant 66 : index
    %c8_261 = arith.constant 8 : index
    %211 = vector.load %arg1[%c0_259, %c66_260, %c8_261] : memref<1x272x16xbf16, #tpu.memory_space<vmem>>, vector<1x192x4xbf16>
    %212 = vector.shape_cast %211 : vector<1x192x4xbf16> to vector<192x4xbf16>
    %c0_262 = arith.constant 0 : index
    %c67_263 = arith.constant 67 : index
    %c8_264 = arith.constant 8 : index
    %213 = vector.load %arg1[%c0_262, %c67_263, %c8_264] : memref<1x272x16xbf16, #tpu.memory_space<vmem>>, vector<1x192x4xbf16>
    %214 = vector.shape_cast %213 : vector<1x192x4xbf16> to vector<192x4xbf16>
    %c0_265 = arith.constant 0 : index
    %c68_266 = arith.constant 68 : index
    %c8_267 = arith.constant 8 : index
    %215 = vector.load %arg1[%c0_265, %c68_266, %c8_267] : memref<1x272x16xbf16, #tpu.memory_space<vmem>>, vector<1x192x4xbf16>
    %216 = vector.shape_cast %215 : vector<1x192x4xbf16> to vector<192x4xbf16>
    %217 = tpu.concatenate %208, %210, %212, %214, %216 in 1 : vector<192x4xbf16>, vector<192x4xbf16>, vector<192x4xbf16>, vector<192x4xbf16>, vector<192x4xbf16> -> vector<192x20xbf16>
    %c2_268 = arith.constant 2 : index
    %c4_269 = arith.constant 4 : index
    %c0_270 = arith.constant 0 : index
    %c0_271 = arith.constant 0 : index
    %218 = vector.load %arg2[%c2_268, %c4_269, %c0_270, %c0_271] : memref<4x5x20x8xbf16, #tpu.memory_space<vmem>>, vector<1x1x20x8xbf16>
    %219 = vector.shape_cast %218 : vector<1x1x20x8xbf16> to vector<20x8xbf16>
    %cst_272 = arith.constant dense<0.000000e+00> : vector<192x8xf32>
    %220 = tpu.matmul %217, %219, %cst_272 {dimension_numbers = #tpu.dot_dimension_numbers<[1], [0], [0], [1], [0, 0, 1, 1], [], []>} : vector<192x20xbf16>, vector<20x8xbf16>, vector<192x8xf32> -> vector<192x8xf32>
    %221 = arith.addf %206, %220 : vector<192x8xf32>
    %c0_273 = arith.constant 0 : index
    %c0_274 = arith.constant 0 : index
    %c12 = arith.constant 12 : index
    %222 = vector.load %arg1[%c0_273, %c0_274, %c12] : memref<1x272x16xbf16, #tpu.memory_space<vmem>>, vector<1x192x4xbf16>
    %223 = vector.shape_cast %222 : vector<1x192x4xbf16> to vector<192x4xbf16>
    %c0_275 = arith.constant 0 : index
    %c1_276 = arith.constant 1 : index
    %c12_277 = arith.constant 12 : index
    %224 = vector.load %arg1[%c0_275, %c1_276, %c12_277] : memref<1x272x16xbf16, #tpu.memory_space<vmem>>, vector<1x192x4xbf16>
    %225 = vector.shape_cast %224 : vector<1x192x4xbf16> to vector<192x4xbf16>
    %c0_278 = arith.constant 0 : index
    %c2_279 = arith.constant 2 : index
    %c12_280 = arith.constant 12 : index
    %226 = vector.load %arg1[%c0_278, %c2_279, %c12_280] : memref<1x272x16xbf16, #tpu.memory_space<vmem>>, vector<1x192x4xbf16>
    %227 = vector.shape_cast %226 : vector<1x192x4xbf16> to vector<192x4xbf16>
    %c0_281 = arith.constant 0 : index
    %c3_282 = arith.constant 3 : index
    %c12_283 = arith.constant 12 : index
    %228 = vector.load %arg1[%c0_281, %c3_282, %c12_283] : memref<1x272x16xbf16, #tpu.memory_space<vmem>>, vector<1x192x4xbf16>
    %229 = vector.shape_cast %228 : vector<1x192x4xbf16> to vector<192x4xbf16>
    %c0_284 = arith.constant 0 : index
    %c4_285 = arith.constant 4 : index
    %c12_286 = arith.constant 12 : index
    %230 = vector.load %arg1[%c0_284, %c4_285, %c12_286] : memref<1x272x16xbf16, #tpu.memory_space<vmem>>, vector<1x192x4xbf16>
    %231 = vector.shape_cast %230 : vector<1x192x4xbf16> to vector<192x4xbf16>
    %232 = tpu.concatenate %223, %225, %227, %229, %231 in 1 : vector<192x4xbf16>, vector<192x4xbf16>, vector<192x4xbf16>, vector<192x4xbf16>, vector<192x4xbf16> -> vector<192x20xbf16>
    %c3_287 = arith.constant 3 : index
    %c0_288 = arith.constant 0 : index
    %c0_289 = arith.constant 0 : index
    %c0_290 = arith.constant 0 : index
    %233 = vector.load %arg2[%c3_287, %c0_288, %c0_289, %c0_290] : memref<4x5x20x8xbf16, #tpu.memory_space<vmem>>, vector<1x1x20x8xbf16>
    %234 = vector.shape_cast %233 : vector<1x1x20x8xbf16> to vector<20x8xbf16>
    %cst_291 = arith.constant dense<0.000000e+00> : vector<192x8xf32>
    %235 = tpu.matmul %232, %234, %cst_291 {dimension_numbers = #tpu.dot_dimension_numbers<[1], [0], [0], [1], [0, 0, 1, 1], [], []>} : vector<192x20xbf16>, vector<20x8xbf16>, vector<192x8xf32> -> vector<192x8xf32>
    %c0_292 = arith.constant 0 : index
    %c16_293 = arith.constant 16 : index
    %c12_294 = arith.constant 12 : index
    %236 = vector.load %arg1[%c0_292, %c16_293, %c12_294] : memref<1x272x16xbf16, #tpu.memory_space<vmem>>, vector<1x192x4xbf16>
    %237 = vector.shape_cast %236 : vector<1x192x4xbf16> to vector<192x4xbf16>
    %c0_295 = arith.constant 0 : index
    %c17_296 = arith.constant 17 : index
    %c12_297 = arith.constant 12 : index
    %238 = vector.load %arg1[%c0_295, %c17_296, %c12_297] : memref<1x272x16xbf16, #tpu.memory_space<vmem>>, vector<1x192x4xbf16>
    %239 = vector.shape_cast %238 : vector<1x192x4xbf16> to vector<192x4xbf16>
    %c0_298 = arith.constant 0 : index
    %c18_299 = arith.constant 18 : index
    %c12_300 = arith.constant 12 : index
    %240 = vector.load %arg1[%c0_298, %c18_299, %c12_300] : memref<1x272x16xbf16, #tpu.memory_space<vmem>>, vector<1x192x4xbf16>
    %241 = vector.shape_cast %240 : vector<1x192x4xbf16> to vector<192x4xbf16>
    %c0_301 = arith.constant 0 : index
    %c19_302 = arith.constant 19 : index
    %c12_303 = arith.constant 12 : index
    %242 = vector.load %arg1[%c0_301, %c19_302, %c12_303] : memref<1x272x16xbf16, #tpu.memory_space<vmem>>, vector<1x192x4xbf16>
    %243 = vector.shape_cast %242 : vector<1x192x4xbf16> to vector<192x4xbf16>
    %c0_304 = arith.constant 0 : index
    %c20_305 = arith.constant 20 : index
    %c12_306 = arith.constant 12 : index
    %244 = vector.load %arg1[%c0_304, %c20_305, %c12_306] : memref<1x272x16xbf16, #tpu.memory_space<vmem>>, vector<1x192x4xbf16>
    %245 = vector.shape_cast %244 : vector<1x192x4xbf16> to vector<192x4xbf16>
    %246 = tpu.concatenate %237, %239, %241, %243, %245 in 1 : vector<192x4xbf16>, vector<192x4xbf16>, vector<192x4xbf16>, vector<192x4xbf16>, vector<192x4xbf16> -> vector<192x20xbf16>
    %c3_307 = arith.constant 3 : index
    %c1_308 = arith.constant 1 : index
    %c0_309 = arith.constant 0 : index
    %c0_310 = arith.constant 0 : index
    %247 = vector.load %arg2[%c3_307, %c1_308, %c0_309, %c0_310] : memref<4x5x20x8xbf16, #tpu.memory_space<vmem>>, vector<1x1x20x8xbf16>
    %248 = vector.shape_cast %247 : vector<1x1x20x8xbf16> to vector<20x8xbf16>
    %cst_311 = arith.constant dense<0.000000e+00> : vector<192x8xf32>
    %249 = tpu.matmul %246, %248, %cst_311 {dimension_numbers = #tpu.dot_dimension_numbers<[1], [0], [0], [1], [0, 0, 1, 1], [], []>} : vector<192x20xbf16>, vector<20x8xbf16>, vector<192x8xf32> -> vector<192x8xf32>
    %250 = arith.addf %235, %249 : vector<192x8xf32>
    %c0_312 = arith.constant 0 : index
    %c32_313 = arith.constant 32 : index
    %c12_314 = arith.constant 12 : index
    %251 = vector.load %arg1[%c0_312, %c32_313, %c12_314] : memref<1x272x16xbf16, #tpu.memory_space<vmem>>, vector<1x192x4xbf16>
    %252 = vector.shape_cast %251 : vector<1x192x4xbf16> to vector<192x4xbf16>
    %c0_315 = arith.constant 0 : index
    %c33_316 = arith.constant 33 : index
    %c12_317 = arith.constant 12 : index
    %253 = vector.load %arg1[%c0_315, %c33_316, %c12_317] : memref<1x272x16xbf16, #tpu.memory_space<vmem>>, vector<1x192x4xbf16>
    %254 = vector.shape_cast %253 : vector<1x192x4xbf16> to vector<192x4xbf16>
    %c0_318 = arith.constant 0 : index
    %c34_319 = arith.constant 34 : index
    %c12_320 = arith.constant 12 : index
    %255 = vector.load %arg1[%c0_318, %c34_319, %c12_320] : memref<1x272x16xbf16, #tpu.memory_space<vmem>>, vector<1x192x4xbf16>
    %256 = vector.shape_cast %255 : vector<1x192x4xbf16> to vector<192x4xbf16>
    %c0_321 = arith.constant 0 : index
    %c35_322 = arith.constant 35 : index
    %c12_323 = arith.constant 12 : index
    %257 = vector.load %arg1[%c0_321, %c35_322, %c12_323] : memref<1x272x16xbf16, #tpu.memory_space<vmem>>, vector<1x192x4xbf16>
    %258 = vector.shape_cast %257 : vector<1x192x4xbf16> to vector<192x4xbf16>
    %c0_324 = arith.constant 0 : index
    %c36_325 = arith.constant 36 : index
    %c12_326 = arith.constant 12 : index
    %259 = vector.load %arg1[%c0_324, %c36_325, %c12_326] : memref<1x272x16xbf16, #tpu.memory_space<vmem>>, vector<1x192x4xbf16>
    %260 = vector.shape_cast %259 : vector<1x192x4xbf16> to vector<192x4xbf16>
    %261 = tpu.concatenate %252, %254, %256, %258, %260 in 1 : vector<192x4xbf16>, vector<192x4xbf16>, vector<192x4xbf16>, vector<192x4xbf16>, vector<192x4xbf16> -> vector<192x20xbf16>
    %c3_327 = arith.constant 3 : index
    %c2_328 = arith.constant 2 : index
    %c0_329 = arith.constant 0 : index
    %c0_330 = arith.constant 0 : index
    %262 = vector.load %arg2[%c3_327, %c2_328, %c0_329, %c0_330] : memref<4x5x20x8xbf16, #tpu.memory_space<vmem>>, vector<1x1x20x8xbf16>
    %263 = vector.shape_cast %262 : vector<1x1x20x8xbf16> to vector<20x8xbf16>
    %cst_331 = arith.constant dense<0.000000e+00> : vector<192x8xf32>
    %264 = tpu.matmul %261, %263, %cst_331 {dimension_numbers = #tpu.dot_dimension_numbers<[1], [0], [0], [1], [0, 0, 1, 1], [], []>} : vector<192x20xbf16>, vector<20x8xbf16>, vector<192x8xf32> -> vector<192x8xf32>
    %265 = arith.addf %250, %264 : vector<192x8xf32>
    %c0_332 = arith.constant 0 : index
    %c48_333 = arith.constant 48 : index
    %c12_334 = arith.constant 12 : index
    %266 = vector.load %arg1[%c0_332, %c48_333, %c12_334] : memref<1x272x16xbf16, #tpu.memory_space<vmem>>, vector<1x192x4xbf16>
    %267 = vector.shape_cast %266 : vector<1x192x4xbf16> to vector<192x4xbf16>
    %c0_335 = arith.constant 0 : index
    %c49_336 = arith.constant 49 : index
    %c12_337 = arith.constant 12 : index
    %268 = vector.load %arg1[%c0_335, %c49_336, %c12_337] : memref<1x272x16xbf16, #tpu.memory_space<vmem>>, vector<1x192x4xbf16>
    %269 = vector.shape_cast %268 : vector<1x192x4xbf16> to vector<192x4xbf16>
    %c0_338 = arith.constant 0 : index
    %c50_339 = arith.constant 50 : index
    %c12_340 = arith.constant 12 : index
    %270 = vector.load %arg1[%c0_338, %c50_339, %c12_340] : memref<1x272x16xbf16, #tpu.memory_space<vmem>>, vector<1x192x4xbf16>
    %271 = vector.shape_cast %270 : vector<1x192x4xbf16> to vector<192x4xbf16>
    %c0_341 = arith.constant 0 : index
    %c51_342 = arith.constant 51 : index
    %c12_343 = arith.constant 12 : index
    %272 = vector.load %arg1[%c0_341, %c51_342, %c12_343] : memref<1x272x16xbf16, #tpu.memory_space<vmem>>, vector<1x192x4xbf16>
    %273 = vector.shape_cast %272 : vector<1x192x4xbf16> to vector<192x4xbf16>
    %c0_344 = arith.constant 0 : index
    %c52_345 = arith.constant 52 : index
    %c12_346 = arith.constant 12 : index
    %274 = vector.load %arg1[%c0_344, %c52_345, %c12_346] : memref<1x272x16xbf16, #tpu.memory_space<vmem>>, vector<1x192x4xbf16>
    %275 = vector.shape_cast %274 : vector<1x192x4xbf16> to vector<192x4xbf16>
    %276 = tpu.concatenate %267, %269, %271, %273, %275 in 1 : vector<192x4xbf16>, vector<192x4xbf16>, vector<192x4xbf16>, vector<192x4xbf16>, vector<192x4xbf16> -> vector<192x20xbf16>
    %c3_347 = arith.constant 3 : index
    %c3_348 = arith.constant 3 : index
    %c0_349 = arith.constant 0 : index
    %c0_350 = arith.constant 0 : index
    %277 = vector.load %arg2[%c3_347, %c3_348, %c0_349, %c0_350] : memref<4x5x20x8xbf16, #tpu.memory_space<vmem>>, vector<1x1x20x8xbf16>
    %278 = vector.shape_cast %277 : vector<1x1x20x8xbf16> to vector<20x8xbf16>
    %cst_351 = arith.constant dense<0.000000e+00> : vector<192x8xf32>
    %279 = tpu.matmul %276, %278, %cst_351 {dimension_numbers = #tpu.dot_dimension_numbers<[1], [0], [0], [1], [0, 0, 1, 1], [], []>} : vector<192x20xbf16>, vector<20x8xbf16>, vector<192x8xf32> -> vector<192x8xf32>
    %280 = arith.addf %265, %279 : vector<192x8xf32>
    %c0_352 = arith.constant 0 : index
    %c64_353 = arith.constant 64 : index
    %c12_354 = arith.constant 12 : index
    %281 = vector.load %arg1[%c0_352, %c64_353, %c12_354] : memref<1x272x16xbf16, #tpu.memory_space<vmem>>, vector<1x192x4xbf16>
    %282 = vector.shape_cast %281 : vector<1x192x4xbf16> to vector<192x4xbf16>
    %c0_355 = arith.constant 0 : index
    %c65_356 = arith.constant 65 : index
    %c12_357 = arith.constant 12 : index
    %283 = vector.load %arg1[%c0_355, %c65_356, %c12_357] : memref<1x272x16xbf16, #tpu.memory_space<vmem>>, vector<1x192x4xbf16>
    %284 = vector.shape_cast %283 : vector<1x192x4xbf16> to vector<192x4xbf16>
    %c0_358 = arith.constant 0 : index
    %c66_359 = arith.constant 66 : index
    %c12_360 = arith.constant 12 : index
    %285 = vector.load %arg1[%c0_358, %c66_359, %c12_360] : memref<1x272x16xbf16, #tpu.memory_space<vmem>>, vector<1x192x4xbf16>
    %286 = vector.shape_cast %285 : vector<1x192x4xbf16> to vector<192x4xbf16>
    %c0_361 = arith.constant 0 : index
    %c67_362 = arith.constant 67 : index
    %c12_363 = arith.constant 12 : index
    %287 = vector.load %arg1[%c0_361, %c67_362, %c12_363] : memref<1x272x16xbf16, #tpu.memory_space<vmem>>, vector<1x192x4xbf16>
    %288 = vector.shape_cast %287 : vector<1x192x4xbf16> to vector<192x4xbf16>
    %c0_364 = arith.constant 0 : index
    %c68_365 = arith.constant 68 : index
    %c12_366 = arith.constant 12 : index
    %289 = vector.load %arg1[%c0_364, %c68_365, %c12_366] : memref<1x272x16xbf16, #tpu.memory_space<vmem>>, vector<1x192x4xbf16>
    %290 = vector.shape_cast %289 : vector<1x192x4xbf16> to vector<192x4xbf16>
    %291 = tpu.concatenate %282, %284, %286, %288, %290 in 1 : vector<192x4xbf16>, vector<192x4xbf16>, vector<192x4xbf16>, vector<192x4xbf16>, vector<192x4xbf16> -> vector<192x20xbf16>
    %c3_367 = arith.constant 3 : index
    %c4_368 = arith.constant 4 : index
    %c0_369 = arith.constant 0 : index
    %c0_370 = arith.constant 0 : index
    %292 = vector.load %arg2[%c3_367, %c4_368, %c0_369, %c0_370] : memref<4x5x20x8xbf16, #tpu.memory_space<vmem>>, vector<1x1x20x8xbf16>
    %293 = vector.shape_cast %292 : vector<1x1x20x8xbf16> to vector<20x8xbf16>
    %cst_371 = arith.constant dense<0.000000e+00> : vector<192x8xf32>
    %294 = tpu.matmul %291, %293, %cst_371 {dimension_numbers = #tpu.dot_dimension_numbers<[1], [0], [0], [1], [0, 0, 1, 1], [], []>} : vector<192x20xbf16>, vector<20x8xbf16>, vector<192x8xf32> -> vector<192x8xf32>
    %295 = arith.addf %280, %294 : vector<192x8xf32>
    %296 = tpu.concatenate %73, %147, %221, %295 in 1 : vector<192x8xf32>, vector<192x8xf32>, vector<192x8xf32>, vector<192x8xf32> -> vector<192x32xf32>
    %c0_372 = arith.constant 0 : index
    %c0_373 = arith.constant 0 : index
    %297 = vector.load %arg3[%c0_372, %c0_373] : memref<1x32xf32, #tpu.memory_space<vmem>>, vector<1x32xf32>
    %298 = vector.broadcast %297 : vector<1x32xf32> to vector<192x32xf32>
    %299 = arith.addf %296, %298 : vector<192x32xf32>
    %c0_374 = arith.constant 0 : index
    %c0_375 = arith.constant 0 : index
    %300 = vector.load %arg8[%c0_374, %c0_375] : memref<192x1xf32, #tpu.memory_space<vmem>>, vector<192x1xf32>
    %301 = vector.broadcast %300 : vector<192x1xf32> to vector<192x32xf32>
    %302 = arith.mulf %299, %301 : vector<192x32xf32>
    %cst_376 = arith.constant dense<0.000000e+00> : vector<32xf32>
    %303 = vector.multi_reduction <add>, %302, %cst_376 [0] : vector<192x32xf32> to vector<32xf32>
    %304 = vector.shape_cast %303 : vector<32xf32> to vector<1x32xf32>
    %305 = arith.mulf %302, %302 : vector<192x32xf32>
    %cst_377 = arith.constant dense<0.000000e+00> : vector<32xf32>
    %306 = vector.multi_reduction <add>, %305, %cst_377 [0] : vector<192x32xf32> to vector<32xf32>
    %307 = vector.shape_cast %306 : vector<32xf32> to vector<1x32xf32>
    %c0_378 = arith.constant 0 : index
    %c0_379 = arith.constant 0 : index
    %308 = vector.load %arg4[%c0_378, %c0_379] : memref<32x4xf32, #tpu.memory_space<vmem>>, vector<32x4xf32>
    %cst_380 = arith.constant dense<0.000000e+00> : vector<1x4xf32>
    %309 = tpu.matmul %304, %308, %cst_380 {dimension_numbers = #tpu.dot_dimension_numbers<[1], [0], [0], [1], [0, 0, 1, 1], [], []>} : vector<1x32xf32>, vector<32x4xf32>, vector<1x4xf32> -> vector<1x4xf32>
    %c0_381 = arith.constant 0 : index
    %c0_382 = arith.constant 0 : index
    %310 = vector.load %arg4[%c0_381, %c0_382] : memref<32x4xf32, #tpu.memory_space<vmem>>, vector<32x4xf32>
    %cst_383 = arith.constant dense<0.000000e+00> : vector<1x4xf32>
    %311 = tpu.matmul %307, %310, %cst_383 {dimension_numbers = #tpu.dot_dimension_numbers<[1], [0], [0], [1], [0, 0, 1, 1], [], []>} : vector<1x32xf32>, vector<32x4xf32>, vector<1x4xf32> -> vector<1x4xf32>
    %cst_384 = arith.constant 8.68055562E-4 : f32
    %312 = vector.broadcast %cst_384 : f32 to vector<1x4xf32>
    %313 = arith.mulf %309, %312 : vector<1x4xf32>
    %cst_385 = arith.constant 8.68055562E-4 : f32
    %314 = vector.broadcast %cst_385 : f32 to vector<1x4xf32>
    %315 = arith.mulf %311, %314 : vector<1x4xf32>
    %316 = arith.mulf %313, %313 : vector<1x4xf32>
    %317 = arith.subf %315, %316 : vector<1x4xf32>
    %cst_386 = arith.constant 0.000000e+00 : f32
    %318 = vector.broadcast %cst_386 : f32 to vector<1x4xf32>
    %319 = arith.maximumf %317, %318 : vector<1x4xf32>
    %cst_387 = arith.constant 9.99999974E-6 : f32
    %320 = vector.broadcast %cst_387 : f32 to vector<1x4xf32>
    %321 = arith.addf %319, %320 : vector<1x4xf32>
    %322 = math.rsqrt %321 : vector<1x4xf32>
    %c0_388 = arith.constant 0 : index
    %c0_389 = arith.constant 0 : index
    %323 = vector.load %arg5[%c0_388, %c0_389] : memref<4x32xf32, #tpu.memory_space<vmem>>, vector<4x32xf32>
    %cst_390 = arith.constant dense<0.000000e+00> : vector<1x32xf32>
    %324 = tpu.matmul %313, %323, %cst_390 {dimension_numbers = #tpu.dot_dimension_numbers<[1], [0], [0], [1], [0, 0, 1, 1], [], []>} : vector<1x4xf32>, vector<4x32xf32>, vector<1x32xf32> -> vector<1x32xf32>
    %c0_391 = arith.constant 0 : index
    %c0_392 = arith.constant 0 : index
    %325 = vector.load %arg5[%c0_391, %c0_392] : memref<4x32xf32, #tpu.memory_space<vmem>>, vector<4x32xf32>
    %cst_393 = arith.constant dense<0.000000e+00> : vector<1x32xf32>
    %326 = tpu.matmul %322, %325, %cst_393 {dimension_numbers = #tpu.dot_dimension_numbers<[1], [0], [0], [1], [0, 0, 1, 1], [], []>} : vector<1x4xf32>, vector<4x32xf32>, vector<1x32xf32> -> vector<1x32xf32>
    %327 = vector.broadcast %324 : vector<1x32xf32> to vector<192x32xf32>
    %328 = arith.subf %299, %327 : vector<192x32xf32>
    %329 = vector.broadcast %326 : vector<1x32xf32> to vector<192x32xf32>
    %330 = arith.mulf %328, %329 : vector<192x32xf32>
    %c0_394 = arith.constant 0 : index
    %c0_395 = arith.constant 0 : index
    %331 = vector.load %arg6[%c0_394, %c0_395] : memref<1x32xf32, #tpu.memory_space<vmem>>, vector<1x32xf32>
    %332 = vector.broadcast %331 : vector<1x32xf32> to vector<192x32xf32>
    %333 = arith.mulf %330, %332 : vector<192x32xf32>
    %c0_396 = arith.constant 0 : index
    %c0_397 = arith.constant 0 : index
    %334 = vector.load %arg7[%c0_396, %c0_397] : memref<1x32xf32, #tpu.memory_space<vmem>>, vector<1x32xf32>
    %335 = vector.broadcast %334 : vector<1x32xf32> to vector<192x32xf32>
    %336 = arith.addf %333, %335 : vector<192x32xf32>
    %cst_398 = arith.constant 0.000000e+00 : f32
    %337 = vector.broadcast %cst_398 : f32 to vector<192x32xf32>
    %338 = arith.cmpf oge, %336, %337 : vector<192x32xf32>
    %cst_399 = arith.constant 2.000000e-01 : f32
    %339 = vector.broadcast %cst_399 : f32 to vector<192x32xf32>
    %340 = arith.mulf %339, %336 : vector<192x32xf32>
    %341 = arith.select %338, %336, %340 : vector<192x32xi1>, vector<192x32xf32>
    %342 = vector.extract_strided_slice %341 {offsets = [0, 0], sizes = [12, 32], strides = [1, 1]} : vector<192x32xf32> to vector<12x32xf32>
    %c0_400 = arith.constant 0 : index
    %c0_401 = arith.constant 0 : index
    %c0_402 = arith.constant 0 : index
    %c0_403 = arith.constant 0 : index
    %343 = vector.load %arg9[%c0_400, %c0_401, %c0_402, %c0_403] : memref<1x12x12x32xbf16, #tpu.memory_space<vmem>>, vector<1x1x12x32xbf16>
    %344 = vector.shape_cast %343 : vector<1x1x12x32xbf16> to vector<12x32xbf16>
    %345 = arith.extf %344 : vector<12x32xbf16> to vector<12x32xf32>
    %346 = arith.addf %342, %345 : vector<12x32xf32>
    %c0_404 = arith.constant 0 : index
    %c0_405 = arith.constant 0 : index
    %c0_406 = arith.constant 0 : index
    %c0_407 = arith.constant 0 : index
    %347 = vector.load %arg10[%c0_404, %c0_405, %c0_406, %c0_407] : memref<1x12x12x32xf32, #tpu.memory_space<vmem>>, vector<1x1x12x32xf32>
    %348 = vector.shape_cast %347 : vector<1x1x12x32xf32> to vector<12x32xf32>
    %349 = vector.shape_cast %346 : vector<12x32xf32> to vector<1x1x12x32xf32>
    tpu.vector_store %arg10[%c0_404, %c0_405, %c0_406, %c0_407], %349 {strides = array<i32>} : memref<1x12x12x32xf32, #tpu.memory_space<vmem>>, vector<1x1x12x32xf32>,
    %350 = vector.extract_strided_slice %341 {offsets = [16, 0], sizes = [12, 32], strides = [1, 1]} : vector<192x32xf32> to vector<12x32xf32>
    %c0_408 = arith.constant 0 : index
    %c1_409 = arith.constant 1 : index
    %c0_410 = arith.constant 0 : index
    %c0_411 = arith.constant 0 : index
    %351 = vector.load %arg9[%c0_408, %c1_409, %c0_410, %c0_411] : memref<1x12x12x32xbf16, #tpu.memory_space<vmem>>, vector<1x1x12x32xbf16>
    %352 = vector.shape_cast %351 : vector<1x1x12x32xbf16> to vector<12x32xbf16>
    %353 = arith.extf %352 : vector<12x32xbf16> to vector<12x32xf32>
    %354 = arith.addf %350, %353 : vector<12x32xf32>
    %c0_412 = arith.constant 0 : index
    %c1_413 = arith.constant 1 : index
    %c0_414 = arith.constant 0 : index
    %c0_415 = arith.constant 0 : index
    %355 = vector.load %arg10[%c0_412, %c1_413, %c0_414, %c0_415] : memref<1x12x12x32xf32, #tpu.memory_space<vmem>>, vector<1x1x12x32xf32>
    %356 = vector.shape_cast %355 : vector<1x1x12x32xf32> to vector<12x32xf32>
    %357 = vector.shape_cast %354 : vector<12x32xf32> to vector<1x1x12x32xf32>
    tpu.vector_store %arg10[%c0_412, %c1_413, %c0_414, %c0_415], %357 {strides = array<i32>} : memref<1x12x12x32xf32, #tpu.memory_space<vmem>>, vector<1x1x12x32xf32>,
    %358 = vector.extract_strided_slice %341 {offsets = [32, 0], sizes = [12, 32], strides = [1, 1]} : vector<192x32xf32> to vector<12x32xf32>
    %c0_416 = arith.constant 0 : index
    %c2_417 = arith.constant 2 : index
    %c0_418 = arith.constant 0 : index
    %c0_419 = arith.constant 0 : index
    %359 = vector.load %arg9[%c0_416, %c2_417, %c0_418, %c0_419] : memref<1x12x12x32xbf16, #tpu.memory_space<vmem>>, vector<1x1x12x32xbf16>
    %360 = vector.shape_cast %359 : vector<1x1x12x32xbf16> to vector<12x32xbf16>
    %361 = arith.extf %360 : vector<12x32xbf16> to vector<12x32xf32>
    %362 = arith.addf %358, %361 : vector<12x32xf32>
    %c0_420 = arith.constant 0 : index
    %c2_421 = arith.constant 2 : index
    %c0_422 = arith.constant 0 : index
    %c0_423 = arith.constant 0 : index
    %363 = vector.load %arg10[%c0_420, %c2_421, %c0_422, %c0_423] : memref<1x12x12x32xf32, #tpu.memory_space<vmem>>, vector<1x1x12x32xf32>
    %364 = vector.shape_cast %363 : vector<1x1x12x32xf32> to vector<12x32xf32>
    %365 = vector.shape_cast %362 : vector<12x32xf32> to vector<1x1x12x32xf32>
    tpu.vector_store %arg10[%c0_420, %c2_421, %c0_422, %c0_423], %365 {strides = array<i32>} : memref<1x12x12x32xf32, #tpu.memory_space<vmem>>, vector<1x1x12x32xf32>,
    %366 = vector.extract_strided_slice %341 {offsets = [48, 0], sizes = [12, 32], strides = [1, 1]} : vector<192x32xf32> to vector<12x32xf32>
    %c0_424 = arith.constant 0 : index
    %c3_425 = arith.constant 3 : index
    %c0_426 = arith.constant 0 : index
    %c0_427 = arith.constant 0 : index
    %367 = vector.load %arg9[%c0_424, %c3_425, %c0_426, %c0_427] : memref<1x12x12x32xbf16, #tpu.memory_space<vmem>>, vector<1x1x12x32xbf16>
    %368 = vector.shape_cast %367 : vector<1x1x12x32xbf16> to vector<12x32xbf16>
    %369 = arith.extf %368 : vector<12x32xbf16> to vector<12x32xf32>
    %370 = arith.addf %366, %369 : vector<12x32xf32>
    %c0_428 = arith.constant 0 : index
    %c3_429 = arith.constant 3 : index
    %c0_430 = arith.constant 0 : index
    %c0_431 = arith.constant 0 : index
    %371 = vector.load %arg10[%c0_428, %c3_429, %c0_430, %c0_431] : memref<1x12x12x32xf32, #tpu.memory_space<vmem>>, vector<1x1x12x32xf32>
    %372 = vector.shape_cast %371 : vector<1x1x12x32xf32> to vector<12x32xf32>
    %373 = vector.shape_cast %370 : vector<12x32xf32> to vector<1x1x12x32xf32>
    tpu.vector_store %arg10[%c0_428, %c3_429, %c0_430, %c0_431], %373 {strides = array<i32>} : memref<1x12x12x32xf32, #tpu.memory_space<vmem>>, vector<1x1x12x32xf32>,
    %374 = vector.extract_strided_slice %341 {offsets = [64, 0], sizes = [12, 32], strides = [1, 1]} : vector<192x32xf32> to vector<12x32xf32>
    %c0_432 = arith.constant 0 : index
    %c4_433 = arith.constant 4 : index
    %c0_434 = arith.constant 0 : index
    %c0_435 = arith.constant 0 : index
    %375 = vector.load %arg9[%c0_432, %c4_433, %c0_434, %c0_435] : memref<1x12x12x32xbf16, #tpu.memory_space<vmem>>, vector<1x1x12x32xbf16>
    %376 = vector.shape_cast %375 : vector<1x1x12x32xbf16> to vector<12x32xbf16>
    %377 = arith.extf %376 : vector<12x32xbf16> to vector<12x32xf32>
    %378 = arith.addf %374, %377 : vector<12x32xf32>
    %c0_436 = arith.constant 0 : index
    %c4_437 = arith.constant 4 : index
    %c0_438 = arith.constant 0 : index
    %c0_439 = arith.constant 0 : index
    %379 = vector.load %arg10[%c0_436, %c4_437, %c0_438, %c0_439] : memref<1x12x12x32xf32, #tpu.memory_space<vmem>>, vector<1x1x12x32xf32>
    %380 = vector.shape_cast %379 : vector<1x1x12x32xf32> to vector<12x32xf32>
    %381 = vector.shape_cast %378 : vector<12x32xf32> to vector<1x1x12x32xf32>
    tpu.vector_store %arg10[%c0_436, %c4_437, %c0_438, %c0_439], %381 {strides = array<i32>} : memref<1x12x12x32xf32, #tpu.memory_space<vmem>>, vector<1x1x12x32xf32>,
    %382 = vector.extract_strided_slice %341 {offsets = [80, 0], sizes = [12, 32], strides = [1, 1]} : vector<192x32xf32> to vector<12x32xf32>
    %c0_440 = arith.constant 0 : index
    %c5 = arith.constant 5 : index
    %c0_441 = arith.constant 0 : index
    %c0_442 = arith.constant 0 : index
    %383 = vector.load %arg9[%c0_440, %c5, %c0_441, %c0_442] : memref<1x12x12x32xbf16, #tpu.memory_space<vmem>>, vector<1x1x12x32xbf16>
    %384 = vector.shape_cast %383 : vector<1x1x12x32xbf16> to vector<12x32xbf16>
    %385 = arith.extf %384 : vector<12x32xbf16> to vector<12x32xf32>
    %386 = arith.addf %382, %385 : vector<12x32xf32>
    %c0_443 = arith.constant 0 : index
    %c5_444 = arith.constant 5 : index
    %c0_445 = arith.constant 0 : index
    %c0_446 = arith.constant 0 : index
    %387 = vector.load %arg10[%c0_443, %c5_444, %c0_445, %c0_446] : memref<1x12x12x32xf32, #tpu.memory_space<vmem>>, vector<1x1x12x32xf32>
    %388 = vector.shape_cast %387 : vector<1x1x12x32xf32> to vector<12x32xf32>
    %389 = vector.shape_cast %386 : vector<12x32xf32> to vector<1x1x12x32xf32>
    tpu.vector_store %arg10[%c0_443, %c5_444, %c0_445, %c0_446], %389 {strides = array<i32>} : memref<1x12x12x32xf32, #tpu.memory_space<vmem>>, vector<1x1x12x32xf32>,
    %390 = vector.extract_strided_slice %341 {offsets = [96, 0], sizes = [12, 32], strides = [1, 1]} : vector<192x32xf32> to vector<12x32xf32>
    %c0_447 = arith.constant 0 : index
    %c6 = arith.constant 6 : index
    %c0_448 = arith.constant 0 : index
    %c0_449 = arith.constant 0 : index
    %391 = vector.load %arg9[%c0_447, %c6, %c0_448, %c0_449] : memref<1x12x12x32xbf16, #tpu.memory_space<vmem>>, vector<1x1x12x32xbf16>
    %392 = vector.shape_cast %391 : vector<1x1x12x32xbf16> to vector<12x32xbf16>
    %393 = arith.extf %392 : vector<12x32xbf16> to vector<12x32xf32>
    %394 = arith.addf %390, %393 : vector<12x32xf32>
    %c0_450 = arith.constant 0 : index
    %c6_451 = arith.constant 6 : index
    %c0_452 = arith.constant 0 : index
    %c0_453 = arith.constant 0 : index
    %395 = vector.load %arg10[%c0_450, %c6_451, %c0_452, %c0_453] : memref<1x12x12x32xf32, #tpu.memory_space<vmem>>, vector<1x1x12x32xf32>
    %396 = vector.shape_cast %395 : vector<1x1x12x32xf32> to vector<12x32xf32>
    %397 = vector.shape_cast %394 : vector<12x32xf32> to vector<1x1x12x32xf32>
    tpu.vector_store %arg10[%c0_450, %c6_451, %c0_452, %c0_453], %397 {strides = array<i32>} : memref<1x12x12x32xf32, #tpu.memory_space<vmem>>, vector<1x1x12x32xf32>,
    %398 = vector.extract_strided_slice %341 {offsets = [112, 0], sizes = [12, 32], strides = [1, 1]} : vector<192x32xf32> to vector<12x32xf32>
    %c0_454 = arith.constant 0 : index
    %c7 = arith.constant 7 : index
    %c0_455 = arith.constant 0 : index
    %c0_456 = arith.constant 0 : index
    %399 = vector.load %arg9[%c0_454, %c7, %c0_455, %c0_456] : memref<1x12x12x32xbf16, #tpu.memory_space<vmem>>, vector<1x1x12x32xbf16>
    %400 = vector.shape_cast %399 : vector<1x1x12x32xbf16> to vector<12x32xbf16>
    %401 = arith.extf %400 : vector<12x32xbf16> to vector<12x32xf32>
    %402 = arith.addf %398, %401 : vector<12x32xf32>
    %c0_457 = arith.constant 0 : index
    %c7_458 = arith.constant 7 : index
    %c0_459 = arith.constant 0 : index
    %c0_460 = arith.constant 0 : index
    %403 = vector.load %arg10[%c0_457, %c7_458, %c0_459, %c0_460] : memref<1x12x12x32xf32, #tpu.memory_space<vmem>>, vector<1x1x12x32xf32>
    %404 = vector.shape_cast %403 : vector<1x1x12x32xf32> to vector<12x32xf32>
    %405 = vector.shape_cast %402 : vector<12x32xf32> to vector<1x1x12x32xf32>
    tpu.vector_store %arg10[%c0_457, %c7_458, %c0_459, %c0_460], %405 {strides = array<i32>} : memref<1x12x12x32xf32, #tpu.memory_space<vmem>>, vector<1x1x12x32xf32>,
    %406 = vector.extract_strided_slice %341 {offsets = [128, 0], sizes = [12, 32], strides = [1, 1]} : vector<192x32xf32> to vector<12x32xf32>
    %c0_461 = arith.constant 0 : index
    %c8_462 = arith.constant 8 : index
    %c0_463 = arith.constant 0 : index
    %c0_464 = arith.constant 0 : index
    %407 = vector.load %arg9[%c0_461, %c8_462, %c0_463, %c0_464] : memref<1x12x12x32xbf16, #tpu.memory_space<vmem>>, vector<1x1x12x32xbf16>
    %408 = vector.shape_cast %407 : vector<1x1x12x32xbf16> to vector<12x32xbf16>
    %409 = arith.extf %408 : vector<12x32xbf16> to vector<12x32xf32>
    %410 = arith.addf %406, %409 : vector<12x32xf32>
    %c0_465 = arith.constant 0 : index
    %c8_466 = arith.constant 8 : index
    %c0_467 = arith.constant 0 : index
    %c0_468 = arith.constant 0 : index
    %411 = vector.load %arg10[%c0_465, %c8_466, %c0_467, %c0_468] : memref<1x12x12x32xf32, #tpu.memory_space<vmem>>, vector<1x1x12x32xf32>
    %412 = vector.shape_cast %411 : vector<1x1x12x32xf32> to vector<12x32xf32>
    %413 = vector.shape_cast %410 : vector<12x32xf32> to vector<1x1x12x32xf32>
    tpu.vector_store %arg10[%c0_465, %c8_466, %c0_467, %c0_468], %413 {strides = array<i32>} : memref<1x12x12x32xf32, #tpu.memory_space<vmem>>, vector<1x1x12x32xf32>,
    %414 = vector.extract_strided_slice %341 {offsets = [144, 0], sizes = [12, 32], strides = [1, 1]} : vector<192x32xf32> to vector<12x32xf32>
    %c0_469 = arith.constant 0 : index
    %c9 = arith.constant 9 : index
    %c0_470 = arith.constant 0 : index
    %c0_471 = arith.constant 0 : index
    %415 = vector.load %arg9[%c0_469, %c9, %c0_470, %c0_471] : memref<1x12x12x32xbf16, #tpu.memory_space<vmem>>, vector<1x1x12x32xbf16>
    %416 = vector.shape_cast %415 : vector<1x1x12x32xbf16> to vector<12x32xbf16>
    %417 = arith.extf %416 : vector<12x32xbf16> to vector<12x32xf32>
    %418 = arith.addf %414, %417 : vector<12x32xf32>
    %c0_472 = arith.constant 0 : index
    %c9_473 = arith.constant 9 : index
    %c0_474 = arith.constant 0 : index
    %c0_475 = arith.constant 0 : index
    %419 = vector.load %arg10[%c0_472, %c9_473, %c0_474, %c0_475] : memref<1x12x12x32xf32, #tpu.memory_space<vmem>>, vector<1x1x12x32xf32>
    %420 = vector.shape_cast %419 : vector<1x1x12x32xf32> to vector<12x32xf32>
    %421 = vector.shape_cast %418 : vector<12x32xf32> to vector<1x1x12x32xf32>
    tpu.vector_store %arg10[%c0_472, %c9_473, %c0_474, %c0_475], %421 {strides = array<i32>} : memref<1x12x12x32xf32, #tpu.memory_space<vmem>>, vector<1x1x12x32xf32>,
    %422 = vector.extract_strided_slice %341 {offsets = [160, 0], sizes = [12, 32], strides = [1, 1]} : vector<192x32xf32> to vector<12x32xf32>
    %c0_476 = arith.constant 0 : index
    %c10 = arith.constant 10 : index
    %c0_477 = arith.constant 0 : index
    %c0_478 = arith.constant 0 : index
    %423 = vector.load %arg9[%c0_476, %c10, %c0_477, %c0_478] : memref<1x12x12x32xbf16, #tpu.memory_space<vmem>>, vector<1x1x12x32xbf16>
    %424 = vector.shape_cast %423 : vector<1x1x12x32xbf16> to vector<12x32xbf16>
    %425 = arith.extf %424 : vector<12x32xbf16> to vector<12x32xf32>
    %426 = arith.addf %422, %425 : vector<12x32xf32>
    %c0_479 = arith.constant 0 : index
    %c10_480 = arith.constant 10 : index
    %c0_481 = arith.constant 0 : index
    %c0_482 = arith.constant 0 : index
    %427 = vector.load %arg10[%c0_479, %c10_480, %c0_481, %c0_482] : memref<1x12x12x32xf32, #tpu.memory_space<vmem>>, vector<1x1x12x32xf32>
    %428 = vector.shape_cast %427 : vector<1x1x12x32xf32> to vector<12x32xf32>
    %429 = vector.shape_cast %426 : vector<12x32xf32> to vector<1x1x12x32xf32>
    tpu.vector_store %arg10[%c0_479, %c10_480, %c0_481, %c0_482], %429 {strides = array<i32>} : memref<1x12x12x32xf32, #tpu.memory_space<vmem>>, vector<1x1x12x32xf32>,
    %430 = vector.extract_strided_slice %341 {offsets = [176, 0], sizes = [12, 32], strides = [1, 1]} : vector<192x32xf32> to vector<12x32xf32>
    %c0_483 = arith.constant 0 : index
    %c11 = arith.constant 11 : index
    %c0_484 = arith.constant 0 : index
    %c0_485 = arith.constant 0 : index
    %431 = vector.load %arg9[%c0_483, %c11, %c0_484, %c0_485] : memref<1x12x12x32xbf16, #tpu.memory_space<vmem>>, vector<1x1x12x32xbf16>
    %432 = vector.shape_cast %431 : vector<1x1x12x32xbf16> to vector<12x32xbf16>
    %433 = arith.extf %432 : vector<12x32xbf16> to vector<12x32xf32>
    %434 = arith.addf %430, %433 : vector<12x32xf32>
    %c0_486 = arith.constant 0 : index
    %c11_487 = arith.constant 11 : index
    %c0_488 = arith.constant 0 : index
    %c0_489 = arith.constant 0 : index
    %435 = vector.load %arg10[%c0_486, %c11_487, %c0_488, %c0_489] : memref<1x12x12x32xf32, #tpu.memory_space<vmem>>, vector<1x1x12x32xf32>
    %436 = vector.shape_cast %435 : vector<1x1x12x32xf32> to vector<12x32xf32>
    %437 = vector.shape_cast %434 : vector<12x32xf32> to vector<1x1x12x32xf32>
    tpu.vector_store %arg10[%c0_486, %c11_487, %c0_488, %c0_489], %437 {strides = array<i32>} : memref<1x12x12x32xf32, #tpu.memory_space<vmem>>, vector<1x1x12x32xf32>,
    return
  }
  func.func @transform_0(%arg0: i32) -> (i32, i32, i32) {
    %c0_i32 = arith.constant 0 : i32
    %c0_i32_0 = arith.constant 0 : i32
    %c0_i32_1 = arith.constant 0 : i32
    return %arg0, %c0_i32, %c0_i32_0 : i32, i32, i32
  }
  func.func @transform_1(%arg0: i32) -> (i32, i32, i32, i32) {
    %c0_i32 = arith.constant 0 : i32
    %c0_i32_0 = arith.constant 0 : i32
    %c0_i32_1 = arith.constant 0 : i32
    %c0_i32_2 = arith.constant 0 : i32
    %c0_i32_3 = arith.constant 0 : i32
    return %c0_i32, %c0_i32_0, %c0_i32_1, %c0_i32_2 : i32, i32, i32, i32
  }
  func.func @transform_2(%arg0: i32) -> (i32, i32) {
    %c0_i32 = arith.constant 0 : i32
    %c0_i32_0 = arith.constant 0 : i32
    %c0_i32_1 = arith.constant 0 : i32
    return %c0_i32, %c0_i32_0 : i32, i32
  }
  func.func @transform_3(%arg0: i32) -> (i32, i32) {
    %c0_i32 = arith.constant 0 : i32
    %c0_i32_0 = arith.constant 0 : i32
    %c0_i32_1 = arith.constant 0 : i32
    return %c0_i32, %c0_i32_0 : i32, i32
  }
  func.func @transform_4(%arg0: i32) -> (i32, i32) {
    %c0_i32 = arith.constant 0 : i32
    %c0_i32_0 = arith.constant 0 : i32
    %c0_i32_1 = arith.constant 0 : i32
    return %c0_i32, %c0_i32_0 : i32, i32
  }
  func.func @transform_5(%arg0: i32) -> (i32, i32) {
    %c0_i32 = arith.constant 0 : i32
    %c0_i32_0 = arith.constant 0 : i32
    %c0_i32_1 = arith.constant 0 : i32
    return %c0_i32, %c0_i32_0 : i32, i32
  }
  func.func @transform_6(%arg0: i32) -> (i32, i32) {
    %c0_i32 = arith.constant 0 : i32
    %c0_i32_0 = arith.constant 0 : i32
    %c0_i32_1 = arith.constant 0 : i32
    return %c0_i32, %c0_i32_0 : i32, i32
  }
  func.func @transform_7(%arg0: i32) -> (i32, i32) {
    %c0_i32 = arith.constant 0 : i32
    %c0_i32_0 = arith.constant 0 : i32
    %c0_i32_1 = arith.constant 0 : i32
    return %c0_i32, %c0_i32_0 : i32, i32
  }
  func.func @transform_8(%arg0: i32) -> (i32, i32, i32, i32) {
    %c0_i32 = arith.constant 0 : i32
    %c0_i32_0 = arith.constant 0 : i32
    %c0_i32_1 = arith.constant 0 : i32
    %c0_i32_2 = arith.constant 0 : i32
    return %arg0, %c0_i32, %c0_i32_0, %c0_i32_1 : i32, i32, i32, i32
  }
  func.func @transform_9(%arg0: i32) -> (i32, i32, i32, i32) {
    %c0_i32 = arith.constant 0 : i32
    %c0_i32_0 = arith.constant 0 : i32
    %c0_i32_1 = arith.constant 0 : i32
    %c0_i32_2 = arith.constant 0 : i32
    return %arg0, %c0_i32, %c0_i32_0, %c0_i32_1 : i32, i32, i32, i32
  }
}

</mosaic_0001>

<bundles_post_ra>
// kernel: tpu_custom_call.1
= control target key start
LH: loop header
LB: loop body
LE: loop exit
PB: predicated region body
PF: predicated region fallthrough
CT: control target
= control target key end

     0   :  { %s12109_s30 = smov 0   ;;  %s18766_s0 = inlined_call_operand.vmem [shape: bf16[2,272,16], index: 0, kind: input, shape index: {}]   ;;  %s18767_s1 = inlined_call_operand.vmem [shape: bf16[4,5,20,8], index: 1, kind: input, shape index: {}]   ;;  %s18768_s2 = inlined_call_operand.vmem [shape: f32[1,32], index: 2, kind: input, shape index: {}]   ;;  %s18769_s3 = inlined_call_operand.vmem [shape: f32[32,4], index: 3, kind: input, shape index: {}]   ;;  %s18770_s4 = inlined_call_operand.vmem [shape: f32[4,32], index: 4, kind: input, shape index: {}]   ;;  %s18771_s5 = inlined_call_operand.vmem [shape: f32[1,32], index: 5, kind: input, shape index: {}]   ;;  %s18772_s6 = inlined_call_operand.vmem [shape: f32[1,32], index: 6, kind: input, shape index: {}]   ;;  %s18773_s7 = inlined_call_operand.vmem [shape: f32[192,1], index: 7, kind: input, shape index: {}]   ;;  %s18774_s8 = inlined_call_operand.vmem [shape: bf16[2,12,12,32], index: 8, kind: input, shape index: {}]   ;;  %s18775_s9 = inlined_call_operand.vmem [shape: f32[2,12,12,32], index: 9, kind: output, shape index: {}]  }
   0x1 LB: > { %s10033_s10 = sadd.s32 4294967295, %s12045_s30   ;;  %p10037_p0 = scmp.ge.s32.totalorder %s12045_s30, 1  ;;  %s12045_s30 = sphi %s12109_s30, %s19_s30  }
   0x2   : > { %p297_p1 = scmp.lt.s32.totalorder %s12045_s30, 3 }
   0x4   : > { %p298_p2 = pnand %p10037_p0, %p297_p1 }
   0x6   : > { %301 = sbr.rel (%p298_p2) target bundleno = 2639 (0xa4f), region = 56 }
   0xd   : > { %p338_p3 = scmp.lt.s32.totalorder %s10033_s10, 1  ;;  %vm445_vm0 = vsmask.f32 7424  ;;  %s12047_s15 = smov 4   ;;  %vm573_vm1 = vcmask 1046528   ;;  %vm715_vm3 = vcmask 1045504  }
   0xe   : > { %s12048_s16 = smov 8   ;;  %vm626_vm2 = vsmask.f32 6400  ;;  %s12049_s17 = smov 12   ;;  %vm1020_vm4 = vcmask 1041408   ;;  %vm765_vm5 = vcmask 31744  }
   0xf   : > { %s20215_s10 = smov (!%p338_p3, %s10033_s10), 1  ;;  %s12050_s18 = smov 16   ;;  %vm790_vm6 = vcmask 64512   ;;  %vm815_vm7 = vcmask 97280   ;;  %vm840_vm8 = vcmask 130048   ;;  %vm995_vm9 = vcmask 162816  }
  0x10   : > { %s11804_s11 = smul.u32 136, %s20215_s10  ;;  %s12051_s23 = smov 124   ;;  %vm8994_vm10 = vcmask 195584   ;;  %vm19227_vm11 = vcmask 261120   ;;  %vm12057_vm12 = vmmov 0   ;;  %vm9510_vm13 = vcmask 1043456  }
  0x11   : > { %s12052_s12 = smov 120   ;;  %s12055_s26 = smov 24  }
  0x12   : > { %s12123_s14 = scalar_lea.vmem %s18766_s0, %s11804_s11 }
  0x13   : > { %v12126_v0 = vld [vmem:[%s12123_s14 + $0x10] sm:$0xff]   ;;  %v12129_v1 = vld [vmem:[%s12123_s14 + $0x18] sm:$0xff]   ;;  %v354_v2 = vld [vmem:[%s12123_s14] sm:$0xf] }
  0x14   : > { %v12133_v3 = vld [vmem:[%s12123_s14 + $0x4] sm:$0xf]  ;;  %v356_v4 = vld [vmem:[%s12123_s14 + $0x8] sm:$0xf]  ;;  %v462_v5 = vshll.u32 %v12126_v0, 16  ;;  %v466_v6 = vshrl.u32 %v12126_v0, 16 }
  0x15   : > { %v470_v7 = vshll.u32 %v12129_v1, 16  ;;  %v12140_v8 = vld [vmem:[%s12123_s14 + $0xc] sm:$0xf]  ;;  %v12143_v9 = vcombine.low %v354_v2, %v12133_v3  ;;  %v12146_v10 = vld [vmem:[%s12123_s14 + $0x20] sm:$0xff]   ;;  %v474_v12 = vshrl.u32 %v12129_v1, 16  ;;  %v12165_v21 = vld [vmem:[%s12123_s14 + $0x30] sm:$0xff]  }
  0x16   : > { %v12149_v11 = vcombine.low %v356_v4, %v12140_v8  ;;  %v12153_v13 = vld [vmem:[%s12123_s14 + $0x28] sm:$0xff]   ;;  %v464_v14 = vrot.slane %v462_v5, 1  ;;  %v478_v19 = vshll.u32 %v12146_v10, 16  ;;  %v18786_v29 = vshll.u32 %v12165_v21, 16  ;;  %v12191_v36 = vld [vmem:[%s12123_s14 + $0x38] sm:$0xff]   ;;  %v12194_v37 = vld [vmem:[%s12123_s14 + $0x40] sm:$0xff]  }
  0x17   : > { %19230 = vst [vmem:[#allocation2_spill] sm:$0xff] %v12143_v9  ;;  %v472_v15 = vrot.slane %v470_v7, 1  ;;  %v447_v16 = vshrl.u32 %v12143_v9, 16  ;;  %v449_v17 = vshll.u32 %v12143_v9, 16  ;;  %v486_v25 = vshll.u32 %v12153_v13, 16  ;;  %v12210_v44 = vld [vmem:[%s12123_s14 + $0x48] sm:$0xff]  }
  0x18   : > { %19231 = vst [vmem:[#allocation3_spill] sm:$0xff] %v12149_v11  ;;  %v454_v18 = vshll.u32 %v12149_v11, 16  ;;  %v458_v20 = vshrl.u32 %v12149_v11, 16  ;;  %v468_v22 = vor.u32 %v466_v6, %v464_v14  ;;  %v480_v27 = vrot.slane %v478_v19, 1  ;;  %v12219_v48 = vld [vmem:[%s12123_s14 + $0x50] sm:$0xff]   ;;  %v12234_v55 = vld [vmem:[%s12123_s14 + $0x58] sm:$0xff]  }
  0x19   : > { %v451_v23 = vrot.slane %v449_v17, 1  ;;  %v476_v24 = vor.u32 %v474_v12, %v472_v15  ;;  %v490_v28 = vshrl.u32 %v12153_v13, 16  ;;  %v488_v32 = vrot.slane %v486_v25, 1  ;;  %v12237_v56 = vld [vmem:[%s12123_s14 + $0x60] ss:$0 sps:$4 sm:$0x11]  }
  0x1a   : > { %v456_v26 = vrot.slane %v454_v18, 1  ;;  %v12179_v30 = vsel %vm445_vm0, %v468_v22, %v472_v15  ;;  %v482_v33 = vshrl.u32 %v12146_v10, 16  ;;  %v496_v35 = vrot.slane %v18786_v29, 1 }
  0x1b   : > { %19232 = vst [vmem:[#allocation4_spill] sm:$0xff] %v12179_v30  ;;  %v452_v31 = vor.u32 %v451_v23, %v447_v16  ;;  %550 = vrot.lane.b32.xlu1 %v12179_v30, %s12047_s15  ;;  %v12200_v39 = vsel %vm445_vm0, %v476_v24, %v480_v27  ;;  %v492_v40 = vor.u32 %v490_v28, %v488_v32  ;;  %v18784_v41 = vshll.u32 %v12191_v36, 16  ;;  %v379_v24 = vld [vmem:[%s12123_s14] sm:$0xe] }
  0x1c   : > { %v460_v34 = vor.u32 %v458_v20, %v456_v26  ;;  %19234 = vst [vmem:[#allocation6_spill] sm:$0xff] %v12200_v39  ;;  %v18785_v42 = vshrl.u32 %v12191_v36, 16  ;;  %v18782_v43 = vshll.u32 %v12194_v37, 16  ;;  %v484_v46 = vor.u32 %v482_v33, %v480_v27 }
  0x1d   : > { %v12197_v38 = vsel %vm445_vm0, %v452_v31, %v456_v26  ;;  %v498_v47 = vshrl.u32 %v12165_v21, 16  ;;  %v504_v49 = vrot.slane %v18784_v41, 1  ;;  %v18780_v51 = vshll.u32 %v12210_v44, 16 }
  0x1e   : > { %19233 = vst [vmem:[#allocation5_spill] sm:$0xff] %v12197_v38  ;;  %546 = vrot.lane.b32.xlu0 %v12197_v38, %s12047_s15  ;;  %v12213_v45 = vsel %vm445_vm0, %v460_v34, %v464_v14  ;;  %v512_v50 = vrot.slane %v18782_v43, 1  ;;  %v12229_v52 = vsel %vm445_vm0, %v492_v40, %v496_v35  ;;  %v18781_v53 = vshrl.u32 %v12210_v44, 16 }
  0x1f   : > { %19235 = vst [vmem:[#allocation7_spill] sm:$0xff] %v12213_v45  ;;  %552 = vrot.lane.b32.xlu1 %v12200_v39, %s12047_s15  ;;  %19236 = vst [vmem:[#allocation8_spill] sm:$0xff] %v12229_v52  ;;  %v18778_v54 = vshll.u32 %v12219_v48, 16  ;;  %v508_v57 = vor.u32 %v18785_v42, %v504_v49  ;;  %v520_v58 = vrot.slane %v18780_v51, 1  ;;  %v12246_v59 = vsel %vm445_vm0, %v484_v46, %v488_v32 }
  0x20   : > { %19237 = vst [vmem:[#allocation9_spill] sm:$0xff] %v12246_v59  ;;  %v500_v60 = vor.u32 %v498_v47, %v496_v35  ;;  %v18783_v61 = vshrl.u32 %v12194_v37, 16  ;;  %v18776_v62 = vshll.u32 %v12234_v55, 16  ;;  %v18777_v2 = vshrl.u32 %v12234_v55, 16 }
  0x21   : > { %v528_v63 = vrot.slane %v18778_v54, 1  ;;  %v12258_v4 = vsel %vm445_vm0, %v508_v57, %v512_v50  ;;  %v524_v14 = vor.u32 %v18781_v53, %v520_v58  ;;  %v542_v16 = vshll.u32 %v12237_v56, 16  ;;  %v871_v54 = vld [vmem:[%s12123_s14 + $0x8] sm:$0xe] }
  0x22   : > { %548 = vrot.lane.b32.xlu0 %v12213_v45, %s12047_s15  ;;  %19238 = vst [vmem:[#allocation10_spill] sm:$0xff] %v12258_v4  ;;  %v536_v15 = vrot.slane %v18776_v62, 1  ;;  %v12268_v17 = vsel %vm445_vm0, %v500_v60, %v504_v49  ;;  %v516_v22 = vor.u32 %v18783_v61, %v512_v50  ;;  %v18779_v23 = vshrl.u32 %v12219_v48, 16  ;;  %v11872_v45 = vld [vmem:[%s18767_s1 + $0xc] sm:$0xff]  }
  0x23   : > { %556 = vrot.lane.b32.xlu1 %v12229_v52, %s12047_s15  ;;  %19239 = vst [vmem:[#allocation11_spill] sm:$0xff] %v12268_v17  ;;  %v12277_v26 = vsel %vm445_vm0, %v524_v14, %v528_v63  ;;  %v544_v31 = vrot.slane %v542_v16, 1  ;;  %v10054_v35 = vcombine.low %v379_v24, %v12133_v3  ;;  %v575_v46 = vrot.slane %v12149_v11, 1  ;;  %10796 = vmatprep.subr.bf16.mxu0 %v11872_v45 }
  0x24   : > { %19240 = vst [vmem:[#allocation12_spill] sm:$0xff] %v12277_v26  ;;  %v12281_v27 = vor.u32 %v18777_v2, %v536_v15  ;;  %v12286_v32 = vsel %vm445_vm0, %v516_v22, %v520_v58  ;;  %v532_v34 = vor.u32 %v18779_v23, %v528_v63  ;;  %v577_v49 = vrot.slane %v12126_v0, 1  ;;  %10797 = vmatpush3.bf16.msra.mxu0 %v11872_v45  ;;  %v12641_v45 = vld [vmem:[%s12123_s14 + $0x18] sm:$0xff]  }
  0x25   : > { %19241 = vst [vmem:[#allocation13_spill] sm:$0xff] %v12286_v32  ;;  %v574_v57 = vrot.slane %v10054_v35, 1  ;;  %v579_v60 = vrot.slane %v12129_v1, 1  ;;  %v581_v63 = vrot.slane %v12146_v10, 1  ;;  %v583_v16 = vrot.slane %v12153_v13, 1 }
  0x26   : > { %554 = vrot.lane.b32.xlu0 %v12246_v59, %s12047_s15  ;;  %v12295_v40 = vsel %vm445_vm0, %v12281_v27, %v544_v31  ;;  %v12302_v50 = vsel %vm445_vm0, %v532_v34, %v536_v15  ;;  %v12307_v58 = vsel %vm573_vm1, %v575_v46, %v577_v49  ;;  %v585_v22 = vrot.slane %v12165_v21, 1 }
  0x27   : > { %560 = vrot.lane.b32.xlu1 %v12258_v4, %s12047_s15  ;;  %19242 = vst [vmem:[#allocation14_spill] sm:$0xff] %v12295_v40  ;;  %19243 = vst [vmem:[#allocation15_spill] sm:$0xff] %v12302_v50  ;;  %v12314_v14 = vsel %vm573_vm1, %v574_v57, %v575_v46  ;;  %v12319_v15 = vsel %vm573_vm1, %v579_v60, %v581_v63  ;;  %v12326_v24 = vsel %vm573_vm1, %v577_v49, %v579_v60 }
  0x28   : > { %19244 = vst [vmem:[#allocation16_spill] sm:$0xff] %v12307_v58  ;;  %19245 = vst [vmem:[#allocation17_spill] sm:$0xff] %v12314_v14  ;;  %v12331_v31 = vsel %vm573_vm1, %v583_v16, %v585_v22  ;;  %v587_v34 = vrot.slane %v12191_v36, 1  ;;  %v589_v46 = vrot.slane %v12194_v37, 1  ;;  %v12338_v57 = vsel %vm573_vm1, %v581_v63, %v583_v16 }
  0x29   : > { %19246 = vst [vmem:[#allocation18_spill] sm:$0xff] %v12319_v15  ;;  %19247 = vst [vmem:[#allocation19_spill] sm:$0xff] %v12326_v24  ;;  %v591_v62 = vrot.slane %v12210_v44, 1  ;;  %v593_v2 = vrot.slane %v12219_v48, 1  ;;  %v628_v51 = vshrl.u32 %v10054_v35, 16  ;;  %v631_v63 = vshll.u32 %v10054_v35, 16 }
  0x2a   : > { %558 = vrot.lane.b32.xlu0 %v12268_v17, %s12047_s15  ;;  %19248 = vst [vmem:[#allocation20_spill] sm:$0xff] %v12331_v31  ;;  %19249 = vst [vmem:[#allocation21_spill] sm:$0xff] %v12338_v57  ;;  %v12343_v60 = vsel %vm573_vm1, %v587_v34, %v589_v46  ;;  %v12351_v23 = vsel %vm573_vm1, %v585_v22, %v587_v34  ;;  %v12356_v16 = vrot.slane %v12234_v55, 1  ;;  %v597_v53 = vrot.slane %v12237_v56, 1 }
  0x2b   : > { %564 = vrot.lane.b32.xlu1 %v12277_v26, %s12047_s15  ;;  %19250 = vst [vmem:[#allocation22_spill] sm:$0xff] %v12343_v60  ;;  %19251 = vst [vmem:[#allocation23_spill] sm:$0xff] %v12351_v23  ;;  %v635_v43 = vrot.slane %v458_v20, 1  ;;  %v636_v61 = vrot.slane %v454_v18, 2  ;;  %v12364_v41 = vsel %vm573_vm1, %v591_v62, %v593_v2  ;;  %v639_v35 = vrot.slane %v466_v6, 1 }
  0x2c   : > { %19252 = vst [vmem:[#allocation24_spill] sm:$0xff] %v12364_v41  ;;  %v640_v22 = vrot.slane %v462_v5, 2  ;;  %v12373_v56 = vcombine.low %v871_v54, %v12140_v8  ;;  %v12376_v20 = vsel %vm573_vm1, %v589_v46, %v591_v62  ;;  %v630_v34 = vrot.slane %v628_v51, 1 }
  0x2d   : > { %19253 = vst [vmem:[#allocation25_spill] sm:$0xff] %v12376_v20  ;;  %v633_v18 = vrot.slane %v631_v63, 2  ;;  %v643_v42 = vrot.slane %v474_v12, 1  ;;  %v12384_v5 = vsel %vm573_vm1, %v12356_v16, %v597_v53  ;;  %v644_v6 = vrot.slane %v470_v7, 2 }
  0x2e   : > { %562 = vrot.lane.b32.xlu0 %v12286_v32, %s12047_s15  ;;  %19254 = vst [vmem:[#allocation26_spill] sm:$0xff] %v12384_v5  ;;  %v902_v54 = vrot.slane %v12373_v56, 1  ;;  %v637_v29 = vor.u32 %v636_v61, %v635_v43  ;;  %v12389_v62 = vor.u32 %v640_v22, %v639_v35  ;;  %v647_v51 = vrot.slane %v482_v33, 1 }
  0x2f   : > { %568 = vrot.lane.b32.xlu1 %v12295_v40, %s12047_s15  ;;  %v648_v12 = vrot.slane %v478_v19, 2  ;;  %v12402_v7 = vsel %vm573_vm1, %v593_v2, %v12356_v16  ;;  %v634_v43 = vor.u32 %v633_v18, %v630_v34  ;;  %v651_v61 = vrot.slane %v490_v28, 1  ;;  %v12428_v18 = vld [vmem:[%s12123_s14 + $0x60] ss:$0 sps:$4 sm:$0x33]  }
  0x30   : > { %v12398_v53 = vsel %vm573_vm1, %v902_v54, %v577_v49  ;;  %19256 = vst [vmem:[#allocation28_spill] sm:$0xff] %v12402_v7  ;;  %v652_v33 = vrot.slane %v486_v25, 2  ;;  %v655_v19 = vrot.slane %v498_v47, 1  ;;  %v19257_v49 = vshll.u32 %v12165_v21, 16 }
  0x31   : > { %19255 = vst [vmem:[#allocation27_spill] sm:$0xff] %v12398_v53  ;;  %v12416_v2 = vsel %vm626_vm2, %v637_v29, %v12389_v62  ;;  %v645_v63 = vor.u32 %v644_v6, %v643_v42  ;;  %v649_v35 = vor.u32 %v648_v12, %v647_v51  ;;  %v12421_v25 = vsel %vm626_vm2, %v634_v43, %v637_v29 }
  0x32   : > { %566 = vrot.lane.b32.xlu0 %v12302_v50, %s12047_s15  ;;  %v656_v46 = vrot.slane %v19257_v49, 2  ;;  %19258 = vst [vmem:[#allocation29_spill] sm:$0xff] %v12416_v2  ;;  %19259 = vst [vmem:[#allocation30_spill] sm:$0xff] %v12421_v25  ;;  %v19260_v28 = vshrl.u32 %v12191_v36, 16  ;;  %v19261_v47 = vshll.u32 %v12191_v36, 16  ;;  %v653_v42 = vor.u32 %v652_v33, %v651_v61 }
  0x33   : > { %601 = vrot.lane.b32.xlu1 %v12307_v58, %s12048_s16  ;;  %v12433_v54 = vsel %vm626_vm2, %v645_v63, %v649_v35  ;;  %v19263_v29 = vshrl.u32 %v12194_v37, 16  ;;  %v19264_v12 = vshll.u32 %v12194_v37, 16  ;;  %v12443_v49 = vsel %vm626_vm2, %v12389_v62, %v645_v63 }
  0x34   : > { %v659_v22 = vrot.slane %v19260_v28, 1  ;;  %v660_v34 = vrot.slane %v19261_v47, 2  ;;  %v657_v6 = vor.u32 %v656_v46, %v655_v19  ;;  %19262 = vst [vmem:[#allocation31_spill] sm:$0xff] %v12433_v54  ;;  %19265 = vst [vmem:[#allocation32_spill] sm:$0xff] %v12443_v49  ;;  %v19267_v33 = vshrl.u32 %v12210_v44, 16 }
  0x35   : > { %v663_v51 = vrot.slane %v19263_v29, 1  ;;  %v664_v43 = vrot.slane %v19264_v12, 2  ;;  %v19268_v46 = vshll.u32 %v12210_v44, 16  ;;  %v19269_v29 = vshrl.u32 %v12219_v48, 16 }
  0x36   : > { %599 = vrot.lane.b32.xlu0 %v12314_v14, %s12048_s16  ;;  %v661_v28 = vor.u32 %v660_v34, %v659_v22  ;;  %v12448_v61 = vsel %vm626_vm2, %v653_v42, %v657_v6  ;;  %v667_v19 = vrot.slane %v19267_v33, 1  ;;  %v19270_v63 = vshll.u32 %v12219_v48, 16 }
  0x37   : > { %605 = vrot.lane.b32.xlu1 %v12319_v15, %s12048_s16  ;;  %19266 = vst [vmem:[#allocation33_spill] sm:$0xff] %v12448_v61  ;;  %v668_v47 = vrot.slane %v19268_v46, 2  ;;  %v671_v12 = vrot.slane %v19269_v29, 1  ;;  %v665_v40 = vor.u32 %v664_v43, %v663_v51  ;;  %v680_v22 = vshrl.u32 %v12428_v18, 16 }
  0x38   : > { %v672_v38 = vrot.slane %v19270_v63, 2  ;;  %v683_v34 = vshll.u32 %v12428_v18, 16  ;;  %v12463_v33 = vsel %vm626_vm2, %v649_v35, %v653_v42  ;;  %v19272_v51 = vshrl.u32 %v12234_v55, 16  ;;  %v381_v42 = vld [vmem:[%s12123_s14] sm:$0xc] }
  0x39   : > { %19271 = vst [vmem:[#allocation34_spill] sm:$0xff] %v12463_v33  ;;  %v669_v46 = vor.u32 %v668_v47, %v667_v19  ;;  %v19273_v29 = vshll.u32 %v12234_v55, 16  ;;  %v12472_v50 = vsel %vm626_vm2, %v661_v28, %v665_v40  ;;  %v682_v32 = vrot.slane %v680_v22, 1 }
  0x3a   : > { %603 = vrot.lane.b32.xlu0 %v12326_v24, %s12048_s16  ;;  %v675_v43 = vrot.slane %v19272_v51, 1  ;;  %19274 = vst [vmem:[#allocation35_spill] sm:$0xff] %v12472_v50  ;;  %v673_v26 = vor.u32 %v672_v38, %v671_v12  ;;  %v685_v4 = vrot.slane %v683_v34, 2  ;;  %v12477_v35 = vsel %vm626_vm2, %v657_v6, %v661_v28 }
  0x3b   : > { %609 = vrot.lane.b32.xlu1 %v12331_v31, %s12048_s16  ;;  %v676_v63 = vrot.slane %v19273_v29, 2  ;;  %19275 = vst [vmem:[#allocation36_spill] sm:$0xff] %v12477_v35  ;;  %v12490_v38 = vsel %vm626_vm2, %v665_v40, %v669_v46  ;;  %v10056_v12 = vcombine.low %v381_v42, %v12133_v3  ;;  %v717_v28 = vrot.slane %v12149_v11, 2 }
  0x3c   : > { %v12483_v19 = vsel %vm626_vm2, %v669_v46, %v673_v26  ;;  %v686_v51 = vor.u32 %v685_v4, %v682_v32  ;;  %19277 = vst [vmem:[#allocation38_spill] sm:$0xff] %v12490_v38  ;;  %v12501_v22 = vrot.slane %v12126_v0, 2  ;;  %v721_v0 = vrot.slane %v12129_v1, 2 }
  0x3d   : > { %19276 = vst [vmem:[#allocation37_spill] sm:$0xff] %v12483_v19  ;;  %v12485_v47 = vor.u32 %v676_v63, %v675_v43  ;;  %v716_v3 = vrot.slane %v10056_v12, 2  ;;  %v723_v40 = vrot.slane %v12146_v10, 2  ;;  %v725_v46 = vrot.slane %v12153_v13, 2  ;;  %v12543_v13 = vld [vmem:[%s12123_s14 + $0x60] sm:$0xff]  }
  0x3e   : > { %607 = vrot.lane.b32.xlu0 %v12338_v57, %s12048_s16  ;;  %v12513_v32 = vsel %vm715_vm3, %v717_v28, %v12501_v22  ;;  %v727_v1 = vrot.slane %v12165_v21, 2  ;;  %v12533_v10 = vsel %vm715_vm3, %v12501_v22, %v721_v0  ;;  %v729_v29 = vrot.slane %v12191_v36, 2  ;;  %v12548_v21 = vld [vmem:[%s12123_s14 + $0x68] ss:$0 sps:$4 sm:$0x11]  }
  0x3f   : > { %613 = vrot.lane.b32.xlu1 %v12343_v60, %s12048_s16  ;;  %v12497_v6 = vsel %vm626_vm2, %v12485_v47, %v686_v51  ;;  %v12507_v4 = vsel %vm626_vm2, %v673_v26, %v12485_v47  ;;  %19280 = vst [vmem:[#allocation41_spill] sm:$0xff] %v12513_v32  ;;  %v12520_v26 = vsel %vm715_vm3, %v716_v3, %v717_v28  ;;  %19283 = vst [vmem:[#allocation44_spill] sm:$0xff] %v12533_v10 }
  0x40   : > { %19278 = vst [vmem:[#allocation39_spill] sm:$0xff] %v12497_v6  ;;  %19279 = vst [vmem:[#allocation40_spill] sm:$0xff] %v12507_v4  ;;  %v12525_v34 = vsel %vm715_vm3, %v721_v0, %v723_v40  ;;  %v12538_v43 = vsel %vm715_vm3, %v725_v46, %v727_v1  ;;  %v731_v63 = vrot.slane %v12194_v37, 2  ;;  %v12551_v42 = vsel %vm715_vm3, %v723_v40, %v725_v46 }
  0x41   : > { %19281 = vst [vmem:[#allocation42_spill] sm:$0xff] %v12520_v26  ;;  %19282 = vst [vmem:[#allocation43_spill] sm:$0xff] %v12525_v34  ;;  %v733_v51 = vrot.slane %v12210_v44, 2  ;;  %v735_v37 = vrot.slane %v12219_v48, 2  ;;  %v883_v12 = vshll.u32 %v12543_v13, 16  ;;  %v12564_v28 = vsel %vm715_vm3, %v727_v1, %v729_v29 }
  0x42   : > { %611 = vrot.lane.b32.xlu0 %v12351_v23, %s12048_s16  ;;  %19284 = vst [vmem:[#allocation45_spill] sm:$0xff] %v12538_v43  ;;  %19285 = vst [vmem:[#allocation46_spill] sm:$0xff] %v12551_v42  ;;  %v12557_v36 = vsel %vm715_vm3, %v729_v29, %v731_v63  ;;  %v12569_v3 = vrot.slane %v12234_v55, 2  ;;  %v739_v44 = vrot.slane %v12428_v18, 2  ;;  %v891_v0 = vshll.u32 %v12548_v21, 16 }
  0x43   : > { %617 = vrot.lane.b32.xlu1 %v12364_v41, %s12048_s16  ;;  %19286 = vst [vmem:[#allocation47_spill] sm:$0xff] %v12557_v36  ;;  %19287 = vst [vmem:[#allocation48_spill] sm:$0xff] %v12564_v28  ;;  %v12574_v48 = vsel %vm715_vm3, %v733_v51, %v735_v37  ;;  %v885_v40 = vrot.slane %v883_v12, 1  ;;  %v887_v46 = vshrl.u32 %v12543_v13, 16  ;;  %v12580_v1 = vsel %vm715_vm3, %v731_v63, %v733_v51 }
  0x44   : > { %19288 = vst [vmem:[#allocation49_spill] sm:$0xff] %v12574_v48  ;;  %19289 = vst [vmem:[#allocation50_spill] sm:$0xff] %v12580_v1  ;;  %v12583_v29 = vld [vmem:[%s12123_s14 + $0x68] ss:$0 sps:$4 sm:$0x33]   ;;  %v893_v55 = vrot.slane %v891_v0, 1  ;;  %v12589_v18 = vsel %vm715_vm3, %v12569_v3, %v739_v44  ;;  %v12597_v63 = vsel %vm715_vm3, %v735_v37, %v12569_v3 }
  0x45   : > { %19290 = vst [vmem:[#allocation51_spill] sm:$0xff] %v12589_v18  ;;  %v889_v17 = vor.u32 %v887_v46, %v885_v40  ;;  %v918_v52 = vshrl.u32 %v12373_v56, 16  ;;  %v921_v59 = vshll.u32 %v12373_v56, 16  ;;  %19291 = vst [vmem:[#allocation52_spill] sm:$0xff] %v12597_v63  ;;  %v904_v51 = vrot.slane %v12543_v13, 1 }
  0x46   : > { %615 = vrot.lane.b32.xlu0 %v12376_v20, %s12048_s16  ;;  %v931_v44 = vshrl.u32 %v12583_v29, 16  ;;  %v934_v56 = vshll.u32 %v12583_v29, 16  ;;  %v1300_v37 = vld [vmem:[%s12123_s14 + $0x10] sm:$0xf] }
  0x47   : > { %621 = vrot.lane.b32.xlu1 %v12384_v5, %s12048_s16  ;;  %v12604_v0 = vsel %vm445_vm0, %v889_v17, %v893_v55  ;;  %v920_v39 = vrot.slane %v918_v52, 1  ;;  %v923_v30 = vrot.slane %v921_v59, 2  ;;  %v12624_v52 = vsel %vm573_vm1, %v12356_v16, %v904_v51 }
  0x48   : > { %19292 = vst [vmem:[#allocation53_spill] sm:$0xff] %v12604_v0  ;;  %19294 = vst [vmem:[#allocation55_spill] sm:$0xff] %v12624_v52  ;;  %v926_v59 = vrot.slane %v887_v46, 1  ;;  %v927_v17 = vrot.slane %v883_v12, 2  ;;  %v906_v16 = vrot.slane %v12548_v21, 1 }
  0x49   : > { %v924_v55 = vor.u32 %v923_v30, %v920_v39  ;;  %v873_v39 = vld [vmem:[%s12123_s14 + $0x8] sm:$0xc] }
  0x4a   : > { %619 = vrot.lane.b32.xlu0 %v12402_v7, %s12048_s16 }
  0x4b   : > { %690 = vrot.lane.b32.xlu1 %v12416_v2, %s12049_s17  ;;  %v12645_v12 = vsel %vm626_vm2, %v924_v55, %v12389_v62  ;;  %v950_v62 = vrot.slane %v12543_v13, 2  ;;  %v12669_v55 = vld [vmem:[%s12123_s14 + $0x28] sm:$0xff]  }
  0x4c   : > { %19296 = vst [vmem:[#allocation57_spill] sm:$0xff] %v12645_v12  ;;  %v19352_v31 = vshrl.u32 %v12669_v55, 16 }
  0x4e   : > { %688 = vrot.lane.b32.xlu0 %v12421_v25, %s12049_s17 }
  0x4f   : > { %694 = vrot.lane.b32.xlu1 %v12433_v54, %s12049_s17 }
  0x52   : > { %692 = vrot.lane.b32.xlu0 %v12443_v49, %s12049_s17 }
  0x53   : > { %698 = vrot.lane.b32.xlu1 %v12448_v61, %s12049_s17 }
  0x56   : > { %696 = vrot.lane.b32.xlu0 %v12463_v33, %s12049_s17 }
  0x57   : > { %702 = vrot.lane.b32.xlu1 %v12472_v50, %s12049_s17 }
  0x5a   : > { %700 = vrot.lane.b32.xlu0 %v12477_v35, %s12049_s17 }
  0x5b   : > { %706 = vrot.lane.b32.xlu1 %v12483_v19, %s12049_s17 }
  0x5e   : > { %704 = vrot.lane.b32.xlu0 %v12490_v38, %s12049_s17 }
  0x5f   : > { %710 = vrot.lane.b32.xlu1 %v12497_v6, %s12049_s17 }
  0x62   : > { %708 = vrot.lane.b32.xlu0 %v12507_v4, %s12049_s17 }
  0x63   : > { %743 = vrot.lane.b32.xlu1 %v12513_v32, %s12050_s18  ;;  %v1325_v32 = vld [vmem:[%s12123_s14 + $0x10] sm:$0xe] }
  0x66   : > { %741 = vrot.lane.b32.xlu0 %v12520_v26, %s12050_s18 }
  0x67   : > { %747 = vrot.lane.b32.xlu1 %v12525_v34, %s12050_s18 }
  0x6a   : > { %745 = vrot.lane.b32.xlu0 %v12533_v10, %s12050_s18 }
  0x6b   : > { %751 = vrot.lane.b32.xlu1 %v12538_v43, %s12050_s18 }
  0x6e   : > { %749 = vrot.lane.b32.xlu0 %v12551_v42, %s12050_s18 }
  0x6f   : > { %755 = vrot.lane.b32.xlu1 %v12557_v36, %s12050_s18  ;;  %v936_v36 = vrot.slane %v934_v56, 2  ;;  %v12654_v56 = vsel %vm573_vm1, %v904_v51, %v906_v16  ;;  %v12682_v16 = vsel %vm715_vm3, %v12569_v3, %v950_v62 }
  0x70   : > { %19297 = vst [vmem:[#allocation58_spill] sm:$0xff] %v12654_v56  ;;  %19300 = vst [vmem:[#allocation61_spill] sm:$0xff] %v12682_v16 }
  0x72   : > { %753 = vrot.lane.b32.xlu0 %v12564_v28, %s12050_s18  ;;  %v12783_v28 = vld [vmem:[%s12123_s14 + $0x68] sm:$0xff]  }
  0x73   : > { %759 = vrot.lane.b32.xlu1 %v12574_v48, %s12050_s18  ;;  %v12618_v48 = vsel %vm445_vm0, %v12281_v27, %v885_v40  ;;  %v11875_v27 = vld [vmem:[%s18767_s1 + $0x14] ss:$0 sps:$4 sm:$0x33]   ;;  %v928_v40 = vor.u32 %v927_v17, %v926_v59  ;;  %v18884_v26 = vshrl.u32 %v12783_v28, 16 }
  0x74   : > { %19293 = vst [vmem:[#allocation54_spill] sm:$0xff] %v12618_v48  ;;  %11784 = vmatprep.subr.msk.bf16.mxu0 %vm1020_vm4, %v11875_v27  ;;  %v1022_v30 = vsel %vm1020_vm4, %v11875_v27, 0 }
  0x75   : > { %10799 = vmatpush3.bf16.msra.mxu0 %v1022_v30  ;;  %v12676_v13 = vsel %vm626_vm2, %v12485_v47, %v928_v40 }
  0x76   : > { %757 = vrot.lane.b32.xlu0 %v12580_v1, %s12050_s18  ;;  %19299 = vst [vmem:[#allocation60_spill] sm:$0xff] %v12676_v13 }
  0x77   : > { %763 = vrot.lane.b32.xlu1 %v12589_v18, %s12050_s18  ;;  %v12614_v18 = vld [vmem:[%s12123_s14 + $0x14] sm:$0xf] }
  0x78   : > { %v12627_v1 = vcombine.low %v1300_v37, %v12614_v18  ;;  %v10061_v37 = vcombine.low %v873_v39, %v12140_v8  ;;  %v12687_v39 = vld [vmem:[%s12123_s14 + $0x38] sm:$0xff]  }
  0x7a   : > { %761 = vrot.lane.b32.xlu0 %v12597_v63, %s12050_s18  ;;  %v933_v63 = vrot.slane %v931_v44, 1  ;;  %19295 = vst [vmem:[#allocation56_spill] sm:$0xff] %v12627_v1  ;;  %v1394_v21 = vshll.u32 %v12627_v1, 16  ;;  %v12649_v44 = vld [vmem:[%s12123_s14 + $0x20] sm:$0xff]   ;;  %v1392_v17 = vshrl.u32 %v12627_v1, 16  ;;  %v948_v27 = vrot.slane %v10061_v37, 2 }
  0x7b   : > { %897 = vrot.lane.b32.xlu1 %v12604_v0, %s12047_s15  ;;  %v18824_v8 = vshll.u32 %v12649_v44, 16  ;;  %v12695_v0 = vld [vmem:[%s12123_s14 + $0x40] sm:$0xff]  }
  0x7c   : > { %v937_v46 = vor.u32 %v936_v36, %v933_v63  ;;  %v18823_v36 = vshll.u32 %v12641_v45, 16  ;;  %v12662_v63 = vld [vmem:[%s12123_s14 + $0x30] sm:$0xff]   ;;  %v1396_v51 = vrot.slane %v1394_v21, 1  ;;  %v12701_v3 = vsel %vm715_vm3, %v948_v27, %v12501_v22 }
  0x7d   : > { %v1409_v47 = vrot.slane %v18824_v8, 1  ;;  %19301 = vst [vmem:[#allocation62_spill] sm:$0xff] %v12701_v3  ;;  %v1529_v50 = vrot.slane %v12695_v0, 1 }
  0x7e   : > { %895 = vrot.lane.b32.xlu0 %v12618_v48, %s12047_s15  ;;  %v12665_v59 = vsel %vm626_vm2, %v928_v40, %v937_v46  ;;  %v1401_v30 = vrot.slane %v18823_v36, 1  ;;  %v18831_v46 = vshll.u32 %v12662_v63, 16  ;;  %v1397_v21 = vor.u32 %v1396_v51, %v1392_v17  ;;  %v12712_v40 = vld [vmem:[%s12123_s14 + $0x48] sm:$0xff]  }
  0x7f   : > { %910 = vrot.lane.b32.xlu1 %v12624_v52, %s12048_s16  ;;  %19298 = vst [vmem:[#allocation59_spill] sm:$0xff] %v12665_v59  ;;  %v952_v36 = vrot.slane %v12583_v29, 2  ;;  %v19303_v29 = vshrl.u32 %v12649_v44, 16  ;;  %v19304_v17 = vshll.u32 %v12669_v55, 16  ;;  %v1531_v38 = vrot.slane %v12712_v40, 1 }
  0x80   : > { %v1425_v51 = vrot.slane %v18831_v46, 1  ;;  %v12715_v22 = vsel %vm445_vm0, %v1397_v21, %v1401_v30  ;;  %v19306_v21 = vshrl.u32 %v12641_v45, 16 }
  0x81   : > { %19302 = vst [vmem:[#allocation63_spill] sm:$0xff] %v12715_v22  ;;  %v1413_v27 = vor.u32 %v19303_v29, %v1409_v47  ;;  %v1417_v48 = vrot.slane %v19304_v17, 1  ;;  %v12730_v37 = vsel %vm715_vm3, %v950_v62, %v952_v36  ;;  %v19308_v17 = vshrl.u32 %v12662_v63, 16  ;;  %v12745_v62 = vld [vmem:[%s12123_s14 + $0x58] sm:$0xff]  }
  0x82   : > { %908 = vrot.lane.b32.xlu0 %v12398_v53, %s12048_s16  ;;  %19305 = vst [vmem:[#allocation64_spill] sm:$0xff] %v12730_v37  ;;  %v1405_v8 = vor.u32 %v19306_v21, %v1401_v30  ;;  %v19311_v30 = vshll.u32 %v12695_v0, 16  ;;  %v12755_v53 = vld [vmem:[%s12123_s14 + $0x60] sm:$0xff]   ;;  %v19315_v29 = vshll.u32 %v12712_v40, 16  ;;  %v1535_v61 = vrot.slane %v12745_v62, 1 }
  0x83   : > { %939 = vrot.lane.b32.xlu1 %v12645_v12, %s12049_s17  ;;  %v12748_v36 = vsel %vm445_vm0, %v1413_v27, %v1417_v48  ;;  %v19313_v27 = vshrl.u32 %v12669_v55, 16  ;;  %v12926_v35 = vsel %vm573_vm1, %v1529_v50, %v1531_v38  ;;  %v1537_v2 = vrot.slane %v12755_v53, 1 }
  0x84   : > { %19310 = vst [vmem:[#allocation66_spill] sm:$0xff] %v12748_v36  ;;  %v1441_v21 = vrot.slane %v19311_v30, 1  ;;  %19343 = vst [vmem:[#allocation86_spill] sm:$0xff] %v12926_v35  ;;  %v19374_v24 = vshrl.u32 %v12745_v62, 16 }
  0x85   : > { %v1421_v12 = vor.u32 %v19313_v27, %v1417_v48  ;;  %v12975_v15 = vsel %vm573_vm1, %v1535_v61, %v1537_v2 }
  0x86   : > { %912 = vrot.lane.b32.xlu0 %v12654_v56, %s12048_s16  ;;  %19355 = vst [vmem:[#allocation92_spill] sm:$0xff] %v12975_v15 }
  0x87   : > { %943 = vrot.lane.b32.xlu1 %v12665_v59, %s12049_s17 }
  0x8a   : > { %941 = vrot.lane.b32.xlu0 %v12676_v13, %s12049_s17  ;;  %v12723_v13 = vld [vmem:[%s12123_s14 + $0x50] sm:$0xff]  }
  0x8b   : > { %956 = vrot.lane.b32.xlu1 %v12682_v16, %s12050_s18  ;;  %v1429_v16 = vor.u32 %v19308_v17, %v1425_v51  ;;  %v12762_v17 = vsel %vm445_vm0, %v1405_v8, %v1409_v47  ;;  %v19316_v8 = vshrl.u32 %v12695_v0, 16  ;;  %v19317_v48 = vshll.u32 %v12723_v13, 16 }
  0x8c   : > { %19312 = vst [vmem:[#allocation67_spill] sm:$0xff] %v12762_v17 }
  0x8d   : > { %v12727_v46 = vpop.permute.xlu1 %550  ;;  %v1445_v47 = vor.u32 %v19316_v8, %v1441_v21  ;;  %v1457_v27 = vrot.slane %v19317_v48, 1  ;;  %v19319_v8 = vshrl.u32 %v12687_v39, 16  ;;  %v19327_v48 = vshrl.u32 %v12755_v53, 16 }
  0x8e   : > { %954 = vrot.lane.b32.xlu0 %v12701_v3, %s12050_s18  ;;  %v19309_v3 = vshll.u32 %v12687_v39, 16 }
  0x8f   : > { %1491 = vrot.lane.b32.xlu1 %v12715_v22, %s12047_s15 }
  0x90   : > { %v12735_v59 = vpop.permute.xlu0 %546  ;;  %v1433_v56 = vrot.slane %v19309_v3, 1 }
  0x91   : > { %19307 = vst [vmem:[#allocation65_spill] sm:$0xff] %v12735_v59  ;;  %v12759_v3 = vpop.permute.xlu1 %552 }
  0x92   : > { %958 = vrot.lane.b32.xlu0 %v12730_v37, %s12050_s18  ;;  %v12772_v22 = vsel %vm445_vm0, %v1429_v16, %v1433_v56  ;;  %v1449_v37 = vrot.slane %v19315_v29, 1  ;;  %v12791_v29 = vsel %vm445_vm0, %v1421_v12, %v1425_v51  ;;  %v1437_v43 = vor.u32 %v19319_v8, %v1433_v56 }
  0x93   : > { %1495 = vrot.lane.b32.xlu1 %v12748_v36, %s12047_s15  ;;  %19314 = vst [vmem:[#allocation68_spill] sm:$0xff] %v12772_v22  ;;  %19318 = vst [vmem:[#allocation69_spill] sm:$0xff] %v12791_v29  ;;  %v19320_v36 = vshll.u32 %v12745_v62, 16  ;;  %v19322_v12 = vshrl.u32 %v12723_v13, 16  ;;  %v19323_v56 = vshll.u32 %v12755_v53, 16 }
  0x94   : > { %v12767_v52 = vpop.permute.xlu0 %548  ;;  %v12804_v42 = vsel %vm445_vm0, %v1445_v47, %v1449_v37  ;;  %v19325_v47 = vshrl.u32 %v12712_v40, 16 }
  0x95   : > { %v12788_v16 = vpop.permute.xlu1 %556  ;;  %v1465_v34 = vrot.slane %v19320_v36, 1  ;;  %19321 = vst [vmem:[#allocation70_spill] sm:$0xff] %v12804_v42  ;;  %v1461_v51 = vor.u32 %v19322_v12, %v1457_v27  ;;  %v1473_v8 = vrot.slane %v19323_v56, 1  ;;  %v12817_v36 = vsel %vm445_vm0, %v1437_v43, %v1441_v21  ;;  %v12823_v12 = vld [vmem:[%s12123_s14 + $0x70] ss:$0 sps:$4 sm:$0x11]  }
  0x96   : > { %1493 = vrot.lane.b32.xlu0 %v12762_v17, %s12047_s15  ;;  %19324 = vst [vmem:[#allocation71_spill] sm:$0xff] %v12817_v36  ;;  %v1453_v17 = vor.u32 %v19325_v47, %v1449_v37  ;;  %v19328_v43 = vshll.u32 %v12783_v28, 16  ;;  %v10106_v37 = vcombine.low %v1325_v32, %v12614_v18 }
  0x97   : > { %1499 = vrot.lane.b32.xlu1 %v12772_v22, %s12047_s15  ;;  %v12830_v56 = vsel %vm445_vm0, %v1461_v51, %v1465_v34 }
  0x98   : > { %v12796_v30 = vpop.permute.xlu0 %554  ;;  %19326 = vst [vmem:[#allocation72_spill] sm:$0xff] %v12830_v56  ;;  %v1481_v21 = vrot.slane %v19328_v43, 1  ;;  %v12842_v10 = vsel %vm445_vm0, %v1453_v17, %v1457_v27  ;;  %v1518_v43 = vrot.slane %v10106_v37, 1  ;;  %v1571_v54 = vshrl.u32 %v10106_v37, 16 }
  0x99   : > { %v12813_v22 = vpop.permute.xlu1 %560  ;;  %19329 = vst [vmem:[#allocation73_spill] sm:$0xff] %v12842_v10  ;;  %v1574_v33 = vshll.u32 %v10106_v37, 16  ;;  %v1539_v37 = vrot.slane %v12783_v28, 1 }
  0x9a   : > { %1497 = vrot.lane.b32.xlu0 %v12791_v29, %s12047_s15  ;;  %v1477_v29 = vor.u32 %v19327_v48, %v1473_v8  ;;  %v1487_v48 = vshll.u32 %v12823_v12, 16  ;;  %v1573_v49 = vrot.slane %v1571_v54, 1 }
  0x9b   : > { %1503 = vrot.lane.b32.xlu1 %v12804_v42, %s12047_s15  ;;  %v19330_v42 = vshrl.u32 %v12745_v62, 16  ;;  %v1576_v5 = vrot.slane %v1574_v33, 2  ;;  %v12960_v54 = vsel %vm573_vm1, %v1537_v2, %v1539_v37  ;;  %v19350_v33 = vshrl.u32 %v12649_v44, 16 }
  0x9c   : > { %v12825_v6 = vpop.permute.xlu0 %558  ;;  %v12853_v32 = vsel %vm445_vm0, %v1477_v29, %v1481_v21  ;;  %v1489_v27 = vrot.slane %v1487_v48, 1  ;;  %19349 = vst [vmem:[#allocation90_spill] sm:$0xff] %v12960_v54  ;;  %v19360_v2 = vshrl.u32 %v12687_v39, 16 }
  0x9d   : > { %v12839_v47 = vpop.permute.xlu1 %564  ;;  %v1469_v51 = vor.u32 %v19330_v42, %v1465_v34  ;;  %19331 = vst [vmem:[#allocation74_spill] sm:$0xff] %v12853_v32  ;;  %v1485_v42 = vor.u32 %v18884_v26, %v1481_v21  ;;  %v1527_v26 = vrot.slane %v12687_v39, 1 }
  0x9e   : > { %1501 = vrot.lane.b32.xlu0 %v12817_v36, %s12047_s15  ;;  %v1519_v36 = vrot.slane %v12641_v45, 1 }
  0x9f   : > { %1507 = vrot.lane.b32.xlu1 %v12830_v56, %s12047_s15  ;;  %v12861_v34 = vsel %vm445_vm0, %v1469_v51, %v1473_v8  ;;  %v1521_v56 = vrot.slane %v12649_v44, 1  ;;  %v12879_v21 = vsel %vm445_vm0, %v1485_v42, %v1489_v27 }
  0xa0   : > { %v12848_v19 = vpop.permute.xlu0 %562  ;;  %19333 = vst [vmem:[#allocation76_spill] sm:$0xff] %v12861_v34  ;;  %v12870_v29 = vsel %vm573_vm1, %v1518_v43, %v1519_v36  ;;  %19337 = vst [vmem:[#allocation80_spill] sm:$0xff] %v12879_v21  ;;  %v1525_v43 = vrot.slane %v12662_v63, 1 }
  0xa1   : > { %v12858_v17 = vpop.permute.xlu1 %568  ;;  %19335 = vst [vmem:[#allocation78_spill] sm:$0xff] %v12870_v29  ;;  %v12900_v27 = vsel %vm573_vm1, %v1519_v36, %v1521_v56 }
  0xa2   : > { %1505 = vrot.lane.b32.xlu0 %v12842_v10, %s12047_s15  ;;  %19332 = vst [vmem:[#allocation75_spill] sm:$0xff] %v12858_v17  ;;  %v1523_v10 = vrot.slane %v12669_v55, 1  ;;  %19340 = vst [vmem:[#allocation83_spill] sm:$0xff] %v12900_v27 }
  0xa3   : > { %1511 = vrot.lane.b32.xlu1 %v12853_v32, %s12047_s15  ;;  %v12893_v32 = vld [vmem:[%s18767_s1] sm:$0xff]  }
  0xa4   : > { %v12865_v4 = vpop.permute.xlu0 %566  ;;  %v12886_v48 = vsel %vm573_vm1, %v1521_v56, %v1523_v10  ;;  %10824 = vmatprep.subr.bf16.mxu0 %v12893_v32  ;;  %v12917_v36 = vsel %vm573_vm1, %v1523_v10, %v1525_v43  ;;  %v12933_v10 = vsel %vm573_vm1, %v1527_v26, %v1529_v50  ;;  %v19347_v50 = vshll.u32 %v12641_v45, 16 }
  0xa5   : > { %19334 = vst [vmem:[#allocation77_spill] sm:$0xff] %v12865_v4  ;;  %v12876_v8 = vpop.permute.xlu1 %601  ;;  %19339 = vst [vmem:[#allocation82_spill] sm:$0xff] %v12886_v48 }
  0xa6   : > { %1509 = vrot.lane.b32.xlu0 %v12861_v34, %s12047_s15  ;;  %19336 = vst [vmem:[#allocation79_spill] sm:$0xff] %v12876_v8  ;;  %19342 = vst [vmem:[#allocation85_spill] sm:$0xff] %v12917_v36 }
  0xa7   : > { %1543 = vrot.lane.b32.xlu1 %v12870_v29, %s12048_s16  ;;  %v12908_v29 = vsel %vm573_vm1, %v1525_v43, %v1527_v26  ;;  %19344 = vst [vmem:[#allocation87_spill] sm:$0xff] %v12933_v10  ;;  %v1579_v26 = vrot.slane %v19347_v50, 2  ;;  %v19351_v50 = vshll.u32 %v12649_v44, 16 }
  0xa8   : > { %v12881_v51 = vpop.permute.xlu0 %599  ;;  %19341 = vst [vmem:[#allocation84_spill] sm:$0xff] %v12908_v29 }
  0xa9   : > { %19338 = vst [vmem:[#allocation81_spill] sm:$0xff] %v12881_v51  ;;  %v12897_v42 = vpop.permute.xlu1 %605  ;;  %v1583_v60 = vrot.slane %v19351_v50, 2 }
  0xaa   : > { %1513 = vrot.lane.b32.xlu0 %v12879_v21, %s12047_s15 }
  0xab   : > { %1547 = vrot.lane.b32.xlu1 %v12886_v48, %s12048_s16  ;;  %v1533_v48 = vrot.slane %v12723_v13, 1 }
  0xac   : > { %v12903_v34 = vpop.permute.xlu0 %603 }
  0xad   : > { %v12914_v21 = vpop.permute.xlu1 %609 }
  0xae   : > { %1545 = vrot.lane.b32.xlu0 %v12900_v27, %s12048_s16 }
  0xaf   : > { %1551 = vrot.lane.b32.xlu1 %v12908_v29, %s12048_s16  ;;  %v12940_v29 = vsel %vm573_vm1, %v1533_v48, %v1535_v61  ;;  %v1594_v61 = vrot.slane %v19360_v2, 1 }
  0xb0   : > { %v12919_v56 = vpop.permute.xlu0 %607  ;;  %19345 = vst [vmem:[#allocation88_spill] sm:$0xff] %v12940_v29 }
  0xb1   : > { %v12930_v27 = vpop.permute.xlu1 %613 }
  0xb2   : > { %1549 = vrot.lane.b32.xlu0 %v12917_v36, %s12048_s16  ;;  %v19346_v36 = vshrl.u32 %v12641_v45, 16 }
  0xb3   : > { %1555 = vrot.lane.b32.xlu1 %v12926_v35, %s12048_s16  ;;  %v12953_v35 = vsel %vm573_vm1, %v1531_v38, %v1533_v48  ;;  %v1586_v38 = vrot.slane %v19352_v31, 1  ;;  %v19353_v48 = vshll.u32 %v12669_v55, 16  ;;  %v19357_v31 = vshrl.u32 %v12662_v63, 16 }
  0xb4   : > { %v12935_v43 = vpop.permute.xlu0 %611  ;;  %v1578_v25 = vrot.slane %v19346_v36, 1  ;;  %19348 = vst [vmem:[#allocation89_spill] sm:$0xff] %v12953_v35  ;;  %v1582_v36 = vrot.slane %v19350_v33, 1  ;;  %v1541_v33 = vrot.slane %v12823_v12, 1  ;;  %v19361_v12 = vshll.u32 %v12687_v39, 16 }
  0xb5   : > { %v12950_v41 = vpop.permute.xlu1 %617  ;;  %v1587_v23 = vrot.slane %v19353_v48, 2 }
  0xb6   : > { %1553 = vrot.lane.b32.xlu0 %v12933_v10, %s12048_s16  ;;  %v1577_v10 = vor.u32 %v1576_v5, %v1573_v49  ;;  %v1580_v20 = vor.u32 %v1579_v26, %v1578_v25  ;;  %v1584_v5 = vor.u32 %v1583_v60, %v1582_v36  ;;  %v1590_v25 = vrot.slane %v19357_v31, 1 }
  0xb7   : > { %1559 = vrot.lane.b32.xlu1 %v12940_v29, %s12048_s16  ;;  %v19358_v49 = vshll.u32 %v12662_v63, 16  ;;  %v1588_v48 = vor.u32 %v1587_v23, %v1586_v38  ;;  %v12998_v36 = vsel %vm573_vm1, %v1539_v37, %v1541_v33  ;;  %v19369_v33 = vshll.u32 %v12712_v40, 16 }
  0xb8   : > { %v12955_v7 = vpop.permute.xlu0 %615  ;;  %v12987_v50 = vsel %vm626_vm2, %v1577_v10, %v1580_v20  ;;  %19363 = vst [vmem:[#allocation96_spill] sm:$0xff] %v12998_v36  ;;  %v19365_v10 = vshrl.u32 %v12695_v0, 16 }
  0xb9   : > { %v12972_v29 = vpop.permute.xlu1 %621  ;;  %v1591_v26 = vrot.slane %v19358_v49, 2  ;;  %19359 = vst [vmem:[#allocation94_spill] sm:$0xff] %v12987_v50  ;;  %v19366_v49 = vshll.u32 %v12695_v0, 16  ;;  %v1603_v58 = vrot.slane %v19369_v33, 2 }
  0xba   : > { %1557 = vrot.lane.b32.xlu0 %v12953_v35, %s12048_s16  ;;  %19354 = vst [vmem:[#allocation91_spill] sm:$0xff] %v12972_v29  ;;  %v1595_v35 = vrot.slane %v19361_v12, 2  ;;  %v1598_v38 = vrot.slane %v19365_v10, 1  ;;  %v13009_v12 = vsel %vm626_vm2, %v1584_v5, %v1588_v48  ;;  %v19381_v29 = vshll.u32 %v12783_v28, 16 }
  0xbb   : > { %1563 = vrot.lane.b32.xlu1 %v12960_v54, %s12048_s16  ;;  %v1592_v23 = vor.u32 %v1591_v26, %v1590_v25  ;;  %v1599_v2 = vrot.slane %v19366_v49, 2  ;;  %19367 = vst [vmem:[#allocation98_spill] sm:$0xff] %v13009_v12  ;;  %v19368_v54 = vshrl.u32 %v12712_v40, 16  ;;  %v13020_v26 = vsel %vm626_vm2, %v1580_v20, %v1584_v5 }
  0xbc   : > { %v12978_v57 = vpop.permute.xlu0 %619  ;;  %19370 = vst [vmem:[#allocation99_spill] sm:$0xff] %v13020_v26  ;;  %v19372_v49 = vshll.u32 %v12723_v13, 16  ;;  %v1610_v20 = vrot.slane %v19374_v24, 1  ;;  %v19375_v5 = vshll.u32 %v12745_v62, 16  ;;  %v19377_v24 = vshrl.u32 %v12755_v53, 16 }
  0xbd   : > { %19356 = vst [vmem:[#allocation93_spill] sm:$0xff] %v12978_v57  ;;  %v12995_v60 = vpop.permute.xlu1 %690  ;;  %v1602_v37 = vrot.slane %v19368_v54, 1  ;;  %v19371_v54 = vshrl.u32 %v12723_v13, 16  ;;  %v1619_v17 = vrot.slane %v19381_v29, 2 }
  0xbe   : > { %1561 = vrot.lane.b32.xlu0 %v12975_v15, %s12048_s16  ;;  %19362 = vst [vmem:[#allocation95_spill] sm:$0xff] %v12995_v60  ;;  %v1596_v15 = vor.u32 %v1595_v35, %v1594_v61  ;;  %v1600_v35 = vor.u32 %v1599_v2, %v1598_v38  ;;  %v1607_v33 = vrot.slane %v19372_v49, 2  ;;  %v1611_v14 = vrot.slane %v19375_v5, 2 }
  0xbf   : > { %1631 = vrot.lane.b32.xlu1 %v12987_v50, %s12049_s17  ;;  %v1606_v61 = vrot.slane %v19371_v54, 1  ;;  %v13042_v2 = vsel %vm626_vm2, %v1588_v48, %v1592_v23  ;;  %v13045_v54 = vld [vmem:[%s12123_s14 + $0x70] ss:$0 sps:$4 sm:$0x33]   ;;  %v19378_v5 = vshll.u32 %v12755_v53, 16  ;;  %v19380_v48 = vshrl.u32 %v12783_v28, 16 }
  0xc0   : > { %v13000_v31 = vpop.permute.xlu0 %688  ;;  %v13031_v50 = vsel %vm626_vm2, %v1592_v23, %v1596_v15  ;;  %19376 = vst [vmem:[#allocation101_spill] sm:$0xff] %v13042_v2  ;;  %v1612_v1 = vor.u32 %v1611_v14, %v1610_v20 }
  0xc1   : > { %19364 = vst [vmem:[#allocation97_spill] sm:$0xff] %v13000_v31  ;;  %v13017_v25 = vpop.permute.xlu1 %694  ;;  %19373 = vst [vmem:[#allocation100_spill] sm:$0xff] %v13031_v50  ;;  %v1618_v23 = vrot.slane %v19380_v48, 1 }
  0xc2   : > { %1565 = vrot.lane.b32.xlu0 %v12998_v36, %s12048_s16  ;;  %v1604_v36 = vor.u32 %v1603_v58, %v1602_v37  ;;  %v1608_v58 = vor.u32 %v1607_v33, %v1606_v61  ;;  %v1614_v37 = vrot.slane %v19377_v24, 1  ;;  %v1327_v33 = vld [vmem:[%s12123_s14 + $0x10] sm:$0xc]  ;;  %v13068_v24 = vsel %vm626_vm2, %v1596_v15, %v1600_v35 }
  0xc3   : > { %1635 = vrot.lane.b32.xlu1 %v13009_v12, %s12049_s17  ;;  %v1615_v12 = vrot.slane %v19378_v5, 2  ;;  %19382 = vst [vmem:[#allocation103_spill] sm:$0xff] %v13068_v24  ;;  %v1623_v5 = vshrl.u32 %v13045_v54, 16  ;;  %v1620_v48 = vor.u32 %v1619_v17, %v1618_v23  ;;  %v1663_v23 = vrot.slane %v12669_v55, 2 }
  0xc4   : > { %v13022_v10 = vpop.permute.xlu0 %692  ;;  %v13077_v29 = vsel %vm626_vm2, %v1608_v58, %v1612_v1  ;;  %v1667_v55 = vrot.slane %v12687_v39, 2  ;;  %v1669_v39 = vrot.slane %v12695_v0, 2  ;;  %v13162_v0 = vld [vmem:[%s12123_s14 + $0x20] sm:$0xff]  }
  0xc5   : > { %v13039_v38 = vpop.permute.xlu1 %698  ;;  %19383 = vst [vmem:[#allocation104_spill] sm:$0xff] %v13077_v29  ;;  %v1616_v20 = vor.u32 %v1615_v12, %v1614_v37  ;;  %v1625_v60 = vrot.slane %v1623_v5, 1 }
  0xc6   : > { %1633 = vrot.lane.b32.xlu0 %v13020_v26, %s12049_s17  ;;  %v13056_v26 = vsel %vm626_vm2, %v1600_v35, %v1604_v36  ;;  %v13085_v35 = vsel %vm626_vm2, %v1604_v36, %v1608_v58 }
  0xc7   : > { %1639 = vrot.lane.b32.xlu1 %v13031_v50, %s12049_s17  ;;  %19379 = vst [vmem:[#allocation102_spill] sm:$0xff] %v13056_v26  ;;  %v1626_v50 = vshll.u32 %v13045_v54, 16  ;;  %19385 = vst [vmem:[#allocation106_spill] sm:$0xff] %v13085_v35  ;;  %v13092_v12 = vsel %vm626_vm2, %v1616_v20, %v1620_v48  ;;  %v13100_v36 = vsel %vm626_vm2, %v1612_v1, %v1616_v20  ;;  %v1996_v20 = vld [vmem:[%s12123_s14 + $0x18] sm:$0xf] }
  0xc8   : > { %v13047_v49 = vpop.permute.xlu0 %696  ;;  %19387 = vst [vmem:[#allocation108_spill] sm:$0xff] %v13092_v12  ;;  %19389 = vst [vmem:[#allocation110_spill] sm:$0xff] %v13100_v36 }
  0xc9   : > { %v13064_v61 = vpop.permute.xlu1 %702  ;;  %v1628_v8 = vrot.slane %v1626_v50, 2 }
  0xca   : > { %1637 = vrot.lane.b32.xlu0 %v13042_v2, %s12049_s17  ;;  %v10108_v2 = vcombine.low %v1327_v33, %v12614_v18  ;;  %v1659_v18 = vrot.slane %v12641_v45, 2  ;;  %v1661_v45 = vrot.slane %v12649_v44, 2  ;;  %v1665_v44 = vrot.slane %v12662_v63, 2 }
  0xcb   : > { %1643 = vrot.lane.b32.xlu1 %v13056_v26, %s12049_s17  ;;  %v1629_v50 = vor.u32 %v1628_v8, %v1625_v60  ;;  %v13196_v26 = vld [vmem:[%s12123_s14 + $0x38] sm:$0xff]  }
  0xcc   : > { %v13072_v14 = vpop.permute.xlu0 %700  ;;  %v1658_v17 = vrot.slane %v10108_v2, 2  ;;  %v13123_v33 = vsel %vm715_vm3, %v1661_v45, %v1663_v23  ;;  %v13143_v63 = vsel %vm715_vm3, %v1665_v44, %v1667_v55  ;;  %v19416_v9 = vshll.u32 %v13196_v26, 16 }
  0xcd   : > { %v13082_v15 = vpop.permute.xlu1 %706  ;;  %v13116_v8 = vsel %vm626_vm2, %v1620_v48, %v1629_v50  ;;  %19395 = vst [vmem:[#allocation116_spill] sm:$0xff] %v13123_v33  ;;  %v13133_v48 = vld [vmem:[%s12123_s14 + $0x1c] sm:$0xf]  ;;  %19398 = vst [vmem:[#allocation119_spill] sm:$0xff] %v13143_v63 }
  0xce   : > { %1641 = vrot.lane.b32.xlu0 %v13068_v24, %s12049_s17  ;;  %19384 = vst [vmem:[#allocation105_spill] sm:$0xff] %v13082_v15  ;;  %v13107_v2 = vsel %vm715_vm3, %v1658_v17, %v1659_v18  ;;  %19393 = vst [vmem:[#allocation114_spill] sm:$0xff] %v13116_v8  ;;  %v13136_v17 = vsel %vm715_vm3, %v1659_v18, %v1661_v45  ;;  %v13155_v45 = vsel %vm715_vm3, %v1663_v23, %v1665_v44  ;;  %v13171_v23 = vld [vmem:[%s12123_s14 + $0x28] sm:$0xff]  }
  0xcf   : > { %1647 = vrot.lane.b32.xlu1 %v13077_v29, %s12049_s17  ;;  %19391 = vst [vmem:[#allocation112_spill] sm:$0xff] %v13107_v2  ;;  %19396 = vst [vmem:[#allocation117_spill] sm:$0xff] %v13133_v48  ;;  %v13188_v29 = vld [vmem:[%s12123_s14 + $0x30] sm:$0xff]  }
  0xd0   : > { %v13087_v31 = vpop.permute.xlu0 %704  ;;  %19397 = vst [vmem:[#allocation118_spill] sm:$0xff] %v13136_v17  ;;  %19400 = vst [vmem:[#allocation121_spill] sm:$0xff] %v13155_v45 }
  0xd1   : > { %19386 = vst [vmem:[#allocation107_spill] sm:$0xff] %v13087_v31  ;;  %v13097_v37 = vpop.permute.xlu1 %710 }
  0xd2   : > { %1645 = vrot.lane.b32.xlu0 %v13085_v35, %s12049_s17  ;;  %19388 = vst [vmem:[#allocation109_spill] sm:$0xff] %v13097_v37 }
  0xd3   : > { %1651 = vrot.lane.b32.xlu1 %v13092_v12, %s12049_s17 }
  0xd4   : > { %v13102_v58 = vpop.permute.xlu0 %708 }
  0xd5   : > { %19390 = vst [vmem:[#allocation111_spill] sm:$0xff] %v13102_v58  ;;  %v13113_v1 = vpop.permute.xlu1 %743 }
  0xd6   : > { %1649 = vrot.lane.b32.xlu0 %v13100_v36, %s12049_s17  ;;  %19392 = vst [vmem:[#allocation113_spill] sm:$0xff] %v13113_v1 }
  0xd7   : > { %1683 = vrot.lane.b32.xlu1 %v13107_v2, %s12050_s18  ;;  %v13148_v2 = vcombine.low %v1996_v20, %v13133_v48  ;;  %v1673_v20 = vrot.slane %v12723_v13, 2  ;;  %v1677_v13 = vrot.slane %v12755_v53, 2 }
  0xd8   : > { %v13118_v60 = vpop.permute.xlu0 %741 }
  0xd9   : > { %19394 = vst [vmem:[#allocation115_spill] sm:$0xff] %v13118_v60  ;;  %v13129_v5 = vpop.permute.xlu1 %747  ;;  %19399 = vst [vmem:[#allocation120_spill] sm:$0xff] %v13148_v2  ;;  %v13222_v60 = vld [vmem:[%s12123_s14 + $0x40] sm:$0xff]  }
  0xda   : > { %1653 = vrot.lane.b32.xlu0 %v13116_v8, %s12049_s17  ;;  %v1671_v8 = vrot.slane %v12712_v40, 2 }
  0xdb   : > { %1687 = vrot.lane.b32.xlu1 %v13123_v33, %s12050_s18  ;;  %v2090_v33 = vshll.u32 %v13148_v2, 16 }
  0xdc   : > { %v13138_v50 = vpop.permute.xlu0 %745  ;;  %v13165_v40 = vsel %vm715_vm3, %v1669_v39, %v1671_v8 }
  0xdd   : > { %v13152_v18 = vpop.permute.xlu1 %751  ;;  %19401 = vst [vmem:[#allocation122_spill] sm:$0xff] %v13165_v40 }
  0xde   : > { %1685 = vrot.lane.b32.xlu0 %v13136_v17, %s12050_s18  ;;  %v1675_v17 = vrot.slane %v12745_v62, 2  ;;  %v1679_v62 = vrot.slane %v12783_v28, 2  ;;  %v13203_v28 = vsel %vm715_vm3, %v1671_v8, %v1673_v20  ;;  %v19409_v8 = vshll.u32 %v13171_v23, 16 }
  0xdf   : > { %1691 = vrot.lane.b32.xlu1 %v13143_v63, %s12050_s18  ;;  %v13178_v63 = vsel %vm715_vm3, %v1667_v55, %v1669_v39  ;;  %v2088_v55 = vshrl.u32 %v13148_v2, 16  ;;  %v2092_v39 = vrot.slane %v2090_v33, 1  ;;  %19405 = vst [vmem:[#allocation126_spill] sm:$0xff] %v13203_v28  ;;  %v19408_v33 = vshll.u32 %v13162_v0, 16 }
  0xe0   : > { %v13157_v36 = vpop.permute.xlu0 %749  ;;  %19402 = vst [vmem:[#allocation123_spill] sm:$0xff] %v13178_v63  ;;  %v13230_v2 = vsel %vm715_vm3, %v1675_v17, %v1677_v13 }
  0xe1   : > { %v13175_v44 = vpop.permute.xlu1 %755  ;;  %v2097_v24 = vrot.slane %v19408_v33, 1  ;;  %v2093_v37 = vor.u32 %v2092_v39, %v2088_v55  ;;  %19411 = vst [vmem:[#allocation130_spill] sm:$0xff] %v13230_v2  ;;  %v1681_v55 = vrot.slane %v13045_v54, 2 }
  0xe2   : > { %1689 = vrot.lane.b32.xlu0 %v13155_v45, %s12050_s18  ;;  %v13191_v45 = vsel %vm715_vm3, %v1673_v20, %v1675_v17  ;;  %v2105_v20 = vrot.slane %v19409_v8, 1  ;;  %v19413_v8 = vshll.u32 %v13188_v29, 16  ;;  %v13246_v17 = vld [vmem:[%s12123_s14 + $0x58] sm:$0xff]  }
  0xe3   : > { %1695 = vrot.lane.b32.xlu1 %v13165_v40, %s12050_s18  ;;  %19403 = vst [vmem:[#allocation124_spill] sm:$0xff] %v13191_v45  ;;  %v13210_v40 = vsel %vm715_vm3, %v1677_v13, %v1679_v62  ;;  %v13249_v54 = vsel %vm445_vm0, %v2093_v37, %v2097_v24  ;;  %v19415_v13 = vshrl.u32 %v13171_v23, 16  ;;  %v19419_v37 = vshrl.u32 %v13162_v0, 16 }
  0xe4   : > { %v13180_v12 = vpop.permute.xlu0 %753  ;;  %19407 = vst [vmem:[#allocation128_spill] sm:$0xff] %v13210_v40  ;;  %19414 = vst [vmem:[#allocation132_spill] sm:$0xff] %v13249_v54 }
  0xe5   : > { %v13200_v53 = vpop.permute.xlu1 %759  ;;  %v2109_v39 = vor.u32 %v19415_v13, %v2105_v20  ;;  %v2101_v59 = vor.u32 %v19419_v37, %v2097_v24  ;;  %v19423_v24 = vshrl.u32 %v13196_v26, 16  ;;  %v19424_v13 = vshll.u32 %v13222_v60, 16 }
  0xe6   : > { %1693 = vrot.lane.b32.xlu0 %v13178_v63, %s12050_s18  ;;  %19404 = vst [vmem:[#allocation125_spill] sm:$0xff] %v13200_v53  ;;  %v13216_v63 = vld [vmem:[%s12123_s14 + $0x48] sm:$0xff]  }
  0xe7   : > { %1699 = vrot.lane.b32.xlu1 %v13191_v45, %s12050_s18  ;;  %v2113_v45 = vrot.slane %v19413_v8, 1  ;;  %v2129_v58 = vrot.slane %v19424_v13, 1  ;;  %v19428_v13 = vshrl.u32 %v13216_v63, 16 }
  0xe8   : > { %v13205_v35 = vpop.permute.xlu0 %757 }
  0xe9   : > { %19406 = vst [vmem:[#allocation127_spill] sm:$0xff] %v13205_v35  ;;  %v13227_v33 = vpop.permute.xlu1 %763  ;;  %v2021_v35 = vld [vmem:[%s12123_s14 + $0x18] sm:$0xe] }
  0xea   : > { %1697 = vrot.lane.b32.xlu0 %v13203_v28, %s12050_s18  ;;  %19410 = vst [vmem:[#allocation129_spill] sm:$0xff] %v13227_v33  ;;  %v13242_v28 = vld [vmem:[%s12123_s14 + $0x50] sm:$0xff]   ;;  %v13261_v33 = vsel %vm715_vm3, %v1679_v62, %v1681_v55  ;;  %v13276_v55 = vsel %vm445_vm0, %v2109_v39, %v2113_v45  ;;  %v13293_v62 = vsel %vm445_vm0, %v2101_v59, %v2105_v20  ;;  %v19427_v39 = vshrl.u32 %v13188_v29, 16 }
  0xeb   : > { %1703 = vrot.lane.b32.xlu1 %v13210_v40, %s12050_s18  ;;  %v2121_v40 = vrot.slane %v19416_v9, 1  ;;  %19418 = vst [vmem:[#allocation134_spill] sm:$0xff] %v13261_v33  ;;  %v19421_v9 = vshll.u32 %v13216_v63, 16  ;;  %19422 = vst [vmem:[#allocation136_spill] sm:$0xff] %v13276_v55  ;;  %v19429_v4 = vshll.u32 %v13242_v28, 16 }
  0xec   : > { %v13234_v51 = vpop.permute.xlu0 %761  ;;  %19426 = vst [vmem:[#allocation138_spill] sm:$0xff] %v13293_v62 }
  0xed   : > { %19412 = vst [vmem:[#allocation131_spill] sm:$0xff] %v13234_v51  ;;  %v13258_v1 = vpop.permute.xlu1 %897  ;;  %v2137_v8 = vrot.slane %v19421_v9, 1  ;;  %v2125_v37 = vor.u32 %v19423_v24, %v2121_v40  ;;  %v13312_v24 = vld [vmem:[%s12123_s14 + $0x70] sm:$0xff]  }
  0xee   : > { %1701 = vrot.lane.b32.xlu0 %v13230_v2, %s12050_s18  ;;  %19417 = vst [vmem:[#allocation133_spill] sm:$0xff] %v13258_v1  ;;  %v2117_v1 = vor.u32 %v19427_v39, %v2113_v45  ;;  %v19436_v39 = vshrl.u32 %v13246_v17, 16 }
  0xef   : > { %2187 = vrot.lane.b32.xlu1 %v13249_v54, %s12047_s15  ;;  %v13283_v54 = vld [vmem:[%s12123_s14 + $0x60] sm:$0xff]   ;;  %v2141_v57 = vor.u32 %v19428_v13, %v2137_v8  ;;  %v13308_v45 = vsel %vm445_vm0, %v2125_v37, %v2129_v58 }
  0xf0   : > { %v13266_v51 = vpop.permute.xlu0 %895  ;;  %19431 = vst [vmem:[#allocation139_spill] sm:$0xff] %v13308_v45  ;;  %v13319_v53 = vsel %vm445_vm0, %v2117_v1, %v2121_v40 }
  0xf1   : > { %19420 = vst [vmem:[#allocation135_spill] sm:$0xff] %v13266_v51  ;;  %v13286_v51 = vld [vmem:[%s12123_s14 + $0x68] sm:$0xff]   ;;  %v13290_v9 = vpop.permute.xlu1 %910  ;;  %19432 = vst [vmem:[#allocation140_spill] sm:$0xff] %v13319_v53 }
  0xf2   : > { %1705 = vrot.lane.b32.xlu0 %v13261_v33, %s12050_s18  ;;  %19425 = vst [vmem:[#allocation137_spill] sm:$0xff] %v13290_v9  ;;  %v2145_v33 = vrot.slane %v19429_v4, 1  ;;  %v19430_v9 = vshll.u32 %v13246_v17, 16  ;;  %v19437_v4 = vshll.u32 %v13283_v54, 16  ;;  %v19438_v40 = vshll.u32 %v13286_v51, 16 }
  0xf3   : > { %2191 = vrot.lane.b32.xlu1 %v13276_v55, %s12047_s15 }
  0xf4   : > { %v909_v2 = vpop.permute.xlu0 %908  ;;  %v2153_v59 = vrot.slane %v19430_v9, 1  ;;  %v19433_v9 = vshrl.u32 %v13222_v60, 16  ;;  %v13328_v55 = vsel %vm445_vm0, %v2141_v57, %v2145_v33  ;;  %v2161_v1 = vrot.slane %v19437_v4, 1 }
  0xf5   : > { %v940_v13 = vpop.permute.xlu1 %939  ;;  %19435 = vst [vmem:[#allocation142_spill] sm:$0xff] %v13328_v55  ;;  %v2169_v15 = vrot.slane %v19438_v40, 1  ;;  %v19440_v57 = vshrl.u32 %v13242_v28, 16  ;;  %v13350_v4 = vcombine.low %v2021_v35, %v13133_v48  ;;  %v13353_v40 = vld [vmem:[%s12123_s14 + $0x78] ss:$0 sps:$4 sm:$0x11]  }
  0xf6   : > { %2189 = vrot.lane.b32.xlu0 %v13293_v62, %s12047_s15  ;;  %v2133_v20 = vor.u32 %v19433_v9, %v2129_v58  ;;  %v2157_v62 = vor.u32 %v19436_v39, %v2153_v59  ;;  %v19023_v58 = vshrl.u32 %v13286_v51, 16  ;;  %v11940_v48 = vld [vmem:[%s12123_s14 + $0x10] sm:$0xff]  }
  0xf7   : > { %2195 = vrot.lane.b32.xlu1 %v13308_v45, %s12047_s15 }
  0xf8   : > { %v13323_v37 = vpop.permute.xlu0 %912  ;;  %v13347_v31 = vsel %vm445_vm0, %v2133_v20, %v2137_v8  ;;  %v2173_v35 = vor.u32 %v19023_v58, %v2169_v15  ;;  %v19443_v8 = vshll.u32 %v13312_v24, 16 }
  0xf9   : > { %19434 = vst [vmem:[#allocation141_spill] sm:$0xff] %v13323_v37  ;;  %v13341_v45 = vpop.permute.xlu1 %943  ;;  %v2149_v37 = vor.u32 %v19440_v57, %v2145_v33  ;;  %19441 = vst [vmem:[#allocation144_spill] sm:$0xff] %v13347_v31  ;;  %v13360_v33 = vsel %vm445_vm0, %v2157_v62, %v2161_v1  ;;  %v13369_v57 = vsel %vm765_vm5, %v12149_v11, %v12767_v52  ;;  %v2214_v11 = vrot.slane %v13350_v4, 1 }
  0xfa   : > { %2193 = vrot.lane.b32.xlu0 %v13319_v53, %s12047_s15  ;;  %19439 = vst [vmem:[#allocation143_spill] sm:$0xff] %v13341_v45  ;;  %19442 = vst [vmem:[#allocation145_spill] sm:$0xff] %v13360_v33  ;;  %v2177_v20 = vrot.slane %v19443_v8, 1  ;;  %v771_v8 = vsel %vm765_vm5, %v11940_v48, %v12727_v46  ;;  %v965_v52 = vsel %vm790_vm6, %v13369_v57, %v909_v2  ;;  %v11941_v45 = vld [vmem:[%s12123_s14 + $0x18] sm:$0xff]   ;;  %v2215_v46 = vrot.slane %v13162_v0, 1 }
  0xfb   : > { %2199 = vrot.lane.b32.xlu1 %v13328_v55, %s12047_s15  ;;  %v13376_v62 = vsel %vm445_vm0, %v2149_v37, %v2153_v59  ;;  %v19445_v55 = vshrl.u32 %v13283_v54, 16  ;;  %v773_v59 = vsel %vm765_vm5, %v11941_v45, %v12759_v3  ;;  %v971_v37 = vsel %vm815_vm7, %v965_v52, %v940_v13 }
  0xfc   : > { %v13355_v9 = vpop.permute.xlu0 %941  ;;  %19444 = vst [vmem:[#allocation146_spill] sm:$0xff] %v13376_v62  ;;  %v798_v2 = vsel %vm790_vm6, %v773_v59, %v12897_v42  ;;  %v13403_v3 = vsel %vm445_vm0, %v2173_v35, %v2177_v20  ;;  %v2219_v52 = vrot.slane %v13188_v29, 1  ;;  %v11942_v59 = vld [vmem:[%s12123_s14 + $0x20] sm:$0xff]  }
  0xfd   : > { %v13373_v39 = vpop.permute.xlu1 %956  ;;  %v2165_v53 = vor.u32 %v19445_v55, %v2161_v1  ;;  %v796_v55 = vsel %vm790_vm6, %v771_v8, %v12903_v34  ;;  %19446 = vst [vmem:[#allocation147_spill] sm:$0xff] %v13403_v3  ;;  %v823_v34 = vsel %vm815_vm7, %v798_v2, %v13017_v25 }
  0xfe   : > { %2197 = vrot.lane.b32.xlu0 %v13347_v31, %s12047_s15  ;;  %v2183_v31 = vshll.u32 %v13353_v40, 16  ;;  %v821_v48 = vsel %vm815_vm7, %v796_v55, %v13022_v10  ;;  %v11883_v10 = vld [vmem:[%s18767_s1 + $0x8] ss:$0 sps:$4 sm:$0x33]   ;;  %v13421_v13 = vsel %vm840_vm8, %v823_v34, %v13129_v5  ;;  %v2217_v5 = vrot.slane %v13171_v23, 1 }
  0xff   : > { %2203 = vrot.lane.b32.xlu1 %v13360_v33, %s12047_s15  ;;  %v13409_v45 = vsel %vm840_vm8, %v821_v48, %v13138_v50  ;;  %v13426_v25 = vsel %vm445_vm0, %v2165_v53, %v2169_v15  ;;  %v19448_v50 = vshrl.u32 %v13312_v24, 16  ;;  %v13439_v15 = vsel %vm573_vm1, %v2214_v11, %v2215_v46  ;;  %v11943_v55 = vld [vmem:[%s12123_s14 + $0x28] sm:$0xff]  }
 0x100   : > { %v955_v1 = vpop.permute.xlu0 %954  ;;  %19447 = vst [vmem:[#allocation148_spill] sm:$0xff] %v13426_v25  ;;  %v2185_v35 = vrot.slane %v2183_v31, 1  ;;  %19449 = vst [vmem:[#allocation149_spill] sm:$0xff] %v13439_v15  ;;  %v1169_v53 = vsel %vm1020_vm4, %v11883_v10, 0  ;;  %v775_v11 = vsel %vm765_vm5, %v11942_v59, %v12796_v30  ;;  %v13469_v48 = vsel %vm573_vm1, %v2217_v5, %v2219_v52  ;;  %v11944_v59 = vld [vmem:[%s12123_s14 + $0x30] sm:$0xff]  }
 0x101   : > { %v977_v58 = vsel %vm840_vm8, %v971_v37, %v955_v1  ;;  %v13414_v42 = vpop.permute.xlu1 %1491  ;;  %v777_v37 = vsel %vm765_vm5, %v11943_v55, %v12788_v16  ;;  %v800_v1 = vsel %vm790_vm6, %v775_v11, %v12919_v56  ;;  %19451 = vst [vmem:[#allocation151_spill] sm:$0xff] %v13469_v48  ;;  %v2223_v16 = vrot.slane %v13222_v60, 1 }
 0x102   : > { %2201 = vrot.lane.b32.xlu0 %v13376_v62, %s12047_s15  ;;  %10800 = vmatprep.mubr.msk.bf16.mxu0 %vm995_vm9, %v977_v58  ;;  %v2181_v58 = vor.u32 %v19448_v50, %v2177_v20  ;;  %v13451_v20 = vld [vmem:[%s18767_s1 + $0x18] sm:$0xff]   ;;  %v802_v30 = vsel %vm790_vm6, %v777_v37, %v12914_v21  ;;  %v825_v34 = vsel %vm815_vm7, %v800_v1, %v13047_v49 }
 0x103   : > { %10801 = vmatmul.mubr.msk.bf16.vlgmr.msra.gmra.mrb[0].mxu0 %vm995_vm9, %v13409_v45  ;;  %2207 = vrot.lane.b32.xlu1 %v13403_v3, %s12047_s15  ;;  %v827_v56 = vsel %vm815_vm7, %v802_v30, %v13039_v38  ;;  %v13481_v50 = vsel %vm840_vm8, %v825_v34, %v13157_v36  ;;  %v13495_v38 = vsel %vm573_vm1, %v2215_v46, %v2217_v5  ;;  %v2267_v5 = vshrl.u32 %v13350_v4, 16  ;;  %v11945_v37 = vld [vmem:[%s12123_s14 + $0x38] sm:$0xff]  }
 0x104   : > { %10804 = vmatprep.mubr.msk.bf16.mxu0 %vm995_vm9, %v13421_v13  ;;  %v13432_v8 = vpop.permute.xlu0 %958  ;;  %10825 = vmatpush3.bf16.msra.mxu0 %v12893_v32  ;;  %v13457_v32 = vsel %vm445_vm0, %v2181_v58, %v2185_v35  ;;  %v13490_v49 = vsel %vm840_vm8, %v827_v56, %v13152_v18  ;;  %19452 = vst [vmem:[#allocation152_spill] sm:$0xff] %v13495_v38  ;;  %v2225_v58 = vrot.slane %v13216_v63, 1  ;;  %v2227_v18 = vrot.slane %v13242_v28, 1 }
 0x105   : > { %v13444_v31 = vpop.permute.xlu1 %1495  ;;  %11785 = vmatprep.subr.msk.bf16.mxu0 %vm1020_vm4, %v11883_v10  ;;  %19450 = vst [vmem:[#allocation150_spill] sm:$0xff] %v13457_v32  ;;  %v2221_v10 = vrot.slane %v13196_v26, 1  ;;  %v779_v11 = vsel %vm765_vm5, %v11944_v59, %v12825_v6  ;;  %v781_v1 = vsel %vm765_vm5, %v11945_v37, %v12813_v22  ;;  %v2231_v22 = vrot.slane %v13283_v54, 1 }
 0x106   : > { %2205 = vrot.lane.b32.xlu0 %v13426_v25, %s12047_s15  ;;  %v804_v30 = vsel %vm790_vm6, %v779_v11, %v12935_v43  ;;  %v806_v6 = vsel %vm790_vm6, %v781_v1, %v12930_v27  ;;  %v2269_v27 = vrot.slane %v2267_v5, 1  ;;  %v19459_v1 = vshll.u32 %v13162_v0, 16 }
 0x107   : > { %2239 = vrot.lane.b32.xlu1 %v13439_v15, %s12048_s16  ;;  %v13506_v35 = vsel %vm573_vm1, %v2221_v10, %v2223_v16  ;;  %v13518_v55 = vsel %vm573_vm1, %v2219_v52, %v2221_v10  ;;  %v829_v52 = vsel %vm815_vm7, %v804_v30, %v13072_v14  ;;  %v2229_v10 = vrot.slane %v13246_v17, 1  ;;  %v19492_v15 = vld [vmem:[#allocation131_spill] sm:$0xff] }
 0x108   : > { %v13464_v2 = vpop.permute.xlu0 %1493  ;;  %10827 = vmatpush3.bf16.msra.mxu0 %v1169_v53  ;;  %19453 = vst [vmem:[#allocation153_spill] sm:$0xff] %v13506_v35  ;;  %v2270_v53 = vshll.u32 %v13350_v4, 16  ;;  %19454 = vst [vmem:[#allocation154_spill] sm:$0xff] %v13518_v55  ;;  %v13530_v4 = vsel %vm573_vm1, %v2225_v58, %v2227_v18  ;;  %v831_v43 = vsel %vm815_vm7, %v806_v6, %v13064_v61  ;;  %v2275_v30 = vrot.slane %v19459_v1, 2  ;;  %v11947_v1 = vld [vmem:[%s12123_s14 + $0x40] sm:$0xff]  }
 0x109   : > { %v13485_v21 = vpop.permute.xlu1 %1499  ;;  %10852 = vmatprep.subr.bf16.mxu0 %v13451_v20  ;;  %19455 = vst [vmem:[#allocation155_spill] sm:$0xff] %v13530_v4  ;;  %v13542_v56 = vsel %vm840_vm8, %v829_v52, %v13180_v12  ;;  %v13550_v14 = vsel %vm840_vm8, %v831_v43, %v13175_v44  ;;  %v13555_v61 = vsel %vm573_vm1, %v2223_v16, %v2225_v58  ;;  %v19458_v12 = vshrl.u32 %v13162_v0, 16  ;;  %v11946_v43 = vld [vmem:[%s12123_s14 + $0x48] sm:$0xff]  }
 0x10a   : > { %2209 = vrot.lane.b32.xlu0 %v13457_v32, %s12047_s15  ;;  %v2272_v11 = vrot.slane %v2270_v53, 2  ;;  %19457 = vst [vmem:[#allocation157_spill] sm:$0xff] %v13555_v61  ;;  %v13568_v44 = vsel %vm573_vm1, %v2229_v10, %v2231_v22  ;;  %v2233_v16 = vrot.slane %v13286_v51, 1  ;;  %v2235_v58 = vrot.slane %v13312_v24, 1 }
 0x10b   : > { %10805 = vmatmul.mubr.msk.bf16.gmra.mrb[4].mxu0 %vm995_vm9, %v13481_v50  ;;  %2243 = vrot.lane.b32.xlu1 %v13469_v48, %s12048_s16  ;;  %v2274_v37 = vrot.slane %v19458_v12, 1  ;;  %19461 = vst [vmem:[#allocation159_spill] sm:$0xff] %v13568_v44  ;;  %v13577_v6 = vsel %vm573_vm1, %v2227_v18, %v2229_v10  ;;  %v785_v12 = vsel %vm765_vm5, %v11946_v43, %v12839_v47  ;;  %v19464_v25 = vshrl.u32 %v13171_v23, 16 }
 0x10c   : > { %10808 = vmatprep.mubr.msk.bf16.mxu0 %vm995_vm9, %v13490_v49  ;;  %v13499_v36 = vpop.permute.xlu0 %1497  ;;  %19463 = vst [vmem:[#allocation161_spill] sm:$0xff] %v13577_v6  ;;  %v2273_v52 = vor.u32 %v2272_v11, %v2269_v27  ;;  %v783_v32 = vsel %vm765_vm5, %v11947_v1, %v12848_v19  ;;  %v19466_v18 = vshll.u32 %v13171_v23, 16  ;;  %v19467_v47 = vshrl.u32 %v13188_v29, 16  ;;  %v19472_v1 = vld [vmem:[#allocation127_spill] sm:$0xff] }
 0x10d   : > { %v13510_v46 = vpop.permute.xlu1 %1503  ;;  %v2276_v3 = vor.u32 %v2275_v30, %v2274_v37  ;;  %v2278_v33 = vrot.slane %v19464_v25, 1  ;;  %v808_v62 = vsel %vm790_vm6, %v783_v32, %v12955_v7  ;;  %v19468_v19 = vshll.u32 %v13188_v29, 16  ;;  %v19469_v37 = vld [vmem:[#allocation107_spill] sm:$0xff]  ;;  %v19471_v30 = vld [vmem:[#allocation105_spill] sm:$0xff] }
 0x10e   : > { %2241 = vrot.lane.b32.xlu0 %v13495_v38, %s12048_s16  ;;  %v2279_v10 = vrot.slane %v19466_v18, 2  ;;  %v2282_v27 = vrot.slane %v19467_v47, 1  ;;  %v810_v25 = vsel %vm790_vm6, %v785_v12, %v12950_v41  ;;  %v833_v7 = vsel %vm815_vm7, %v808_v62, %v19469_v37  ;;  %v19473_v12 = vld [vmem:[#allocation125_spill] sm:$0xff]  ;;  %v19488_v38 = vld [vmem:[#allocation135_spill] sm:$0xff] }
 0x10f   : > { %2247 = vrot.lane.b32.xlu1 %v13506_v35, %s12048_s16  ;;  %v2283_v11 = vrot.slane %v19468_v19, 2  ;;  %v13604_v32 = vsel %vm573_vm1, %v2233_v16, %v2235_v58  ;;  %v835_v43 = vsel %vm815_vm7, %v810_v25, %v19471_v30  ;;  %v13610_v18 = vsel %vm840_vm8, %v833_v7, %v19472_v1  ;;  %v13664_v35 = vld [vmem:[%s12123_s14 + $0x58] sm:$0xff]  }
 0x110   : > { %v13525_v34 = vpop.permute.xlu0 %1501  ;;  %19470 = vst [vmem:[#allocation107_spill] sm:$0xff] %v13604_v32  ;;  %v2237_v41 = vrot.slane %v13353_v40, 1  ;;  %v13619_v62 = vsel %vm840_vm8, %v835_v43, %v19473_v12  ;;  %v13624_v19 = vsel %vm573_vm1, %v2231_v22, %v2233_v16  ;;  %v13633_v40 = vsel %vm626_vm2, %v2273_v52, %v2276_v3 }
 0x111   : > { %v13546_v59 = vpop.permute.xlu1 %1507  ;;  %19474 = vst [vmem:[#allocation105_spill] sm:$0xff] %v13624_v19  ;;  %19476 = vst [vmem:[#allocation125_spill] sm:$0xff] %v13633_v40  ;;  %v2280_v37 = vor.u32 %v2279_v10, %v2278_v33  ;;  %v2284_v7 = vor.u32 %v2283_v11, %v2282_v27  ;;  %v19477_v30 = vshrl.u32 %v13196_v26, 16  ;;  %v19478_v22 = vshll.u32 %v13196_v26, 16 }
 0x112   : > { %2245 = vrot.lane.b32.xlu0 %v13518_v55, %s12048_s16  ;;  %19456 = vst [vmem:[#allocation156_spill] sm:$0xff] %v13546_v59  ;;  %v19479_v1 = vshrl.u32 %v13222_v60, 16  ;;  %v13651_v10 = vsel %vm573_vm1, %v2235_v58, %v2237_v41  ;;  %v19483_v27 = vshrl.u32 %v13216_v63, 16  ;;  %v19486_v55 = vshll.u32 %v13242_v28, 16 }
 0x113   : > { %10809 = vmatmul.mubr.msk.bf16.gmra.mrb[8].mxu0 %vm995_vm9, %v13542_v56  ;;  %2251 = vrot.lane.b32.xlu1 %v13530_v4, %s12048_s16  ;;  %v2286_v43 = vrot.slane %v19477_v30, 1  ;;  %v2287_v16 = vrot.slane %v19478_v22, 2  ;;  %v11948_v4 = vld [vmem:[%s12123_s14 + $0x50] sm:$0xff]   ;;  %v19484_v30 = vshll.u32 %v13216_v63, 16  ;;  %v961_v58 = vsel %vm765_vm5, %v13664_v35, %v19488_v38 }
 0x114   : > { %10812 = vmatprep.mubr.msk.bf16.mxu0 %vm995_vm9, %v13550_v14  ;;  %v13563_v5 = vpop.permute.xlu0 %1505  ;;  %v2290_v12 = vrot.slane %v19479_v1, 1  ;;  %v2294_v11 = vrot.slane %v19483_v27, 1  ;;  %v13674_v27 = vsel %vm626_vm2, %v2280_v37, %v2284_v7 }
 0x115   : > { %19460 = vst [vmem:[#allocation158_spill] sm:$0xff] %v13563_v5  ;;  %v13574_v53 = vpop.permute.xlu1 %1511  ;;  %v2295_v22 = vrot.slane %v19484_v30, 2  ;;  %v19490_v30 = vld [vmem:[#allocation111_spill] sm:$0xff]  ;;  %v19511_v5 = vld [vmem:[#allocation97_spill] sm:$0xff] }
 0x116   : > { %2249 = vrot.lane.b32.xlu0 %v13555_v61, %s12048_s16  ;;  %19462 = vst [vmem:[#allocation160_spill] sm:$0xff] %v13574_v53 }
 0x117   : > { %2255 = vrot.lane.b32.xlu1 %v13568_v44, %s12048_s16 }
 0x118   : > { %v13589_v61 = vpop.permute.xlu0 %1509 }
 0x119   : > { %19465 = vst [vmem:[#allocation162_spill] sm:$0xff] %v13589_v61  ;;  %v13614_v47 = vpop.permute.xlu1 %1543  ;;  %v19509_v61 = vshrl.u32 %v13312_v24, 16 }
 0x11a   : > { %2253 = vrot.lane.b32.xlu0 %v13577_v6, %s12048_s16  ;;  %v19480_v6 = vshll.u32 %v13222_v60, 16 }
 0x11b   : > { %10813 = vmatmul.mubr.msk.bf16.gmra.mrb[12].mxu0 %vm995_vm9, %v13610_v18  ;;  %2259 = vrot.lane.b32.xlu1 %v13604_v32, %s12048_s16  ;;  %v19481_v32 = vld [vmem:[#allocation77_spill] sm:$0xff]  ;;  %v2314_v59 = vrot.slane %v19509_v61, 1 }
 0x11c   : > { %10816 = vmatprep.mubr.msk.bf16.mxu0 %vm995_vm9, %v13619_v62  ;;  %v13628_v25 = vpop.permute.xlu0 %1513  ;;  %v2291_v44 = vrot.slane %v19480_v6, 2  ;;  %v787_v52 = vsel %vm765_vm5, %v11948_v4, %v19481_v32  ;;  %19482 = vst [vmem:[#allocation77_spill] sm:$0xff] %v13651_v10  ;;  %v19485_v6 = vshrl.u32 %v13242_v28, 16  ;;  %v2299_v4 = vrot.slane %v19486_v55, 2  ;;  %v19487_v32 = vld [vmem:[#allocation93_spill] sm:$0xff] }
 0x11d   : > { %19475 = vst [vmem:[#allocation127_spill] sm:$0xff] %v13628_v25  ;;  %v13648_v33 = vpop.permute.xlu1 %1547  ;;  %19489 = vst [vmem:[#allocation93_spill] sm:$0xff] %v13674_v27 }
 0x11e   : > { %2257 = vrot.lane.b32.xlu0 %v13624_v19, %s12048_s16  ;;  %v2298_v1 = vrot.slane %v19485_v6, 1  ;;  %v812_v19 = vsel %vm790_vm6, %v787_v52, %v19487_v32  ;;  %v19491_v6 = vld [vmem:[#allocation137_spill] sm:$0xff]  ;;  %v2288_v32 = vor.u32 %v2287_v16, %v2286_v43  ;;  %v2292_v48 = vor.u32 %v2291_v44, %v2290_v12 }
 0x11f   : > { %2327 = vrot.lane.b32.xlu1 %v13633_v40, %s12049_s17  ;;  %v837_v55 = vsel %vm815_vm7, %v812_v19, %v19490_v30  ;;  %v967_v52 = vsel %vm790_vm6, %v961_v58, %v19491_v6  ;;  %v13695_v44 = vsel %vm626_vm2, %v2276_v3, %v2280_v37  ;;  %v19494_v16 = vshrl.u32 %v13246_v17, 16 }
 0x120   : > { %v13669_v41 = vpop.permute.xlu0 %1545  ;;  %v13682_v25 = vsel %vm840_vm8, %v837_v55, %v19492_v15  ;;  %v973_v38 = vsel %vm815_vm7, %v967_v52, %v13355_v9  ;;  %19493 = vst [vmem:[#allocation135_spill] sm:$0xff] %v13695_v44  ;;  %v2296_v15 = vor.u32 %v2295_v22, %v2294_v11  ;;  %v2300_v43 = vor.u32 %v2299_v4, %v2298_v1  ;;  %v19499_v1 = vld [vmem:[#allocation65_spill] sm:$0xff]  ;;  %v19500_v4 = vld [vmem:[#allocation2_spill] sm:$0xff] }
 0x121   : > { %v13688_v40 = vpop.permute.xlu1 %1551  ;;  %v979_v19 = vsel %vm840_vm8, %v973_v38, %v13373_v39  ;;  %v2302_v39 = vrot.slane %v19494_v16, 1  ;;  %v19495_v12 = vshll.u32 %v13246_v17, 16  ;;  %v19496_v30 = vshrl.u32 %v13283_v54, 16  ;;  %v19501_v52 = vld [vmem:[#allocation81_spill] sm:$0xff] }
 0x122   : > { %2261 = vrot.lane.b32.xlu0 %v13651_v10, %s12048_s16  ;;  %v19497_v37 = vshll.u32 %v13283_v54, 16  ;;  %v13711_v22 = vsel %vm626_vm2, %v2288_v32, %v2292_v48  ;;  %v767_v55 = vsel %vm765_vm5, %v19500_v4, %v19499_v1  ;;  %v19502_v16 = vld [vmem:[#allocation133_spill] sm:$0xff]  ;;  %v19508_v4 = vshll.u32 %v13286_v51, 16 }
 0x123   : > { %10817 = vmatmul.mubr.msk.bf16.gmra.mrb[16].mxu0 %vm995_vm9, %v13682_v25  ;;  %2331 = vrot.lane.b32.xlu1 %v13674_v27, %s12049_s17  ;;  %v2303_v58 = vrot.slane %v19495_v12, 2  ;;  %v2306_v3 = vrot.slane %v19496_v30, 1  ;;  %19498 = vst [vmem:[#allocation111_spill] sm:$0xff] %v13711_v22  ;;  %v792_v38 = vsel %vm790_vm6, %v767_v55, %v19501_v52  ;;  %v13726_v30 = vsel %vm626_vm2, %v2284_v7, %v2288_v32  ;;  %v13732_v1 = vld [vmem:[%s12123_s14 + $0x78] ss:$0 sps:$4 sm:$0x33]  }
 0x124   : > { %10820 = vmatprep.mubr.msk.bf16.mxu0 %vm995_vm9, %v979_v19  ;;  %v13698_v9 = vpop.permute.xlu0 %1549  ;;  %v2307_v11 = vrot.slane %v19497_v37, 2  ;;  %v11950_v19 = vld [vmem:[%s12123_s14 + $0x60] sm:$0xff]   ;;  %19503 = vst [vmem:[#allocation137_spill] sm:$0xff] %v13726_v30  ;;  %v13729_v37 = vsel %vm626_vm2, %v2296_v15, %v2300_v43  ;;  %v19505_v27 = vld [vmem:[#allocation141_spill] sm:$0xff]  ;;  %v19507_v32 = vld [vmem:[#allocation143_spill] sm:$0xff]  ;;  %v2311_v53 = vrot.slane %v19508_v4, 2  ;;  %v13763_v61 = vsel %vm626_vm2, %v2292_v48, %v2296_v15 }
 0x125   : > { %v13718_v6 = vpop.permute.xlu1 %1555  ;;  %v963_v12 = vsel %vm765_vm5, %v11950_v19, %v19502_v16  ;;  %19504 = vst [vmem:[#allocation131_spill] sm:$0xff] %v13729_v37  ;;  %v2304_v55 = vor.u32 %v2303_v58, %v2302_v39  ;;  %v19506_v19 = vshrl.u32 %v13286_v51, 16  ;;  %19513 = vst [vmem:[#allocation65_spill] sm:$0xff] %v13763_v61  ;;  %v2319_v4 = vshrl.u32 %v13732_v1, 16 }
 0x126   : > { %2329 = vrot.lane.b32.xlu0 %v13695_v44, %s12049_s17  ;;  %v969_v44 = vsel %vm790_vm6, %v963_v12, %v19505_v27  ;;  %v2308_v52 = vor.u32 %v2307_v11, %v2306_v3  ;;  %v19510_v27 = vshll.u32 %v13312_v24, 16  ;;  %v19512_v3 = vld [vmem:[#allocation115_spill] sm:$0xff] }
 0x127   : > { %2335 = vrot.lane.b32.xlu1 %v13711_v22, %s12049_s17  ;;  %v2310_v7 = vrot.slane %v19506_v19, 1  ;;  %v975_v16 = vsel %vm815_vm7, %v969_v44, %v19507_v32  ;;  %v817_v22 = vsel %vm815_vm7, %v792_v38, %v19511_v5  ;;  %v2023_v44 = vld [vmem:[%s12123_s14 + $0x18] sm:$0xc]  ;;  %v2322_v5 = vshll.u32 %v13732_v1, 16 }
 0x128   : > { %v13736_v10 = vpop.permute.xlu0 %1553  ;;  %v2315_v12 = vrot.slane %v19510_v27, 2  ;;  %v981_v39 = vsel %vm840_vm8, %v975_v16, %v13432_v8  ;;  %v842_v11 = vsel %vm840_vm8, %v817_v22, %v19512_v3  ;;  %v13773_v38 = vsel %vm626_vm2, %v2304_v55, %v2308_v52  ;;  %v19515_v32 = vld [vmem:[#allocation117_spill] sm:$0xff]  ;;  %v19518_v3 = vld [vmem:[#allocation79_spill] sm:$0xff] }
 0x129   : > { %v13756_v58 = vpop.permute.xlu1 %1559  ;;  %19514 = vst [vmem:[#allocation81_spill] sm:$0xff] %v13773_v38  ;;  %v2312_v22 = vor.u32 %v2311_v53, %v2310_v7  ;;  %v10141_v16 = vcombine.low %v2023_v44, %v19515_v32  ;;  %v13781_v15 = vsel %vm626_vm2, %v2300_v43, %v2304_v55  ;;  %v2321_v27 = vrot.slane %v2319_v4, 1  ;;  %v19521_v55 = vld [vmem:[#allocation113_spill] sm:$0xff]  ;;  %v11895_v4 = vld [vmem:[%s18767_s1 + $0x20] ss:$0 sps:$4 sm:$0x33]  }
 0x12a   : > { %2333 = vrot.lane.b32.xlu0 %v13726_v30, %s12049_s17  ;;  %v2316_v19 = vor.u32 %v2315_v12, %v2314_v59  ;;  %19517 = vst [vmem:[#allocation141_spill] sm:$0xff] %v13781_v15  ;;  %v19519_v59 = vld [vmem:[#allocation95_spill] sm:$0xff]  ;;  %v2355_v43 = vrot.slane %v13162_v0, 2 }
 0x12b   : > { %10821 = vmatmul.mubr.msk.bf16.gmra.mrb[20].mxu0 %vm995_vm9, %v981_v39  ;;  %2339 = vrot.lane.b32.xlu1 %v13729_v37, %s12049_s17  ;;  %v2324_v39 = vrot.slane %v2322_v5, 2  ;;  %v2354_v12 = vrot.slane %v10141_v16, 2  ;;  %v13807_v5 = vsel %vm626_vm2, %v2308_v52, %v2312_v22  ;;  %v1841_v52 = vsel %vm1020_vm4, %v11895_v4, 0 }
 0x12c   : > { %10828 = vmatprep.mubr.msk.bf16.mxu0 %vm995_vm9, %v842_v11  ;;  %v13768_v8 = vpop.permute.xlu0 %1557  ;;  %v794_v11 = vsel %vm790_vm6, %v13369_v57, %v19518_v3  ;;  %v13793_v7 = vsel %vm626_vm2, %v2312_v22, %v2316_v19  ;;  %19522 = vst [vmem:[#allocation97_spill] sm:$0xff] %v13807_v5  ;;  %v2357_v3 = vrot.slane %v13171_v23, 2  ;;  %v13830_v22 = vld [vmem:[%s18767_s1 + $0x24] sm:$0xff]  }
 0x12d   : > { %v13778_v48 = vpop.permute.xlu1 %1563  ;;  %v819_v53 = vsel %vm815_vm7, %v794_v11, %v19519_v59  ;;  %19520 = vst [vmem:[#allocation143_spill] sm:$0xff] %v13793_v7  ;;  %v2325_v32 = vor.u32 %v2324_v39, %v2321_v27  ;;  %v13816_v16 = vsel %vm715_vm3, %v2354_v12, %v2355_v43  ;;  %v2359_v11 = vrot.slane %v13188_v29, 2  ;;  %v2692_v59 = vld [vmem:[%s12123_s14 + $0x20] sm:$0xf] }
 0x12e   : > { %2337 = vrot.lane.b32.xlu0 %v13763_v61, %s12049_s17  ;;  %19516 = vst [vmem:[#allocation133_spill] sm:$0xff] %v13778_v48  ;;  %v844_v44 = vsel %vm840_vm8, %v819_v53, %v19521_v55  ;;  %19524 = vst [vmem:[#allocation117_spill] sm:$0xff] %v13816_v16  ;;  %v2361_v27 = vrot.slane %v13196_v26, 2  ;;  %v2363_v39 = vrot.slane %v13222_v60, 2  ;;  %v13846_v53 = vld [vmem:[%s12123_s14 + $0x24] sm:$0xf]  ;;  %v13856_v12 = vsel %vm715_vm3, %v2355_v43, %v2357_v3 }
 0x12f   : > { %2343 = vrot.lane.b32.xlu1 %v13773_v38, %s12049_s17  ;;  %v13833_v23 = vsel %vm626_vm2, %v2316_v19, %v2325_v32  ;;  %19527 = vst [vmem:[#allocation113_spill] sm:$0xff] %v13856_v12  ;;  %v13865_v60 = vcombine.low %v2692_v59, %v13846_v53  ;;  %v2367_v43 = vrot.slane %v13242_v28, 2  ;;  %v2371_v28 = vrot.slane %v13283_v54, 2 }
 0x130   : > { %v13786_v37 = vpop.permute.xlu0 %1561  ;;  %19525 = vst [vmem:[#allocation79_spill] sm:$0xff] %v13833_v23  ;;  %v13868_v55 = vsel %vm715_vm3, %v2361_v27, %v2363_v39  ;;  %v2373_v54 = vrot.slane %v13286_v51, 2 }
 0x131   : > { %v13800_v57 = vpop.permute.xlu1 %1631  ;;  %19528 = vst [vmem:[#allocation163_spill] sm:$0xff] %v13865_v60  ;;  %19529 = vst [vmem:[#allocation164_spill] sm:$0xff] %v13868_v55  ;;  %v2786_v32 = vshll.u32 %v13865_v60, 16 }
 0x132   : > { %2341 = vrot.lane.b32.xlu0 %v13781_v15, %s12049_s17 }
 0x133   : > { %10829 = vmatmul.mubr.msk.bf16.vlgmr.msra.gmra.mrb[0].mxu0 %vm995_vm9, %v844_v44  ;;  %2347 = vrot.lane.b32.xlu1 %v13793_v7, %s12049_s17  ;;  %v13877_v44 = vsel %vm715_vm3, %v2359_v11, %v2361_v27 }
 0x134   : > { %10832 = vmatprep.mubr.msk.bf16.mxu0 %vm995_vm9, %v13409_v45  ;;  %v13811_v0 = vpop.permute.xlu0 %1565  ;;  %10853 = vmatpush3.bf16.msra.mxu0 %v13451_v20  ;;  %v13840_v20 = vsel %vm715_vm3, %v2357_v3, %v2359_v11  ;;  %19530 = vst [vmem:[#allocation165_spill] sm:$0xff] %v13877_v44  ;;  %v13893_v11 = vld [vmem:[%s12123_s14 + $0x30] sm:$0xff]  }
 0x135   : > { %19523 = vst [vmem:[#allocation115_spill] sm:$0xff] %v13811_v0  ;;  %v13823_v45 = vpop.permute.xlu1 %1635  ;;  %11786 = vmatprep.subr.msk.bf16.mxu0 %vm1020_vm4, %v11895_v4  ;;  %19526 = vst [vmem:[#allocation95_spill] sm:$0xff] %v13840_v20 }
 0x136   : > { %2345 = vrot.lane.b32.xlu0 %v13807_v5, %s12049_s17 }
 0x137   : > { %2379 = vrot.lane.b32.xlu1 %v13816_v16, %s12050_s18  ;;  %v13943_v16 = vld [vmem:[%s12123_s14 + $0x50] sm:$0xff]  }
 0x138   : > { %v13835_v29 = vpop.permute.xlu0 %1633  ;;  %10855 = vmatpush3.bf16.msra.mxu0 %v1841_v52  ;;  %v13890_v52 = vld [vmem:[%s12123_s14 + $0x28] sm:$0xff]  }
 0x139   : > { %v13850_v19 = vpop.permute.xlu1 %1639  ;;  %10880 = vmatprep.subr.bf16.mxu0 %v13830_v22 }
 0x13a   : > { %2349 = vrot.lane.b32.xlu0 %v13833_v23, %s12049_s17  ;;  %v13939_v23 = vld [vmem:[%s12123_s14 + $0x48] sm:$0xff]  }
 0x13b   : > { %10833 = vmatmul.mubr.msk.bf16.gmra.mrb[4].mxu0 %vm995_vm9, %v13421_v13  ;;  %2383 = vrot.lane.b32.xlu1 %v13840_v20, %s12050_s18  ;;  %v2365_v13 = vrot.slane %v13216_v63, 2  ;;  %v2369_v63 = vrot.slane %v13246_v17, 2 }
 0x13c   : > { %10836 = vmatprep.mubr.msk.bf16.mxu0 %vm995_vm9, %v13481_v50  ;;  %v13860_v26 = vpop.permute.xlu0 %1637 }
 0x13d   : > { %v13874_v50 = vpop.permute.xlu1 %1643  ;;  %v13885_v3 = vsel %vm715_vm3, %v2365_v13, %v2367_v43  ;;  %v13902_v59 = vsel %vm715_vm3, %v2363_v39, %v2365_v13  ;;  %v13917_v39 = vsel %vm715_vm3, %v2369_v63, %v2371_v28  ;;  %v13921_v13 = vld [vmem:[%s12123_s14 + $0x38] sm:$0xff]  }
 0x13e   : > { %2381 = vrot.lane.b32.xlu0 %v13856_v12, %s12050_s18  ;;  %19531 = vst [vmem:[#allocation166_spill] sm:$0xff] %v13885_v3  ;;  %19532 = vst [vmem:[#allocation167_spill] sm:$0xff] %v13902_v59  ;;  %v13914_v12 = vld [vmem:[%s12123_s14 + $0x40] sm:$0xff]  }
 0x13f   : > { %2387 = vrot.lane.b32.xlu1 %v13868_v55, %s12050_s18  ;;  %v2784_v55 = vshrl.u32 %v13865_v60, 16  ;;  %19533 = vst [vmem:[#allocation168_spill] sm:$0xff] %v13917_v39  ;;  %v19549_v60 = vshll.u32 %v13943_v16, 16 }
 0x140   : > { %v13879_v4 = vpop.permute.xlu0 %1641 }
 0x141   : > { %v13897_v27 = vpop.permute.xlu1 %1647 }
 0x142   : > { %2385 = vrot.lane.b32.xlu0 %v13877_v44, %s12050_s18  ;;  %v2375_v44 = vrot.slane %v13312_v24, 2  ;;  %v13929_v24 = vsel %vm715_vm3, %v2367_v43, %v2369_v63  ;;  %v19539_v43 = vshll.u32 %v13893_v11, 16 }
 0x143   : > { %10837 = vmatmul.mubr.msk.bf16.gmra.mrb[8].mxu0 %vm995_vm9, %v13490_v49  ;;  %2391 = vrot.lane.b32.xlu1 %v13885_v3, %s12050_s18  ;;  %v2788_v49 = vrot.slane %v2786_v32, 1  ;;  %19535 = vst [vmem:[#allocation170_spill] sm:$0xff] %v13929_v24  ;;  %v19101_v3 = vshll.u32 %v13914_v12, 16 }
 0x144   : > { %10840 = vmatprep.mubr.msk.bf16.mxu0 %vm995_vm9, %v13542_v56  ;;  %v13906_v17 = vpop.permute.xlu0 %1645  ;;  %v13936_v20 = vsel %vm715_vm3, %v2373_v54, %v2375_v44  ;;  %v2801_v63 = vrot.slane %v19539_v43, 1  ;;  %v19543_v43 = vshrl.u32 %v13893_v11, 16 }
 0x145   : > { %v13926_v51 = vpop.permute.xlu1 %1651  ;;  %19537 = vst [vmem:[#allocation172_spill] sm:$0xff] %v13936_v20  ;;  %v2789_v56 = vor.u32 %v2788_v49, %v2784_v55  ;;  %v13958_v49 = vsel %vm715_vm3, %v2371_v28, %v2373_v54  ;;  %v2817_v7 = vrot.slane %v19101_v3, 1  ;;  %v13984_v3 = vld [vmem:[%s12123_s14 + $0x60] sm:$0xff]   ;;  %v19546_v54 = vshrl.u32 %v13890_v52, 16 }
 0x146   : > { %2389 = vrot.lane.b32.xlu0 %v13902_v59, %s12050_s18  ;;  %19534 = vst [vmem:[#allocation169_spill] sm:$0xff] %v13926_v51  ;;  %v19538_v59 = vshll.u32 %v13890_v52, 16  ;;  %19540 = vst [vmem:[#allocation173_spill] sm:$0xff] %v13958_v49  ;;  %v19558_v51 = vld [vmem:[#allocation91_spill] sm:$0xff] }
 0x147   : > { %2395 = vrot.lane.b32.xlu1 %v13917_v39, %s12050_s18 }
 0x148   : > { %v13931_v32 = vpop.permute.xlu0 %1649  ;;  %v2793_v5 = vrot.slane %v19538_v59, 1  ;;  %v2377_v59 = vrot.slane %v13732_v1, 2 }
 0x149   : > { %19536 = vst [vmem:[#allocation171_spill] sm:$0xff] %v13931_v32  ;;  %v13953_v55 = vpop.permute.xlu1 %1683  ;;  %v19559_v32 = vld [vmem:[#allocation109_spill] sm:$0xff] }
 0x14a   : > { %2393 = vrot.lane.b32.xlu0 %v13929_v24, %s12050_s18  ;;  %v13974_v1 = vsel %vm445_vm0, %v2789_v56, %v2793_v5  ;;  %v19544_v24 = vshll.u32 %v13921_v13, 16  ;;  %v13991_v56 = vsel %vm715_vm3, %v2375_v44, %v2377_v59  ;;  %v2833_v44 = vrot.slane %v19549_v60, 1 }
 0x14b   : > { %10841 = vmatmul.mubr.msk.bf16.gmra.mrb[12].mxu0 %vm995_vm9, %v13550_v14  ;;  %2399 = vrot.lane.b32.xlu1 %v13936_v20, %s12050_s18  ;;  %19542 = vst [vmem:[#allocation175_spill] sm:$0xff] %v13974_v1  ;;  %v13981_v20 = vld [vmem:[%s12123_s14 + $0x58] sm:$0xff]   ;;  %19545 = vst [vmem:[#allocation176_spill] sm:$0xff] %v13991_v56  ;;  %v2797_v14 = vor.u32 %v19546_v54, %v2793_v5 }
 0x14c   : > { %10844 = vmatprep.mubr.msk.bf16.mxu0 %vm995_vm9, %v13610_v18  ;;  %v13964_v39 = vpop.permute.xlu0 %1653  ;;  %v2805_v18 = vor.u32 %v19543_v43, %v2801_v63  ;;  %v2809_v15 = vrot.slane %v19544_v24, 1  ;;  %v19547_v24 = vshrl.u32 %v13914_v12, 16  ;;  %v14015_v43 = vld [vmem:[%s12123_s14 + $0x68] sm:$0xff]  }
 0x14d   : > { %19541 = vst [vmem:[#allocation174_spill] sm:$0xff] %v13964_v39  ;;  %v13988_v28 = vpop.permute.xlu1 %1687  ;;  %v14008_v39 = vld [vmem:[%s12123_s14 + $0x70] sm:$0xff]   ;;  %v14025_v60 = vsel %vm445_vm0, %v2797_v14, %v2801_v63  ;;  %v19555_v63 = vshrl.u32 %v13943_v16, 16  ;;  %v14045_v14 = vld [vmem:[%s12123_s14 + $0x78] sm:$0xff]  }
 0x14e   : > { %2397 = vrot.lane.b32.xlu0 %v13958_v49, %s12050_s18  ;;  %v2821_v61 = vor.u32 %v19547_v24, %v2817_v7  ;;  %v19548_v49 = vshll.u32 %v13939_v23, 16  ;;  %v14011_v5 = vsel %vm445_vm0, %v2805_v18, %v2809_v15  ;;  %19551 = vst [vmem:[#allocation178_spill] sm:$0xff] %v14025_v60  ;;  %v19552_v18 = vshrl.u32 %v13921_v13, 16 }
 0x14f   : > { %2883 = vrot.lane.b32.xlu1 %v13974_v1, %s12047_s15  ;;  %19550 = vst [vmem:[#allocation177_spill] sm:$0xff] %v14011_v5  ;;  %v19553_v1 = vld [vmem:[#allocation75_spill] sm:$0xff] }
 0x150   : > { %v13996_v38 = vpop.permute.xlu0 %1685  ;;  %v2825_v30 = vrot.slane %v19548_v49, 1  ;;  %v2813_v59 = vor.u32 %v19552_v18, %v2809_v15  ;;  %v789_v24 = vsel %vm765_vm5, %v13664_v35, %v19553_v1  ;;  %v2837_v15 = vor.u32 %v19555_v63, %v2833_v44 }
 0x151   : > { %v14020_v49 = vpop.permute.xlu1 %1691  ;;  %v19556_v35 = vshll.u32 %v13981_v20, 16  ;;  %v19563_v18 = vshll.u32 %v14008_v39, 16 }
 0x152   : > { %2401 = vrot.lane.b32.xlu0 %v13991_v56, %s12050_s18  ;;  %v14064_v48 = vsel %vm445_vm0, %v2813_v59, %v2817_v7 }
 0x153   : > { %10845 = vmatmul.mubr.msk.bf16.gmra.mrb[16].mxu0 %vm995_vm9, %v13619_v62  ;;  %2887 = vrot.lane.b32.xlu1 %v14011_v5, %s12047_s15  ;;  %v14040_v62 = vsel %vm445_vm0, %v2821_v61, %v2825_v30  ;;  %v2841_v1 = vrot.slane %v19556_v35, 1  ;;  %v814_v61 = vsel %vm790_vm6, %v789_v24, %v19558_v51  ;;  %19560 = vst [vmem:[#allocation91_spill] sm:$0xff] %v14064_v48  ;;  %v19562_v5 = vld [vmem:[#allocation56_spill] sm:$0xff] }
 0x154   : > { %10848 = vmatprep.mubr.msk.bf16.mxu0 %vm995_vm9, %v13682_v25  ;;  %v14035_v56 = vpop.permute.xlu0 %1689  ;;  %19554 = vst [vmem:[#allocation75_spill] sm:$0xff] %v14040_v62  ;;  %v19557_v25 = vshll.u32 %v13984_v3, 16  ;;  %v839_v35 = vsel %vm815_vm7, %v814_v61, %v19559_v32  ;;  %v1708_v51 = vsel %vm765_vm5, %v19562_v5, %v13414_v42  ;;  %v19565_v42 = vshrl.u32 %v13984_v3, 16  ;;  %v19567_v5 = vld [vmem:[#allocation129_spill] sm:$0xff] }
 0x155   : > { %v14058_v63 = vpop.permute.xlu1 %1695  ;;  %v14082_v59 = vsel %vm445_vm0, %v2837_v15, %v2841_v1 }
 0x156   : > { %v2849_v54 = vrot.slane %v19557_v25, 1  ;;  %2885 = vrot.lane.b32.xlu0 %v14025_v60, %s12047_s15  ;;  %v19561_v25 = vshrl.u32 %v13939_v23, 16  ;;  %v2865_v60 = vrot.slane %v19563_v18, 1  ;;  %19564 = vst [vmem:[#allocation109_spill] sm:$0xff] %v14082_v59  ;;  %v864_v18 = vsel %vm840_vm8, %v839_v35, %v19567_v5 }
 0x157   : > { %2891 = vrot.lane.b32.xlu1 %v14040_v62, %s12047_s15  ;;  %v14107_v35 = vld [vmem:[%s12123_s14 + $0x80] ss:$0 sps:$4 sm:$0x11]  }
 0x158   : > { %v2829_v0 = vor.u32 %v19561_v25, %v2825_v30  ;;  %v14071_v24 = vpop.permute.xlu0 %1693  ;;  %v1732_v30 = vsel %vm790_vm6, %v1708_v51, %v13614_v47  ;;  %v2853_v61 = vor.u32 %v19565_v42, %v2849_v54  ;;  %v19566_v25 = vshll.u32 %v14015_v43, 16  ;;  %v2717_v51 = vld [vmem:[%s12123_s14 + $0x20] sm:$0xe] }
 0x159   : > { %v1756_v32 = vsel %vm815_vm7, %v1732_v30, %v13800_v57  ;;  %v14094_v7 = vpop.permute.xlu1 %1699  ;;  %v19568_v47 = vshrl.u32 %v13981_v20, 16  ;;  %v19126_v57 = vshrl.u32 %v14015_v43, 16 }
 0x15a   : > { %v2857_v62 = vrot.slane %v19566_v25, 1  ;;  %2889 = vrot.lane.b32.xlu0 %v14064_v48, %s12047_s15  ;;  %v1780_v42 = vsel %vm840_vm8, %v1756_v32, %v13953_v55  ;;  %v14103_v5 = vsel %vm445_vm0, %v2829_v0, %v2833_v44  ;;  %v19571_v32 = vshll.u32 %v14045_v14, 16 }
 0x15b   : > { %v2845_v15 = vor.u32 %v19568_v47, %v2841_v1  ;;  %10849 = vmatmul.mubr.msk.bf16.gmra.mrb[20].mxu0 %vm995_vm9, %v864_v18  ;;  %19569 = vst [vmem:[#allocation129_spill] sm:$0xff] %v14103_v5  ;;  %2895 = vrot.lane.b32.xlu1 %v14082_v59, %s12047_s15  ;;  %v19570_v1 = vshrl.u32 %v14008_v39, 16  ;;  %v14122_v44 = vcombine.low %v2717_v51, %v13846_v53  ;;  %v14142_v59 = vld [vmem:[%s12123_s14 + $0x20] sm:$0xff]  }
 0x15c   : > { %10856 = vmatprep.mubr.msk.bf16.mxu0 %vm995_vm9, %v1780_v42  ;;  %v14110_v30 = vpop.permute.xlu0 %1697  ;;  %v2873_v25 = vrot.slane %v19571_v32, 1  ;;  %v14119_v0 = vsel %vm445_vm0, %v2853_v61, %v2857_v62  ;;  %v14132_v42 = vld [vmem:[%s12123_s14 + $0x18] sm:$0xff]   ;;  %v2861_v61 = vor.u32 %v19126_v57, %v2857_v62  ;;  %v2879_v32 = vshll.u32 %v14107_v35, 16 }
 0x15d   : > { %v2869_v55 = vor.u32 %v19570_v1, %v2865_v60  ;;  %19572 = vst [vmem:[#allocation179_spill] sm:$0xff] %v14119_v0  ;;  %v14126_v18 = vpop.permute.xlu1 %1703  ;;  %v14129_v47 = vsel %vm445_vm0, %v2845_v15, %v2849_v54  ;;  %v1710_v1 = vsel %vm765_vm5, %v14132_v42, %v13464_v2  ;;  %v1712_v54 = vsel %vm765_vm5, %v14142_v59, %v13444_v31 }
 0x15e   : > { %2893 = vrot.lane.b32.xlu0 %v14103_v5, %s12047_s15  ;;  %19573 = vst [vmem:[#allocation180_spill] sm:$0xff] %v14129_v47  ;;  %v1734_v15 = vsel %vm790_vm6, %v1710_v1, %v13669_v41  ;;  %v1736_v62 = vsel %vm790_vm6, %v1712_v54, %v13648_v33  ;;  %v2910_v51 = vrot.slane %v14122_v44, 1  ;;  %v2911_v31 = vrot.slane %v13890_v52, 1  ;;  %v11905_v33 = vld [vmem:[%s18767_s1 + $0x2c] ss:$0 sps:$4 sm:$0x33]  }
 0x15f   : > { %2899 = vrot.lane.b32.xlu1 %v14119_v0, %s12047_s15  ;;  %v14154_v2 = vsel %vm445_vm0, %v2869_v55, %v2873_v25  ;;  %v1758_v57 = vsel %vm815_vm7, %v1734_v15, %v13835_v29  ;;  %v1760_v41 = vsel %vm815_vm7, %v1736_v62, %v13823_v45  ;;  %v14177_v45 = vsel %vm445_vm0, %v2861_v61, %v2865_v60  ;;  %v14199_v61 = vld [vmem:[%s12123_s14 + $0x28] sm:$0xff]  }
 0x160   : > { %v14149_v5 = vpop.permute.xlu0 %1701  ;;  %19574 = vst [vmem:[#allocation181_spill] sm:$0xff] %v14154_v2  ;;  %v1782_v1 = vsel %vm840_vm8, %v1758_v57, %v13996_v38  ;;  %v1784_v29 = vsel %vm840_vm8, %v1760_v41, %v13988_v28  ;;  %19575 = vst [vmem:[#allocation182_spill] sm:$0xff] %v14177_v45  ;;  %v19576_v38 = vshrl.u32 %v14045_v14, 16  ;;  %v2881_v54 = vrot.slane %v2879_v32, 1 }
 0x161   : > { %v14168_v55 = vpop.permute.xlu1 %2187  ;;  %v2913_v28 = vrot.slane %v13893_v11, 1  ;;  %v2915_v62 = vrot.slane %v13921_v13, 1  ;;  %v14189_v41 = vsel %vm573_vm1, %v2910_v51, %v2911_v31  ;;  %v1714_v32 = vsel %vm765_vm5, %v14199_v61, %v13499_v36 }
 0x162   : > { %2897 = vrot.lane.b32.xlu0 %v14129_v47, %s12047_s15  ;;  %v2877_v57 = vor.u32 %v19576_v38, %v2873_v25  ;;  %19577 = vst [vmem:[#allocation183_spill] sm:$0xff] %v14189_v41  ;;  %v2537_v25 = vsel %vm1020_vm4, %v11905_v33, 0  ;;  %v19590_v47 = vshrl.u32 %v13893_v11, 16 }
 0x163   : > { %10857 = vmatmul.mubr.msk.bf16.vlgmr.msra.gmra.mrb[0].mxu0 %vm995_vm9, %v1782_v1  ;;  %2903 = vrot.lane.b32.xlu1 %v14154_v2, %s12047_s15  ;;  %v14208_v1 = vld [vmem:[%s12123_s14 + $0x30] sm:$0xff]  }
 0x164   : > { %10860 = vmatprep.mubr.msk.bf16.mxu0 %vm995_vm9, %v1784_v29  ;;  %v14182_v15 = vpop.permute.xlu0 %1705  ;;  %10881 = vmatpush3.bf16.msra.mxu0 %v13830_v22  ;;  %v14205_v51 = vsel %vm445_vm0, %v2877_v57, %v2881_v54  ;;  %v1716_v22 = vsel %vm765_vm5, %v14208_v1, %v13485_v21  ;;  %v1738_v29 = vsel %vm790_vm6, %v1714_v32, %v13698_v9  ;;  %v2917_v54 = vrot.slane %v13914_v12, 1 }
 0x165   : > { %v14194_v60 = vpop.permute.xlu1 %2191  ;;  %11787 = vmatprep.subr.msk.bf16.mxu0 %vm1020_vm4, %v11905_v33  ;;  %19578 = vst [vmem:[#allocation184_spill] sm:$0xff] %v14205_v51  ;;  %v14220_v33 = vsel %vm573_vm1, %v2913_v28, %v2915_v62  ;;  %v1740_v36 = vsel %vm790_vm6, %v1716_v22, %v13688_v40  ;;  %v1762_v57 = vsel %vm815_vm7, %v1738_v29, %v13860_v26  ;;  %v2919_v21 = vrot.slane %v13939_v23, 1  ;;  %v14259_v29 = vld [vmem:[%s12123_s14 + $0x38] sm:$0xff]  }
 0x166   : > { %2901 = vrot.lane.b32.xlu0 %v14177_v45, %s12047_s15  ;;  %19579 = vst [vmem:[#allocation185_spill] sm:$0xff] %v14220_v33  ;;  %v1764_v9 = vsel %vm815_vm7, %v1740_v36, %v13850_v19  ;;  %v1786_v32 = vsel %vm840_vm8, %v1762_v57, %v14035_v56  ;;  %v14240_v26 = vsel %vm573_vm1, %v2911_v31, %v2913_v28  ;;  %v2921_v56 = vrot.slane %v13943_v16, 1 }
 0x167   : > { %2935 = vrot.lane.b32.xlu1 %v14189_v41, %s12048_s16  ;;  %v1788_v40 = vsel %vm840_vm8, %v1764_v9, %v14020_v49  ;;  %19580 = vst [vmem:[#allocation186_spill] sm:$0xff] %v14240_v26  ;;  %v14250_v22 = vsel %vm573_vm1, %v2917_v54, %v2919_v21  ;;  %v2963_v31 = vshrl.u32 %v14122_v44, 16  ;;  %v2966_v28 = vshll.u32 %v14122_v44, 16  ;;  %v14268_v9 = vld [vmem:[%s12123_s14 + $0x40] sm:$0xff]  }
 0x168   : > { %v14215_v38 = vpop.permute.xlu0 %2189  ;;  %10883 = vmatpush3.bf16.msra.mxu0 %v2537_v25  ;;  %v2923_v25 = vrot.slane %v13981_v20, 1  ;;  %19581 = vst [vmem:[#allocation187_spill] sm:$0xff] %v14250_v22  ;;  %v1718_v36 = vsel %vm765_vm5, %v14259_v29, %v13525_v34  ;;  %v14265_v57 = vsel %vm573_vm1, %v2915_v62, %v2917_v54  ;;  %v2925_v54 = vrot.slane %v13984_v3, 1 }
 0x169   : > { %v14234_v2 = vpop.permute.xlu1 %2195  ;;  %19582 = vst [vmem:[#allocation188_spill] sm:$0xff] %v14265_v57  ;;  %v2965_v0 = vrot.slane %v2963_v31, 1  ;;  %v2974_v48 = vrot.slane %v19590_v47, 1 }
 0x16a   : > { %2905 = vrot.lane.b32.xlu0 %v14205_v51, %s12047_s15  ;;  %v14280_v44 = vsel %vm573_vm1, %v2921_v56, %v2923_v25 }
 0x16b   : > { %10861 = vmatmul.mubr.msk.bf16.gmra.mrb[4].mxu0 %vm995_vm9, %v1786_v32  ;;  %2939 = vrot.lane.b32.xlu1 %v14220_v33, %s12048_s16  ;;  %v1720_v32 = vsel %vm765_vm5, %v14268_v9, %v13510_v46  ;;  %19583 = vst [vmem:[#allocation189_spill] sm:$0xff] %v14280_v44  ;;  %v2927_v46 = vrot.slane %v14015_v43, 1 }
 0x16c   : > { %10864 = vmatprep.mubr.msk.bf16.mxu0 %vm995_vm9, %v1788_v40  ;;  %v14243_v19 = vpop.permute.xlu0 %2193  ;;  %v1742_v40 = vsel %vm790_vm6, %v1718_v36, %v13736_v10  ;;  %v1744_v34 = vsel %vm790_vm6, %v1720_v32, %v13718_v6  ;;  %v2968_v6 = vrot.slane %v2966_v28, 2  ;;  %v14300_v32 = vsel %vm573_vm1, %v2919_v21, %v2921_v56 }
 0x16d   : > { %v14254_v49 = vpop.permute.xlu1 %2199  ;;  %v1766_v62 = vsel %vm815_vm7, %v1742_v40, %v13879_v4  ;;  %v1768_v10 = vsel %vm815_vm7, %v1744_v34, %v13874_v50  ;;  %19584 = vst [vmem:[#allocation190_spill] sm:$0xff] %v14300_v32  ;;  %v19585_v50 = vshrl.u32 %v13890_v52, 16  ;;  %v2929_v21 = vrot.slane %v14008_v39, 1 }
 0x16e   : > { %2937 = vrot.lane.b32.xlu0 %v14240_v26, %s12048_s16  ;;  %v1790_v36 = vsel %vm840_vm8, %v1766_v62, %v14071_v24  ;;  %v1792_v4 = vsel %vm840_vm8, %v1768_v10, %v14058_v63  ;;  %v19586_v24 = vshll.u32 %v13890_v52, 16  ;;  %v14312_v63 = vsel %vm573_vm1, %v2925_v54, %v2927_v46 }
 0x16f   : > { %2943 = vrot.lane.b32.xlu1 %v14250_v22, %s12048_s16  ;;  %v2970_v40 = vrot.slane %v19585_v50, 1  ;;  %19587 = vst [vmem:[#allocation191_spill] sm:$0xff] %v14312_v63  ;;  %v2931_v56 = vrot.slane %v14045_v14, 1  ;;  %v14321_v62 = vsel %vm573_vm1, %v2923_v25, %v2925_v54  ;;  %v2969_v10 = vor.u32 %v2968_v6, %v2965_v0  ;;  %v19592_v22 = vld [vmem:[#allocation156_spill] sm:$0xff] }
 0x170   : > { %v14275_v51 = vpop.permute.xlu0 %2197  ;;  %v2971_v34 = vrot.slane %v19586_v24, 2  ;;  %19588 = vst [vmem:[#allocation192_spill] sm:$0xff] %v14321_v62  ;;  %v19593_v6 = vshrl.u32 %v13921_v13, 16 }
 0x171   : > { %v14294_v45 = vpop.permute.xlu1 %2203 }
 0x172   : > { %2941 = vrot.lane.b32.xlu0 %v14265_v57, %s12048_s16  ;;  %v2972_v24 = vor.u32 %v2971_v34, %v2970_v40  ;;  %v2978_v47 = vrot.slane %v19593_v6, 1  ;;  %v19594_v40 = vshll.u32 %v13921_v13, 16 }
 0x173   : > { %10865 = vmatmul.mubr.msk.bf16.gmra.mrb[8].mxu0 %vm995_vm9, %v1790_v36  ;;  %2947 = vrot.lane.b32.xlu1 %v14280_v44, %s12048_s16  ;;  %v14324_v36 = vld [vmem:[%s12123_s14 + $0x48] sm:$0xff]   ;;  %v19591_v44 = vshll.u32 %v13893_v11, 16 }
 0x174   : > { %10868 = vmatprep.mubr.msk.bf16.mxu0 %vm995_vm9, %v1792_v4  ;;  %v14307_v31 = vpop.permute.xlu0 %2201  ;;  %v19589_v4 = vld [vmem:[#allocation158_spill] sm:$0xff] }
 0x175   : > { %v14318_v28 = vpop.permute.xlu1 %2207  ;;  %v1722_v50 = vsel %vm765_vm5, %v14324_v36, %v19589_v4  ;;  %v2975_v57 = vrot.slane %v19591_v44, 2  ;;  %v2979_v44 = vrot.slane %v19594_v40, 2  ;;  %v14354_v4 = vsel %vm573_vm1, %v2929_v21, %v2931_v56 }
 0x176   : > { %2945 = vrot.lane.b32.xlu0 %v14300_v32, %s12048_s16  ;;  %v14334_v32 = vld [vmem:[%s12123_s14 + $0x50] sm:$0xff]   ;;  %v1746_v0 = vsel %vm790_vm6, %v1722_v50, %v13768_v8  ;;  %19595 = vst [vmem:[#allocation158_spill] sm:$0xff] %v14354_v4  ;;  %v2933_v40 = vrot.slane %v14107_v35, 1 }
 0x177   : > { %v1724_v25 = vsel %vm765_vm5, %v14334_v32, %v19592_v22  ;;  %2951 = vrot.lane.b32.xlu1 %v14312_v63, %s12048_s16  ;;  %v1770_v22 = vsel %vm815_vm7, %v1746_v0, %v13906_v17  ;;  %v14369_v17 = vsel %vm573_vm1, %v2927_v46, %v2929_v21  ;;  %v2976_v35 = vor.u32 %v2975_v57, %v2974_v48 }
 0x178   : > { %v14341_v54 = vpop.permute.xlu0 %2205  ;;  %v1748_v34 = vsel %vm790_vm6, %v1724_v25, %v13756_v58  ;;  %v1794_v50 = vsel %vm840_vm8, %v1770_v22, %v14110_v30  ;;  %19596 = vst [vmem:[#allocation156_spill] sm:$0xff] %v14369_v17  ;;  %v14377_v30 = vsel %vm626_vm2, %v2969_v10, %v2972_v24  ;;  %v2980_v25 = vor.u32 %v2979_v44, %v2978_v47  ;;  %v14397_v44 = vld [vmem:[%s12123_s14 + $0x58] sm:$0xff]  }
 0x179   : > { %v1772_v8 = vsel %vm815_vm7, %v1748_v34, %v13897_v27  ;;  %v14362_v6 = vpop.permute.xlu1 %2239  ;;  %19597 = vst [vmem:[#allocation193_spill] sm:$0xff] %v14377_v30  ;;  %v19599_v34 = vshll.u32 %v13914_v12, 16  ;;  %v19600_v21 = vshrl.u32 %v13939_v23, 16  ;;  %v14392_v48 = vsel %vm573_vm1, %v2931_v56, %v2933_v40  ;;  %19604 = vst [vmem:[#allocation195_spill] sm:$0xff] %v14397_v44  ;;  %v14409_v56 = vld [vmem:[%s12123_s14 + $0x60] sm:$0xff]   ;;  %v19610_v40 = vld [vmem:[#allocation160_spill] sm:$0xff] }
 0x17a   : > { %2949 = vrot.lane.b32.xlu0 %v14321_v62, %s12048_s16  ;;  %v1796_v58 = vsel %vm840_vm8, %v1772_v8, %v14094_v7  ;;  %v19598_v7 = vshrl.u32 %v13914_v12, 16  ;;  %v19601_v8 = vshll.u32 %v13939_v23, 16  ;;  %19602 = vst [vmem:[#allocation194_spill] sm:$0xff] %v14392_v48  ;;  %v19603_v57 = vshrl.u32 %v13943_v16, 16 }
 0x17b   : > { %10869 = vmatmul.mubr.msk.bf16.gmra.mrb[12].mxu0 %vm995_vm9, %v1794_v50  ;;  %2955 = vrot.lane.b32.xlu1 %v14354_v4, %s12048_s16  ;;  %v2983_v46 = vrot.slane %v19599_v34, 2  ;;  %v2986_v22 = vrot.slane %v19600_v21, 1  ;;  %v19606_v34 = vshll.u32 %v13943_v16, 16 }
 0x17c   : > { %10872 = vmatprep.mubr.msk.bf16.mxu0 %vm995_vm9, %v1796_v58  ;;  %v14372_v27 = vpop.permute.xlu0 %2209  ;;  %v2982_v0 = vrot.slane %v19598_v7, 1  ;;  %v2987_v50 = vrot.slane %v19601_v8, 2  ;;  %v2990_v47 = vrot.slane %v19603_v57, 1  ;;  %v19605_v58 = vld [vmem:[#allocation162_spill] sm:$0xff]  ;;  %v19607_v8 = vshrl.u32 %v13981_v20, 16 }
 0x17d   : > { %v14389_v10 = vpop.permute.xlu1 %2243  ;;  %v1726_v7 = vsel %vm765_vm5, %v14397_v44, %v19605_v58  ;;  %v2991_v21 = vrot.slane %v19606_v34, 2  ;;  %19609 = vst [vmem:[#allocation162_spill] sm:$0xff] %v14409_v56  ;;  %v1728_v57 = vsel %vm765_vm5, %v14409_v56, %v19610_v40  ;;  %v14421_v58 = vsel %vm626_vm2, %v2976_v35, %v2980_v25  ;;  %v19612_v34 = vld [vmem:[#allocation133_spill] sm:$0xff] }
 0x17e   : > { %2953 = vrot.lane.b32.xlu0 %v14369_v17, %s12048_s16  ;;  %v2994_v4 = vrot.slane %v19607_v8, 1  ;;  %v19608_v17 = vshll.u32 %v13981_v20, 16  ;;  %v1750_v63 = vsel %vm790_vm6, %v1726_v7, %v13786_v37  ;;  %19611 = vst [vmem:[#allocation160_spill] sm:$0xff] %v14421_v58  ;;  %v19613_v8 = vld [vmem:[#allocation171_spill] sm:$0xff]  ;;  %v2984_v41 = vor.u32 %v2983_v46, %v2982_v0  ;;  %v19614_v40 = vld [vmem:[#allocation169_spill] sm:$0xff] }
 0x17f   : > { %3023 = vrot.lane.b32.xlu1 %v14377_v30, %s12049_s17  ;;  %v1774_v33 = vsel %vm815_vm7, %v1750_v63, %v19613_v8  ;;  %v2988_v44 = vor.u32 %v2987_v50, %v2986_v22  ;;  %v14439_v63 = vsel %vm626_vm2, %v2972_v24, %v2976_v35  ;;  %v2992_v0 = vor.u32 %v2991_v21, %v2990_v47  ;;  %v14462_v21 = vld [vmem:[%s12123_s14 + $0x68] sm:$0xff]  }
 0x180   : > { %v2995_v62 = vrot.slane %v19608_v17, 2  ;;  %v14416_v26 = vpop.permute.xlu0 %2241  ;;  %v1752_v17 = vsel %vm790_vm6, %v1728_v57, %v19612_v34  ;;  %v1798_v37 = vsel %vm840_vm8, %v1774_v33, %v14149_v5  ;;  %19615 = vst [vmem:[#allocation133_spill] sm:$0xff] %v14439_v63  ;;  %v19616_v33 = vshrl.u32 %v13984_v3, 16  ;;  %19621 = vst [vmem:[#allocation169_spill] sm:$0xff] %v14462_v21  ;;  %v19622_v34 = vld [vmem:[#allocation127_spill] sm:$0xff] }
 0x181   : > { %v1776_v56 = vsel %vm815_vm7, %v1752_v17, %v19614_v40  ;;  %v14433_v7 = vpop.permute.xlu1 %2247  ;;  %v19619_v35 = vshll.u32 %v14015_v43, 16  ;;  %v1730_v17 = vsel %vm765_vm5, %v14462_v21, %v19622_v34  ;;  %v14468_v8 = vsel %vm626_vm2, %v2980_v25, %v2984_v41  ;;  %v14487_v25 = vld [vmem:[%s18767_s1 + $0x30] sm:$0xff]  }
 0x182   : > { %2957 = vrot.lane.b32.xlu0 %v14392_v48, %s12048_s16  ;;  %v1800_v57 = vsel %vm840_vm8, %v1776_v56, %v14126_v18  ;;  %v2996_v46 = vor.u32 %v2995_v62, %v2994_v4  ;;  %v2998_v22 = vrot.slane %v19616_v33, 1  ;;  %v19617_v18 = vshll.u32 %v13984_v3, 16  ;;  %19623 = vst [vmem:[#allocation127_spill] sm:$0xff] %v14468_v8  ;;  %v19627_v48 = vld [vmem:[#allocation174_spill] sm:$0xff]  ;;  %10908 = vmatprep.subr.bf16.mxu0 %v14487_v25 }
 0x183   : > { %10873 = vmatmul.mubr.msk.bf16.gmra.mrb[16].mxu0 %vm995_vm9, %v1798_v37  ;;  %3027 = vrot.lane.b32.xlu1 %v14421_v58, %s12049_s17  ;;  %v19618_v56 = vshrl.u32 %v14015_v43, 16  ;;  %v3003_v47 = vrot.slane %v19619_v35, 2  ;;  %v14455_v62 = vsel %vm626_vm2, %v2984_v41, %v2988_v44  ;;  %v14474_v37 = vld [vmem:[%s12123_s14 + $0x80] ss:$0 sps:$4 sm:$0x33]   ;;  %v19626_v34 = vshrl.u32 %v14008_v39, 16 }
 0x184   : > { %10876 = vmatprep.mubr.msk.bf16.mxu0 %vm995_vm9, %v1800_v57  ;;  %v14442_v5 = vpop.permute.xlu0 %2245  ;;  %v2999_v50 = vrot.slane %v19617_v18, 2  ;;  %19620 = vst [vmem:[#allocation171_spill] sm:$0xff] %v14455_v62  ;;  %v14471_v40 = vsel %vm626_vm2, %v2992_v0, %v2996_v46  ;;  %v19625_v57 = vld [vmem:[#allocation115_spill] sm:$0xff] }
 0x185   : > { %v3002_v24 = vrot.slane %v19618_v56, 1  ;;  %v14459_v4 = vpop.permute.xlu1 %2251  ;;  %19624 = vst [vmem:[#allocation196_spill] sm:$0xff] %v14471_v40  ;;  %v1754_v33 = vsel %vm790_vm6, %v1730_v17, %v19625_v57  ;;  %v3006_v41 = vrot.slane %v19626_v34, 1  ;;  %v19628_v17 = vshll.u32 %v14008_v39, 16  ;;  %v2719_v34 = vld [vmem:[%s12123_s14 + $0x20] sm:$0xc] }
 0x186   : > { %3025 = vrot.lane.b32.xlu0 %v14439_v63, %s12049_s17  ;;  %v3000_v56 = vor.u32 %v2999_v50, %v2998_v22  ;;  %v1778_v58 = vsel %vm815_vm7, %v1754_v33, %v19627_v48  ;;  %v19629_v63 = vshrl.u32 %v14045_v14, 16  ;;  %v19630_v22 = vshll.u32 %v14045_v14, 16 }
 0x187   : > { %3031 = vrot.lane.b32.xlu1 %v14455_v62, %s12049_s17  ;;  %v3004_v35 = vor.u32 %v3003_v47, %v3002_v24  ;;  %v3007_v57 = vrot.slane %v19628_v17, 2  ;;  %v1802_v24 = vsel %vm840_vm8, %v1778_v58, %v14182_v15  ;;  %v14507_v48 = vsel %vm626_vm2, %v2988_v44, %v2992_v0 }
 0x188   : > { %v14478_v18 = vpop.permute.xlu0 %2249  ;;  %v3010_v30 = vrot.slane %v19629_v63, 1  ;;  %v3011_v50 = vrot.slane %v19630_v22, 2  ;;  %19631 = vst [vmem:[#allocation115_spill] sm:$0xff] %v14507_v48  ;;  %v3015_v63 = vshrl.u32 %v14474_v37, 16  ;;  %v3018_v33 = vshll.u32 %v14474_v37, 16 }
 0x189   : > { %v14501_v47 = vpop.permute.xlu1 %2255  ;;  %v14516_v15 = vsel %vm626_vm2, %v3000_v56, %v3004_v35  ;;  %v3008_v58 = vor.u32 %v3007_v57, %v3006_v41  ;;  %v10174_v62 = vcombine.low %v2719_v34, %v13846_v53  ;;  %v14524_v0 = vsel %vm626_vm2, %v2996_v46, %v3000_v56 }
 0x18a   : > { %3029 = vrot.lane.b32.xlu0 %v14468_v8, %s12049_s17  ;;  %19632 = vst [vmem:[#allocation174_spill] sm:$0xff] %v14516_v15  ;;  %v3012_v22 = vor.u32 %v3011_v50, %v3010_v30  ;;  %19633 = vst [vmem:[#allocation197_spill] sm:$0xff] %v14524_v0  ;;  %v3020_v8 = vrot.slane %v3018_v33, 2  ;;  %v3051_v53 = vrot.slane %v13890_v52, 2  ;;  %v3055_v52 = vrot.slane %v13921_v13, 2 }
 0x18b   : > { %10877 = vmatmul.mubr.msk.bf16.gmra.mrb[20].mxu0 %vm995_vm9, %v1802_v24  ;;  %3035 = vrot.lane.b32.xlu1 %v14471_v40, %s12049_s17  ;;  %v3017_v24 = vrot.slane %v3015_v63, 1  ;;  %v3050_v30 = vrot.slane %v10174_v62, 2  ;;  %v14537_v46 = vsel %vm626_vm2, %v3004_v35, %v3008_v58  ;;  %v3053_v62 = vrot.slane %v13893_v11, 2 }
 0x18c   : > { %v14511_v17 = vpop.permute.xlu0 %2253  ;;  %v14531_v41 = vsel %vm626_vm2, %v3008_v58, %v3012_v22  ;;  %19635 = vst [vmem:[#allocation199_spill] sm:$0xff] %v14537_v46  ;;  %v3057_v58 = vrot.slane %v13914_v12, 2  ;;  %v3059_v11 = vrot.slane %v13939_v23, 2  ;;  %v3061_v12 = vrot.slane %v13943_v16, 2 }
 0x18d   : > { %v14521_v44 = vpop.permute.xlu1 %2259  ;;  %19634 = vst [vmem:[#allocation198_spill] sm:$0xff] %v14531_v41  ;;  %v3021_v56 = vor.u32 %v3020_v8, %v3017_v24  ;;  %v14544_v34 = vsel %vm715_vm3, %v3050_v30, %v3051_v53  ;;  %v14558_v33 = vsel %vm715_vm3, %v3053_v62, %v3055_v52  ;;  %v14567_v24 = vsel %vm715_vm3, %v3051_v53, %v3053_v62 }
 0x18e   : > { %3033 = vrot.lane.b32.xlu0 %v14507_v48, %s12049_s17  ;;  %19636 = vst [vmem:[#allocation200_spill] sm:$0xff] %v14544_v34  ;;  %19638 = vst [vmem:[#allocation202_spill] sm:$0xff] %v14558_v33  ;;  %v14574_v30 = vsel %vm715_vm3, %v3057_v58, %v3059_v11  ;;  %v3063_v23 = vrot.slane %v13981_v20, 2  ;;  %v14583_v53 = vsel %vm715_vm3, %v3055_v52, %v3057_v58  ;;  %v3065_v16 = vrot.slane %v13984_v3, 2  ;;  %v19684_v48 = vld [vmem:[#allocation163_spill] sm:$0xff] }
 0x18f   : > { %3039 = vrot.lane.b32.xlu1 %v14516_v15, %s12049_s17  ;;  %v14553_v35 = vsel %vm626_vm2, %v3012_v22, %v3021_v56  ;;  %19639 = vst [vmem:[#allocation203_spill] sm:$0xff] %v14567_v24  ;;  %19640 = vst [vmem:[#allocation204_spill] sm:$0xff] %v14574_v30  ;;  %v3067_v20 = vrot.slane %v14015_v43, 2  ;;  %v14599_v52 = vsel %vm715_vm3, %v3059_v11, %v3061_v12  ;;  %v3069_v3 = vrot.slane %v14008_v39, 2 }
 0x190   : > { %v14526_v21 = vpop.permute.xlu0 %2257  ;;  %19637 = vst [vmem:[#allocation201_spill] sm:$0xff] %v14553_v35  ;;  %19641 = vst [vmem:[#allocation205_spill] sm:$0xff] %v14583_v53  ;;  %v3071_v43 = vrot.slane %v14045_v14, 2  ;;  %v14615_v11 = vsel %vm715_vm3, %v3063_v23, %v3065_v16 }
 0x191   : > { %v2328_v57 = vpop.permute.xlu1 %2327  ;;  %19643 = vst [vmem:[#allocation207_spill] sm:$0xff] %v14599_v52  ;;  %19645 = vst [vmem:[#allocation209_spill] sm:$0xff] %v14615_v11 }
 0x192   : > { %3037 = vrot.lane.b32.xlu0 %v14524_v0, %s12049_s17  ;;  %v14627_v14 = vsel %vm715_vm3, %v3069_v3, %v3071_v43 }
 0x193   : > { %3043 = vrot.lane.b32.xlu1 %v14531_v41, %s12049_s17  ;;  %19647 = vst [vmem:[#allocation210_spill] sm:$0xff] %v14627_v14 }
 0x194   : > { %v14539_v50 = vpop.permute.xlu0 %2261 }
 0x195   : > { %v14550_v63 = vpop.permute.xlu1 %2331 }
 0x196   : > { %3041 = vrot.lane.b32.xlu0 %v14537_v46, %s12049_s17  ;;  %v14606_v46 = vsel %vm715_vm3, %v3065_v16, %v3067_v20  ;;  %v14634_v16 = vsel %vm715_vm3, %v3067_v20, %v3069_v3  ;;  %v14651_v20 = vld [vmem:[%s12123_s14 + $0x28] sm:$0xff]  }
 0x197   : > { %3075 = vrot.lane.b32.xlu1 %v14544_v34, %s12050_s18  ;;  %19644 = vst [vmem:[#allocation208_spill] sm:$0xff] %v14606_v46  ;;  %19648 = vst [vmem:[#allocation211_spill] sm:$0xff] %v14634_v16 }
 0x198   : > { %v2330_v8 = vpop.permute.xlu0 %2329 }
 0x199   : > { %v14564_v13 = vpop.permute.xlu1 %2335 }
 0x19a   : > { %3045 = vrot.lane.b32.xlu0 %v14553_v35, %s12049_s17  ;;  %v14590_v35 = vsel %vm715_vm3, %v3061_v12, %v3063_v23  ;;  %v19646_v12 = vld [vmem:[#allocation120_spill] sm:$0xff] }
 0x19b   : > { %3079 = vrot.lane.b32.xlu1 %v14558_v33, %s12050_s18  ;;  %19642 = vst [vmem:[#allocation206_spill] sm:$0xff] %v14590_v35  ;;  %v2404_v0 = vsel %vm765_vm5, %v19646_v12, %v14168_v55 }
 0x19c   : > { %v14569_v22 = vpop.permute.xlu0 %2333  ;;  %v2428_v39 = vsel %vm790_vm6, %v2404_v0, %v14362_v6  ;;  %v14643_v6 = vld [vmem:[%s12123_s14 + $0x20] sm:$0xff]  }
 0x19d   : > { %v14580_v56 = vpop.permute.xlu1 %2339  ;;  %v2406_v0 = vsel %vm765_vm5, %v14643_v6, %v14215_v38 }
 0x19e   : > { %3077 = vrot.lane.b32.xlu0 %v14567_v24, %s12050_s18 }
 0x19f   : > { %3083 = vrot.lane.b32.xlu1 %v14574_v30, %s12050_s18 }
 0x1a0   : > { %v14585_v62 = vpop.permute.xlu0 %2337 }
 0x1a1   : > { %v14596_v41 = vpop.permute.xlu1 %2343 }
 0x1a2   : > { %3081 = vrot.lane.b32.xlu0 %v14583_v53, %s12050_s18 }
 0x1a3   : > { %3087 = vrot.lane.b32.xlu1 %v14590_v35, %s12050_s18 }
 0x1a4   : > { %v14601_v58 = vpop.permute.xlu0 %2341 }
 0x1a5   : > { %v14612_v15 = vpop.permute.xlu1 %2347 }
 0x1a6   : > { %3085 = vrot.lane.b32.xlu0 %v14599_v52, %s12050_s18  ;;  %v2452_v52 = vsel %vm815_vm7, %v2428_v39, %v2328_v57 }
 0x1a7   : > { %3091 = vrot.lane.b32.xlu1 %v14606_v46, %s12050_s18  ;;  %v3073_v46 = vrot.slane %v14474_v37, 2  ;;  %v2408_v37 = vsel %vm765_vm5, %v14651_v20, %v14194_v60  ;;  %v11907_v60 = vld [vmem:[%s18767_s1 + $0x38] ss:$0 sps:$4 sm:$0x33]  }
 0x1a8   : > { %v14620_v35 = vpop.permute.xlu0 %2345  ;;  %v2432_v38 = vsel %vm790_vm6, %v2408_v37, %v14389_v10 }
 0x1a9   : > { %v2380_v23 = vpop.permute.xlu1 %2379  ;;  %v14659_v3 = vsel %vm715_vm3, %v3071_v43, %v3073_v46 }
 0x1aa   : > { %3089 = vrot.lane.b32.xlu0 %v14615_v11, %s12050_s18  ;;  %v2476_v55 = vsel %vm840_vm8, %v2452_v52, %v2380_v23  ;;  %v2430_v52 = vsel %vm790_vm6, %v2406_v0, %v14416_v26  ;;  %19649 = vst [vmem:[#allocation212_spill] sm:$0xff] %v14659_v3  ;;  %v2456_v26 = vsel %vm815_vm7, %v2432_v38, %v14550_v63  ;;  %v11964_v0 = vld [vmem:[%s12123_s14 + $0x10] sm:$0xff]   ;;  %v3233_v63 = vsel %vm1020_vm4, %v11907_v60, 0  ;;  %v14691_v38 = vld [vmem:[%s12123_s14 + $0x38] sm:$0xff]  }
 0x1ab   : > { %3095 = vrot.lane.b32.xlu1 %v14627_v14, %s12050_s18  ;;  %10884 = vmatprep.mubr.msk.bf16.mxu0 %vm995_vm9, %v2476_v55  ;;  %v2454_v39 = vsel %vm815_vm7, %v2430_v52, %v2330_v8  ;;  %v19650_v55 = vld [vmem:[#allocation2_spill] sm:$0xff]  ;;  %v19651_v52 = vld [vmem:[#allocation3_spill] sm:$0xff]  ;;  %v19682_v11 = vld [vmem:[#allocation48_spill] sm:$0xff] }
 0x1ac   : > { %v14637_v40 = vpop.permute.xlu0 %2349  ;;  %v19680_v14 = vld [vmem:[#allocation46_spill] sm:$0xff] }
 0x1ad   : > { %v2384_v57 = vpop.permute.xlu1 %2383 }
 0x1ae   : > { %3093 = vrot.lane.b32.xlu0 %v14634_v16, %s12050_s18  ;;  %v2480_v10 = vsel %vm840_vm8, %v2456_v26, %v2384_v57  ;;  %v14683_v57 = vld [vmem:[%s12123_s14 + $0x30] sm:$0xff]  }
 0x1af   : > { %3388 = vrot.lane.b32.xlu1 %v19650_v55, %s12051_s23  ;;  %v2410_v37 = vsel %vm765_vm5, %v14683_v57, %v14243_v19  ;;  %v19668_v55 = vld [vmem:[#allocation34_spill] sm:$0xff] }
 0x1b0   : > { %v2382_v23 = vpop.permute.xlu0 %2381 }
 0x1b1   : > { %v2478_v46 = vsel %vm840_vm8, %v2454_v39, %v2382_v23  ;;  %v2388_v8 = vpop.permute.xlu1 %2387  ;;  %v2412_v39 = vsel %vm765_vm5, %v14691_v38, %v14234_v2  ;;  %v2434_v23 = vsel %vm790_vm6, %v2410_v37, %v14442_v5  ;;  %v14715_v37 = vld [vmem:[%s12123_s14 + $0x40] sm:$0xff]  }
 0x1b2   : > { %3097 = vrot.lane.b32.xlu0 %v14659_v3, %s12050_s18  ;;  %10885 = vmatmul.mubr.msk.bf16.vlgmr.msra.gmra.mrb[0].mxu0 %vm995_vm9, %v2478_v46  ;;  %v2458_v19 = vsel %vm815_vm7, %v2434_v23, %v14569_v22  ;;  %v11967_v46 = vld [vmem:[%s12123_s14 + $0x20] sm:$0xff]   ;;  %v19678_v3 = vld [vmem:[#allocation44_spill] sm:$0xff] }
 0x1b3   : > { %10888 = vmatprep.mubr.msk.bf16.mxu0 %vm995_vm9, %v2480_v10  ;;  %10909 = vmatpush3.bf16.msra.mxu0 %v14487_v25 }
 0x1b4   : > { %v2386_v43 = vpop.permute.xlu0 %2385  ;;  %3392 = vrot.lane.b32.xlu1 %v11964_v0, %s12051_s23  ;;  %11788 = vmatprep.subr.msk.bf16.mxu0 %vm1020_vm4, %v11907_v60  ;;  %v2436_v60 = vsel %vm790_vm6, %v2412_v39, %v14433_v7  ;;  %v11968_v0 = vld [vmem:[%s12123_s14 + $0x18] sm:$0xff]   ;;  %v14723_v39 = vld [vmem:[%s12123_s14 + $0x48] sm:$0xff]  }
 0x1b5   : > { %v2392_v25 = vpop.permute.xlu1 %2391  ;;  %v2460_v2 = vsel %vm815_vm7, %v2436_v60, %v14564_v13  ;;  %v2482_v5 = vsel %vm840_vm8, %v2458_v19, %v2386_v43  ;;  %v2414_v13 = vsel %vm765_vm5, %v14715_v37, %v14275_v51  ;;  %v2416_v23 = vsel %vm765_vm5, %v14723_v39, %v14254_v49 }
 0x1b6   : > { %3390 = vrot.lane.b32.xlu0 %v19651_v52, %s12051_s23  ;;  %v2484_v10 = vsel %vm840_vm8, %v2460_v2, %v2388_v8  ;;  %v11971_v8 = vld [vmem:[%s12123_s14 + $0x28] sm:$0xff]   ;;  %v2438_v60 = vsel %vm790_vm6, %v2414_v13, %v14478_v18  ;;  %v2440_v19 = vsel %vm790_vm6, %v2416_v23, %v14459_v4  ;;  %v11973_v2 = vld [vmem:[%s12123_s14 + $0x40] sm:$0xff]   ;;  %v14759_v13 = vld [vmem:[%s12123_s14 + $0x58] sm:$0xff]  }
 0x1b7   : > { %10911 = vmatpush3.bf16.msra.mxu0 %v3233_v63  ;;  %v11969_v63 = vld [vmem:[%s12123_s14 + $0x30] sm:$0xff]   ;;  %v2462_v51 = vsel %vm815_vm7, %v2438_v60, %v14585_v62  ;;  %v19679_v52 = vld [vmem:[#allocation41_spill] sm:$0xff] }
 0x1b8   : > { %v2390_v26 = vpop.permute.xlu0 %2389  ;;  %3396 = vrot.lane.b32.xlu1 %v11967_v46, %s12051_s23 }
 0x1b9   : > { %v2396_v7 = vpop.permute.xlu1 %2395  ;;  %v2486_v49 = vsel %vm840_vm8, %v2462_v51, %v2390_v26  ;;  %v11977_v26 = vld [vmem:[%s12123_s14 + $0x48] sm:$0xff]   ;;  %v19652_v51 = vld [vmem:[#allocation17_spill] sm:$0xff] }
 0x1ba   : > { %3394 = vrot.lane.b32.xlu0 %v11968_v0, %s12051_s23  ;;  %10889 = vmatmul.mubr.msk.bf16.gmra.mrb[4].mxu0 %vm995_vm9, %v2482_v5  ;;  %v2464_v5 = vsel %vm815_vm7, %v2440_v19, %v14580_v56  ;;  %v11975_v0 = vld [vmem:[%s12123_s14 + $0x50] sm:$0xff]  }
 0x1bb   : > { %10892 = vmatprep.mubr.msk.bf16.mxu0 %vm995_vm9, %v2484_v10  ;;  %v2488_v18 = vsel %vm840_vm8, %v2464_v5, %v2392_v25  ;;  %v11974_v10 = vld [vmem:[%s12123_s14 + $0x38] sm:$0xff]   ;;  %v14749_v56 = vld [vmem:[%s12123_s14 + $0x50] sm:$0xff]  }
 0x1bc   : > { %v2394_v22 = vpop.permute.xlu0 %2393  ;;  %3400 = vrot.lane.b32.xlu1 %v11969_v63, %s12051_s23  ;;  %v2418_v25 = vsel %vm765_vm5, %v14749_v56, %v14307_v31 }
 0x1bd   : > { %v2400_v43 = vpop.permute.xlu1 %2399  ;;  %v2442_v23 = vsel %vm790_vm6, %v2418_v25, %v14511_v17  ;;  %v11979_v17 = vld [vmem:[%s12123_s14 + $0x58] sm:$0xff]  }
 0x1be   : > { %3398 = vrot.lane.b32.xlu0 %v11971_v8, %s12051_s23  ;;  %v2420_v8 = vsel %vm765_vm5, %v14759_v13, %v14294_v45  ;;  %v2466_v31 = vsel %vm815_vm7, %v2442_v23, %v14601_v58  ;;  %v19655_v23 = vld [vmem:[#allocation21_spill] sm:$0xff] }
 0x1bf   : > { %v2444_v60 = vsel %vm790_vm6, %v2420_v8, %v14501_v47  ;;  %v2490_v45 = vsel %vm840_vm8, %v2466_v31, %v2394_v22 }
 0x1c0   : > { %v2398_v46 = vpop.permute.xlu0 %2397  ;;  %3404 = vrot.lane.b32.xlu1 %v11973_v2, %s12051_s23  ;;  %v2468_v2 = vsel %vm815_vm7, %v2444_v60, %v14596_v41 }
 0x1c1   : > { %v14743_v4 = vpop.permute.xlu1 %2883  ;;  %v2492_v5 = vsel %vm840_vm8, %v2468_v2, %v2396_v7  ;;  %v19654_v7 = vld [vmem:[#allocation16_spill] sm:$0xff]  ;;  %v19657_v2 = vld [vmem:[#allocation23_spill] sm:$0xff] }
 0x1c2   : > { %3402 = vrot.lane.b32.xlu0 %v11974_v10, %s12051_s23  ;;  %10893 = vmatmul.mubr.msk.bf16.gmra.mrb[8].mxu0 %vm995_vm9, %v2486_v49  ;;  %v19653_v49 = vld [vmem:[#allocation19_spill] sm:$0xff] }
 0x1c3   : > { %10896 = vmatprep.mubr.msk.bf16.mxu0 %vm995_vm9, %v2488_v18  ;;  %v14789_v18 = vld [vmem:[%s12123_s14 + $0x60] sm:$0xff]   ;;  %v14799_v10 = vld [vmem:[%s12123_s14 + $0x68] sm:$0xff]  }
 0x1c4   : > { %v2402_v62 = vpop.permute.xlu0 %2401  ;;  %3408 = vrot.lane.b32.xlu1 %v11975_v0, %s12051_s23  ;;  %v2422_v41 = vsel %vm765_vm5, %v14789_v18, %v14341_v54  ;;  %v2424_v0 = vsel %vm765_vm5, %v14799_v10, %v14318_v28 }
 0x1c5   : > { %v14756_v63 = vpop.permute.xlu1 %2887  ;;  %v2446_v25 = vsel %vm790_vm6, %v2422_v41, %v14526_v21  ;;  %v19656_v21 = vld [vmem:[#allocation18_spill] sm:$0xff] }
 0x1c6   : > { %3406 = vrot.lane.b32.xlu0 %v11977_v26, %s12051_s23  ;;  %v2448_v26 = vsel %vm790_vm6, %v2424_v0, %v14521_v44  ;;  %v2470_v54 = vsel %vm815_vm7, %v2446_v25, %v14620_v35  ;;  %v19660_v0 = vld [vmem:[#allocation25_spill] sm:$0xff] }
 0x1c7   : > { %v2472_v60 = vsel %vm815_vm7, %v2448_v26, %v14612_v15  ;;  %v2494_v31 = vsel %vm840_vm8, %v2470_v54, %v2398_v46 }
 0x1c8   : > { %v14770_v19 = vpop.permute.xlu0 %2885  ;;  %3412 = vrot.lane.b32.xlu1 %v19652_v51, %s12047_s15  ;;  %v2496_v28 = vsel %vm840_vm8, %v2472_v60, %v2400_v43  ;;  %v19659_v43 = vld [vmem:[#allocation20_spill] sm:$0xff] }
 0x1c9   : > { %v14781_v47 = vpop.permute.xlu1 %2891 }
 0x1ca   : > { %3410 = vrot.lane.b32.xlu0 %v11979_v17, %s12051_s23  ;;  %10897 = vmatmul.mubr.msk.bf16.gmra.mrb[12].mxu0 %vm995_vm9, %v2490_v45  ;;  %v14829_v45 = vld [vmem:[%s12123_s14 + $0x70] sm:$0xff]  }
 0x1cb   : > { %10900 = vmatprep.mubr.msk.bf16.mxu0 %vm995_vm9, %v2492_v5  ;;  %19658 = vst [vmem:[#allocation213_spill] sm:$0xff] %v14829_v45  ;;  %v2426_v15 = vsel %vm765_vm5, %v14829_v45, %v14372_v27  ;;  %v19661_v27 = vld [vmem:[#allocation22_spill] sm:$0xff] }
 0x1cc   : > { %v14784_v58 = vpop.permute.xlu0 %2889  ;;  %3416 = vrot.lane.b32.xlu1 %v19653_v49, %s12047_s15  ;;  %v2450_v5 = vsel %vm790_vm6, %v2426_v15, %v14539_v50  ;;  %v19662_v50 = vld [vmem:[#allocation28_spill] sm:$0xff]  ;;  %v19676_v49 = vld [vmem:[#allocation42_spill] sm:$0xff] }
 0x1cd   : > { %v14796_v22 = vpop.permute.xlu1 %2895  ;;  %v2474_v17 = vsel %vm815_vm7, %v2450_v5, %v14637_v40  ;;  %v19663_v40 = vld [vmem:[#allocation24_spill] sm:$0xff]  ;;  %v11985_v45 = vld [vmem:[%s12123_s14 + $0x60] sm:$0xff]  }
 0x1ce   : > { %3414 = vrot.lane.b32.xlu0 %v19654_v7, %s12047_s15  ;;  %v2498_v25 = vsel %vm840_vm8, %v2474_v17, %v2402_v62  ;;  %v19665_v62 = vld [vmem:[#allocation26_spill] sm:$0xff]  ;;  %v19666_v17 = vld [vmem:[#allocation32_spill] sm:$0xff] }
 0x1d0   : > { %v14810_v8 = vpop.permute.xlu0 %2893  ;;  %3420 = vrot.lane.b32.xlu1 %v19655_v23, %s12047_s15 }
 0x1d1   : > { %v14821_v44 = vpop.permute.xlu1 %2899 }
 0x1d2   : > { %3418 = vrot.lane.b32.xlu0 %v19656_v21, %s12047_s15  ;;  %10901 = vmatmul.mubr.msk.bf16.gmra.mrb[16].mxu0 %vm995_vm9, %v2494_v31 }
 0x1d3   : > { %10904 = vmatprep.mubr.msk.bf16.mxu0 %vm995_vm9, %v2496_v28  ;;  %v19664_v28 = vld [vmem:[#allocation30_spill] sm:$0xff] }
 0x1d4   : > { %v14824_v35 = vpop.permute.xlu0 %2897  ;;  %3424 = vrot.lane.b32.xlu1 %v19657_v2, %s12047_s15  ;;  %v19672_v2 = vld [vmem:[#allocation38_spill] sm:$0xff] }
 0x1d5   : > { %v14836_v46 = vpop.permute.xlu1 %2903 }
 0x1d6   : > { %3422 = vrot.lane.b32.xlu0 %v19659_v43, %s12047_s15  ;;  %v19673_v43 = vld [vmem:[#allocation35_spill] sm:$0xff] }
 0x1d8   : > { %v14842_v41 = vpop.permute.xlu0 %2901  ;;  %3428 = vrot.lane.b32.xlu1 %v19660_v0, %s12047_s15  ;;  %v19671_v0 = vld [vmem:[#allocation33_spill] sm:$0xff] }
 0x1d9   : > { %v2936_v26 = vpop.permute.xlu1 %2935 }
 0x1da   : > { %3426 = vrot.lane.b32.xlu0 %v19661_v27, %s12047_s15  ;;  %10905 = vmatmul.mubr.msk.bf16.gmra.mrb[20].mxu0 %vm995_vm9, %v2498_v25  ;;  %v19667_v25 = vld [vmem:[#allocation29_spill] sm:$0xff] }
 0x1dc   : > { %v14850_v54 = vpop.permute.xlu0 %2905  ;;  %3432 = vrot.lane.b32.xlu1 %v19662_v50, %s12047_s15 }
 0x1dd   : > { %v2940_v60 = vpop.permute.xlu1 %2939 }
 0x1de   : > { %3430 = vrot.lane.b32.xlu0 %v19663_v40, %s12047_s15  ;;  %v19670_v40 = vld [vmem:[#allocation36_spill] sm:$0xff] }
 0x1e0   : > { %v2938_v31 = vpop.permute.xlu0 %2937  ;;  %3436 = vrot.lane.b32.xlu1 %v19664_v28, %s12048_s16  ;;  %v19669_v28 = vld [vmem:[#allocation31_spill] sm:$0xff] }
 0x1e1   : > { %v14860_v15 = vpop.permute.xlu1 %2943 }
 0x1e2   : > { %3434 = vrot.lane.b32.xlu0 %v19665_v62, %s12047_s15 }
 0x1e4   : > { %v14862_v5 = vpop.permute.xlu0 %2941  ;;  %3440 = vrot.lane.b32.xlu1 %v19666_v17, %s12048_s16  ;;  %v19677_v17 = vld [vmem:[#allocation39_spill] sm:$0xff] }
 0x1e5   : > { %v14868_v7 = vpop.permute.xlu1 %2947 }
 0x1e6   : > { %3438 = vrot.lane.b32.xlu0 %v19667_v25, %s12048_s16 }
 0x1e8   : > { %v14870_v51 = vpop.permute.xlu0 %2945  ;;  %3444 = vrot.lane.b32.xlu1 %v19668_v55, %s12048_s16  ;;  %v19674_v55 = vld [vmem:[#allocation40_spill] sm:$0xff] }
 0x1e9   : > { %v14876_v62 = vpop.permute.xlu1 %2951 }
 0x1ea   : > { %3442 = vrot.lane.b32.xlu0 %v19669_v28, %s12048_s16 }
 0x1ec   : > { %v14878_v50 = vpop.permute.xlu0 %2949  ;;  %3448 = vrot.lane.b32.xlu1 %v19670_v40, %s12048_s16  ;;  %v19675_v40 = vld [vmem:[#allocation37_spill] sm:$0xff] }
 0x1ed   : > { %v14884_v25 = vpop.permute.xlu1 %2955 }
 0x1ee   : > { %3446 = vrot.lane.b32.xlu0 %v19671_v0, %s12048_s16 }
 0x1f0   : > { %v14886_v27 = vpop.permute.xlu0 %2953  ;;  %3452 = vrot.lane.b32.xlu1 %v19672_v2, %s12048_s16 }
 0x1f1   : > { %v3024_v23 = vpop.permute.xlu1 %3023 }
 0x1f2   : > { %3450 = vrot.lane.b32.xlu0 %v19673_v43, %s12048_s16 }
 0x1f4   : > { %v14892_v21 = vpop.permute.xlu0 %2957  ;;  %3456 = vrot.lane.b32.xlu1 %v19674_v55, %s12048_s16 }
 0x1f5   : > { %v3028_v0 = vpop.permute.xlu1 %3027 }
 0x1f6   : > { %3454 = vrot.lane.b32.xlu0 %v19675_v40, %s12048_s16 }
 0x1f8   : > { %v3026_v28 = vpop.permute.xlu0 %3025  ;;  %3460 = vrot.lane.b32.xlu1 %v19676_v49, %s12049_s17  ;;  %v19681_v49 = vld [vmem:[#allocation43_spill] sm:$0xff] }
 0x1f9   : > { %v14902_v2 = vpop.permute.xlu1 %3031 }
 0x1fa   : > { %3458 = vrot.lane.b32.xlu0 %v19677_v17, %s12048_s16 }
 0x1fc   : > { %v3030_v43 = vpop.permute.xlu0 %3029  ;;  %3464 = vrot.lane.b32.xlu1 %v19678_v3, %s12049_s17 }
 0x1fd   : > { %v14908_v55 = vpop.permute.xlu1 %3035 }
 0x1fe   : > { %3462 = vrot.lane.b32.xlu0 %v19679_v52, %s12049_s17  ;;  %v19683_v52 = vld [vmem:[#allocation45_spill] sm:$0xff] }
 0x200   : > { %v14910_v40 = vpop.permute.xlu0 %3033  ;;  %3468 = vrot.lane.b32.xlu1 %v19680_v14, %s12049_s17  ;;  %v3100_v14 = vsel %vm765_vm5, %v19684_v48, %v14743_v4  ;;  %v19687_v4 = vld [vmem:[#allocation52_spill] sm:$0xff] }
 0x201   : > { %v14916_v17 = vpop.permute.xlu1 %3039  ;;  %v3124_v53 = vsel %vm790_vm6, %v3100_v14, %v2936_v26  ;;  %v11908_v14 = vld [vmem:[%s18767_s1 + $0x48] sm:$0xff]  }
 0x202   : > { %3466 = vrot.lane.b32.xlu0 %v19681_v49, %s12049_s17  ;;  %v19685_v49 = vld [vmem:[#allocation50_spill] sm:$0xff]  ;;  %v3148_v33 = vsel %vm815_vm7, %v3124_v53, %v3024_v23  ;;  %v14947_v26 = vld [vmem:[%s12123_s14 + $0x28] sm:$0xff]   ;;  %v14955_v23 = vld [vmem:[%s12123_s14 + $0x30] sm:$0xff]   ;;  %10936 = vmatprep.subr.bf16.mxu1 %v11908_v14 }
 0x203   : > { %19688 = vst [vmem:[#allocation214_spill] sm:$0xff] %v14947_v26  ;;  %v3102_v53 = vsel %vm765_vm5, %v14947_v26, %v14770_v19  ;;  %19690 = vst [vmem:[#allocation215_spill] sm:$0xff] %v14955_v23  ;;  %10937 = vmatpush3.bf16.msra.mxu1 %v11908_v14 }
 0x204   : > { %v14918_v16 = vpop.permute.xlu0 %3037  ;;  %3472 = vrot.lane.b32.xlu1 %v19682_v11, %s12049_s17  ;;  %v19686_v11 = vld [vmem:[#allocation47_spill] sm:$0xff] }
 0x205   : > { %v14924_v3 = vpop.permute.xlu1 %3043 }
 0x206   : > { %3470 = vrot.lane.b32.xlu0 %v19683_v52, %s12049_s17 }
 0x208   : > { %v14929_v30 = vpop.permute.xlu0 %3041  ;;  %3476 = vrot.lane.b32.xlu1 %v19685_v49, %s12049_s17 }
 0x209   : > { %v3076_v52 = vpop.permute.xlu1 %3075 }
 0x20a   : > { %3474 = vrot.lane.b32.xlu0 %v19686_v11, %s12049_s17  ;;  %v3172_v24 = vsel %vm840_vm8, %v3148_v33, %v3076_v52  ;;  %v19689_v33 = vld [vmem:[#allocation49_spill] sm:$0xff] }
 0x20b   : > { %10912 = vmatprep.mubr.msk.bf16.mxu0 %vm995_vm9, %v3172_v24  ;;  %v3104_v24 = vsel %vm765_vm5, %v14955_v23, %v14756_v63  ;;  %v11909_v63 = vld [vmem:[%s18767_s1 + $0x50] ss:$0 sps:$4 sm:$0x33]  }
 0x20c   : > { %v14938_v34 = vpop.permute.xlu0 %3045  ;;  %3480 = vrot.lane.b32.xlu1 %v19687_v4, %s12049_s17  ;;  %v3126_v4 = vsel %vm790_vm6, %v3102_v53, %v2938_v31  ;;  %v3128_v49 = vsel %vm790_vm6, %v3104_v24, %v2940_v60  ;;  %v19691_v60 = vld [vmem:[#allocation51_spill] sm:$0xff]  ;;  %11789 = vmatprep.subr.msk.bf16.mxu1 %vm1020_vm4, %v11909_v63  ;;  %v14988_v53 = vld [vmem:[%s12123_s14 + $0x40] sm:$0xff]  }
 0x20d   : > { %v3080_v52 = vpop.permute.xlu1 %3079  ;;  %v3150_v11 = vsel %vm815_vm7, %v3126_v4, %v3026_v28  ;;  %v3152_v19 = vsel %vm815_vm7, %v3128_v49, %v3028_v0  ;;  %v3677_v49 = vsel %vm1020_vm4, %v11909_v63, 0  ;;  %v19694_v4 = vld [vmem:[#allocation27_spill] sm:$0xff]  ;;  %19695 = vst [vmem:[#allocation217_spill] sm:$0xff] %v14988_v53  ;;  %v19696_v63 = vld [vmem:[#allocation57_spill] sm:$0xff] }
 0x20e   : > { %3478 = vrot.lane.b32.xlu0 %v19689_v33, %s12049_s17  ;;  %v3176_v31 = vsel %vm840_vm8, %v3152_v19, %v3080_v52  ;;  %10939 = vmatpush3.bf16.msra.mxu1 %v3677_v49 }
 0x210   : > { %v3078_v48 = vpop.permute.xlu0 %3077  ;;  %3596 = vrot.lane.b32.xlu1 %v11985_v45, %s12051_s23  ;;  %v14980_v45 = vld [vmem:[%s12123_s14 + $0x38] sm:$0xff]  }
 0x211   : > { %v3174_v33 = vsel %vm840_vm8, %v3150_v11, %v3078_v48  ;;  %v3084_v28 = vpop.permute.xlu1 %3083  ;;  %v19692_v11 = vld [vmem:[#allocation55_spill] sm:$0xff]  ;;  %19693 = vst [vmem:[#allocation216_spill] sm:$0xff] %v14980_v45  ;;  %v3106_v0 = vsel %vm765_vm5, %v14980_v45, %v14784_v58 }
 0x212   : > { %3482 = vrot.lane.b32.xlu0 %v19691_v60, %s12049_s17  ;;  %10913 = vmatmul.mubr.msk.bf16.vlgmr.msra.gmra.mrb[0].mxu0 %vm995_vm9, %v3174_v33  ;;  %v3108_v33 = vsel %vm765_vm5, %v14988_v53, %v14781_v47  ;;  %v3130_v52 = vsel %vm790_vm6, %v3106_v0, %v14862_v5  ;;  %v19697_v60 = vld [vmem:[#allocation58_spill] sm:$0xff]  ;;  %v19698_v5 = vld [vmem:[#allocation59_spill] sm:$0xff] }
 0x213   : > { %10916 = vmatprep.mubr.msk.bf16.mxu0 %vm995_vm9, %v3176_v31  ;;  %v3132_v24 = vsel %vm790_vm6, %v3108_v33, %v14860_v15  ;;  %v3154_v19 = vsel %vm815_vm7, %v3130_v52, %v3030_v43  ;;  %v15011_v0 = vld [vmem:[%s12123_s14 + $0x48] sm:$0xff]   ;;  %v15019_v33 = vld [vmem:[%s12123_s14 + $0x50] sm:$0xff]  }
 0x214   : > { %v3082_v48 = vpop.permute.xlu0 %3081  ;;  %3600 = vrot.lane.b32.xlu1 %v19692_v11, %s12047_s15  ;;  %v3156_v31 = vsel %vm815_vm7, %v3132_v24, %v14902_v2  ;;  %19699 = vst [vmem:[#allocation218_spill] sm:$0xff] %v15011_v0  ;;  %v3110_v2 = vsel %vm765_vm5, %v15011_v0, %v14810_v8  ;;  %19701 = vst [vmem:[#allocation219_spill] sm:$0xff] %v15019_v33  ;;  %v3112_v52 = vsel %vm765_vm5, %v15019_v33, %v14796_v22  ;;  %v19734_v11 = vld [vmem:[#allocation102_spill] sm:$0xff] }
 0x215   : > { %v3088_v14 = vpop.permute.xlu1 %3087  ;;  %v3178_v49 = vsel %vm840_vm8, %v3154_v19, %v3082_v48  ;;  %v3180_v47 = vsel %vm840_vm8, %v3156_v31, %v3084_v28  ;;  %v19700_v28 = vld [vmem:[#allocation60_spill] sm:$0xff]  ;;  %v3134_v24 = vsel %vm790_vm6, %v3110_v2, %v14870_v51  ;;  %v3136_v19 = vsel %vm790_vm6, %v3112_v52, %v14868_v7  ;;  %v19703_v51 = vld [vmem:[#allocation62_spill] sm:$0xff]  ;;  %v15045_v52 = vld [vmem:[%s12123_s14 + $0x58] sm:$0xff]  }
 0x216   : > { %3598 = vrot.lane.b32.xlu0 %v19694_v4, %s12047_s15  ;;  %v3158_v8 = vsel %vm815_vm7, %v3134_v24, %v14910_v40  ;;  %v19704_v2 = vld [vmem:[#allocation56_spill] sm:$0xff]  ;;  %19705 = vst [vmem:[#allocation220_spill] sm:$0xff] %v15045_v52  ;;  %v19748_v33 = vld [vmem:[#allocation122_spill] sm:$0xff] }
 0x217   : > { %v19738_v4 = vld [vmem:[#allocation108_spill] sm:$0xff] }
 0x218   : > { %v3086_v58 = vpop.permute.xlu0 %3085  ;;  %3604 = vrot.lane.b32.xlu1 %v19696_v63, %s12048_s16 }
 0x219   : > { %v3092_v15 = vpop.permute.xlu1 %3091 }
 0x21a   : > { %3602 = vrot.lane.b32.xlu0 %v19697_v60, %s12047_s15  ;;  %10917 = vmatmul.mubr.msk.bf16.gmra.mrb[4].mxu0 %vm995_vm9, %v3178_v49  ;;  %v19702_v49 = vld [vmem:[#allocation61_spill] sm:$0xff]  ;;  %v3182_v60 = vsel %vm840_vm8, %v3158_v8, %v3086_v58 }
 0x21b   : > { %10920 = vmatprep.mubr.msk.bf16.mxu0 %vm995_vm9, %v3180_v47  ;;  %v3160_v47 = vsel %vm815_vm7, %v3136_v19, %v14908_v55  ;;  %v3114_v55 = vsel %vm765_vm5, %v15045_v52, %v14824_v35 }
 0x21c   : > { %v3090_v43 = vpop.permute.xlu0 %3089  ;;  %3608 = vrot.lane.b32.xlu1 %v19698_v5, %s12048_s16  ;;  %v3184_v22 = vsel %vm840_vm8, %v3160_v47, %v3088_v14  ;;  %v19706_v14 = vld [vmem:[#allocation64_spill] sm:$0xff]  ;;  %v3138_v19 = vsel %vm790_vm6, %v3114_v55, %v14878_v50 }
 0x21d   : > { %v3096_v48 = vpop.permute.xlu1 %3095  ;;  %v3162_v35 = vsel %vm815_vm7, %v3138_v19, %v14918_v16 }
 0x21e   : > { %3606 = vrot.lane.b32.xlu0 %v19700_v28, %s12048_s16  ;;  %v19736_v28 = vld [vmem:[#allocation104_spill] sm:$0xff] }
 0x220   : > { %v3094_v31 = vpop.permute.xlu0 %3093  ;;  %3612 = vrot.lane.b32.xlu1 %v19702_v49, %s12049_s17 }
 0x221   : > { %v15039_v7 = vpop.permute.xlu1 %3388 }
 0x222   : > { %3610 = vrot.lane.b32.xlu0 %v19703_v51, %s12049_s17  ;;  %10921 = vmatmul.mubr.msk.bf16.gmra.mrb[8].mxu0 %vm995_vm9, %v3182_v60  ;;  %v15055_v60 = vld [vmem:[%s12123_s14 + $0x60] sm:$0xff]  }
 0x223   : > { %10924 = vmatprep.mubr.msk.bf16.mxu0 %vm995_vm9, %v3184_v22  ;;  %19707 = vst [vmem:[#allocation221_spill] sm:$0xff] %v15055_v60  ;;  %v3116_v24 = vsel %vm765_vm5, %v15055_v60, %v14821_v44  ;;  %v3186_v44 = vsel %vm840_vm8, %v3162_v35, %v3090_v43  ;;  %v19746_v60 = vld [vmem:[#allocation119_spill] sm:$0xff] }
 0x224   : > { %v3098_v40 = vpop.permute.xlu0 %3097  ;;  %3955 = vrot.lane.b32.xlu1 %v19704_v2, %s12051_s23  ;;  %v3140_v8 = vsel %vm790_vm6, %v3116_v24, %v14876_v62 }
 0x225   : > { %v3164_v22 = vsel %vm815_vm7, %v3140_v8, %v14916_v17  ;;  %v15095_v17 = vld [vmem:[%s12123_s14 + $0x70] sm:$0xff]   ;;  %v19714_v8 = vld [vmem:[#allocation169_spill] sm:$0xff] }
 0x226   : > { %3614 = vrot.lane.b32.xlu0 %v19706_v14, %s12049_s17  ;;  %v15052_v58 = vpop.permute.xlu1 %3392  ;;  %v3188_v2 = vsel %vm840_vm8, %v3164_v22, %v3092_v15  ;;  %19709 = vst [vmem:[#allocation223_spill] sm:$0xff] %v15095_v17  ;;  %v3120_v15 = vsel %vm765_vm5, %v15095_v17, %v14836_v46  ;;  %v19716_v22 = vld [vmem:[#allocation82_spill] sm:$0xff]  ;;  %v19732_v14 = vld [vmem:[#allocation100_spill] sm:$0xff] }
 0x227   : > { %v3144_v43 = vsel %vm790_vm6, %v3120_v15, %v14884_v25  ;;  %v19744_v17 = vld [vmem:[#allocation116_spill] sm:$0xff] }
 0x228   : > { %v15066_v47 = vpop.permute.xlu0 %3390  ;;  %3959 = vrot.lane.b32.xlu1 %v14142_v59, %s12051_s23  ;;  %v15085_v59 = vld [vmem:[%s12123_s14 + $0x68] sm:$0xff]  }
 0x229   : > { %19708 = vst [vmem:[#allocation222_spill] sm:$0xff] %v15085_v59  ;;  %v3118_v62 = vsel %vm765_vm5, %v15085_v59, %v14842_v41 }
 0x22a   : > { %3957 = vrot.lane.b32.xlu0 %v14132_v42, %s12051_s23  ;;  %10925 = vmatmul.mubr.msk.bf16.gmra.mrb[12].mxu0 %vm995_vm9, %v3186_v44  ;;  %v15077_v50 = vpop.permute.xlu1 %3396  ;;  %v19717_v44 = vld [vmem:[#allocation83_spill] sm:$0xff] }
 0x22b   : > { %10928 = vmatprep.mubr.msk.bf16.mxu0 %vm995_vm9, %v3188_v2 }
 0x22c   : > { %v15080_v16 = vpop.permute.xlu0 %3394  ;;  %3963 = vrot.lane.b32.xlu1 %v14208_v1, %s12051_s23  ;;  %v3142_v1 = vsel %vm790_vm6, %v3118_v62, %v14886_v27 }
 0x22d   : > { %v3166_v41 = vsel %vm815_vm7, %v3142_v1, %v14929_v30  ;;  %v19718_v1 = vld [vmem:[#allocation84_spill] sm:$0xff] }
 0x22e   : > { %3961 = vrot.lane.b32.xlu0 %v14199_v61, %s12051_s23  ;;  %v15092_v42 = vpop.permute.xlu1 %3400  ;;  %v3168_v61 = vsel %vm815_vm7, %v3144_v43, %v14924_v3  ;;  %v3190_v55 = vsel %vm840_vm8, %v3166_v41, %v3094_v31  ;;  %v19719_v43 = vld [vmem:[#allocation85_spill] sm:$0xff] }
 0x22f   : > { %v3192_v46 = vsel %vm840_vm8, %v3168_v61, %v3096_v48 }
 0x230   : > { %v15106_v2 = vpop.permute.xlu0 %3398  ;;  %3967 = vrot.lane.b32.xlu1 %v14268_v9, %s12051_s23  ;;  %v15125_v9 = vld [vmem:[%s12123_s14 + $0x78] sm:$0xff]  }
 0x231   : > { %19710 = vst [vmem:[#allocation224_spill] sm:$0xff] %v15125_v9  ;;  %v3122_v3 = vsel %vm765_vm5, %v15125_v9, %v14850_v54  ;;  %v19712_v54 = vld [vmem:[#allocation195_spill] sm:$0xff]  ;;  %v19741_v9 = vld [vmem:[#allocation112_spill] sm:$0xff] }
 0x232   : > { %3965 = vrot.lane.b32.xlu0 %v14259_v29, %s12051_s23  ;;  %10929 = vmatmul.mubr.msk.bf16.gmra.mrb[16].mxu0 %vm995_vm9, %v3190_v55  ;;  %v15117_v27 = vpop.permute.xlu1 %3404  ;;  %v3146_v25 = vsel %vm790_vm6, %v3122_v3, %v14892_v21  ;;  %v19713_v21 = vld [vmem:[#allocation78_spill] sm:$0xff] }
 0x233   : > { %10932 = vmatprep.mubr.msk.bf16.mxu0 %vm995_vm9, %v3192_v46  ;;  %v3170_v48 = vsel %vm815_vm7, %v3146_v25, %v14938_v34  ;;  %v15155_v34 = vld [vmem:[%s18767_s1 + $0x3c] sm:$0xff]   ;;  %v19721_v46 = vld [vmem:[#allocation87_spill] sm:$0xff] }
 0x234   : > { %v15120_v30 = vpop.permute.xlu0 %3402  ;;  %3971 = vrot.lane.b32.xlu1 %v14334_v32, %s12051_s23  ;;  %v19711_v32 = vld [vmem:[#allocation162_spill] sm:$0xff]  ;;  %v3194_v24 = vsel %vm840_vm8, %v3170_v48, %v3098_v40  ;;  %10964 = vmatprep.subr.bf16.mxu1 %v15155_v34  ;;  %v19722_v48 = vld [vmem:[#allocation88_spill] sm:$0xff] }
 0x235   : > { %v19720_v55 = vld [vmem:[#allocation86_spill] sm:$0xff] }
 0x236   : > { %3969 = vrot.lane.b32.xlu0 %v14324_v36, %s12051_s23  ;;  %v15132_v29 = vpop.permute.xlu1 %3408 }
 0x238   : > { %v15138_v31 = vpop.permute.xlu0 %3406  ;;  %3975 = vrot.lane.b32.xlu1 %v19711_v32, %s12051_s23  ;;  %v19723_v32 = vld [vmem:[#allocation89_spill] sm:$0xff] }
 0x23a   : > { %3973 = vrot.lane.b32.xlu0 %v19712_v54, %s12051_s23  ;;  %10933 = vmatmul.mubr.msk.bf16.gmra.mrb[20].mxu0 %vm995_vm9, %v3194_v24  ;;  %v15146_v36 = vpop.permute.xlu1 %3412 }
 0x23c   : > { %v15148_v19 = vpop.permute.xlu0 %3410  ;;  %3979 = vrot.lane.b32.xlu1 %v19713_v21, %s12047_s15 }
 0x23e   : > { %3977 = vrot.lane.b32.xlu0 %v19714_v8, %s12051_s23  ;;  %v15159_v40 = vpop.permute.xlu1 %3416  ;;  %v19724_v8 = vld [vmem:[#allocation90_spill] sm:$0xff] }
 0x240   : > { %v15162_v35 = vpop.permute.xlu0 %3414  ;;  %3983 = vrot.lane.b32.xlu1 %v19716_v22, %s12047_s15 }
 0x241   : > { %19715 = vst [vmem:[#allocation162_spill] sm:$0xff] %v15162_v35 }
 0x242   : > { %3981 = vrot.lane.b32.xlu0 %v19717_v44, %s12047_s15  ;;  %v15168_v62 = vpop.permute.xlu1 %3420  ;;  %v19730_v44 = vld [vmem:[#allocation98_spill] sm:$0xff] }
 0x244   : > { %v15170_v15 = vpop.permute.xlu0 %3418  ;;  %3987 = vrot.lane.b32.xlu1 %v19718_v1, %s12047_s15 }
 0x246   : > { %3985 = vrot.lane.b32.xlu0 %v19719_v43, %s12047_s15  ;;  %v15176_v41 = vpop.permute.xlu1 %3424  ;;  %v19727_v43 = vld [vmem:[#allocation94_spill] sm:$0xff] }
 0x248   : > { %v15178_v61 = vpop.permute.xlu0 %3422  ;;  %3991 = vrot.lane.b32.xlu1 %v19720_v55, %s12047_s15  ;;  %v19725_v55 = vld [vmem:[#allocation92_spill] sm:$0xff] }
 0x24a   : > { %3989 = vrot.lane.b32.xlu0 %v19721_v46, %s12047_s15  ;;  %v15184_v3 = vpop.permute.xlu1 %3428 }
 0x24c   : > { %v15186_v25 = vpop.permute.xlu0 %3426  ;;  %3995 = vrot.lane.b32.xlu1 %v19722_v48, %s12047_s15  ;;  %v19728_v48 = vld [vmem:[#allocation96_spill] sm:$0xff] }
 0x24e   : > { %3993 = vrot.lane.b32.xlu0 %v19723_v32, %s12047_s15  ;;  %v15192_v24 = vpop.permute.xlu1 %3432 }
 0x250   : > { %v15194_v54 = vpop.permute.xlu0 %3430  ;;  %3999 = vrot.lane.b32.xlu1 %v19724_v8, %s12047_s15  ;;  %v19731_v8 = vld [vmem:[#allocation99_spill] sm:$0xff] }
 0x252   : > { %3997 = vrot.lane.b32.xlu0 %v19725_v55, %s12047_s15  ;;  %v15200_v46 = vpop.permute.xlu1 %3436 }
 0x254   : > { %v15202_v1 = vpop.permute.xlu0 %3434  ;;  %4003 = vrot.lane.b32.xlu1 %v19727_v43, %s12048_s16  ;;  %v19733_v43 = vld [vmem:[#allocation101_spill] sm:$0xff] }
 0x255   : > { %19726 = vst [vmem:[#allocation195_spill] sm:$0xff] %v15202_v1  ;;  %v19752_v1 = vld [vmem:[#allocation128_spill] sm:$0xff] }
 0x256   : > { %4001 = vrot.lane.b32.xlu0 %v19728_v48, %s12047_s15  ;;  %v15208_v32 = vpop.permute.xlu1 %3440 }
 0x258   : > { %v15210_v22 = vpop.permute.xlu0 %3438  ;;  %4007 = vrot.lane.b32.xlu1 %v19730_v44, %s12048_s16  ;;  %v19735_v44 = vld [vmem:[#allocation103_spill] sm:$0xff] }
 0x259   : > { %19729 = vst [vmem:[#allocation169_spill] sm:$0xff] %v15210_v22  ;;  %v19758_v22 = vld [vmem:[#allocation6_spill] sm:$0xff] }
 0x25a   : > { %4005 = vrot.lane.b32.xlu0 %v19731_v8, %s12048_s16  ;;  %v15216_v55 = vpop.permute.xlu1 %3444 }
 0x25c   : > { %v15218_v21 = vpop.permute.xlu0 %3442  ;;  %4011 = vrot.lane.b32.xlu1 %v19732_v14, %s12048_s16  ;;  %v19737_v14 = vld [vmem:[#allocation106_spill] sm:$0xff] }
 0x25e   : > { %4009 = vrot.lane.b32.xlu0 %v19733_v43, %s12048_s16  ;;  %v15224_v48 = vpop.permute.xlu1 %3448 }
 0x260   : > { %v15226_v49 = vpop.permute.xlu0 %3446  ;;  %4015 = vrot.lane.b32.xlu1 %v19734_v11, %s12048_s16  ;;  %v19739_v11 = vld [vmem:[#allocation110_spill] sm:$0xff] }
 0x262   : > { %4013 = vrot.lane.b32.xlu0 %v19735_v44, %s12048_s16  ;;  %v15232_v8 = vpop.permute.xlu1 %3452 }
 0x264   : > { %v15234_v5 = vpop.permute.xlu0 %3450  ;;  %4019 = vrot.lane.b32.xlu1 %v19736_v28, %s12048_s16  ;;  %v19742_v28 = vld [vmem:[#allocation114_spill] sm:$0xff] }
 0x266   : > { %4017 = vrot.lane.b32.xlu0 %v19737_v14, %s12048_s16  ;;  %v15240_v43 = vpop.permute.xlu1 %3456 }
 0x268   : > { %v15242_v51 = vpop.permute.xlu0 %3454  ;;  %4023 = vrot.lane.b32.xlu1 %v19738_v4, %s12048_s16  ;;  %v19745_v4 = vld [vmem:[#allocation118_spill] sm:$0xff] }
 0x26a   : > { %4021 = vrot.lane.b32.xlu0 %v19739_v11, %s12048_s16  ;;  %v15248_v44 = vpop.permute.xlu1 %3460 }
 0x26c   : > { %v15250_v63 = vpop.permute.xlu0 %3458  ;;  %4027 = vrot.lane.b32.xlu1 %v19741_v9, %s12049_s17  ;;  %v19747_v9 = vld [vmem:[#allocation121_spill] sm:$0xff] }
 0x26d   : > { %19740 = vst [vmem:[#allocation225_spill] sm:$0xff] %v15250_v63  ;;  %v19750_v63 = vld [vmem:[#allocation124_spill] sm:$0xff] }
 0x26e   : > { %4025 = vrot.lane.b32.xlu0 %v19742_v28, %s12048_s16  ;;  %v3465_v14 = vpop.permute.xlu1 %3464 }
 0x270   : > { %v15256_v59 = vpop.permute.xlu0 %3462  ;;  %4031 = vrot.lane.b32.xlu1 %v19744_v17, %s12049_s17  ;;  %v19749_v17 = vld [vmem:[#allocation123_spill] sm:$0xff] }
 0x271   : > { %19743 = vst [vmem:[#allocation226_spill] sm:$0xff] %v15256_v59 }
 0x272   : > { %4029 = vrot.lane.b32.xlu0 %v19745_v4, %s12049_s17  ;;  %v15262_v11 = vpop.permute.xlu1 %3468 }
 0x274   : > { %v3467_v52 = vpop.permute.xlu0 %3466  ;;  %4035 = vrot.lane.b32.xlu1 %v19746_v60, %s12049_s17  ;;  %v19751_v60 = vld [vmem:[#allocation126_spill] sm:$0xff] }
 0x276   : > { %4033 = vrot.lane.b32.xlu0 %v19747_v9, %s12049_s17  ;;  %v15268_v0 = vpop.permute.xlu1 %3472 }
 0x278   : > { %v15270_v28 = vpop.permute.xlu0 %3470  ;;  %4039 = vrot.lane.b32.xlu1 %v19748_v33, %s12049_s17  ;;  %v19753_v33 = vld [vmem:[#allocation130_spill] sm:$0xff] }
 0x27a   : > { %4037 = vrot.lane.b32.xlu0 %v19749_v17, %s12049_s17  ;;  %v15276_v4 = vpop.permute.xlu1 %3476 }
 0x27c   : > { %v15278_v45 = vpop.permute.xlu0 %3474  ;;  %4043 = vrot.lane.b32.xlu1 %v19750_v63, %s12049_s17  ;;  %v19755_v63 = vld [vmem:[#allocation134_spill] sm:$0xff] }
 0x27e   : > { %4041 = vrot.lane.b32.xlu0 %v19751_v60, %s12049_s17  ;;  %v15284_v9 = vpop.permute.xlu1 %3480 }
 0x280   : > { %v15286_v53 = vpop.permute.xlu0 %3478  ;;  %4047 = vrot.lane.b32.xlu1 %v19752_v1, %s12049_s17 }
 0x282   : > { %4045 = vrot.lane.b32.xlu0 %v19753_v33, %s12049_s17  ;;  %v15292_v17 = vpop.permute.xlu1 %3596 }
 0x284   : > { %v15294_v26 = vpop.permute.xlu0 %3482  ;;  %4352 = vrot.lane.b32.xlu1 %v19646_v12, %s12051_s23 }
 0x285   : > { %19754 = vst [vmem:[#allocation227_spill] sm:$0xff] %v15294_v26 }
 0x286   : > { %4049 = vrot.lane.b32.xlu0 %v19755_v63, %s12049_s17  ;;  %v15300_v60 = vpop.permute.xlu1 %3600 }
 0x288   : > { %v3599_v23 = vpop.permute.xlu0 %3598  ;;  %4356 = vrot.lane.b32.xlu1 %v14651_v20, %s12051_s23  ;;  %v19756_v20 = vld [vmem:[#allocation7_spill] sm:$0xff] }
 0x28a   : > { %4354 = vrot.lane.b32.xlu0 %v14643_v6, %s12051_s23  ;;  %v3605_v1 = vpop.permute.xlu1 %3604  ;;  %v15321_v6 = vsel %vm765_vm5, %v15066_v47, %v19756_v20 }
 0x28b   : > { %v3622_v59 = vsel %vm790_vm6, %v15321_v6, %v3599_v23 }
 0x28c   : > { %v15306_v33 = vpop.permute.xlu0 %3602  ;;  %4360 = vrot.lane.b32.xlu1 %v14691_v38, %s12051_s23  ;;  %v19757_v38 = vld [vmem:[#allocation4_spill] sm:$0xff]  ;;  %v3628_v20 = vsel %vm815_vm7, %v3622_v59, %v3605_v1  ;;  %v11911_v59 = vld [vmem:[%s18767_s1 + $0x44] ss:$0 sps:$4 sm:$0x33]  }
 0x28e   : > { %4358 = vrot.lane.b32.xlu0 %v14683_v57, %s12051_s23  ;;  %v15312_v12 = vpop.permute.xlu1 %3608  ;;  %v3492_v57 = vsel %vm765_vm5, %v15052_v58, %v19757_v38 }
 0x28f   : > { %v3525_v47 = vsel %vm790_vm6, %v3492_v57, %v15159_v40 }
 0x290   : > { %v15314_v63 = vpop.permute.xlu0 %3606  ;;  %4364 = vrot.lane.b32.xlu1 %v14723_v39, %s12051_s23  ;;  %v3495_v39 = vsel %vm765_vm5, %v15080_v16, %v19758_v22  ;;  %v3549_v58 = vsel %vm815_vm7, %v3525_v47, %v15208_v32  ;;  %v19761_v32 = vld [vmem:[#allocation149_spill] sm:$0xff] }
 0x291   : > { %v15348_v22 = vsel %vm840_vm8, %v3549_v58, %v3465_v14  ;;  %v19766_v58 = vld [vmem:[#allocation10_spill] sm:$0xff] }
 0x292   : > { %4362 = vrot.lane.b32.xlu0 %v14715_v37, %s12051_s23  ;;  %v15325_v26 = vpop.permute.xlu1 %3612  ;;  %v3527_v37 = vsel %vm790_vm6, %v3495_v39, %v15170_v15  ;;  %v19760_v15 = vld [vmem:[#allocation8_spill] sm:$0xff] }
 0x293   : > { %v3551_v16 = vsel %vm815_vm7, %v3527_v37, %v15218_v21  ;;  %v15379_v21 = vld [vmem:[%s18767_s1 + $0x54] sm:$0xff]   ;;  %v19765_v37 = vld [vmem:[#allocation11_spill] sm:$0xff] }
 0x294   : > { %v3611_v35 = vpop.permute.xlu0 %3610  ;;  %4368 = vrot.lane.b32.xlu1 %v14759_v13, %s12051_s23  ;;  %v15359_v40 = vsel %vm840_vm8, %v3551_v16, %v3467_v52  ;;  %v3824_v52 = vsel %vm1020_vm4, %v11911_v59, 0 }
 0x295   : > { %v3634_v23 = vsel %vm840_vm8, %v3628_v20, %v3611_v35  ;;  %v19759_v35 = vld [vmem:[#allocation9_spill] sm:$0xff] }
 0x296   : > { %4366 = vrot.lane.b32.xlu0 %v14749_v56, %s12051_s23  ;;  %10940 = vmatprep.mubr.msk.bf16.mxu1 %vm995_vm9, %v3634_v23  ;;  %v15353_v13 = vpop.permute.xlu1 %3955  ;;  %v3507_v23 = vsel %vm765_vm5, %v15120_v30, %v19766_v58 }
 0x297   : > { %10941 = vmatmul.mubr.msk.bf16.vlgmr.msra.gmra.mrb[0].mxu1 %vm995_vm9, %v15348_v22 }
 0x298   : > { %10944 = vmatprep.mubr.msk.bf16.mxu1 %vm995_vm9, %v15359_v40  ;;  %v15365_v14 = vpop.permute.xlu0 %3614  ;;  %4372 = vrot.lane.b32.xlu1 %v14799_v10, %s12051_s23  ;;  %v3498_v10 = vsel %vm765_vm5, %v15077_v50, %v19759_v35 }
 0x299   : > { %10965 = vmatpush3.bf16.msra.mxu1 %v15155_v34  ;;  %v3501_v34 = vsel %vm765_vm5, %v15106_v2, %v19760_v15 }
 0x29a   : > { %4370 = vrot.lane.b32.xlu0 %v14789_v18, %s12051_s23  ;;  %v15372_v56 = vpop.permute.xlu1 %3959  ;;  %11790 = vmatprep.subr.msk.bf16.mxu1 %vm1020_vm4, %v11911_v59  ;;  %v3529_v18 = vsel %vm790_vm6, %v3498_v10, %v15168_v62  ;;  %v3531_v20 = vsel %vm790_vm6, %v3501_v34, %v15178_v61  ;;  %v19762_v62 = vld [vmem:[#allocation213_spill] sm:$0xff]  ;;  %v3535_v10 = vsel %vm790_vm6, %v3507_v23, %v15186_v25 }
 0x29b   : > { %v3553_v57 = vsel %vm815_vm7, %v3529_v18, %v15216_v55  ;;  %v3555_v50 = vsel %vm815_vm7, %v3531_v20, %v15226_v49  ;;  %v19764_v55 = vld [vmem:[#allocation152_spill] sm:$0xff]  ;;  %v19770_v25 = vld [vmem:[#allocation157_spill] sm:$0xff] }
 0x29c   : > { %v15389_v1 = vpop.permute.xlu0 %3957  ;;  %4376 = vrot.lane.b32.xlu1 %v19761_v32, %s12047_s15  ;;  %v15401_v2 = vsel %vm840_vm8, %v3553_v57, %v15262_v11  ;;  %v15410_v61 = vsel %vm840_vm8, %v3555_v50, %v15270_v28  ;;  %v19763_v11 = vld [vmem:[#allocation151_spill] sm:$0xff]  ;;  %v3504_v28 = vsel %vm765_vm5, %v15092_v42, %v19765_v37  ;;  %v3559_v42 = vsel %vm815_vm7, %v3535_v10, %v15234_v5  ;;  %v19771_v57 = vld [vmem:[#allocation13_spill] sm:$0xff]  ;;  %v19772_v50 = vld [vmem:[#allocation12_spill] sm:$0xff] }
 0x29d   : > { %10967 = vmatpush3.bf16.msra.mxu1 %v3824_v52  ;;  %v3533_v16 = vsel %vm790_vm6, %v3504_v28, %v15176_v41  ;;  %v19767_v52 = vld [vmem:[#allocation153_spill] sm:$0xff]  ;;  %v19768_v41 = vld [vmem:[#allocation154_spill] sm:$0xff]  ;;  %v15452_v20 = vsel %vm840_vm8, %v3559_v42, %v15278_v45  ;;  %v3510_v45 = vsel %vm765_vm5, %v15117_v27, %v19771_v57 }
 0x29e   : > { %4374 = vrot.lane.b32.xlu0 %v19762_v62, %s12051_s23  ;;  %v15405_v39 = vpop.permute.xlu1 %3963  ;;  %10992 = vmatprep.subr.bf16.mxu1 %v15379_v21  ;;  %v3557_v34 = vsel %vm815_vm7, %v3533_v16, %v15224_v48  ;;  %v3513_v62 = vsel %vm765_vm5, %v15138_v31, %v19772_v50  ;;  %v3537_v28 = vsel %vm790_vm6, %v3510_v45, %v15184_v3  ;;  %v19773_v16 = vld [vmem:[#allocation159_spill] sm:$0xff]  ;;  %v19774_v3 = vld [vmem:[#allocation161_spill] sm:$0xff] }
 0x29f   : > { %10945 = vmatmul.mubr.msk.bf16.gmra.mrb[4].mxu1 %vm995_vm9, %v15401_v2  ;;  %v15444_v30 = vsel %vm840_vm8, %v3557_v34, %v15268_v0  ;;  %v19769_v0 = vld [vmem:[#allocation155_spill] sm:$0xff]  ;;  %v3539_v10 = vsel %vm790_vm6, %v3513_v62, %v15194_v54  ;;  %v3561_v34 = vsel %vm815_vm7, %v3537_v28, %v15232_v8  ;;  %v19776_v54 = vld [vmem:[#allocation105_spill] sm:$0xff]  ;;  %v19778_v28 = vld [vmem:[#allocation54_spill] sm:$0xff] }
 0x2a0   : > { %10948 = vmatprep.mubr.msk.bf16.mxu1 %vm995_vm9, %v15410_v61  ;;  %v15416_v49 = vpop.permute.xlu0 %3961  ;;  %4380 = vrot.lane.b32.xlu1 %v19763_v11, %s12047_s15  ;;  %v3563_v27 = vsel %vm815_vm7, %v3539_v10, %v15242_v51  ;;  %v15486_v31 = vsel %vm840_vm8, %v3561_v34, %v15276_v4  ;;  %v19775_v4 = vld [vmem:[#allocation107_spill] sm:$0xff]  ;;  %v3617_v10 = vsel %vm765_vm5, %v15148_v19, %v19778_v28 }
 0x2a1   : > { %v15494_v45 = vsel %vm840_vm8, %v3563_v27, %v15286_v53  ;;  %v19777_v62 = vld [vmem:[#allocation15_spill] sm:$0xff] }
 0x2a2   : > { %4378 = vrot.lane.b32.xlu0 %v19764_v55, %s12047_s15  ;;  %v15422_v47 = vpop.permute.xlu1 %3967  ;;  %v3516_v53 = vsel %vm765_vm5, %v15132_v29, %v19777_v62  ;;  %v19803_v11 = vld [vmem:[#allocation167_spill] sm:$0xff] }
 0x2a3   : > { %v3541_v34 = vsel %vm790_vm6, %v3516_v53, %v15192_v24  ;;  %v19780_v24 = vld [vmem:[#allocation77_spill] sm:$0xff] }
 0x2a4   : > { %v15432_v59 = vpop.permute.xlu0 %3965  ;;  %4384 = vrot.lane.b32.xlu1 %v19767_v52, %s12047_s15  ;;  %v19786_v52 = vld [vmem:[#allocation137_spill] sm:$0xff] }
 0x2a6   : > { %4382 = vrot.lane.b32.xlu0 %v19768_v41, %s12047_s15  ;;  %v15448_v18 = vpop.permute.xlu1 %3971 }
 0x2a7   : > { %10949 = vmatmul.mubr.msk.bf16.gmra.mrb[8].mxu1 %vm995_vm9, %v15444_v30 }
 0x2a8   : > { %10952 = vmatprep.mubr.msk.bf16.mxu1 %vm995_vm9, %v15452_v20  ;;  %v15458_v5 = vpop.permute.xlu0 %3969  ;;  %4388 = vrot.lane.b32.xlu1 %v19769_v0, %s12047_s15 }
 0x2aa   : > { %4386 = vrot.lane.b32.xlu0 %v19770_v25, %s12047_s15  ;;  %v15464_v48 = vpop.permute.xlu1 %3975 }
 0x2ac   : > { %v15474_v23 = vpop.permute.xlu0 %3973  ;;  %4392 = vrot.lane.b32.xlu1 %v19773_v16, %s12047_s15  ;;  %v3624_v16 = vsel %vm790_vm6, %v3617_v10, %v15300_v60 }
 0x2ae   : > { %4390 = vrot.lane.b32.xlu0 %v19774_v3, %s12047_s15  ;;  %v15490_v42 = vpop.permute.xlu1 %3979  ;;  %v3630_v3 = vsel %vm815_vm7, %v3624_v16, %v15314_v63  ;;  %v19782_v63 = vld [vmem:[#allocation135_spill] sm:$0xff]  ;;  %v19783_v16 = vld [vmem:[#allocation53_spill] sm:$0xff] }
 0x2af   : > { %10953 = vmatmul.mubr.msk.bf16.gmra.mrb[12].mxu1 %vm995_vm9, %v15486_v31  ;;  %v3636_v0 = vsel %vm840_vm8, %v3630_v3, %v15325_v26  ;;  %v19784_v26 = vld [vmem:[#allocation5_spill] sm:$0xff] }
 0x2b0   : > { %10956 = vmatprep.mubr.msk.bf16.mxu1 %vm995_vm9, %v15494_v45  ;;  %v15500_v51 = vpop.permute.xlu0 %3977  ;;  %4396 = vrot.lane.b32.xlu1 %v19775_v4, %s12047_s15  ;;  %v19779_v4 = vld [vmem:[#allocation125_spill] sm:$0xff]  ;;  %v3486_v3 = vsel %vm765_vm5, %v15039_v7, %v19784_v26 }
 0x2b1   : > { %v19820_v26 = vld [vmem:[#allocation225_spill] sm:$0xff] }
 0x2b2   : > { %4394 = vrot.lane.b32.xlu0 %v19776_v54, %s12047_s15  ;;  %v15506_v8 = vpop.permute.xlu1 %3983  ;;  %v3565_v54 = vsel %vm815_vm7, %v3541_v34, %v15240_v43  ;;  %v19785_v34 = vld [vmem:[#allocation111_spill] sm:$0xff] }
 0x2b3   : > { %v15526_v29 = vsel %vm840_vm8, %v3565_v54, %v15284_v9  ;;  %v19781_v9 = vld [vmem:[#allocation93_spill] sm:$0xff]  ;;  %v3620_v54 = vsel %vm765_vm5, %v15292_v17, %v19783_v16 }
 0x2b4   : > { %v15516_v27 = vpop.permute.xlu0 %3981  ;;  %4400 = vrot.lane.b32.xlu1 %v19779_v4, %s12048_s16 }
 0x2b6   : > { %4398 = vrot.lane.b32.xlu0 %v19780_v24, %s12047_s15  ;;  %v15532_v53 = vpop.permute.xlu1 %3987  ;;  %v3521_v24 = vsel %vm790_vm6, %v3486_v3, %v15146_v36 }
 0x2b7   : > { %10957 = vmatmul.mubr.msk.bf16.gmra.mrb[16].mxu1 %vm995_vm9, %v15526_v29  ;;  %v3545_v17 = vsel %vm815_vm7, %v3521_v24, %v15200_v46  ;;  %v19788_v46 = vld [vmem:[#allocation65_spill] sm:$0xff] }
 0x2b8   : > { %10960 = vmatprep.mubr.msk.bf16.mxu1 %vm995_vm9, %v3636_v0  ;;  %v15539_v60 = vpop.permute.xlu0 %3985  ;;  %4404 = vrot.lane.b32.xlu1 %v19781_v9, %s12048_s16  ;;  %v3626_v0 = vsel %vm790_vm6, %v3620_v54, %v15306_v33  ;;  %v3569_v54 = vsel %vm840_vm8, %v3545_v17, %v15248_v44  ;;  %v19790_v44 = vld [vmem:[#allocation81_spill] sm:$0xff] }
 0x2b9   : > { %v3632_v25 = vsel %vm815_vm7, %v3626_v0, %v15312_v12  ;;  %v19787_v12 = vld [vmem:[#allocation131_spill] sm:$0xff]  ;;  %v19791_v0 = vld [vmem:[#allocation169_spill] sm:$0xff] }
 0x2ba   : > { %4402 = vrot.lane.b32.xlu0 %v19782_v63, %s12048_s16  ;;  %v15545_v43 = vpop.permute.xlu1 %3991  ;;  %v3638_v7 = vsel %vm840_vm8, %v3632_v25, %v15365_v14  ;;  %v19789_v25 = vld [vmem:[#allocation162_spill] sm:$0xff]  ;;  %v19818_v63 = vld [vmem:[#allocation63_spill] sm:$0xff] }
 0x2bb   : > { %v3523_v24 = vsel %vm790_vm6, %v15321_v6, %v19789_v25  ;;  %v11913_v6 = vld [vmem:[%s18767_s1 + $0x5c] ss:$0 sps:$4 sm:$0x33]   ;;  %v4053_v4 = vsel %vm765_vm5, %v15353_v13, %v19818_v63  ;;  %v19824_v63 = vld [vmem:[#allocation216_spill] sm:$0xff] }
 0x2bc   : > { %v15555_v10 = vpop.permute.xlu0 %3989  ;;  %4408 = vrot.lane.b32.xlu1 %v19785_v34, %s12048_s16  ;;  %v3547_v17 = vsel %vm815_vm7, %v3523_v24, %v19791_v0  ;;  %v19794_v24 = vld [vmem:[#allocation143_spill] sm:$0xff]  ;;  %v19795_v0 = vld [vmem:[#allocation97_spill] sm:$0xff]  ;;  %v19800_v34 = vld [vmem:[#allocation164_spill] sm:$0xff]  ;;  %v4088_v16 = vsel %vm790_vm6, %v4053_v4, %v15490_v42 }
 0x2be   : > { %4406 = vrot.lane.b32.xlu0 %v19786_v52, %s12048_s16  ;;  %v15569_v33 = vpop.permute.xlu1 %3995 }
 0x2bf   : > { %10961 = vmatmul.mubr.msk.bf16.gmra.mrb[20].mxu1 %vm995_vm9, %v3638_v7  ;;  %v19792_v7 = vld [vmem:[#allocation226_spill] sm:$0xff] }
 0x2c0   : > { %v15574_v36 = vpop.permute.xlu0 %3993  ;;  %10968 = vmatprep.mubr.msk.bf16.mxu1 %vm995_vm9, %v3569_v54  ;;  %4412 = vrot.lane.b32.xlu1 %v19787_v12, %s12048_s16  ;;  %v3571_v54 = vsel %vm840_vm8, %v3547_v17, %v19792_v7  ;;  %v19793_v12 = vld [vmem:[#allocation141_spill] sm:$0xff]  ;;  %v4197_v7 = vsel %vm1020_vm4, %v11913_v6, 0 }
 0x2c2   : > { %4410 = vrot.lane.b32.xlu0 %v19788_v46, %s12048_s16  ;;  %v15581_v14 = vpop.permute.xlu1 %3999 }
 0x2c4   : > { %v15586_v3 = vpop.permute.xlu0 %3997  ;;  %4416 = vrot.lane.b32.xlu1 %v19790_v44, %s12048_s16  ;;  %v19798_v44 = vld [vmem:[#allocation95_spill] sm:$0xff] }
 0x2c6   : > { %4414 = vrot.lane.b32.xlu0 %v19793_v12, %s12048_s16  ;;  %v15596_v46 = vpop.permute.xlu1 %4003 }
 0x2c7   : > { %10969 = vmatmul.mubr.msk.bf16.vlgmr.msra.gmra.mrb[0].mxu1 %vm995_vm9, %v3571_v54  ;;  %v15618_v54 = vld [vmem:[%s18767_s1 + $0x60] sm:$0xff]  }
 0x2c8   : > { %v15602_v25 = vpop.permute.xlu0 %4001  ;;  %10972 = vmatprep.mubr.msk.bf16.mxu1 %vm995_vm9, %v15348_v22  ;;  %4420 = vrot.lane.b32.xlu1 %v19794_v24, %s12048_s16  ;;  %v19796_v24 = vld [vmem:[#allocation117_spill] sm:$0xff] }
 0x2c9   : > { %10993 = vmatpush3.bf16.msra.mxu1 %v15379_v21  ;;  %v19797_v21 = vld [vmem:[#allocation79_spill] sm:$0xff] }
 0x2ca   : > { %4418 = vrot.lane.b32.xlu0 %v19795_v0, %s12048_s16  ;;  %v15611_v17 = vpop.permute.xlu1 %4007  ;;  %11791 = vmatprep.subr.msk.bf16.mxu1 %vm1020_vm4, %v11913_v6 }
 0x2cc   : > { %v15620_v22 = vpop.permute.xlu0 %4005  ;;  %4424 = vrot.lane.b32.xlu1 %v19796_v24, %s12049_s17  ;;  %v19808_v24 = vld [vmem:[#allocation163_spill] sm:$0xff] }
 0x2cd   : > { %10995 = vmatpush3.bf16.msra.mxu1 %v4197_v7  ;;  %v19799_v7 = vld [vmem:[#allocation113_spill] sm:$0xff] }
 0x2ce   : > { %4422 = vrot.lane.b32.xlu0 %v19797_v21, %s12048_s16  ;;  %v15626_v0 = vpop.permute.xlu1 %4011  ;;  %11020 = vmatprep.subr.bf16.mxu1 %v15618_v54 }
 0x2cf   : > { %10973 = vmatmul.mubr.msk.bf16.gmra.mrb[4].mxu1 %vm995_vm9, %v15359_v40  ;;  %v19801_v40 = vld [vmem:[#allocation165_spill] sm:$0xff] }
 0x2d0   : > { %v15631_v6 = vpop.permute.xlu0 %4009  ;;  %10976 = vmatprep.mubr.msk.bf16.mxu1 %vm995_vm9, %v15401_v2  ;;  %4428 = vrot.lane.b32.xlu1 %v19798_v44, %s12049_s17  ;;  %v19802_v44 = vld [vmem:[#allocation166_spill] sm:$0xff] }
 0x2d2   : > { %4426 = vrot.lane.b32.xlu0 %v19799_v7, %s12049_s17  ;;  %v15639_v12 = vpop.permute.xlu1 %4015 }
 0x2d4   : > { %v15641_v21 = vpop.permute.xlu0 %4013  ;;  %4432 = vrot.lane.b32.xlu1 %v19800_v34, %s12049_s17 }
 0x2d6   : > { %4430 = vrot.lane.b32.xlu0 %v19801_v40, %s12049_s17  ;;  %v15647_v41 = vpop.permute.xlu1 %4019  ;;  %v19804_v40 = vld [vmem:[#allocation168_spill] sm:$0xff] }
 0x2d7   : > { %10977 = vmatmul.mubr.msk.bf16.gmra.mrb[8].mxu1 %vm995_vm9, %v15410_v61  ;;  %v19805_v61 = vld [vmem:[#allocation170_spill] sm:$0xff] }
 0x2d8   : > { %v15651_v2 = vpop.permute.xlu0 %4017  ;;  %10980 = vmatprep.mubr.msk.bf16.mxu1 %vm995_vm9, %v15444_v30  ;;  %4436 = vrot.lane.b32.xlu1 %v19802_v44, %s12049_s17  ;;  %v19806_v44 = vld [vmem:[#allocation172_spill] sm:$0xff] }
 0x2da   : > { %4434 = vrot.lane.b32.xlu0 %v19803_v11, %s12049_s17  ;;  %v15659_v34 = vpop.permute.xlu1 %4023  ;;  %v19807_v11 = vld [vmem:[#allocation173_spill] sm:$0xff] }
 0x2dc   : > { %v15661_v52 = vpop.permute.xlu0 %4021  ;;  %4440 = vrot.lane.b32.xlu1 %v19804_v40, %s12049_s17 }
 0x2de   : > { %4438 = vrot.lane.b32.xlu0 %v19805_v61, %s12049_s17  ;;  %v4028_v9 = vpop.permute.xlu1 %4027 }
 0x2df   : > { %10981 = vmatmul.mubr.msk.bf16.gmra.mrb[12].mxu1 %vm995_vm9, %v15452_v20  ;;  %v19811_v20 = vld [vmem:[#allocation176_spill] sm:$0xff] }
 0x2e0   : > { %v15669_v30 = vpop.permute.xlu0 %4025  ;;  %10984 = vmatprep.mubr.msk.bf16.mxu1 %vm995_vm9, %v15486_v31  ;;  %4444 = vrot.lane.b32.xlu1 %v19806_v44, %s12049_s17 }
 0x2e2   : > { %4442 = vrot.lane.b32.xlu0 %v19807_v11, %s12049_s17  ;;  %v4032_v7 = vpop.permute.xlu1 %4031 }
 0x2e4   : > { %v4030_v40 = vpop.permute.xlu0 %4029  ;;  %4749 = vrot.lane.b32.xlu1 %v19808_v24, %s12051_s23 }
 0x2e5   : > { %v15679_v61 = vpop.f32.mrb[0].mxu0 }
 0x2e6   : > { %19809 = vst [vmem:[#allocation4_spill] sm:$0xff] %v15679_v61  ;;  %v15681_v55 = vpop.f32.mrb[1].mxu0  ;;  %4446 = vrot.lane.b32.xlu0 %v19811_v20, %s12049_s17  ;;  %v15685_v32 = vpop.permute.xlu1 %4035  ;;  %v19814_v61 = vld [vmem:[#allocation215_spill] sm:$0xff]  ;;  %v19816_v20 = vld [vmem:[#allocation14_spill] sm:$0xff] }
 0x2e7   : > { %19810 = vst [vmem:[#allocation9_spill] sm:$0xff] %v15681_v55  ;;  %v15687_v31 = vpop.f32.mrb[2].mxu0  ;;  %10985 = vmatmul.mubr.msk.bf16.gmra.mrb[16].mxu1 %vm995_vm9, %v15494_v45  ;;  %v19815_v55 = vld [vmem:[#allocation214_spill] sm:$0xff]  ;;  %v19817_v45 = vld [vmem:[#allocation195_spill] sm:$0xff] }
 0x2e8   : > { %19812 = vst [vmem:[#allocation8_spill] sm:$0xff] %v15687_v31  ;;  %v15691_v44 = vpop.f32.mrb[3].mxu0  ;;  %v15693_v11 = vpop.permute.xlu0 %4033  ;;  %10988 = vmatprep.mubr.msk.bf16.mxu1 %vm995_vm9, %v15526_v29  ;;  %4753 = vrot.lane.b32.xlu1 %v19814_v61, %s12051_s23  ;;  %v3519_v31 = vsel %vm765_vm5, %v15148_v19, %v19816_v20  ;;  %v19819_v61 = vld [vmem:[#allocation217_spill] sm:$0xff]  ;;  %v19822_v19 = vld [vmem:[#allocation227_spill] sm:$0xff] }
 0x2e9   : > { %19813 = vst [vmem:[#allocation213_spill] sm:$0xff] %v15691_v44  ;;  %v3543_v44 = vsel %vm790_vm6, %v3519_v31, %v19817_v45  ;;  %v4112_v45 = vsel %vm815_vm7, %v4088_v16, %v15596_v46  ;;  %v19827_v16 = vld [vmem:[#allocation219_spill] sm:$0xff]  ;;  %v19828_v46 = vld [vmem:[#allocation218_spill] sm:$0xff] }
 0x2ea   : > { %4751 = vrot.lane.b32.xlu0 %v19815_v55, %s12051_s23  ;;  %v15701_v24 = vpop.permute.xlu1 %4039  ;;  %v3567_v55 = vsel %vm815_vm7, %v3543_v44, %v19820_v26  ;;  %v4136_v26 = vsel %vm840_vm8, %v4112_v45, %v4028_v9 }
 0x2eb   : > { %v3591_v31 = vsel %vm840_vm8, %v3567_v55, %v19822_v19  ;;  %v19829_v55 = vld [vmem:[#allocation67_spill] sm:$0xff]  ;;  %v19830_v19 = vld [vmem:[#allocation66_spill] sm:$0xff] }
 0x2ec   : > { %v15711_v29 = vpop.permute.xlu0 %4037  ;;  %4757 = vrot.lane.b32.xlu1 %v19819_v61, %s12051_s23  ;;  %v4056_v9 = vsel %vm765_vm5, %v15389_v1, %v19829_v55 }
 0x2ed   : > { %v15719_v28 = vpop.f32.mrb[4].mxu0  ;;  %v4090_v45 = vsel %vm790_vm6, %v4056_v9, %v15516_v27  ;;  %v19834_v27 = vld [vmem:[#allocation220_spill] sm:$0xff] }
 0x2ee   : > { %19821 = vst [vmem:[#allocation11_spill] sm:$0xff] %v15719_v28  ;;  %v15725_v13 = vpop.f32.mrb[5].mxu0  ;;  %4755 = vrot.lane.b32.xlu0 %v19824_v63, %s12051_s23  ;;  %v15729_v61 = vpop.permute.xlu1 %4043 }
 0x2ef   : > { %19823 = vst [vmem:[#allocation10_spill] sm:$0xff] %v15725_v13  ;;  %v15732_v44 = vpop.f32.mrb[6].mxu0  ;;  %10989 = vmatmul.mubr.msk.bf16.gmra.mrb[20].mxu1 %vm995_vm9, %v3591_v31  ;;  %v4059_v31 = vsel %vm765_vm5, %v15372_v56, %v19830_v19 }
 0x2f0   : > { %19825 = vst [vmem:[#allocation13_spill] sm:$0xff] %v15732_v44  ;;  %v15735_v42 = vpop.f32.mrb[7].mxu0  ;;  %v15737_v4 = vpop.permute.xlu0 %4041  ;;  %10996 = vmatprep.mubr.msk.bf16.mxu1 %vm995_vm9, %v4136_v26  ;;  %4761 = vrot.lane.b32.xlu1 %v19827_v16, %s12051_s23  ;;  %v19831_v16 = vld [vmem:[#allocation221_spill] sm:$0xff]  ;;  %v4114_v44 = vsel %vm815_vm7, %v4090_v45, %v15620_v22  ;;  %v19838_v45 = vld [vmem:[#allocation222_spill] sm:$0xff] }
 0x2f1   : > { %19826 = vst [vmem:[#allocation12_spill] sm:$0xff] %v15735_v42  ;;  %v4138_v56 = vsel %vm840_vm8, %v4114_v44, %v4030_v40  ;;  %v19837_v44 = vld [vmem:[#allocation223_spill] sm:$0xff] }
 0x2f2   : > { %4759 = vrot.lane.b32.xlu0 %v19828_v46, %s12051_s23  ;;  %v15744_v63 = vpop.permute.xlu1 %4047  ;;  %v4092_v46 = vsel %vm790_vm6, %v4059_v31, %v15506_v8  ;;  %v11915_v8 = vld [vmem:[%s18767_s1 + $0x68] ss:$0 sps:$4 sm:$0x33]  }
 0x2f3   : > { %v4116_v1 = vsel %vm815_vm7, %v4092_v46, %v15611_v17  ;;  %v19839_v46 = vld [vmem:[#allocation69_spill] sm:$0xff] }
 0x2f4   : > { %v15754_v26 = vpop.permute.xlu0 %4045  ;;  %4765 = vrot.lane.b32.xlu1 %v19831_v16, %s12051_s23  ;;  %v4140_v22 = vsel %vm840_vm8, %v4116_v1, %v4032_v7  ;;  %v4594_v7 = vsel %vm1020_vm4, %v11915_v8, 0  ;;  %v4062_v1 = vsel %vm765_vm5, %v15416_v49, %v19839_v46 }
 0x2f5   : > { %v15762_v28 = vpop.f32.mrb[8].mxu0 }
 0x2f6   : > { %19832 = vst [vmem:[#allocation15_spill] sm:$0xff] %v15762_v28  ;;  %v15767_v42 = vpop.f32.mrb[9].mxu0  ;;  %4763 = vrot.lane.b32.xlu0 %v19834_v27, %s12051_s23  ;;  %v15771_v9 = vpop.permute.xlu1 %4352 }
 0x2f7   : > { %19833 = vst [vmem:[#allocation162_spill] sm:$0xff] %v15767_v42  ;;  %v15777_v31 = vpop.f32.mrb[10].mxu0  ;;  %10997 = vmatmul.mubr.msk.bf16.vlgmr.msra.gmra.mrb[0].mxu1 %vm995_vm9, %v4138_v56  ;;  %v19840_v56 = vld [vmem:[#allocation68_spill] sm:$0xff] }
 0x2f8   : > { %19835 = vst [vmem:[#allocation169_spill] sm:$0xff] %v15777_v31  ;;  %v15780_v17 = vpop.f32.mrb[11].mxu0  ;;  %v15782_v40 = vpop.permute.xlu0 %4049  ;;  %11000 = vmatprep.mubr.msk.bf16.mxu1 %vm995_vm9, %v4140_v22  ;;  %4769 = vrot.lane.b32.xlu1 %v19837_v44, %s12051_s23  ;;  %v4065_v27 = vsel %vm765_vm5, %v15405_v39, %v19840_v56  ;;  %v19841_v44 = vld [vmem:[#allocation183_spill] sm:$0xff] }
 0x2f9   : > { %19836 = vst [vmem:[#allocation226_spill] sm:$0xff] %v15780_v17  ;;  %11021 = vmatpush3.bf16.msra.mxu1 %v15618_v54  ;;  %v4094_v54 = vsel %vm790_vm6, %v4062_v1, %v15539_v60  ;;  %v19844_v1 = vld [vmem:[#allocation224_spill] sm:$0xff] }
 0x2fa   : > { %4767 = vrot.lane.b32.xlu0 %v19838_v45, %s12051_s23  ;;  %v15790_v16 = vpop.permute.xlu1 %4356  ;;  %11792 = vmatprep.subr.msk.bf16.mxu1 %vm1020_vm4, %v11915_v8  ;;  %v4096_v45 = vsel %vm790_vm6, %v4065_v27, %v15532_v53  ;;  %v4118_v8 = vsel %vm815_vm7, %v4094_v54, %v15631_v6  ;;  %v19848_v27 = vld [vmem:[#allocation186_spill] sm:$0xff] }
 0x2fb   : > { %v4120_v39 = vsel %vm815_vm7, %v4096_v45, %v15626_v0  ;;  %v4142_v49 = vsel %vm840_vm8, %v4118_v8, %v15693_v11  ;;  %v19847_v11 = vld [vmem:[#allocation185_spill] sm:$0xff]  ;;  %v19849_v45 = vld [vmem:[#allocation71_spill] sm:$0xff]  ;;  %v19850_v8 = vld [vmem:[#allocation70_spill] sm:$0xff] }
 0x2fc   : > { %v15802_v22 = vpop.permute.xlu0 %4354  ;;  %4773 = vrot.lane.b32.xlu1 %v19841_v44, %s12047_s15  ;;  %v4144_v53 = vsel %vm840_vm8, %v4120_v39, %v15685_v32  ;;  %v4068_v32 = vsel %vm765_vm5, %v15432_v59, %v19849_v45  ;;  %v4071_v39 = vsel %vm765_vm5, %v15422_v47, %v19850_v8 }
 0x2fd   : > { %v15810_v31 = vpop.f32.mrb[12].mxu0  ;;  %11023 = vmatpush3.bf16.msra.mxu1 %v4594_v7  ;;  %v4100_v59 = vsel %vm790_vm6, %v4071_v39, %v15545_v43 }
 0x2fe   : > { %19842 = vst [vmem:[#allocation215_spill] sm:$0xff] %v15810_v31  ;;  %v15816_v60 = vpop.f32.mrb[13].mxu0  ;;  %4771 = vrot.lane.b32.xlu0 %v19844_v1, %s12051_s23  ;;  %v15820_v28 = vpop.permute.xlu1 %4360 }
 0x2ff   : > { %19843 = vst [vmem:[#allocation214_spill] sm:$0xff] %v15816_v60  ;;  %v15824_v6 = vpop.f32.mrb[14].mxu0  ;;  %11001 = vmatmul.mubr.msk.bf16.gmra.mrb[4].mxu1 %vm995_vm9, %v4142_v49  ;;  %v4098_v49 = vsel %vm790_vm6, %v4068_v32, %v15555_v10  ;;  %v4124_v10 = vsel %vm815_vm7, %v4100_v59, %v15639_v12  ;;  %v19854_v60 = vld [vmem:[#allocation188_spill] sm:$0xff]  ;;  %v19859_v59 = vld [vmem:[#allocation73_spill] sm:$0xff] }
 0x300   : > { %19845 = vst [vmem:[#allocation14_spill] sm:$0xff] %v15824_v6  ;;  %v15827_v7 = vpop.f32.mrb[15].mxu0  ;;  %v15829_v0 = vpop.permute.xlu0 %4358  ;;  %11004 = vmatprep.mubr.msk.bf16.mxu1 %vm995_vm9, %v4144_v53  ;;  %4777 = vrot.lane.b32.xlu1 %v19847_v11, %s12047_s15  ;;  %v19851_v53 = vld [vmem:[#allocation187_spill] sm:$0xff]  ;;  %v4122_v31 = vsel %vm815_vm7, %v4098_v49, %v15641_v21  ;;  %v4148_v43 = vsel %vm840_vm8, %v4124_v10, %v15701_v24  ;;  %v19860_v10 = vld [vmem:[#allocation72_spill] sm:$0xff]  ;;  %v19887_v11 = vld [vmem:[#allocation209_spill] sm:$0xff] }
 0x301   : > { %19846 = vst [vmem:[#allocation195_spill] sm:$0xff] %v15827_v7  ;;  %v15853_v6 = vld [vmem:[%s18767_s1 + $0x6c] sm:$0xff]   ;;  %v4146_v32 = vsel %vm840_vm8, %v4122_v31, %v15711_v29  ;;  %v19857_v29 = vld [vmem:[#allocation189_spill] sm:$0xff]  ;;  %v19858_v31 = vld [vmem:[#allocation190_spill] sm:$0xff]  ;;  %v4074_v24 = vsel %vm765_vm5, %v15458_v5, %v19859_v59 }
 0x302   : > { %4775 = vrot.lane.b32.xlu0 %v19848_v27, %s12047_s15  ;;  %v15836_v54 = vpop.permute.xlu1 %4364  ;;  %11048 = vmatprep.subr.bf16.mxu1 %v15853_v6 }
 0x304   : > { %v15846_v1 = vpop.permute.xlu0 %4362  ;;  %4781 = vrot.lane.b32.xlu1 %v19851_v53, %s12047_s15 }
 0x305   : > { %v15859_v47 = vpop.f32.mrb[16].mxu0 }
 0x306   : > { %19852 = vst [vmem:[#allocation217_spill] sm:$0xff] %v15859_v47  ;;  %v15865_v7 = vpop.f32.mrb[17].mxu0  ;;  %4779 = vrot.lane.b32.xlu0 %v19854_v60, %s12047_s15  ;;  %v15869_v17 = vpop.permute.xlu1 %4368  ;;  %v19861_v47 = vld [vmem:[#allocation191_spill] sm:$0xff] }
 0x307   : > { %19853 = vst [vmem:[#allocation225_spill] sm:$0xff] %v15865_v7  ;;  %v15874_v21 = vpop.f32.mrb[18].mxu0  ;;  %11005 = vmatmul.mubr.msk.bf16.gmra.mrb[8].mxu1 %vm995_vm9, %v4146_v32  ;;  %v4077_v32 = vsel %vm765_vm5, %v15448_v18, %v19860_v10 }
 0x308   : > { %19855 = vst [vmem:[#allocation227_spill] sm:$0xff] %v15874_v21  ;;  %v15877_v12 = vpop.f32.mrb[19].mxu0  ;;  %v15879_v39 = vpop.permute.xlu0 %4366  ;;  %11008 = vmatprep.mubr.msk.bf16.mxu1 %vm995_vm9, %v4148_v43  ;;  %4785 = vrot.lane.b32.xlu1 %v19857_v29, %s12047_s15  ;;  %v4102_v21 = vsel %vm790_vm6, %v4074_v24, %v15574_v36  ;;  %v19864_v24 = vld [vmem:[#allocation192_spill] sm:$0xff] }
 0x309   : > { %19856 = vst [vmem:[#allocation216_spill] sm:$0xff] %v15877_v12  ;;  %v4104_v12 = vsel %vm790_vm6, %v4077_v32, %v15569_v33  ;;  %v4126_v7 = vsel %vm815_vm7, %v4102_v21, %v15651_v2  ;;  %v19882_v29 = vld [vmem:[#allocation196_spill] sm:$0xff] }
 0x30a   : > { %4783 = vrot.lane.b32.xlu0 %v19858_v31, %s12047_s15  ;;  %v15886_v49 = vpop.permute.xlu1 %4372  ;;  %v4128_v5 = vsel %vm815_vm7, %v4104_v12, %v15647_v41  ;;  %v4150_v18 = vsel %vm840_vm8, %v4126_v7, %v15737_v4  ;;  %v19867_v4 = vld [vmem:[#allocation193_spill] sm:$0xff]  ;;  %v19868_v7 = vld [vmem:[#allocation156_spill] sm:$0xff]  ;;  %v19883_v31 = vld [vmem:[#allocation207_spill] sm:$0xff] }
 0x30b   : > { %v4152_v33 = vsel %vm840_vm8, %v4128_v5, %v15729_v61  ;;  %v19869_v12 = vld [vmem:[#allocation76_spill] sm:$0xff]  ;;  %v19870_v5 = vld [vmem:[#allocation74_spill] sm:$0xff] }
 0x30c   : > { %v15896_v43 = vpop.permute.xlu0 %4370  ;;  %4789 = vrot.lane.b32.xlu1 %v19861_v47, %s12047_s15  ;;  %v4080_v61 = vsel %vm765_vm5, %v15474_v23, %v19869_v12 }
 0x30d   : > { %v15904_v42 = vpop.f32.mrb[20].mxu0 }
 0x30e   : > { %19862 = vst [vmem:[#allocation219_spill] sm:$0xff] %v15904_v42  ;;  %v15910_v36 = vpop.f32.mrb[21].mxu0  ;;  %4787 = vrot.lane.b32.xlu0 %v19864_v24, %s12047_s15  ;;  %v15914_v13 = vpop.permute.xlu1 %4376  ;;  %v19871_v42 = vld [vmem:[#allocation200_spill] sm:$0xff] }
 0x30f   : > { %19863 = vst [vmem:[#allocation218_spill] sm:$0xff] %v15910_v36  ;;  %v15918_v32 = vpop.f32.mrb[22].mxu0  ;;  %11009 = vmatmul.mubr.msk.bf16.gmra.mrb[12].mxu1 %vm995_vm9, %v4150_v18  ;;  %v4083_v18 = vsel %vm765_vm5, %v15464_v48, %v19870_v5 }
 0x310   : > { %19865 = vst [vmem:[#allocation67_spill] sm:$0xff] %v15918_v32  ;;  %v15921_v2 = vpop.f32.mrb[23].mxu0  ;;  %v15923_v41 = vpop.permute.xlu0 %4374  ;;  %11012 = vmatprep.mubr.msk.bf16.mxu1 %vm995_vm9, %v4152_v33  ;;  %4797 = vrot.lane.b32.xlu1 %v19867_v4, %s12048_s16  ;;  %v4106_v32 = vsel %vm790_vm6, %v4080_v61, %v15586_v3 }
 0x311   : > { %19866 = vst [vmem:[#allocation66_spill] sm:$0xff] %v15921_v2  ;;  %v4108_v2 = vsel %vm790_vm6, %v4083_v18, %v15581_v14  ;;  %v4130_v36 = vsel %vm815_vm7, %v4106_v32, %v15661_v52  ;;  %v19873_v52 = vld [vmem:[#allocation160_spill] sm:$0xff]  ;;  %v19876_v18 = vld [vmem:[#allocation202_spill] sm:$0xff] }
 0x312   : > { %4791 = vrot.lane.b32.xlu0 %v19868_v7, %s12047_s15  ;;  %v15930_v21 = vpop.permute.xlu1 %4380  ;;  %v4132_v23 = vsel %vm815_vm7, %v4108_v2, %v15659_v34  ;;  %v4154_v48 = vsel %vm840_vm8, %v4130_v36, %v15754_v26  ;;  %v19872_v7 = vld [vmem:[#allocation133_spill] sm:$0xff]  ;;  %v19874_v34 = vld [vmem:[#allocation203_spill] sm:$0xff]  ;;  %v19875_v36 = vld [vmem:[#allocation80_spill] sm:$0xff] }
 0x313   : > { %v4156_v61 = vsel %vm840_vm8, %v4132_v23, %v15744_v63  ;;  %v4086_v32 = vsel %vm765_vm5, %v15500_v51, %v19875_v36 }
 0x314   : > { %v15940_v33 = vpop.permute.xlu0 %4378  ;;  %4821 = vrot.lane.b32.xlu1 %v19871_v42, %s12049_s17  ;;  %v4110_v63 = vsel %vm790_vm6, %v4086_v32, %v15602_v25  ;;  %v19878_v25 = vld [vmem:[#allocation171_spill] sm:$0xff]  ;;  %v19879_v32 = vld [vmem:[#allocation205_spill] sm:$0xff]  ;;  %v19892_v42 = vld [vmem:[#allocation132_spill] sm:$0xff] }
 0x315   : > { %v4134_v23 = vsel %vm815_vm7, %v4110_v63, %v15669_v30  ;;  %v19881_v63 = vld [vmem:[#allocation115_spill] sm:$0xff]  ;;  %v4450_v27 = vsel %vm765_vm5, %v15771_v9, %v19892_v42  ;;  %v19895_v9 = vld [vmem:[#allocation210_spill] sm:$0xff] }
 0x316   : > { %4799 = vrot.lane.b32.xlu0 %v19872_v7, %s12048_s16  ;;  %v15954_v3 = vpop.permute.xlu1 %4384  ;;  %v4485_v44 = vsel %vm790_vm6, %v4450_v27, %v15914_v13  ;;  %v19896_v42 = vld [vmem:[#allocation138_spill] sm:$0xff]  ;;  %v19897_v13 = vld [vmem:[#allocation201_spill] sm:$0xff]  ;;  %v19898_v27 = vld [vmem:[#allocation136_spill] sm:$0xff] }
 0x317   : > { %11013 = vmatmul.mubr.msk.bf16.gmra.mrb[16].mxu1 %vm995_vm9, %v4154_v48  ;;  %v4158_v48 = vsel %vm840_vm8, %v4134_v23, %v15782_v40  ;;  %v19880_v40 = vld [vmem:[#allocation204_spill] sm:$0xff] }
 0x318   : > { %v15959_v14 = vpop.permute.xlu0 %4382  ;;  %11016 = vmatprep.mubr.msk.bf16.mxu1 %vm995_vm9, %v4156_v61  ;;  %4801 = vrot.lane.b32.xlu1 %v19873_v52, %s12048_s16  ;;  %v19877_v61 = vld [vmem:[#allocation127_spill] sm:$0xff] }
 0x31a   : > { %4823 = vrot.lane.b32.xlu0 %v19874_v34, %s12049_s17  ;;  %v15966_v26 = vpop.permute.xlu1 %4388  ;;  %v19890_v34 = vld [vmem:[#allocation158_spill] sm:$0xff] }
 0x31c   : > { %v15973_v2 = vpop.permute.xlu0 %4386  ;;  %4825 = vrot.lane.b32.xlu1 %v19876_v18, %s12049_s17  ;;  %v19885_v18 = vld [vmem:[#allocation197_spill] sm:$0xff] }
 0x31e   : > { %4803 = vrot.lane.b32.xlu0 %v19877_v61, %s12048_s16  ;;  %v15983_v47 = vpop.permute.xlu1 %4392 }
 0x31f   : > { %11017 = vmatmul.mubr.msk.bf16.gmra.mrb[20].mxu1 %vm995_vm9, %v4158_v48 }
 0x320   : > { %v15986_v51 = vpop.permute.xlu0 %4390  ;;  %4805 = vrot.lane.b32.xlu1 %v19878_v25, %s12048_s16 }
 0x322   : > { %4827 = vrot.lane.b32.xlu0 %v19879_v32, %s12049_s17  ;;  %v15992_v24 = vpop.permute.xlu1 %4396  ;;  %v19884_v32 = vld [vmem:[#allocation206_spill] sm:$0xff] }
 0x324   : > { %v15994_v30 = vpop.permute.xlu0 %4394  ;;  %4829 = vrot.lane.b32.xlu1 %v19880_v40, %s12049_s17 }
 0x326   : > { %4807 = vrot.lane.b32.xlu0 %v19881_v63, %s12048_s16  ;;  %v4401_v23 = vpop.permute.xlu1 %4400  ;;  %v19886_v63 = vld [vmem:[#allocation174_spill] sm:$0xff] }
 0x327   : > { %v4509_v7 = vsel %vm815_vm7, %v4485_v44, %v4401_v23  ;;  %v4456_v23 = vsel %vm765_vm5, %v15790_v16, %v19898_v27 }
 0x328   : > { %v16000_v48 = vpop.permute.xlu0 %4398  ;;  %4809 = vrot.lane.b32.xlu1 %v19882_v29, %s12048_s16 }
 0x32a   : > { %4831 = vrot.lane.b32.xlu0 %v19883_v31, %s12049_s17  ;;  %v4405_v53 = vpop.permute.xlu1 %4404  ;;  %v19888_v31 = vld [vmem:[#allocation208_spill] sm:$0xff] }
 0x32c   : > { %v4403_v25 = vpop.permute.xlu0 %4402  ;;  %4833 = vrot.lane.b32.xlu1 %v19884_v32, %s12049_s17  ;;  %v19889_v32 = vld [vmem:[#allocation199_spill] sm:$0xff] }
 0x32e   : > { %4811 = vrot.lane.b32.xlu0 %v19885_v18, %s12048_s16  ;;  %v4409_v40 = vpop.permute.xlu1 %4408 }
 0x330   : > { %v4407_v60 = vpop.permute.xlu0 %4406  ;;  %4813 = vrot.lane.b32.xlu1 %v19886_v63, %s12048_s16  ;;  %v19891_v63 = vld [vmem:[#allocation211_spill] sm:$0xff] }
 0x332   : > { %4835 = vrot.lane.b32.xlu0 %v19887_v11, %s12049_s17  ;;  %v16014_v29 = vpop.permute.xlu1 %4412 }
 0x334   : > { %v16016_v61 = vpop.permute.xlu0 %4410  ;;  %4837 = vrot.lane.b32.xlu1 %v19888_v31, %s12049_s17 }
 0x336   : > { %4815 = vrot.lane.b32.xlu0 %v19889_v32, %s12048_s16  ;;  %v16022_v52 = vpop.permute.xlu1 %4416  ;;  %v19893_v32 = vld [vmem:[#allocation198_spill] sm:$0xff] }
 0x338   : > { %v16024_v18 = vpop.permute.xlu0 %4414  ;;  %4793 = vrot.lane.b32.xlu1 %v19890_v34, %s12047_s15  ;;  %v19894_v34 = vld [vmem:[#allocation194_spill] sm:$0xff] }
 0x33a   : > { %4839 = vrot.lane.b32.xlu0 %v19891_v63, %s12049_s17  ;;  %v16030_v11 = vpop.permute.xlu1 %4420 }
 0x33c   : > { %v16035_v31 = vpop.permute.xlu0 %4418  ;;  %4817 = vrot.lane.b32.xlu1 %v19893_v32, %s12048_s16  ;;  %v4453_v32 = vsel %vm765_vm5, %v15802_v22, %v19896_v42  ;;  %v19899_v22 = vld [vmem:[#allocation3_spill] sm:$0xff] }
 0x33e   : > { %4795 = vrot.lane.b32.xlu0 %v19894_v34, %s12047_s15  ;;  %v4425_v63 = vpop.permute.xlu1 %4424  ;;  %v11917_v34 = vld [vmem:[%s18767_s1 + $0x74] ss:$0 sps:$4 sm:$0x33]  }
 0x33f   : > { %v4533_v4 = vsel %vm840_vm8, %v4509_v7, %v4425_v63  ;;  %v4487_v7 = vsel %vm790_vm6, %v4453_v32, %v15940_v33  ;;  %v4489_v63 = vsel %vm790_vm6, %v4456_v23, %v15930_v21  ;;  %v19900_v32 = vld [vmem:[#allocation212_spill] sm:$0xff] }
 0x340   : > { %v16045_v36 = vpop.permute.xlu0 %4422  ;;  %4841 = vrot.lane.b32.xlu1 %v19895_v9, %s12049_s17  ;;  %11024 = vmatprep.mubr.msk.bf16.mxu1 %vm995_vm9, %v4533_v4  ;;  %v4511_v4 = vsel %vm815_vm7, %v4487_v7, %v4403_v25  ;;  %v4513_v16 = vsel %vm815_vm7, %v4489_v63, %v4405_v53  ;;  %v11995_v23 = vld [vmem:[%s12123_s14 + $0x10] sm:$0xff]   ;;  %v4991_v53 = vsel %vm1020_vm4, %v11917_v34, 0  ;;  %v19902_v7 = vld [vmem:[#allocation7_spill] sm:$0xff] }
 0x341   : > { %v19903_v63 = vld [vmem:[#allocation139_spill] sm:$0xff] }
 0x342   : > { %4819 = vrot.lane.b32.xlu0 %v19897_v13, %s12048_s16  ;;  %v4429_v44 = vpop.permute.xlu1 %4428 }
 0x343   : > { %v4537_v33 = vsel %vm840_vm8, %v4513_v16, %v4429_v44 }
 0x344   : > { %v4427_v9 = vpop.permute.xlu0 %4426  ;;  %5148 = vrot.lane.b32.xlu1 %v19899_v22, %s12052_s12 }
 0x345   : > { %v4535_v13 = vsel %vm840_vm8, %v4511_v4, %v4427_v9  ;;  %v19901_v9 = vld [vmem:[#allocation140_spill] sm:$0xff] }
 0x346   : > { %4843 = vrot.lane.b32.xlu0 %v19900_v32, %s12049_s17  ;;  %11025 = vmatmul.mubr.msk.bf16.vlgmr.msra.gmra.mrb[0].mxu1 %vm995_vm9, %v4535_v13  ;;  %v4433_v21 = vpop.permute.xlu1 %4432  ;;  %v4459_v44 = vsel %vm765_vm5, %v15829_v0, %v19901_v9  ;;  %s12053_s17 = smov 116   ;;  %v11918_v0 = vld [vmem:[%s18767_s1 + $0x84] sm:$0xff]  }
 0x347   : > { %11028 = vmatprep.mubr.msk.bf16.mxu1 %vm995_vm9, %v4537_v33  ;;  %11049 = vmatpush3.bf16.msra.mxu1 %v15853_v6  ;;  %v4462_v6 = vsel %vm765_vm5, %v15820_v28, %v19903_v63  ;;  %v4491_v4 = vsel %vm790_vm6, %v4459_v44, %v15959_v14 }
 0x348   : > { %v4431_v25 = vpop.permute.xlu0 %4430  ;;  %5150 = vrot.lane.b32.xlu1 %v11995_v23, %s12052_s12  ;;  %11793 = vmatprep.subr.msk.bf16.mxu1 %vm1020_vm4, %v11917_v34  ;;  %v4493_v16 = vsel %vm790_vm6, %v4462_v6, %v15954_v3  ;;  %v4515_v34 = vsel %vm815_vm7, %v4491_v4, %v4407_v60  ;;  %v19906_v6 = vld [vmem:[#allocation142_spill] sm:$0xff] }
 0x349   : > { %v4517_v28 = vsel %vm815_vm7, %v4493_v16, %v4409_v40  ;;  %v4539_v32 = vsel %vm840_vm8, %v4515_v34, %v4431_v25  ;;  %11076 = vmatprep.subr.bf16.mxu0 %v11918_v0  ;;  %v11919_v40 = vld [vmem:[%s18767_s1 + $0x8c] ss:$0 sps:$4 sm:$0x33]   ;;  %v19905_v25 = vld [vmem:[#allocation144_spill] sm:$0xff]  ;;  %v4468_v4 = vsel %vm765_vm5, %v15836_v54, %v19906_v6 }
 0x34a   : > { %5172 = vrot.lane.b32.xlu0 %v19902_v7, %s12051_s23  ;;  %v4437_v13 = vpop.permute.xlu1 %4436  ;;  %v4541_v14 = vsel %vm840_vm8, %v4517_v28, %v4433_v21  ;;  %11077 = vmatpush3.bf16.msra.mxu0 %v11918_v0  ;;  %v16113_v21 = vld [vmem:[%s18767_s1 + $0xc0] sm:$0xff]   ;;  %v5433_v44 = vsel %vm1020_vm4, %v11919_v40, 0  ;;  %v19907_v28 = vld [vmem:[#allocation32_spill] sm:$0xff] }
 0x34b   : > { %11051 = vmatpush3.bf16.msra.mxu1 %v4991_v53  ;;  %11794 = vmatprep.subr.msk.bf16.mxu0 %vm1020_vm4, %v11919_v40  ;;  %v11999_v6 = vld [vmem:[%s12123_s14 + $0x30] sm:$0xff]  }
 0x34c   : > { %v4435_v33 = vpop.permute.xlu0 %4434  ;;  %6904 = vrot.lane.b32.xlu1 %v19899_v22, %s12053_s17  ;;  %v19904_v22 = vld [vmem:[#allocation57_spill] sm:$0xff]  ;;  %11216 = vmatprep.subr.bf16.mxu1 %v16113_v21 }
 0x34e   : > { %5174 = vrot.lane.b32.xlu0 %v19757_v38, %s12051_s23  ;;  %11029 = vmatmul.mubr.msk.bf16.gmra.mrb[4].mxu1 %vm995_vm9, %v4539_v32  ;;  %v4441_v60 = vpop.permute.xlu1 %4440  ;;  %v4465_v32 = vsel %vm765_vm5, %v15846_v1, %v19905_v25  ;;  %v4497_v1 = vsel %vm790_vm6, %v4468_v4, %v15966_v26 }
 0x34f   : > { %11032 = vmatprep.mubr.msk.bf16.mxu1 %vm995_vm9, %v4541_v14  ;;  %v4495_v16 = vsel %vm790_vm6, %v4465_v32, %v15973_v2  ;;  %11079 = vmatpush3.bf16.msra.mxu0 %v5433_v44  ;;  %v4521_v0 = vsel %vm815_vm7, %v4497_v1, %v16014_v29 }
 0x350   : > { %v4439_v3 = vpop.permute.xlu0 %4438  ;;  %5360 = vrot.lane.b32.xlu1 %v19904_v22, %s12047_s15  ;;  %v4545_v2 = vsel %vm840_vm8, %v4521_v0, %v4437_v13  ;;  %v19915_v0 = vld [vmem:[#allocation147_spill] sm:$0xff] }
 0x352   : > { %6928 = vrot.lane.b32.xlu0 %v19902_v7, %s12052_s12  ;;  %v4445_v53 = vpop.permute.xlu1 %4444  ;;  %v4519_v7 = vsel %vm815_vm7, %v4495_v16, %v16016_v61 }
 0x353   : > { %v4543_v54 = vsel %vm840_vm8, %v4519_v7, %v4435_v33  ;;  %v19909_v33 = vld [vmem:[#allocation27_spill] sm:$0xff] }
 0x354   : > { %v4443_v34 = vpop.permute.xlu0 %4442  ;;  %6930 = vrot.lane.b32.xlu1 %v19757_v38, %s12052_s12  ;;  %v19908_v38 = vld [vmem:[#allocation146_spill] sm:$0xff] }
 0x355   : > { %v4471_v29 = vsel %vm765_vm5, %v15879_v39, %v19908_v38  ;;  %v19911_v39 = vld [vmem:[#allocation19_spill] sm:$0xff] }
 0x356   : > { %6906 = vrot.lane.b32.xlu0 %v11995_v23, %s12053_s17  ;;  %11033 = vmatmul.mubr.msk.bf16.gmra.mrb[8].mxu1 %vm995_vm9, %v4543_v54  ;;  %v16140_v26 = vpop.permute.xlu1 %4749  ;;  %v19910_v23 = vld [vmem:[#allocation145_spill] sm:$0xff]  ;;  %v4499_v40 = vsel %vm790_vm6, %v4471_v29, %v15986_v51  ;;  %v19912_v51 = vld [vmem:[#allocation62_spill] sm:$0xff]  ;;  %v4480_v54 = vsel %vm765_vm5, %v15886_v49, %v19915_v0 }
 0x357   : > { %11036 = vmatprep.mubr.msk.bf16.mxu1 %vm995_vm9, %v4545_v2  ;;  %v4474_v14 = vsel %vm765_vm5, %v15869_v17, %v19910_v23  ;;  %v4523_v44 = vsel %vm815_vm7, %v4499_v40, %v16024_v18  ;;  %v4505_v29 = vsel %vm790_vm6, %v4480_v54, %v15992_v24  ;;  %v11996_v40 = vld [vmem:[%s12123_s14 + $0x18] sm:$0xff]   ;;  %v19918_v54 = vld [vmem:[#allocation31_spill] sm:$0xff] }
 0x358   : > { %v4447_v61 = vpop.permute.xlu0 %4446  ;;  %5198 = vrot.lane.b32.xlu1 %v19907_v28, %s12047_s15  ;;  %v4501_v32 = vsel %vm790_vm6, %v4474_v14, %v15983_v47  ;;  %v4547_v1 = vsel %vm840_vm8, %v4523_v44, %v4439_v3 }
 0x359   : > { %v4525_v16 = vsel %vm815_vm7, %v4501_v32, %v16022_v52  ;;  %v19913_v52 = vld [vmem:[#allocation148_spill] sm:$0xff]  ;;  %v4529_v32 = vsel %vm815_vm7, %v4505_v29, %v16030_v11  ;;  %v19919_v29 = vld [vmem:[#allocation34_spill] sm:$0xff] }
 0x35a   : > { %7116 = vrot.lane.b32.xlu0 %v19909_v33, %s12051_s23  ;;  %v16150_v13 = vpop.permute.xlu1 %4753  ;;  %v4549_v17 = vsel %vm840_vm8, %v4525_v16, %v4441_v60  ;;  %v4477_v3 = vsel %vm765_vm5, %v15896_v43, %v19913_v52  ;;  %v19914_v60 = vld [vmem:[#allocation44_spill] sm:$0xff]  ;;  %v4553_v49 = vsel %vm840_vm8, %v4529_v32, %v4445_v53  ;;  %v19916_v16 = vld [vmem:[#allocation150_spill] sm:$0xff] }
 0x35b   : > { %v4503_v2 = vsel %vm790_vm6, %v4477_v3, %v15994_v30  ;;  %v11997_v30 = vld [vmem:[%s12123_s14 + $0x20] sm:$0xff]   ;;  %v4483_v11 = vsel %vm765_vm5, %v15923_v41, %v19916_v16  ;;  %v11998_v16 = vld [vmem:[%s12123_s14 + $0x28] sm:$0xff]  }
 0x35c   : > { %v16161_v4 = vpop.permute.xlu0 %4751  ;;  %6954 = vrot.lane.b32.xlu1 %v19911_v39, %s12051_s23  ;;  %v4527_v14 = vsel %vm815_vm7, %v4503_v2, %v16035_v31  ;;  %v19917_v53 = vld [vmem:[#allocation6_spill] sm:$0xff] }
 0x35d   : > { %v4551_v44 = vsel %vm840_vm8, %v4527_v14, %v4443_v34  ;;  %v19920_v14 = vld [vmem:[#allocation18_spill] sm:$0xff] }
 0x35e   : > { %5366 = vrot.lane.b32.xlu0 %v19912_v51, %s12048_s16  ;;  %11037 = vmatmul.mubr.msk.bf16.gmra.mrb[12].mxu1 %vm995_vm9, %v4547_v1  ;;  %v16172_v47 = vpop.permute.xlu1 %4757  ;;  %v4507_v1 = vsel %vm790_vm6, %v4483_v11, %v16000_v48  ;;  %v19923_v11 = vld [vmem:[#allocation46_spill] sm:$0xff] }
 0x35f   : > { %11040 = vmatprep.mubr.msk.bf16.mxu1 %vm995_vm9, %v4549_v17  ;;  %v4531_v17 = vsel %vm815_vm7, %v4507_v1, %v16045_v36  ;;  %v19924_v1 = vld [vmem:[#allocation175_spill] sm:$0xff] }
 0x360   : > { %v16175_v18 = vpop.permute.xlu0 %4755  ;;  %7122 = vrot.lane.b32.xlu1 %v19912_v51, %s12047_s15  ;;  %v4555_v3 = vsel %vm840_vm8, %v4531_v17, %v4447_v61  ;;  %v4847_v17 = vsel %vm765_vm5, %v16140_v26, %v19924_v1  ;;  %v19925_v26 = vld [vmem:[#allocation178_spill] sm:$0xff] }
 0x361   : > { %v4850_v1 = vsel %vm765_vm5, %v16161_v4, %v19925_v26 }
 0x362   : > { %5222 = vrot.lane.b32.xlu0 %v19914_v60, %s12048_s16  ;;  %v16184_v7 = vpop.permute.xlu1 %4761 }
 0x364   : > { %v16195_v43 = vpop.permute.xlu0 %4759  ;;  %5152 = vrot.lane.b32.xlu1 %v11996_v40, %s12052_s12 }
 0x366   : > { %6978 = vrot.lane.b32.xlu0 %v19914_v60, %s12047_s15  ;;  %11041 = vmatmul.mubr.msk.bf16.gmra.mrb[16].mxu1 %vm995_vm9, %v4551_v44  ;;  %v16206_v24 = vpop.permute.xlu1 %4765  ;;  %v19921_v44 = vld [vmem:[#allocation21_spill] sm:$0xff] }
 0x367   : > { %11044 = vmatprep.mubr.msk.bf16.mxu1 %vm995_vm9, %v4553_v49 }
 0x368   : > { %v16209_v31 = vpop.permute.xlu0 %4763  ;;  %5154 = vrot.lane.b32.xlu1 %v11997_v30, %s12052_s12 }
 0x36a   : > { %5176 = vrot.lane.b32.xlu0 %v19917_v53, %s12051_s23  ;;  %v16218_v34 = vpop.permute.xlu1 %4769 }
 0x36c   : > { %v16224_v51 = vpop.permute.xlu0 %4767  ;;  %6908 = vrot.lane.b32.xlu1 %v11996_v40, %s12053_s17 }
 0x36e   : > { %5178 = vrot.lane.b32.xlu0 %v19759_v35, %s12051_s23  ;;  %11045 = vmatmul.mubr.msk.bf16.gmra.mrb[20].mxu1 %vm995_vm9, %v4555_v3  ;;  %v4774_v41 = vpop.permute.xlu1 %4773 }
 0x36f   : > { %v4882_v0 = vsel %vm790_vm6, %v4847_v17, %v4774_v41 }
 0x370   : > { %v16231_v60 = vpop.permute.xlu0 %4771  ;;  %5200 = vrot.lane.b32.xlu1 %v19918_v54, %s12047_s15 }
 0x372   : > { %6932 = vrot.lane.b32.xlu0 %v19917_v53, %s12052_s12  ;;  %v4778_v36 = vpop.permute.xlu1 %4777 }
 0x374   : > { %v4776_v48 = vpop.permute.xlu0 %4775  ;;  %6934 = vrot.lane.b32.xlu1 %v19759_v35, %s12052_s12  ;;  %v19922_v35 = vld [vmem:[#allocation43_spill] sm:$0xff] }
 0x375   : > { %v4884_v41 = vsel %vm790_vm6, %v4850_v1, %v4776_v48  ;;  %v19927_v48 = vld [vmem:[#allocation33_spill] sm:$0xff]  ;;  %v19928_v1 = vld [vmem:[#allocation91_spill] sm:$0xff] }
 0x376   : > { %6910 = vrot.lane.b32.xlu0 %v11997_v30, %s12053_s17  ;;  %v4782_v61 = vpop.permute.xlu1 %4781 }
 0x378   : > { %v4780_v2 = vpop.permute.xlu0 %4779  ;;  %5202 = vrot.lane.b32.xlu1 %v19919_v29, %s12047_s15 }
 0x37a   : > { %6956 = vrot.lane.b32.xlu0 %v19920_v14, %s12051_s23  ;;  %v16244_v40 = vpop.permute.xlu1 %4785 }
 0x37c   : > { %v16246_v32 = vpop.permute.xlu0 %4783  ;;  %6958 = vrot.lane.b32.xlu1 %v19921_v44, %s12051_s23 }
 0x37e   : > { %5224 = vrot.lane.b32.xlu0 %v19922_v35, %s12048_s16  ;;  %v16252_v49 = vpop.permute.xlu1 %4789 }
 0x380   : > { %v16254_v30 = vpop.permute.xlu0 %4787  ;;  %6980 = vrot.lane.b32.xlu1 %v19922_v35, %s12047_s15 }
 0x382   : > { %5226 = vrot.lane.b32.xlu0 %v19923_v11, %s12048_s16  ;;  %v4798_v53 = vpop.permute.xlu1 %4797 }
 0x383   : > { %v4906_v52 = vsel %vm815_vm7, %v4882_v0, %v4798_v53 }
 0x384   : > { %v16263_v3 = vpop.permute.xlu0 %4791  ;;  %5156 = vrot.lane.b32.xlu1 %v11998_v16, %s12052_s12 }
 0x386   : > { %6982 = vrot.lane.b32.xlu0 %v19923_v11, %s12047_s15  ;;  %v4822_v35 = vpop.permute.xlu1 %4821  ;;  %v19926_v11 = vld [vmem:[#allocation177_spill] sm:$0xff] }
 0x387   : > { %v4930_v23 = vsel %vm840_vm8, %v4906_v52, %v4822_v35  ;;  %v4853_v52 = vsel %vm765_vm5, %v16150_v13, %v19926_v11 }
 0x388   : > { %v4800_v38 = vpop.permute.xlu0 %4799  ;;  %5158 = vrot.lane.b32.xlu1 %v11999_v6, %s12052_s12  ;;  %11052 = vmatprep.mubr.msk.bf16.mxu1 %vm995_vm9, %v4930_v23  ;;  %v11921_v23 = vld [vmem:[%s18767_s1 + $0xc8] ss:$0 sps:$4 sm:$0x33]   ;;  %v4886_v4 = vsel %vm790_vm6, %v4853_v52, %v4778_v36 }
 0x389   : > { %v4908_v53 = vsel %vm815_vm7, %v4884_v41, %v4800_v38  ;;  %v7189_v36 = vsel %vm1020_vm4, %v11921_v23, 0  ;;  %v19929_v41 = vld [vmem:[#allocation75_spill] sm:$0xff] }
 0x38a   : > { %5180 = vrot.lane.b32.xlu0 %v19760_v15, %s12051_s23  ;;  %v4802_v0 = vpop.permute.xlu1 %4801  ;;  %v4859_v52 = vsel %vm765_vm5, %v16172_v47, %v19929_v41  ;;  %v19974_v41 = vld [vmem:[#allocation63_spill] sm:$0xff] }
 0x38b   : > { %v4910_v26 = vsel %vm815_vm7, %v4886_v4, %v4802_v0  ;;  %v4856_v0 = vsel %vm765_vm5, %v16175_v18, %v19928_v1 }
 0x38c   : > { %v4824_v17 = vpop.permute.xlu0 %4823  ;;  %6912 = vrot.lane.b32.xlu1 %v11998_v16, %s12053_s17 }
 0x38d   : > { %v4932_v35 = vsel %vm840_vm8, %v4908_v53, %v4824_v17 }
 0x38e   : > { %5182 = vrot.lane.b32.xlu0 %v19765_v37, %s12051_s23  ;;  %11053 = vmatmul.mubr.msk.bf16.vlgmr.msra.gmra.mrb[0].mxu1 %vm995_vm9, %v4932_v35  ;;  %v4826_v13 = vpop.permute.xlu1 %4825  ;;  %v19930_v35 = vld [vmem:[#allocation36_spill] sm:$0xff] }
 0x38f   : > { %v4934_v38 = vsel %vm840_vm8, %v4910_v26, %v4826_v13  ;;  %11217 = vmatpush3.bf16.msra.mxu1 %v16113_v21  ;;  %v4888_v21 = vsel %vm790_vm6, %v4856_v0, %v4780_v2  ;;  %v19932_v13 = vld [vmem:[#allocation20_spill] sm:$0xff] }
 0x390   : > { %v4804_v16 = vpop.permute.xlu0 %4803  ;;  %5204 = vrot.lane.b32.xlu1 %v19927_v48, %s12047_s15  ;;  %11056 = vmatprep.mubr.msk.bf16.mxu1 %vm995_vm9, %v4934_v38 }
 0x391   : > { %11799 = vmatprep.subr.msk.bf16.mxu1 %vm1020_vm4, %v11921_v23  ;;  %v4912_v53 = vsel %vm815_vm7, %v4888_v21, %v4804_v16  ;;  %v4890_v23 = vsel %vm790_vm6, %v4859_v52, %v4782_v61  ;;  %v19933_v16 = vld [vmem:[#allocation109_spill] sm:$0xff]  ;;  %v19934_v21 = vld [vmem:[#allocation23_spill] sm:$0xff] }
 0x392   : > { %6936 = vrot.lane.b32.xlu0 %v19760_v15, %s12052_s12  ;;  %v4806_v26 = vpop.permute.xlu1 %4805 }
 0x393   : > { %11219 = vmatpush3.bf16.msra.mxu1 %v7189_v36  ;;  %v4914_v15 = vsel %vm815_vm7, %v4890_v23, %v4806_v26  ;;  %v4865_v36 = vsel %vm765_vm5, %v16184_v7, %v19933_v16 }
 0x394   : > { %v4828_v17 = vpop.permute.xlu0 %4827  ;;  %6938 = vrot.lane.b32.xlu1 %v19765_v37, %s12052_s12  ;;  %v19931_v37 = vld [vmem:[#allocation129_spill] sm:$0xff] }
 0x395   : > { %v4936_v18 = vsel %vm840_vm8, %v4912_v53, %v4828_v17  ;;  %v4862_v61 = vsel %vm765_vm5, %v16195_v43, %v19931_v37  ;;  %v4894_v43 = vsel %vm790_vm6, %v4865_v36, %v16244_v40  ;;  %v19936_v40 = vld [vmem:[#allocation180_spill] sm:$0xff]  ;;  %v12000_v36 = vld [vmem:[%s12123_s14 + $0x38] sm:$0xff]  }
 0x396   : > { %6914 = vrot.lane.b32.xlu0 %v11999_v6, %s12053_s17  ;;  %11057 = vmatmul.mubr.msk.bf16.gmra.mrb[4].mxu1 %vm995_vm9, %v4936_v18  ;;  %v4830_v2 = vpop.permute.xlu1 %4829  ;;  %v4892_v6 = vsel %vm790_vm6, %v4862_v61, %v16246_v32  ;;  %v19935_v32 = vld [vmem:[#allocation45_spill] sm:$0xff]  ;;  %v4868_v18 = vsel %vm765_vm5, %v16209_v31, %v19936_v40 }
 0x397   : > { %v4938_v4 = vsel %vm840_vm8, %v4914_v15, %v4830_v2  ;;  %v19937_v15 = vld [vmem:[#allocation48_spill] sm:$0xff] }
 0x398   : > { %v4808_v47 = vpop.permute.xlu0 %4807  ;;  %5206 = vrot.lane.b32.xlu1 %v19930_v35, %s12047_s15  ;;  %11060 = vmatprep.mubr.msk.bf16.mxu1 %vm995_vm9, %v4938_v4  ;;  %v4896_v4 = vsel %vm790_vm6, %v4868_v18, %v16254_v30 }
 0x399   : > { %v4916_v0 = vsel %vm815_vm7, %v4892_v6, %v4808_v47  ;;  %v19938_v47 = vld [vmem:[#allocation179_spill] sm:$0xff] }
 0x39a   : > { %6960 = vrot.lane.b32.xlu0 %v19932_v13, %s12051_s23  ;;  %v4810_v38 = vpop.permute.xlu1 %4809  ;;  %v4871_v61 = vsel %vm765_vm5, %v16206_v24, %v19938_v47 }
 0x39b   : > { %v4918_v53 = vsel %vm815_vm7, %v4894_v43, %v4810_v38  ;;  %v4898_v31 = vsel %vm790_vm6, %v4871_v61, %v16252_v49 }
 0x39c   : > { %v4832_v26 = vpop.permute.xlu0 %4831  ;;  %6962 = vrot.lane.b32.xlu1 %v19934_v21, %s12051_s23 }
 0x39d   : > { %v4940_v52 = vsel %vm840_vm8, %v4916_v0, %v4832_v26 }
 0x39e   : > { %5228 = vrot.lane.b32.xlu0 %v19935_v32, %s12048_s16  ;;  %11061 = vmatmul.mubr.msk.bf16.gmra.mrb[8].mxu1 %vm995_vm9, %v4940_v52  ;;  %v4834_v7 = vpop.permute.xlu1 %4833  ;;  %v12001_v52 = vld [vmem:[%s12123_s14 + $0x40] sm:$0xff]  }
 0x39f   : > { %v4942_v17 = vsel %vm840_vm8, %v4918_v53, %v4834_v7  ;;  %v19939_v53 = vld [vmem:[#allocation182_spill] sm:$0xff] }
 0x3a0   : > { %v4812_v23 = vpop.permute.xlu0 %4811  ;;  %6984 = vrot.lane.b32.xlu1 %v19935_v32, %s12047_s15  ;;  %11064 = vmatprep.mubr.msk.bf16.mxu1 %vm995_vm9, %v4942_v17  ;;  %v4874_v49 = vsel %vm765_vm5, %v16224_v51, %v19939_v53 }
 0x3a1   : > { %v4920_v38 = vsel %vm815_vm7, %v4896_v4, %v4812_v23  ;;  %v4900_v7 = vsel %vm790_vm6, %v4874_v49, %v16263_v3  ;;  %v19941_v3 = vld [vmem:[#allocation35_spill] sm:$0xff]  ;;  %v19944_v49 = vld [vmem:[#allocation22_spill] sm:$0xff] }
 0x3a2   : > { %5230 = vrot.lane.b32.xlu0 %v19937_v15, %s12048_s16  ;;  %v4814_v2 = vpop.permute.xlu1 %4813 }
 0x3a3   : > { %v4922_v26 = vsel %vm815_vm7, %v4898_v31, %v4814_v2 }
 0x3a4   : > { %v4836_v6 = vpop.permute.xlu0 %4835  ;;  %5160 = vrot.lane.b32.xlu1 %v12000_v36, %s12052_s12 }
 0x3a5   : > { %v4944_v0 = vsel %vm840_vm8, %v4920_v38, %v4836_v6 }
 0x3a6   : > { %6986 = vrot.lane.b32.xlu0 %v19937_v15, %s12047_s15  ;;  %11065 = vmatmul.mubr.msk.bf16.gmra.mrb[12].mxu1 %vm995_vm9, %v4944_v0  ;;  %v4838_v30 = vpop.permute.xlu1 %4837  ;;  %v19940_v15 = vld [vmem:[#allocation181_spill] sm:$0xff] }
 0x3a7   : > { %v4946_v24 = vsel %vm840_vm8, %v4922_v26, %v4838_v30  ;;  %v4877_v2 = vsel %vm765_vm5, %v16218_v34, %v19940_v15  ;;  %v19942_v34 = vld [vmem:[#allocation184_spill] sm:$0xff] }
 0x3a8   : > { %v4816_v43 = vpop.permute.xlu0 %4815  ;;  %5162 = vrot.lane.b32.xlu1 %v12001_v52, %s12052_s12  ;;  %11068 = vmatprep.mubr.msk.bf16.mxu1 %vm995_vm9, %v4946_v24  ;;  %v4880_v0 = vsel %vm765_vm5, %v16231_v60, %v19942_v34 }
 0x3a9   : > { %v4924_v17 = vsel %vm815_vm7, %v4900_v7, %v4816_v43  ;;  %v19943_v43 = vld [vmem:[#allocation38_spill] sm:$0xff]  ;;  %v19946_v7 = vld [vmem:[#allocation47_spill] sm:$0xff] }
 0x3aa   : > { %5184 = vrot.lane.b32.xlu0 %v19766_v58, %s12051_s23  ;;  %v4794_v32 = vpop.permute.xlu1 %4793 }
 0x3ab   : > { %v4902_v61 = vsel %vm790_vm6, %v4877_v2, %v4794_v32  ;;  %v19945_v32 = vld [vmem:[#allocation25_spill] sm:$0xff] }
 0x3ac   : > { %v4840_v23 = vpop.permute.xlu0 %4839  ;;  %6916 = vrot.lane.b32.xlu1 %v12000_v36, %s12053_s17 }
 0x3ad   : > { %v4948_v18 = vsel %vm840_vm8, %v4924_v17, %v4840_v23 }
 0x3ae   : > { %5186 = vrot.lane.b32.xlu0 %v19771_v57, %s12051_s23  ;;  %11069 = vmatmul.mubr.msk.bf16.gmra.mrb[16].mxu1 %vm995_vm9, %v4948_v18  ;;  %v4818_v51 = vpop.permute.xlu1 %4817  ;;  %v19947_v18 = vld [vmem:[#allocation50_spill] sm:$0xff] }
 0x3af   : > { %v4926_v38 = vsel %vm815_vm7, %v4902_v61, %v4818_v51 }
 0x3b0   : > { %v4796_v4 = vpop.permute.xlu0 %4795  ;;  %5208 = vrot.lane.b32.xlu1 %v19941_v3, %s12047_s15 }
 0x3b1   : > { %v4904_v30 = vsel %vm790_vm6, %v4880_v0, %v4796_v4  ;;  %v12002_v4 = vld [vmem:[%s12123_s14 + $0x48] sm:$0xff]  }
 0x3b2   : > { %6940 = vrot.lane.b32.xlu0 %v19766_v58, %s12052_s12  ;;  %v4842_v6 = vpop.permute.xlu1 %4841 }
 0x3b3   : > { %v4950_v36 = vsel %vm840_vm8, %v4926_v38, %v4842_v6  ;;  %v12003_v6 = vld [vmem:[%s12123_s14 + $0x50] sm:$0xff]  }
 0x3b4   : > { %v4820_v31 = vpop.permute.xlu0 %4819  ;;  %6942 = vrot.lane.b32.xlu1 %v19771_v57, %s12052_s12  ;;  %11072 = vmatprep.mubr.msk.bf16.mxu1 %vm995_vm9, %v4950_v36 }
 0x3b5   : > { %v4928_v58 = vsel %vm815_vm7, %v4904_v30, %v4820_v31 }
 0x3b6   : > { %6918 = vrot.lane.b32.xlu0 %v12001_v52, %s12053_s17  ;;  %v5149_v26 = vpop.permute.xlu1 %5148 }
 0x3b8   : > { %v4844_v24 = vpop.permute.xlu0 %4843  ;;  %5210 = vrot.lane.b32.xlu1 %v19943_v43, %s12047_s15 }
 0x3b9   : > { %v4952_v57 = vsel %vm840_vm8, %v4928_v58, %v4844_v24 }
 0x3ba   : > { %6964 = vrot.lane.b32.xlu0 %v19944_v49, %s12051_s23  ;;  %11073 = vmatmul.mubr.msk.bf16.gmra.mrb[20].mxu1 %vm995_vm9, %v4952_v57  ;;  %v5151_v60 = vpop.permute.xlu1 %5150 }
 0x3bc   : > { %v5173_v52 = vpop.permute.xlu0 %5172  ;;  %6966 = vrot.lane.b32.xlu1 %v19945_v32, %s12051_s23 }
 0x3bd   : > { %v16426_v31 = vsel %vm765_vm5, %v5149_v26, %v5173_v52 }
 0x3be   : > { %5232 = vrot.lane.b32.xlu0 %v19946_v7, %s12048_s16  ;;  %v6905_v17 = vpop.permute.xlu1 %6904  ;;  %v5378_v24 = vsel %vm790_vm6, %v16426_v31, %v19909_v33 }
 0x3c0   : > { %v5175_v23 = vpop.permute.xlu0 %5174  ;;  %6988 = vrot.lane.b32.xlu1 %v19946_v7, %s12047_s15 }
 0x3c1   : > { %v5250_v26 = vsel %vm765_vm5, %v5151_v60, %v5175_v23 }
 0x3c2   : > { %5234 = vrot.lane.b32.xlu0 %v19947_v18, %s12048_s16  ;;  %v5361_v51 = vpop.permute.xlu1 %5360  ;;  %v5283_v60 = vsel %vm790_vm6, %v5250_v26, %v19911_v39 }
 0x3c3   : > { %v5384_v52 = vsel %vm815_vm7, %v5378_v24, %v5361_v51 }
 0x3c4   : > { %v6929_v2 = vpop.permute.xlu0 %6928  ;;  %5164 = vrot.lane.b32.xlu1 %v12002_v4, %s12052_s12 }
 0x3c5   : > { %v16430_v30 = vsel %vm765_vm5, %v6905_v17, %v6929_v2 }
 0x3c6   : > { %6990 = vrot.lane.b32.xlu0 %v19947_v18, %s12047_s15  ;;  %v6931_v61 = vpop.permute.xlu1 %6930  ;;  %v19948_v18 = vld [vmem:[#allocation37_spill] sm:$0xff] }
 0x3c8   : > { %v6907_v38 = vpop.permute.xlu0 %6906  ;;  %5166 = vrot.lane.b32.xlu1 %v12003_v6, %s12052_s12 }
 0x3c9   : > { %v7006_v51 = vsel %vm765_vm5, %v6907_v38, %v6931_v61 }
 0x3ca   : > { %5188 = vrot.lane.b32.xlu0 %v19772_v50, %s12051_s23  ;;  %v5199_v36 = vpop.permute.xlu1 %5198 }
 0x3cc   : > { %v7117_v0 = vpop.permute.xlu0 %7116  ;;  %6920 = vrot.lane.b32.xlu1 %v12002_v4, %s12053_s17  ;;  %v5307_v4 = vsel %vm815_vm7, %v5283_v60, %v5199_v36  ;;  %v19950_v36 = vld [vmem:[#allocation24_spill] sm:$0xff] }
 0x3cd   : > { %v7134_v57 = vsel %vm790_vm6, %v16430_v30, %v7117_v0 }
 0x3ce   : > { %5190 = vrot.lane.b32.xlu0 %v19777_v62, %s12051_s23  ;;  %v6955_v58 = vpop.permute.xlu1 %6954  ;;  %v7140_v33 = vsel %vm815_vm7, %v7134_v57, %v19904_v22  ;;  %v19951_v57 = vld [vmem:[#allocation28_spill] sm:$0xff] }
 0x3d0   : > { %v5367_v7 = vpop.permute.xlu0 %5366  ;;  %5212 = vrot.lane.b32.xlu1 %v19948_v18, %s12047_s15 }
 0x3d1   : > { %v5390_v17 = vsel %vm840_vm8, %v5384_v52, %v5367_v7  ;;  %v19953_v7 = vld [vmem:[#allocation52_spill] sm:$0xff] }
 0x3d2   : > { %6944 = vrot.lane.b32.xlu0 %v19772_v50, %s12052_s12  ;;  %11080 = vmatprep.mubr.msk.bf16.mxu0 %vm995_vm9, %v5390_v17  ;;  %v7123_v2 = vpop.permute.xlu1 %7122  ;;  %v7039_v50 = vsel %vm790_vm6, %v7006_v51, %v6955_v58  ;;  %v12005_v51 = vld [vmem:[%s12123_s14 + $0x60] sm:$0xff]  }
 0x3d3   : > { %v7146_v23 = vsel %vm840_vm8, %v7140_v33, %v7123_v2  ;;  %v7063_v39 = vsel %vm815_vm7, %v7039_v50, %v19907_v28  ;;  %v19952_v28 = vld [vmem:[#allocation49_spill] sm:$0xff] }
 0x3d4   : > { %v5223_v0 = vpop.permute.xlu0 %5222  ;;  %6946 = vrot.lane.b32.xlu1 %v19777_v62, %s12052_s12  ;;  %11220 = vmatprep.mubr.msk.bf16.mxu1 %vm995_vm9, %v7146_v23  ;;  %v19949_v62 = vld [vmem:[#allocation40_spill] sm:$0xff]  ;;  %v12004_v33 = vld [vmem:[%s12123_s14 + $0x58] sm:$0xff]  }
 0x3d5   : > { %v16459_v24 = vsel %vm840_vm8, %v5307_v4, %v5223_v0  ;;  %v19954_v4 = vld [vmem:[#allocation54_spill] sm:$0xff] }
 0x3d6   : > { %6922 = vrot.lane.b32.xlu0 %v12003_v6, %s12053_s17  ;;  %11081 = vmatmul.mubr.msk.bf16.vlgmr.msra.gmra.mrb[24].mxu0 %vm995_vm9, %v16459_v24  ;;  %v5153_v22 = vpop.permute.xlu1 %5152 }
 0x3d8   : > { %v6979_v61 = vpop.permute.xlu0 %6978  ;;  %5214 = vrot.lane.b32.xlu1 %v19949_v62, %s12047_s15 }
 0x3d9   : > { %v16469_v38 = vsel %vm840_vm8, %v7063_v39, %v6979_v61 }
 0x3da   : > { %6968 = vrot.lane.b32.xlu0 %v19950_v36, %s12051_s23  ;;  %11221 = vmatmul.mubr.msk.bf16.vlgmr.msra.gmra.mrb[24].mxu1 %vm995_vm9, %v16469_v38  ;;  %v5155_v6 = vpop.permute.xlu1 %5154 }
 0x3dc   : > { %v5177_v58 = vpop.permute.xlu0 %5176  ;;  %6970 = vrot.lane.b32.xlu1 %v19951_v57, %s12051_s23 }
 0x3dd   : > { %v5253_v50 = vsel %vm765_vm5, %v5153_v22, %v5177_v58  ;;  %v19956_v22 = vld [vmem:[#allocation60_spill] sm:$0xff] }
 0x3de   : > { %5236 = vrot.lane.b32.xlu0 %v19952_v28, %s12048_s16  ;;  %v6909_v26 = vpop.permute.xlu1 %6908  ;;  %v5285_v34 = vsel %vm790_vm6, %v5253_v50, %v19920_v14 }
 0x3e0   : > { %v5179_v52 = vpop.permute.xlu0 %5178  ;;  %6992 = vrot.lane.b32.xlu1 %v19952_v28, %s12047_s15  ;;  %v19955_v28 = vld [vmem:[#allocation53_spill] sm:$0xff] }
 0x3e1   : > { %v5256_v53 = vsel %vm765_vm5, %v5155_v6, %v5179_v52 }
 0x3e2   : > { %5238 = vrot.lane.b32.xlu0 %v19953_v7, %s12048_s16  ;;  %v5201_v17 = vpop.permute.xlu1 %5200 }
 0x3e3   : > { %v5309_v47 = vsel %vm815_vm7, %v5285_v34, %v5201_v17  ;;  %v5287_v34 = vsel %vm790_vm6, %v5256_v53, %v19921_v44 }
 0x3e4   : > { %v6933_v2 = vpop.permute.xlu0 %6932  ;;  %5168 = vrot.lane.b32.xlu1 %v12004_v33, %s12052_s12 }
 0x3e5   : > { %v7009_v61 = vsel %vm765_vm5, %v6909_v26, %v6933_v2  ;;  %v19957_v2 = vld [vmem:[#allocation59_spill] sm:$0xff] }
 0x3e6   : > { %6994 = vrot.lane.b32.xlu0 %v19953_v7, %s12047_s15  ;;  %v6935_v60 = vpop.permute.xlu1 %6934 }
 0x3e8   : > { %v6911_v23 = vpop.permute.xlu0 %6910  ;;  %5354 = vrot.lane.b32.xlu1 %v12005_v51, %s12052_s12 }
 0x3e9   : > { %v7012_v52 = vsel %vm765_vm5, %v6911_v23, %v6935_v60  ;;  %v19958_v60 = vld [vmem:[#allocation55_spill] sm:$0xff] }
 0x3ea   : > { %5356 = vrot.lane.b32.xlu0 %v19954_v4, %s12051_s23  ;;  %v5203_v0 = vpop.permute.xlu1 %5202 }
 0x3ec   : > { %v6957_v39 = vpop.permute.xlu0 %6956  ;;  %6924 = vrot.lane.b32.xlu1 %v12004_v33, %s12053_s17 }
 0x3ed   : > { %v7041_v15 = vsel %vm790_vm6, %v7009_v61, %v6957_v39  ;;  %v19961_v39 = vld [vmem:[#allocation64_spill] sm:$0xff] }
 0x3ee   : > { %5358 = vrot.lane.b32.xlu0 %v19955_v28, %s12051_s23  ;;  %v6959_v7 = vpop.permute.xlu1 %6958  ;;  %v7065_v26 = vsel %vm815_vm7, %v7041_v15, %v19918_v54 }
 0x3ef   : > { %v7043_v17 = vsel %vm790_vm6, %v7012_v52, %v6959_v7  ;;  %v19962_v7 = vld [vmem:[#allocation2_spill] sm:$0xff] }
 0x3f0   : > { %v5225_v40 = vpop.permute.xlu0 %5224  ;;  %5362 = vrot.lane.b32.xlu1 %v19956_v22, %s12047_s15  ;;  %v7067_v53 = vsel %vm815_vm7, %v7043_v17, %v19919_v29  ;;  %v19960_v29 = vld [vmem:[#allocation61_spill] sm:$0xff]  ;;  %v11923_v52 = vld [vmem:[%s18767_s1 + $0x80] ss:$0 sps:$4 sm:$0x33]  }
 0x3f1   : > { %v16504_v58 = vsel %vm840_vm8, %v5309_v47, %v5225_v40  ;;  %v5311_v40 = vsel %vm815_vm7, %v5287_v34, %v5203_v0 }
 0x3f2   : > { %7112 = vrot.lane.b32.xlu0 %v19954_v4, %s12052_s12  ;;  %11084 = vmatprep.mubr.msk.bf16.mxu0 %vm995_vm9, %v16504_v58  ;;  %v6981_v14 = vpop.permute.xlu1 %6980  ;;  %v19959_v4 = vld [vmem:[#allocation58_spill] sm:$0xff] }
 0x3f3   : > { %v16515_v6 = vsel %vm840_vm8, %v7065_v26, %v6981_v14  ;;  %v11922_v14 = vld [vmem:[%s18767_s1 + $0x78] sm:$0xff]  }
 0x3f4   : > { %v5227_v47 = vpop.permute.xlu0 %5226  ;;  %7114 = vrot.lane.b32.xlu1 %v19955_v28, %s12052_s12  ;;  %11224 = vmatprep.mubr.msk.bf16.mxu1 %vm995_vm9, %v16515_v6 }
 0x3f5   : > { %v16525_v54 = vsel %vm840_vm8, %v5311_v40, %v5227_v47  ;;  %11104 = vmatprep.subr.bf16.mxu0 %v11922_v14  ;;  %v11924_v40 = vld [vmem:[%s18767_s1 + $0xb4] sm:$0xff]  }
 0x3f6   : > { %7110 = vrot.lane.b32.xlu0 %v12005_v51, %s12053_s17  ;;  %11085 = vmatmul.mubr.msk.bf16.gmra.mrb[28].mxu0 %vm995_vm9, %v16525_v54  ;;  %v5157_v44 = vpop.permute.xlu1 %5156  ;;  %v19963_v47 = vld [vmem:[#allocation5_spill] sm:$0xff] }
 0x3f7   : > { %11105 = vmatpush3.bf16.msra.mxu0 %v11922_v14  ;;  %11244 = vmatprep.subr.bf16.mxu1 %v11924_v40 }
 0x3f8   : > { %v6983_v15 = vpop.permute.xlu0 %6982  ;;  %5364 = vrot.lane.b32.xlu1 %v19957_v2, %s12047_s15  ;;  %11795 = vmatprep.subr.msk.bf16.mxu0 %vm1020_vm4, %v11923_v52 }
 0x3f9   : > { %v16535_v33 = vsel %vm840_vm8, %v7067_v53, %v6983_v15  ;;  %v5580_v53 = vsel %vm1020_vm4, %v11923_v52, 0  ;;  %11245 = vmatpush3.bf16.msra.mxu1 %v11924_v40 }
 0x3fa   : > { %7118 = vrot.lane.b32.xlu0 %v19958_v60, %s12051_s23  ;;  %11225 = vmatmul.mubr.msk.bf16.gmra.mrb[28].mxu1 %vm995_vm9, %v16535_v33  ;;  %v5159_v23 = vpop.permute.xlu1 %5158 }
 0x3fb   : > { %11107 = vmatpush3.bf16.msra.mxu0 %v5580_v53 }
 0x3fc   : > { %v5181_v51 = vpop.permute.xlu0 %5180  ;;  %7120 = vrot.lane.b32.xlu1 %v19959_v4, %s12051_s23 }
 0x3fd   : > { %v5259_v15 = vsel %vm765_vm5, %v5157_v44, %v5181_v51 }
 0x3fe   : > { %5368 = vrot.lane.b32.xlu0 %v19960_v29, %s12048_s16  ;;  %v6913_v0 = vpop.permute.xlu1 %6912  ;;  %v5289_v44 = vsel %vm790_vm6, %v5259_v15, %v19932_v13 }
 0x400   : > { %v5183_v50 = vpop.permute.xlu0 %5182  ;;  %7124 = vrot.lane.b32.xlu1 %v19960_v29, %s12047_s15 }
 0x401   : > { %v5262_v40 = vsel %vm765_vm5, %v5159_v23, %v5183_v50 }
 0x402   : > { %5370 = vrot.lane.b32.xlu0 %v19961_v39, %s12048_s16  ;;  %v5205_v61 = vpop.permute.xlu1 %5204  ;;  %v5291_v50 = vsel %vm790_vm6, %v5262_v40, %v19934_v21  ;;  %v19968_v21 = vld [vmem:[#allocation42_spill] sm:$0xff] }
 0x403   : > { %v5313_v53 = vsel %vm815_vm7, %v5289_v44, %v5205_v61 }
 0x404   : > { %v6937_v28 = vpop.permute.xlu0 %6936  ;;  %5146 = vrot.lane.b32.xlu1 %v19962_v7, %s12052_s12 }
 0x405   : > { %v7015_v14 = vsel %vm765_vm5, %v6913_v0, %v6937_v28  ;;  %v19965_v0 = vld [vmem:[#allocation29_spill] sm:$0xff] }
 0x406   : > { %7126 = vrot.lane.b32.xlu0 %v19961_v39, %s12047_s15  ;;  %v6939_v26 = vpop.permute.xlu1 %6938  ;;  %v19964_v39 = vld [vmem:[#allocation30_spill] sm:$0xff] }
 0x408   : > { %v6915_v34 = vpop.permute.xlu0 %6914  ;;  %6902 = vrot.lane.b32.xlu1 %v19962_v7, %s12053_s17  ;;  %v11925_v7 = vld [vmem:[%s18767_s1 + $0xbc] ss:$0 sps:$4 sm:$0x33]  }
 0x409   : > { %11800 = vmatprep.subr.msk.bf16.mxu1 %vm1020_vm4, %v11925_v7  ;;  %v7336_v52 = vsel %vm1020_vm4, %v11925_v7, 0  ;;  %v7018_v15 = vsel %vm765_vm5, %v6915_v34, %v6939_v26  ;;  %v19967_v7 = vld [vmem:[#allocation16_spill] sm:$0xff] }
 0x40a   : > { %5170 = vrot.lane.b32.xlu0 %v19963_v47, %s12051_s23  ;;  %v5207_v17 = vpop.permute.xlu1 %5206  ;;  %11247 = vmatpush3.bf16.msra.mxu1 %v7336_v52 }
 0x40c   : > { %v6961_v29 = vpop.permute.xlu0 %6960  ;;  %5194 = vrot.lane.b32.xlu1 %v19964_v39, %s12047_s15 }
 0x40d   : > { %v7045_v51 = vsel %vm790_vm6, %v7015_v14, %v6961_v29 }
 0x40e   : > { %6926 = vrot.lane.b32.xlu0 %v19963_v47, %s12052_s12  ;;  %v6963_v16 = vpop.permute.xlu1 %6962  ;;  %v19966_v47 = vld [vmem:[#allocation17_spill] sm:$0xff]  ;;  %v7069_v23 = vsel %vm815_vm7, %v7045_v51, %v19927_v48 }
 0x40f   : > { %v7047_v14 = vsel %vm790_vm6, %v7018_v15, %v6963_v16  ;;  %v19969_v16 = vld [vmem:[#allocation41_spill] sm:$0xff]  ;;  %v19972_v15 = vld [vmem:[#allocation26_spill] sm:$0xff] }
 0x410   : > { %v5229_v37 = vpop.permute.xlu0 %5228  ;;  %5196 = vrot.lane.b32.xlu1 %v19965_v0, %s12047_s15  ;;  %v7071_v34 = vsel %vm815_vm7, %v7047_v14, %v19930_v35  ;;  %v19973_v14 = vld [vmem:[#allocation56_spill] sm:$0xff] }
 0x411   : > { %v16587_v28 = vsel %vm840_vm8, %v5313_v53, %v5229_v37  ;;  %v5315_v37 = vsel %vm815_vm7, %v5291_v50, %v5207_v17  ;;  %v19970_v53 = vld [vmem:[#allocation39_spill] sm:$0xff] }
 0x412   : > { %6950 = vrot.lane.b32.xlu0 %v19966_v47, %s12051_s23  ;;  %11088 = vmatprep.mubr.msk.bf16.mxu0 %vm995_vm9, %v16587_v28  ;;  %v6985_v13 = vpop.permute.xlu1 %6984  ;;  %v19971_v50 = vld [vmem:[#allocation51_spill] sm:$0xff] }
 0x413   : > { %v16598_v61 = vsel %vm840_vm8, %v7069_v23, %v6985_v13 }
 0x414   : > { %v5231_v29 = vpop.permute.xlu0 %5230  ;;  %6952 = vrot.lane.b32.xlu1 %v19967_v7, %s12051_s23  ;;  %11228 = vmatprep.mubr.msk.bf16.mxu1 %vm995_vm9, %v16598_v61 }
 0x415   : > { %v16608_v48 = vsel %vm840_vm8, %v5315_v37, %v5231_v29 }
 0x416   : > { %5218 = vrot.lane.b32.xlu0 %v19968_v21, %s12048_s16  ;;  %11089 = vmatmul.mubr.msk.bf16.gmra.mrb[32].mxu0 %vm995_vm9, %v16608_v48  ;;  %v5161_v26 = vpop.permute.xlu1 %5160 }
 0x418   : > { %v6987_v17 = vpop.permute.xlu0 %6986  ;;  %6974 = vrot.lane.b32.xlu1 %v19968_v21, %s12047_s15 }
 0x419   : > { %v16619_v52 = vsel %vm840_vm8, %v7071_v34, %v6987_v17  ;;  %v12006_v17 = vld [vmem:[%s12123_s14 + $0x18] sm:$0xff]  }
 0x41a   : > { %5220 = vrot.lane.b32.xlu0 %v19969_v16, %s12048_s16  ;;  %11229 = vmatmul.mubr.msk.bf16.gmra.mrb[32].mxu1 %vm995_vm9, %v16619_v52  ;;  %v5163_v44 = vpop.permute.xlu1 %5162 }
 0x41c   : > { %v5185_v51 = vpop.permute.xlu0 %5184  ;;  %5192 = vrot.lane.b32.xlu1 %v19816_v20, %s12051_s23 }
 0x41d   : > { %v5265_v34 = vsel %vm765_vm5, %v5161_v26, %v5185_v51 }
 0x41e   : > { %6976 = vrot.lane.b32.xlu0 %v19969_v16, %s12047_s15  ;;  %v6917_v35 = vpop.permute.xlu1 %6916  ;;  %v5293_v11 = vsel %vm790_vm6, %v5265_v34, %v19944_v49  ;;  %v19977_v34 = vld [vmem:[#allocation78_spill] sm:$0xff] }
 0x420   : > { %v5187_v40 = vpop.permute.xlu0 %5186  ;;  %5216 = vrot.lane.b32.xlu1 %v19970_v53, %s12047_s15 }
 0x422   : > { %6948 = vrot.lane.b32.xlu0 %v19816_v20, %s12052_s12  ;;  %v5209_v13 = vpop.permute.xlu1 %5208 }
 0x423   : > { %v5317_v63 = vsel %vm815_vm7, %v5293_v11, %v5209_v13 }
 0x424   : > { %v6941_v23 = vpop.permute.xlu0 %6940  ;;  %5240 = vrot.lane.b32.xlu1 %v19971_v50, %s12048_s16 }
 0x425   : > { %v7021_v16 = vsel %vm765_vm5, %v6917_v35, %v6941_v23  ;;  %v19975_v23 = vld [vmem:[#allocation94_spill] sm:$0xff] }
 0x426   : > { %6972 = vrot.lane.b32.xlu0 %v19972_v15, %s12051_s23  ;;  %v6943_v37 = vpop.permute.xlu1 %6942 }
 0x428   : > { %v6919_v29 = vpop.permute.xlu0 %6918  ;;  %5711 = vrot.lane.b32.xlu1 %v19973_v14, %s12052_s12 }
 0x42a   : > { %6996 = vrot.lane.b32.xlu0 %v19971_v50, %s12047_s15  ;;  %v5211_v21 = vpop.permute.xlu1 %5210  ;;  %v5268_v50 = vsel %vm765_vm5, %v5163_v44, %v5187_v40  ;;  %v7024_v40 = vsel %vm765_vm5, %v6919_v29, %v6943_v37 }
 0x42b   : > { %v5295_v11 = vsel %vm790_vm6, %v5268_v50, %v19945_v32  ;;  %v19978_v50 = vld [vmem:[#allocation83_spill] sm:$0xff] }
 0x42c   : > { %v6965_v20 = vpop.permute.xlu0 %6964  ;;  %5713 = vrot.lane.b32.xlu1 %v12006_v17, %s12052_s12 }
 0x42d   : > { %v7049_v25 = vsel %vm790_vm6, %v7021_v16, %v6965_v20 }
 0x42e   : > { %5735 = vrot.lane.b32.xlu0 %v19974_v41, %s12051_s23  ;;  %v6967_v1 = vpop.permute.xlu1 %6966  ;;  %v7073_v35 = vsel %vm815_vm7, %v7049_v25, %v19941_v3  ;;  %v16677_v25 = vld [vmem:[%s18767_s1 + $0x90] sm:$0xff]  }
 0x42f   : > { %v7051_v3 = vsel %vm790_vm6, %v7024_v40, %v6967_v1  ;;  %11132 = vmatprep.subr.bf16.mxu0 %v16677_v25  ;;  %v16695_v1 = vld [vmem:[%s18767_s1 + $0xcc] sm:$0xff]  }
 0x430   : > { %v5233_v26 = vpop.permute.xlu0 %5232  ;;  %7467 = vrot.lane.b32.xlu1 %v19973_v14, %s12053_s17  ;;  %v7075_v29 = vsel %vm815_vm7, %v7051_v3, %v19943_v43  ;;  %11272 = vmatprep.subr.bf16.mxu1 %v16695_v1 }
 0x431   : > { %v16655_v51 = vsel %vm840_vm8, %v5317_v63, %v5233_v26  ;;  %v5319_v63 = vsel %vm815_vm7, %v5295_v11, %v5211_v21 }
 0x432   : > { %5737 = vrot.lane.b32.xlu0 %v19829_v55, %s12051_s23  ;;  %11092 = vmatprep.mubr.msk.bf16.mxu0 %vm995_vm9, %v16655_v51  ;;  %v6989_v49 = vpop.permute.xlu1 %6988 }
 0x433   : > { %v16666_v44 = vsel %vm840_vm8, %v7073_v35, %v6989_v49  ;;  %v19980_v35 = vld [vmem:[#allocation118_spill] sm:$0xff] }
 0x434   : > { %v5235_v13 = vpop.permute.xlu0 %5234  ;;  %5759 = vrot.lane.b32.xlu1 %v19975_v23, %s12047_s15  ;;  %11232 = vmatprep.mubr.msk.bf16.mxu1 %vm995_vm9, %v16666_v44 }
 0x435   : > { %v16681_v32 = vsel %vm840_vm8, %v5319_v63, %v5235_v13  ;;  %v12007_v63 = vld [vmem:[%s12123_s14 + $0x20] sm:$0xff]  }
 0x436   : > { %7491 = vrot.lane.b32.xlu0 %v19974_v41, %s12052_s12  ;;  %11093 = vmatmul.mubr.msk.bf16.gmra.mrb[36].mxu0 %vm995_vm9, %v16681_v32  ;;  %v5165_v37 = vpop.permute.xlu1 %5164 }
 0x438   : > { %v6991_v14 = vpop.permute.xlu0 %6990  ;;  %7493 = vrot.lane.b32.xlu1 %v19829_v55, %s12052_s12  ;;  %v19976_v55 = vld [vmem:[#allocation99_spill] sm:$0xff] }
 0x439   : > { %v16698_v41 = vsel %vm840_vm8, %v7075_v29, %v6991_v14  ;;  %v12008_v14 = vld [vmem:[%s12123_s14 + $0x28] sm:$0xff]  }
 0x43a   : > { %7469 = vrot.lane.b32.xlu0 %v12006_v17, %s12053_s17  ;;  %11233 = vmatmul.mubr.msk.bf16.gmra.mrb[36].mxu1 %vm995_vm9, %v16698_v41  ;;  %v5167_v21 = vpop.permute.xlu1 %5166  ;;  %v19979_v17 = vld [vmem:[#allocation112_spill] sm:$0xff] }
 0x43c   : > { %v5189_v43 = vpop.permute.xlu0 %5188  ;;  %5761 = vrot.lane.b32.xlu1 %v19976_v55, %s12047_s15 }
 0x43d   : > { %v5271_v3 = vsel %vm765_vm5, %v5165_v37, %v5189_v43 }
 0x43e   : > { %7515 = vrot.lane.b32.xlu0 %v19977_v34, %s12051_s23  ;;  %v6921_v20 = vpop.permute.xlu1 %6920  ;;  %v5297_v27 = vsel %vm790_vm6, %v5271_v3, %v19950_v36  ;;  %v19983_v3 = vld [vmem:[#allocation82_spill] sm:$0xff] }
 0x440   : > { %v5191_v16 = vpop.permute.xlu0 %5190  ;;  %7517 = vrot.lane.b32.xlu1 %v19978_v50, %s12051_s23 }
 0x442   : > { %5783 = vrot.lane.b32.xlu0 %v19979_v17, %s12048_s16  ;;  %v5213_v26 = vpop.permute.xlu1 %5212 }
 0x443   : > { %v5321_v5 = vsel %vm815_vm7, %v5297_v27, %v5213_v26 }
 0x444   : > { %v6945_v49 = vpop.permute.xlu0 %6944  ;;  %7539 = vrot.lane.b32.xlu1 %v19979_v17, %s12047_s15 }
 0x445   : > { %v7027_v17 = vsel %vm765_vm5, %v6921_v20, %v6945_v49  ;;  %v19981_v49 = vld [vmem:[#allocation98_spill] sm:$0xff] }
 0x446   : > { %5785 = vrot.lane.b32.xlu0 %v19980_v35, %s12048_s16  ;;  %v6947_v11 = vpop.permute.xlu1 %6946 }
 0x448   : > { %v6923_v40 = vpop.permute.xlu0 %6922  ;;  %5715 = vrot.lane.b32.xlu1 %v12007_v63, %s12052_s12 }
 0x44a   : > { %7541 = vrot.lane.b32.xlu0 %v19980_v35, %s12047_s15  ;;  %v5215_v13 = vpop.permute.xlu1 %5214  ;;  %v5274_v35 = vsel %vm765_vm5, %v5167_v21, %v5191_v16  ;;  %v7030_v16 = vsel %vm765_vm5, %v6923_v40, %v6947_v11 }
 0x44b   : > { %v5299_v21 = vsel %vm790_vm6, %v5274_v35, %v19951_v57 }
 0x44c   : > { %v6969_v29 = vpop.permute.xlu0 %6968  ;;  %5717 = vrot.lane.b32.xlu1 %v12008_v14, %s12052_s12 }
 0x44d   : > { %v7053_v42 = vsel %vm790_vm6, %v7027_v17, %v6969_v29  ;;  %v19984_v29 = vld [vmem:[#allocation85_spill] sm:$0xff] }
 0x44e   : > { %5739 = vrot.lane.b32.xlu0 %v19830_v19, %s12051_s23  ;;  %v6971_v9 = vpop.permute.xlu1 %6970  ;;  %v7077_v36 = vsel %vm815_vm7, %v7053_v42, %v19948_v18 }
 0x450   : > { %v5237_v37 = vpop.permute.xlu0 %5236  ;;  %7471 = vrot.lane.b32.xlu1 %v12007_v63, %s12053_s17  ;;  %v7055_v63 = vsel %vm790_vm6, %v7030_v16, %v6971_v9  ;;  %v19990_v16 = vld [vmem:[#allocation121_spill] sm:$0xff] }
 0x451   : > { %v16733_v43 = vsel %vm840_vm8, %v5321_v5, %v5237_v37  ;;  %v5323_v5 = vsel %vm815_vm7, %v5299_v21, %v5215_v13  ;;  %v7079_v57 = vsel %vm815_vm7, %v7055_v63, %v19949_v62  ;;  %v19982_v13 = vld [vmem:[#allocation101_spill] sm:$0xff]  ;;  %v12009_v63 = vld [vmem:[%s12123_s14 + $0x30] sm:$0xff]  }
 0x452   : > { %5741 = vrot.lane.b32.xlu0 %v19839_v46, %s12051_s23  ;;  %11096 = vmatprep.mubr.msk.bf16.mxu0 %vm995_vm9, %v16733_v43  ;;  %v6993_v20 = vpop.permute.xlu1 %6992 }
 0x453   : > { %v16744_v27 = vsel %vm840_vm8, %v7077_v36, %v6993_v20 }
 0x454   : > { %v5239_v26 = vpop.permute.xlu0 %5238  ;;  %5763 = vrot.lane.b32.xlu1 %v19981_v49, %s12047_s15  ;;  %11236 = vmatprep.mubr.msk.bf16.mxu1 %vm995_vm9, %v16744_v27 }
 0x455   : > { %v16754_v42 = vsel %vm840_vm8, %v5323_v5, %v5239_v26 }
 0x456   : > { %7495 = vrot.lane.b32.xlu0 %v19830_v19, %s12052_s12  ;;  %11097 = vmatmul.mubr.msk.bf16.gmra.mrb[40].mxu0 %vm995_vm9, %v16754_v42  ;;  %v16760_v18 = vpop.permute.xlu1 %5168 }
 0x458   : > { %v6995_v11 = vpop.permute.xlu0 %6994  ;;  %7497 = vrot.lane.b32.xlu1 %v19839_v46, %s12052_s12 }
 0x459   : > { %v16767_v9 = vsel %vm840_vm8, %v7079_v57, %v6995_v11 }
 0x45a   : > { %7473 = vrot.lane.b32.xlu0 %v12008_v14, %s12053_s17  ;;  %11237 = vmatmul.mubr.msk.bf16.gmra.mrb[40].mxu1 %vm995_vm9, %v16767_v9  ;;  %v5355_v19 = vpop.permute.xlu1 %5354  ;;  %v19986_v14 = vld [vmem:[#allocation116_spill] sm:$0xff] }
 0x45c   : > { %v5357_v40 = vpop.permute.xlu0 %5356  ;;  %5765 = vrot.lane.b32.xlu1 %v19982_v13, %s12047_s15  ;;  %v12010_v13 = vld [vmem:[%s12123_s14 + $0x38] sm:$0xff]  }
 0x45e   : > { %7519 = vrot.lane.b32.xlu0 %v19983_v3, %s12051_s23  ;;  %v16776_v62 = vpop.permute.xlu1 %6924 }
 0x460   : > { %v5359_v46 = vpop.permute.xlu0 %5358  ;;  %7521 = vrot.lane.b32.xlu1 %v19984_v29, %s12051_s23 }
 0x461   : > { %v16780_v17 = vpop.f32.mrb[0].mxu1 }
 0x462   : > { %19985 = vst [vmem:[#allocation221_spill] sm:$0xff] %v16780_v17  ;;  %5787 = vrot.lane.b32.xlu0 %v19986_v14, %s12048_s16  ;;  %v16784_v35 = vpop.f32.mrb[1].mxu1  ;;  %v5363_v37 = vpop.permute.xlu1 %5362 }
 0x463   : > { %19987 = vst [vmem:[#allocation220_spill] sm:$0xff] %v16784_v35  ;;  %v16786_v20 = vpop.f32.mrb[2].mxu1 }
 0x464   : > { %19988 = vst [vmem:[#allocation223_spill] sm:$0xff] %v16786_v20  ;;  %v7113_v36 = vpop.permute.xlu0 %7112  ;;  %v16788_v21 = vpop.f32.mrb[3].mxu1  ;;  %7543 = vrot.lane.b32.xlu1 %v19986_v14, %s12047_s15  ;;  %v5373_v14 = vsel %vm765_vm5, %v16760_v18, %v5357_v40  ;;  %v5376_v40 = vsel %vm765_vm5, %v5355_v19, %v5359_v46 }
 0x465   : > { %19989 = vst [vmem:[#allocation222_spill] sm:$0xff] %v16788_v21  ;;  %v5382_v46 = vsel %vm790_vm6, %v5376_v40, %v19959_v4 }
 0x466   : > { %5789 = vrot.lane.b32.xlu0 %v19990_v16, %s12048_s16  ;;  %v7115_v5 = vpop.permute.xlu1 %7114 }
 0x468   : > { %v7111_v26 = vpop.permute.xlu0 %7110  ;;  %5719 = vrot.lane.b32.xlu1 %v12009_v63, %s12052_s12 }
 0x469   : > { %v16796_v57 = vpop.f32.mrb[4].mxu1 }
 0x46a   : > { %19991 = vst [vmem:[#allocation69_spill] sm:$0xff] %v16796_v57  ;;  %7545 = vrot.lane.b32.xlu0 %v19990_v16, %s12047_s15  ;;  %v16800_v11 = vpop.f32.mrb[5].mxu1  ;;  %v5365_v20 = vpop.permute.xlu1 %5364  ;;  %v7129_v57 = vsel %vm765_vm5, %v16776_v62, %v7113_v36 }
 0x46b   : > { %19992 = vst [vmem:[#allocation68_spill] sm:$0xff] %v16800_v11  ;;  %v16802_v17 = vpop.f32.mrb[6].mxu1  ;;  %v5380_v11 = vsel %vm790_vm6, %v5373_v14, %v19958_v60 }
 0x46c   : > { %19993 = vst [vmem:[#allocation224_spill] sm:$0xff] %v16802_v17  ;;  %v7119_v21 = vpop.permute.xlu0 %7118  ;;  %v16806_v35 = vpop.f32.mrb[7].mxu1  ;;  %5721 = vrot.lane.b32.xlu1 %v12010_v13, %s12052_s12  ;;  %v5386_v29 = vsel %vm815_vm7, %v5380_v11, %v5363_v37 }
 0x46d   : > { %19994 = vst [vmem:[#allocation71_spill] sm:$0xff] %v16806_v35  ;;  %v7136_v17 = vsel %vm790_vm6, %v7129_v57, %v7119_v21  ;;  %v5388_v21 = vsel %vm815_vm7, %v5382_v46, %v5365_v20 }
 0x46e   : > { %5743 = vrot.lane.b32.xlu0 %v19840_v56, %s12051_s23  ;;  %v7121_v16 = vpop.permute.xlu1 %7120  ;;  %v7142_v19 = vsel %vm815_vm7, %v7136_v17, %v19956_v22 }
 0x470   : > { %v5369_v35 = vpop.permute.xlu0 %5368  ;;  %7475 = vrot.lane.b32.xlu1 %v12009_v63, %s12053_s17 }
 0x471   : > { %v5392_v49 = vsel %vm840_vm8, %v5386_v29, %v5369_v35  ;;  %v16821_v3 = vpop.f32.mrb[8].mxu1  ;;  %v7132_v35 = vsel %vm765_vm5, %v7111_v26, %v7115_v5 }
 0x472   : > { %5745 = vrot.lane.b32.xlu0 %v19849_v45, %s12051_s23  ;;  %v16825_v36 = vpop.f32.mrb[9].mxu1  ;;  %11100 = vmatprep.mubr.msk.bf16.mxu0 %vm995_vm9, %v5392_v49  ;;  %v7125_v60 = vpop.permute.xlu1 %7124  ;;  %v19995_v49 = vld [vmem:[#allocation100_spill] sm:$0xff]  ;;  %v7138_v22 = vsel %vm790_vm6, %v7132_v35, %v7121_v16 }
 0x473   : > { %v16832_v37 = vpop.f32.mrb[10].mxu1  ;;  %v7148_v29 = vsel %vm840_vm8, %v7142_v19, %v7125_v60  ;;  %v7144_v20 = vsel %vm815_vm7, %v7138_v22, %v19957_v2  ;;  %v19998_v2 = vld [vmem:[#allocation103_spill] sm:$0xff] }
 0x474   : > { %v5371_v63 = vpop.permute.xlu0 %5370  ;;  %v16837_v57 = vpop.f32.mrb[11].mxu1  ;;  %5767 = vrot.lane.b32.xlu1 %v19995_v49, %s12047_s15  ;;  %11240 = vmatprep.mubr.msk.bf16.mxu1 %vm995_vm9, %v7148_v29 }
 0x475   : > { %v5394_v4 = vsel %vm840_vm8, %v5388_v21, %v5371_v63  ;;  %v20002_v21 = vld [vmem:[#allocation119_spill] sm:$0xff] }
 0x476   : > { %7499 = vrot.lane.b32.xlu0 %v19840_v56, %s12052_s12  ;;  %11101 = vmatmul.mubr.msk.bf16.gmra.mrb[44].mxu0 %vm995_vm9, %v5394_v4  ;;  %v5147_v17 = vpop.permute.xlu1 %5146 }
 0x478   : > { %v7127_v5 = vpop.permute.xlu0 %7126  ;;  %7501 = vrot.lane.b32.xlu1 %v19849_v45, %s12052_s12  ;;  %v19999_v45 = vld [vmem:[#allocation84_spill] sm:$0xff] }
 0x479   : > { %v7150_v26 = vsel %vm840_vm8, %v7144_v20, %v7127_v5  ;;  %v16852_v11 = vpop.f32.mrb[12].mxu1 }
 0x47a   : > { %19996 = vst [vmem:[#allocation70_spill] sm:$0xff] %v16852_v11  ;;  %7477 = vrot.lane.b32.xlu0 %v12010_v13, %s12053_s17  ;;  %v16855_v14 = vpop.f32.mrb[13].mxu1  ;;  %11241 = vmatmul.mubr.msk.bf16.gmra.mrb[44].mxu1 %vm995_vm9, %v7150_v26  ;;  %v6903_v56 = vpop.permute.xlu1 %6902  ;;  %v20000_v13 = vld [vmem:[#allocation87_spill] sm:$0xff]  ;;  %v12011_v11 = vld [vmem:[%s12123_s14 + $0x40] sm:$0xff]  }
 0x47b   : > { %v16858_v16 = vpop.f32.mrb[14].mxu1 }
 0x47c   : > { %19997 = vst [vmem:[#allocation73_spill] sm:$0xff] %v16858_v16  ;;  %v5171_v40 = vpop.permute.xlu0 %5170  ;;  %v16860_v60 = vpop.f32.mrb[15].mxu1  ;;  %5769 = vrot.lane.b32.xlu1 %v19998_v2, %s12047_s15 }
 0x47d   : > { %v5244_v35 = vsel %vm765_vm5, %v5147_v17, %v5171_v40  ;;  %v20005_v17 = vld [vmem:[#allocation123_spill] sm:$0xff] }
 0x47e   : > { %7523 = vrot.lane.b32.xlu0 %v19999_v45, %s12051_s23  ;;  %v5195_v19 = vpop.permute.xlu1 %5194  ;;  %v5279_v26 = vsel %vm790_vm6, %v5244_v35, %v19966_v47 }
 0x480   : > { %v6927_v46 = vpop.permute.xlu0 %6926  ;;  %7525 = vrot.lane.b32.xlu1 %v20000_v13, %s12051_s23 }
 0x481   : > { %v16868_v29 = vpop.f32.mrb[16].mxu1 }
 0x482   : > { %20001 = vst [vmem:[#allocation72_spill] sm:$0xff] %v16868_v29  ;;  %5791 = vrot.lane.b32.xlu0 %v20002_v21, %s12048_s16  ;;  %v16873_v63 = vpop.f32.mrb[17].mxu1  ;;  %v5197_v22 = vpop.permute.xlu1 %5196  ;;  %v7000_v29 = vsel %vm765_vm5, %v6903_v56, %v6927_v46  ;;  %v5281_v46 = vsel %vm790_vm6, %v16426_v31, %v19967_v7 }
 0x483   : > { %20003 = vst [vmem:[#allocation76_spill] sm:$0xff] %v16873_v63  ;;  %v16875_v4 = vpop.f32.mrb[18].mxu1 }
 0x484   : > { %20004 = vst [vmem:[#allocation3_spill] sm:$0xff] %v16875_v4  ;;  %v6951_v20 = vpop.permute.xlu0 %6950  ;;  %v16877_v5 = vpop.f32.mrb[19].mxu1  ;;  %7547 = vrot.lane.b32.xlu1 %v20002_v21, %s12047_s15  ;;  %v5303_v4 = vsel %vm815_vm7, %v5279_v26, %v5195_v19 }
 0x485   : > { %v7035_v63 = vsel %vm790_vm6, %v7000_v29, %v6951_v20  ;;  %v5305_v29 = vsel %vm815_vm7, %v5281_v46, %v5197_v22  ;;  %v12012_v20 = vld [vmem:[%s12123_s14 + $0x48] sm:$0xff]   ;;  %v20009_v46 = vld [vmem:[#allocation89_spill] sm:$0xff] }
 0x486   : > { %5793 = vrot.lane.b32.xlu0 %v20005_v17, %s12048_s16  ;;  %v6953_v40 = vpop.permute.xlu1 %6952  ;;  %v7059_v56 = vsel %vm815_vm7, %v7035_v63, %v19964_v39 }
 0x487   : > { %v7037_v39 = vsel %vm790_vm6, %v16430_v30, %v6953_v40 }
 0x488   : > { %v5219_v16 = vpop.permute.xlu0 %5218  ;;  %5723 = vrot.lane.b32.xlu1 %v12011_v11, %s12052_s12  ;;  %v7061_v30 = vsel %vm815_vm7, %v7037_v39, %v19965_v0 }
 0x489   : > { %v5327_v21 = vsel %vm840_vm8, %v5303_v4, %v5219_v16  ;;  %v11927_v16 = vld [vmem:[%s18767_s1 + $0x98] ss:$0 sps:$4 sm:$0x33]  }
 0x48a   : > { %7549 = vrot.lane.b32.xlu0 %v20005_v17, %s12047_s15  ;;  %11108 = vmatprep.mubr.msk.bf16.mxu0 %vm995_vm9, %v5327_v21  ;;  %v6975_v47 = vpop.permute.xlu1 %6974  ;;  %v5953_v40 = vsel %vm1020_vm4, %v11927_v16, 0 }
 0x48b   : > { %v7083_v19 = vsel %vm840_vm8, %v7059_v56, %v6975_v47 }
 0x48c   : > { %v5221_v35 = vpop.permute.xlu0 %5220  ;;  %5725 = vrot.lane.b32.xlu1 %v12012_v20, %s12052_s12  ;;  %11248 = vmatprep.mubr.msk.bf16.mxu1 %vm995_vm9, %v7083_v19 }
 0x48d   : > { %v5329_v63 = vsel %vm840_vm8, %v5305_v29, %v5221_v35  ;;  %v16910_v31 = vpop.f32.mrb[20].mxu1  ;;  %v12013_v35 = vld [vmem:[%s12123_s14 + $0x50] sm:$0xff]  }
 0x48e   : > { %5747 = vrot.lane.b32.xlu0 %v19850_v8, %s12051_s23  ;;  %v16914_v7 = vpop.f32.mrb[21].mxu1  ;;  %11109 = vmatmul.mubr.msk.bf16.vlgmr.msra.gmra.mrb[24].mxu0 %vm995_vm9, %v5329_v63  ;;  %v16917_v22 = vpop.permute.xlu1 %5192 }
 0x48f   : > { %v16919_v4 = vpop.f32.mrb[22].mxu1  ;;  %11112 = vmatprep.mubr.msk.bf16.mxu0 %vm995_vm9, %v16459_v24  ;;  %11133 = vmatpush3.bf16.msra.mxu0 %v16677_v25  ;;  %v11929_v24 = vld [vmem:[%s18767_s1 + $0xd4] ss:$0 sps:$4 sm:$0x33]  }
 0x490   : > { %v6977_v26 = vpop.permute.xlu0 %6976  ;;  %v16926_v17 = vpop.f32.mrb[23].mxu1  ;;  %7479 = vrot.lane.b32.xlu1 %v12011_v11, %s12053_s17  ;;  %11796 = vmatprep.subr.msk.bf16.mxu0 %vm1020_vm4, %v11927_v16  ;;  %v20006_v11 = vld [vmem:[#allocation102_spill] sm:$0xff]  ;;  %v7709_v47 = vsel %vm1020_vm4, %v11929_v24, 0 }
 0x491   : > { %v7085_v21 = vsel %vm840_vm8, %v7061_v30, %v6977_v26 }
 0x492   : > { %5749 = vrot.lane.b32.xlu0 %v19859_v59, %s12051_s23  ;;  %11249 = vmatmul.mubr.msk.bf16.vlgmr.msra.gmra.mrb[24].mxu1 %vm995_vm9, %v7085_v21  ;;  %v5217_v0 = vpop.permute.xlu1 %5216 }
 0x493   : > { %11252 = vmatprep.mubr.msk.bf16.mxu1 %vm995_vm9, %v16469_v38  ;;  %11135 = vmatpush3.bf16.msra.mxu0 %v5953_v40 }
 0x494   : > { %v6949_v25 = vpop.permute.xlu0 %6948  ;;  %5771 = vrot.lane.b32.xlu1 %v20006_v11, %s12047_s15  ;;  %11273 = vmatpush3.bf16.msra.mxu1 %v16695_v1 }
 0x495   : > { %11801 = vmatprep.subr.msk.bf16.mxu1 %vm1020_vm4, %v11929_v24  ;;  %v7033_v63 = vsel %vm765_vm5, %v16776_v62, %v6949_v25 }
 0x496   : > { %7503 = vrot.lane.b32.xlu0 %v19850_v8, %s12052_s12  ;;  %11113 = vmatmul.mubr.msk.bf16.gmra.mrb[28].mxu0 %vm995_vm9, %v16504_v58  ;;  %v5241_v56 = vpop.permute.xlu1 %5240  ;;  %v20007_v58 = vld [vmem:[#allocation106_spill] sm:$0xff] }
 0x497   : > { %11116 = vmatprep.mubr.msk.bf16.mxu0 %vm995_vm9, %v16525_v54  ;;  %v20008_v54 = vld [vmem:[#allocation86_spill] sm:$0xff] }
 0x498   : > { %v6973_v38 = vpop.permute.xlu0 %6972  ;;  %7505 = vrot.lane.b32.xlu1 %v19859_v59, %s12052_s12  ;;  %11275 = vmatpush3.bf16.msra.mxu1 %v7709_v47 }
 0x49a   : > { %7481 = vrot.lane.b32.xlu0 %v12012_v20, %s12053_s17  ;;  %11253 = vmatmul.mubr.msk.bf16.gmra.mrb[28].mxu1 %vm995_vm9, %v16515_v6  ;;  %v5712_v1 = vpop.permute.xlu1 %5711 }
 0x49b   : > { %11256 = vmatprep.mubr.msk.bf16.mxu1 %vm995_vm9, %v16535_v33  ;;  %v20010_v33 = vld [vmem:[#allocation122_spill] sm:$0xff] }
 0x49c   : > { %v6997_v8 = vpop.permute.xlu0 %6996  ;;  %5773 = vrot.lane.b32.xlu1 %v20007_v58, %s12047_s15 }
 0x49e   : > { %7527 = vrot.lane.b32.xlu0 %v20008_v54, %s12051_s23  ;;  %11117 = vmatmul.mubr.msk.bf16.gmra.mrb[32].mxu0 %vm995_vm9, %v16587_v28  ;;  %v5714_v59 = vpop.permute.xlu1 %5713 }
 0x49f   : > { %11120 = vmatprep.mubr.msk.bf16.mxu0 %vm995_vm9, %v16608_v48  ;;  %v20011_v48 = vld [vmem:[#allocation126_spill] sm:$0xff] }
 0x4a0   : > { %v5736_v6 = vpop.permute.xlu0 %5735  ;;  %7529 = vrot.lane.b32.xlu1 %v20009_v46, %s12051_s23 }
 0x4a2   : > { %5795 = vrot.lane.b32.xlu0 %v20010_v33, %s12048_s16  ;;  %11257 = vmatmul.mubr.msk.bf16.gmra.mrb[32].mxu1 %vm995_vm9, %v16598_v61  ;;  %v7468_v19 = vpop.permute.xlu1 %7467 }
 0x4a3   : > { %11260 = vmatprep.mubr.msk.bf16.mxu1 %vm995_vm9, %v16619_v52 }
 0x4a4   : > { %v5738_v28 = vpop.permute.xlu0 %5737  ;;  %7551 = vrot.lane.b32.xlu1 %v20010_v33, %s12047_s15 }
 0x4a5   : > { %v5812_v24 = vsel %vm765_vm5, %v5714_v59, %v5738_v28  ;;  %v20015_v28 = vld [vmem:[#allocation92_spill] sm:$0xff] }
 0x4a6   : > { %5797 = vrot.lane.b32.xlu0 %v20011_v48, %s12048_s16  ;;  %11121 = vmatmul.mubr.msk.bf16.gmra.mrb[36].mxu0 %vm995_vm9, %v16655_v51  ;;  %v5760_v29 = vpop.permute.xlu1 %5759  ;;  %v12014_v51 = vld [vmem:[%s12123_s14 + $0x58] sm:$0xff]  }
 0x4a7   : > { %11124 = vmatprep.mubr.msk.bf16.mxu0 %vm995_vm9, %v16681_v32 }
 0x4a8   : > { %v7492_v61 = vpop.permute.xlu0 %7491  ;;  %5727 = vrot.lane.b32.xlu1 %v12013_v35, %s12052_s12 }
 0x4aa   : > { %7553 = vrot.lane.b32.xlu0 %v20011_v48, %s12047_s15  ;;  %11261 = vmatmul.mubr.msk.bf16.gmra.mrb[36].mxu1 %vm995_vm9, %v16666_v44  ;;  %v7494_v52 = vpop.permute.xlu1 %7493  ;;  %v5277_v44 = vsel %vm765_vm5, %v16760_v18, %v16917_v22 }
 0x4ab   : > { %11264 = vmatprep.mubr.msk.bf16.mxu1 %vm995_vm9, %v16698_v41  ;;  %v5809_v41 = vsel %vm765_vm5, %v5712_v1, %v5736_v6  ;;  %v5301_v39 = vsel %vm790_vm6, %v5277_v44, %v19972_v15  ;;  %v7057_v15 = vsel %vm790_vm6, %v7033_v63, %v6973_v38  ;;  %v20014_v6 = vld [vmem:[#allocation88_spill] sm:$0xff] }
 0x4ac   : > { %v7470_v20 = vpop.permute.xlu0 %7469  ;;  %5729 = vrot.lane.b32.xlu1 %v12014_v51, %s12052_s12  ;;  %v5325_v18 = vsel %vm815_vm7, %v5301_v39, %v5217_v0  ;;  %v7081_v21 = vsel %vm815_vm7, %v7057_v15, %v19970_v53  ;;  %v5846_v53 = vsel %vm790_vm6, %v5812_v24, %v19978_v50  ;;  %v20019_v63 = vld [vmem:[#allocation80_spill] sm:$0xff] }
 0x4ad   : > { %v5349_v26 = vsel %vm840_vm8, %v5325_v18, %v5241_v56  ;;  %v7105_v25 = vsel %vm840_vm8, %v7081_v21, %v6997_v8  ;;  %v7568_v38 = vsel %vm765_vm5, %v7470_v20, %v7494_v52  ;;  %v20013_v8 = vld [vmem:[#allocation110_spill] sm:$0xff] }
 0x4ae   : > { %5751 = vrot.lane.b32.xlu0 %v19860_v10, %s12051_s23  ;;  %11125 = vmatmul.mubr.msk.bf16.gmra.mrb[40].mxu0 %vm995_vm9, %v16733_v43  ;;  %v5762_v32 = vpop.permute.xlu1 %5761  ;;  %v20017_v52 = vld [vmem:[#allocation130_spill] sm:$0xff] }
 0x4af   : > { %11128 = vmatprep.mubr.msk.bf16.mxu0 %vm995_vm9, %v16754_v42  ;;  %v5844_v42 = vsel %vm790_vm6, %v5809_v41, %v19977_v34  ;;  %v7565_v34 = vsel %vm765_vm5, %v7468_v19, %v7492_v61  ;;  %v12016_v41 = vld [vmem:[%s12123_s14 + $0x68] sm:$0xff]  }
 0x4b0   : > { %v7516_v16 = vpop.permute.xlu0 %7515  ;;  %7483 = vrot.lane.b32.xlu1 %v12013_v35, %s12053_s17  ;;  %v5868_v22 = vsel %vm815_vm7, %v5844_v42, %v5760_v29  ;;  %v20016_v29 = vld [vmem:[#allocation124_spill] sm:$0xff] }
 0x4b2   : > { %5753 = vrot.lane.b32.xlu0 %v19869_v12, %s12051_s23  ;;  %11265 = vmatmul.mubr.msk.bf16.gmra.mrb[40].mxu1 %vm995_vm9, %v16744_v27  ;;  %v7518_v43 = vpop.permute.xlu1 %7517  ;;  %v20012_v27 = vld [vmem:[#allocation104_spill] sm:$0xff] }
 0x4b3   : > { %11268 = vmatprep.mubr.msk.bf16.mxu1 %vm995_vm9, %v16767_v9  ;;  %v7600_v9 = vsel %vm790_vm6, %v7565_v34, %v7516_v16  ;;  %v20018_v16 = vld [vmem:[#allocation74_spill] sm:$0xff] }
 0x4b4   : > { %v5784_v30 = vpop.permute.xlu0 %5783  ;;  %5775 = vrot.lane.b32.xlu1 %v20012_v27, %s12047_s15  ;;  %v7624_v47 = vsel %vm815_vm7, %v7600_v9, %v19975_v23  ;;  %v7602_v23 = vsel %vm790_vm6, %v7568_v38, %v7518_v43 }
 0x4b5   : > { %v5892_v40 = vsel %vm840_vm8, %v5868_v22, %v5784_v30  ;;  %v7626_v33 = vsel %vm815_vm7, %v7602_v23, %v19976_v55  ;;  %v20020_v30 = vld [vmem:[#allocation82_spill] sm:$0xff] }
 0x4b6   : > { %7507 = vrot.lane.b32.xlu0 %v19860_v10, %s12052_s12  ;;  %11129 = vmatmul.mubr.msk.bf16.gmra.mrb[44].mxu0 %vm995_vm9, %v5349_v26  ;;  %v7540_v62 = vpop.permute.xlu1 %7539 }
 0x4b7   : > { %11136 = vmatprep.mubr.msk.bf16.mxu0 %vm995_vm9, %v5892_v40  ;;  %v7648_v10 = vsel %vm840_vm8, %v7624_v47, %v7540_v62  ;;  %v20021_v62 = vld [vmem:[#allocation108_spill] sm:$0xff]  ;;  %v20023_v47 = vld [vmem:[#allocation85_spill] sm:$0xff] }
 0x4b8   : > { %v5786_v0 = vpop.permute.xlu0 %5785  ;;  %7509 = vrot.lane.b32.xlu1 %v19869_v12, %s12052_s12  ;;  %v5870_v12 = vsel %vm815_vm7, %v5846_v53, %v5762_v32 }
 0x4b9   : > { %v5894_v59 = vsel %vm840_vm8, %v5870_v12, %v5786_v0  ;;  %v20022_v0 = vld [vmem:[#allocation98_spill] sm:$0xff] }
 0x4ba   : > { %7485 = vrot.lane.b32.xlu0 %v12014_v51, %s12053_s17  ;;  %11269 = vmatmul.mubr.msk.bf16.gmra.mrb[44].mxu1 %vm995_vm9, %v7105_v25  ;;  %v5716_v56 = vpop.permute.xlu1 %5715  ;;  %v12015_v51 = vld [vmem:[%s12123_s14 + $0x60] sm:$0xff]  }
 0x4bb   : > { %11276 = vmatprep.mubr.msk.bf16.mxu1 %vm995_vm9, %v7648_v10 }
 0x4bc   : > { %v7542_v1 = vpop.permute.xlu0 %7541  ;;  %5777 = vrot.lane.b32.xlu1 %v20013_v8, %s12047_s15 }
 0x4bd   : > { %v7650_v48 = vsel %vm840_vm8, %v7626_v33, %v7542_v1 }
 0x4be   : > { %7531 = vrot.lane.b32.xlu0 %v20014_v6, %s12051_s23  ;;  %11137 = vmatmul.mubr.msk.bf16.vlgmr.msra.gmra.mrb[24].mxu0 %vm995_vm9, %v5894_v59  ;;  %v5718_v50 = vpop.permute.xlu1 %5717 }
 0x4c0   : > { %v5740_v19 = vpop.permute.xlu0 %5739  ;;  %7533 = vrot.lane.b32.xlu1 %v20015_v28, %s12051_s23 }
 0x4c1   : > { %v5815_v39 = vsel %vm765_vm5, %v5716_v56, %v5740_v19 }
 0x4c2   : > { %5799 = vrot.lane.b32.xlu0 %v20016_v29, %s12048_s16  ;;  %11277 = vmatmul.mubr.msk.bf16.vlgmr.msra.gmra.mrb[24].mxu1 %vm995_vm9, %v7650_v48  ;;  %v7472_v61 = vpop.permute.xlu1 %7471  ;;  %v5848_v26 = vsel %vm790_vm6, %v5815_v39, %v20020_v30  ;;  %v20025_v48 = vld [vmem:[#allocation114_spill] sm:$0xff] }
 0x4c4   : > { %v5742_v35 = vpop.permute.xlu0 %5741  ;;  %7555 = vrot.lane.b32.xlu1 %v20016_v29, %s12047_s15 }
 0x4c5   : > { %v5818_v34 = vsel %vm765_vm5, %v5718_v50, %v5742_v35  ;;  %v20024_v50 = vld [vmem:[#allocation101_spill] sm:$0xff] }
 0x4c6   : > { %5801 = vrot.lane.b32.xlu0 %v20017_v52, %s12048_s16  ;;  %v5764_v55 = vpop.permute.xlu1 %5763  ;;  %v5850_v10 = vsel %vm790_vm6, %v5818_v34, %v20023_v47 }
 0x4c7   : > { %v5872_v40 = vsel %vm815_vm7, %v5848_v26, %v5764_v55  ;;  %v20027_v55 = vld [vmem:[#allocation96_spill] sm:$0xff] }
 0x4c8   : > { %v7496_v20 = vpop.permute.xlu0 %7495  ;;  %5731 = vrot.lane.b32.xlu1 %v12015_v51, %s12052_s12 }
 0x4c9   : > { %v7571_v18 = vsel %vm765_vm5, %v7472_v61, %v7496_v20  ;;  %v20026_v61 = vld [vmem:[#allocation90_spill] sm:$0xff]  ;;  %v20028_v20 = vld [vmem:[#allocation128_spill] sm:$0xff] }
 0x4ca   : > { %7557 = vrot.lane.b32.xlu0 %v20017_v52, %s12047_s15  ;;  %v7498_v32 = vpop.permute.xlu1 %7497 }
 0x4cc   : > { %v7474_v44 = vpop.permute.xlu0 %7473  ;;  %5733 = vrot.lane.b32.xlu1 %v12016_v41, %s12052_s12 }
 0x4cd   : > { %v7574_v53 = vsel %vm765_vm5, %v7474_v44, %v7498_v32  ;;  %v20029_v44 = vld [vmem:[#allocation134_spill] sm:$0xff] }
 0x4ce   : > { %5755 = vrot.lane.b32.xlu0 %v20018_v16, %s12051_s23  ;;  %v5766_v43 = vpop.permute.xlu1 %5765 }
 0x4cf   : > { %v5874_v38 = vsel %vm815_vm7, %v5850_v10, %v5766_v43  ;;  %v20030_v43 = vld [vmem:[#allocation120_spill] sm:$0xff]  ;;  %v20033_v10 = vld [vmem:[#allocation125_spill] sm:$0xff] }
 0x4d0   : > { %v7520_v42 = vpop.permute.xlu0 %7519  ;;  %7487 = vrot.lane.b32.xlu1 %v12015_v51, %s12053_s17 }
 0x4d1   : > { %v7604_v15 = vsel %vm790_vm6, %v7571_v18, %v7520_v42  ;;  %v12017_v18 = vld [vmem:[%s12123_s14 + $0x20] sm:$0xff]  }
 0x4d2   : > { %5757 = vrot.lane.b32.xlu0 %v20019_v63, %s12051_s23  ;;  %v7522_v22 = vpop.permute.xlu1 %7521  ;;  %v7628_v25 = vsel %vm815_vm7, %v7604_v15, %v20022_v0  ;;  %v11930_v15 = vld [vmem:[%s18767_s1 + $0x9c] sm:$0xff]  }
 0x4d3   : > { %v7606_v1 = vsel %vm790_vm6, %v7574_v53, %v7522_v22  ;;  %11160 = vmatprep.subr.bf16.mxu0 %v11930_v15  ;;  %v11932_v53 = vld [vmem:[%s18767_s1 + $0xd8] sm:$0xff]  }
 0x4d4   : > { %v5788_v9 = vpop.permute.xlu0 %5787  ;;  %5779 = vrot.lane.b32.xlu1 %v20021_v62, %s12047_s15  ;;  %v7630_v33 = vsel %vm815_vm7, %v7606_v1, %v20024_v50  ;;  %11161 = vmatpush3.bf16.msra.mxu0 %v11930_v15 }
 0x4d5   : > { %v5896_v21 = vsel %vm840_vm8, %v5872_v40, %v5788_v9  ;;  %v20032_v40 = vld [vmem:[#allocation138_spill] sm:$0xff]  ;;  %11300 = vmatprep.subr.bf16.mxu1 %v11932_v53 }
 0x4d6   : > { %7511 = vrot.lane.b32.xlu0 %v20018_v16, %s12052_s12  ;;  %11140 = vmatprep.mubr.msk.bf16.mxu0 %vm995_vm9, %v5896_v21  ;;  %v7544_v24 = vpop.permute.xlu1 %7543 }
 0x4d7   : > { %v7652_v56 = vsel %vm840_vm8, %v7628_v25, %v7544_v24  ;;  %11301 = vmatpush3.bf16.msra.mxu1 %v11932_v53 }
 0x4d8   : > { %v5790_v12 = vpop.permute.xlu0 %5789  ;;  %7513 = vrot.lane.b32.xlu1 %v20019_v63, %s12052_s12  ;;  %11280 = vmatprep.mubr.msk.bf16.mxu1 %vm995_vm9, %v7652_v56  ;;  %v20031_v63 = vld [vmem:[#allocation132_spill] sm:$0xff]  ;;  %v11931_v56 = vld [vmem:[%s18767_s1 + $0xa4] ss:$0 sps:$4 sm:$0x33]  }
 0x4d9   : > { %v5898_v23 = vsel %vm840_vm8, %v5874_v38, %v5790_v12  ;;  %v6350_v1 = vsel %vm1020_vm4, %v11931_v56, 0  ;;  %11797 = vmatprep.subr.msk.bf16.mxu0 %vm1020_vm4, %v11931_v56 }
 0x4da   : > { %7489 = vrot.lane.b32.xlu0 %v12016_v41, %s12053_s17  ;;  %11141 = vmatmul.mubr.msk.bf16.gmra.mrb[28].mxu0 %vm995_vm9, %v5898_v23  ;;  %v5720_v59 = vpop.permute.xlu1 %5719 }
 0x4db   : > { %11163 = vmatpush3.bf16.msra.mxu0 %v6350_v1 }
 0x4dc   : > { %v7546_v19 = vpop.permute.xlu0 %7545  ;;  %5781 = vrot.lane.b32.xlu1 %v20025_v48, %s12047_s15 }
 0x4dd   : > { %v7654_v29 = vsel %vm840_vm8, %v7630_v33, %v7546_v19 }
 0x4de   : > { %7535 = vrot.lane.b32.xlu0 %v20026_v61, %s12051_s23  ;;  %11281 = vmatmul.mubr.msk.bf16.gmra.mrb[28].mxu1 %vm995_vm9, %v7654_v29  ;;  %v5722_v35 = vpop.permute.xlu1 %5721 }
 0x4e0   : > { %v5744_v52 = vpop.permute.xlu0 %5743  ;;  %7537 = vrot.lane.b32.xlu1 %v20027_v55, %s12051_s23 }
 0x4e1   : > { %v5821_v30 = vsel %vm765_vm5, %v5720_v59, %v5744_v52 }
 0x4e2   : > { %5803 = vrot.lane.b32.xlu0 %v20028_v20, %s12048_s16  ;;  %v7476_v51 = vpop.permute.xlu1 %7475  ;;  %v5852_v21 = vsel %vm790_vm6, %v5821_v30, %v19999_v45 }
 0x4e4   : > { %v5746_v32 = vpop.permute.xlu0 %5745  ;;  %7559 = vrot.lane.b32.xlu1 %v20028_v20, %s12047_s15 }
 0x4e5   : > { %v5824_v0 = vsel %vm765_vm5, %v5722_v35, %v5746_v32  ;;  %v20034_v32 = vld [vmem:[#allocation135_spill] sm:$0xff] }
 0x4e6   : > { %5805 = vrot.lane.b32.xlu0 %v20029_v44, %s12048_s16  ;;  %v5768_v41 = vpop.permute.xlu1 %5767  ;;  %v5854_v23 = vsel %vm790_vm6, %v5824_v0, %v20000_v13 }
 0x4e7   : > { %v5876_v25 = vsel %vm815_vm7, %v5852_v21, %v5768_v41  ;;  %v20035_v41 = vld [vmem:[#allocation149_spill] sm:$0xff] }
 0x4e8   : > { %v7500_v16 = vpop.permute.xlu0 %7499  ;;  %6108 = vrot.lane.b32.xlu1 %v20030_v43, %s12052_s12 }
 0x4e9   : > { %v7577_v34 = vsel %vm765_vm5, %v7476_v51, %v7500_v16 }
 0x4ea   : > { %7561 = vrot.lane.b32.xlu0 %v20029_v44, %s12047_s15  ;;  %v7502_v39 = vpop.permute.xlu1 %7501 }
 0x4ec   : > { %v7478_v42 = vpop.permute.xlu0 %7477  ;;  %6110 = vrot.lane.b32.xlu1 %v12017_v18, %s12052_s12 }
 0x4ed   : > { %v7580_v50 = vsel %vm765_vm5, %v7478_v42, %v7502_v39  ;;  %v20036_v39 = vld [vmem:[#allocation152_spill] sm:$0xff] }
 0x4ee   : > { %6132 = vrot.lane.b32.xlu0 %v20031_v63, %s12051_s23  ;;  %v5770_v22 = vpop.permute.xlu1 %5769 }
 0x4ef   : > { %v5878_v33 = vsel %vm815_vm7, %v5854_v23, %v5770_v22  ;;  %v20041_v23 = vld [vmem:[#allocation93_spill] sm:$0xff] }
 0x4f0   : > { %v7524_v26 = vpop.permute.xlu0 %7523  ;;  %7864 = vrot.lane.b32.xlu1 %v20030_v43, %s12053_s17 }
 0x4f1   : > { %v7608_v24 = vsel %vm790_vm6, %v7577_v34, %v7524_v26  ;;  %v12018_v26 = vld [vmem:[%s12123_s14 + $0x28] sm:$0xff]  }
 0x4f2   : > { %6134 = vrot.lane.b32.xlu0 %v20032_v40, %s12051_s23  ;;  %v7526_v9 = vpop.permute.xlu1 %7525  ;;  %v7632_v12 = vsel %vm815_vm7, %v7608_v24, %v19995_v49  ;;  %v11933_v49 = vld [vmem:[%s18767_s1 + $0xe0] ss:$0 sps:$4 sm:$0x33]  }
 0x4f3   : > { %v7610_v13 = vsel %vm790_vm6, %v7580_v50, %v7526_v9  ;;  %v8106_v52 = vsel %vm1020_vm4, %v11933_v49, 0  ;;  %11802 = vmatprep.subr.msk.bf16.mxu1 %vm1020_vm4, %v11933_v49  ;;  %v20039_v9 = vld [vmem:[#allocation136_spill] sm:$0xff] }
 0x4f4   : > { %v5792_v47 = vpop.permute.xlu0 %5791  ;;  %6156 = vrot.lane.b32.xlu1 %v20033_v10, %s12047_s15  ;;  %v7634_v20 = vsel %vm815_vm7, %v7610_v13, %v19998_v2  ;;  %11303 = vmatpush3.bf16.msra.mxu1 %v8106_v52  ;;  %v20037_v2 = vld [vmem:[#allocation117_spill] sm:$0xff] }
 0x4f5   : > { %v5900_v45 = vsel %vm840_vm8, %v5876_v25, %v5792_v47  ;;  %v20040_v47 = vld [vmem:[#allocation140_spill] sm:$0xff] }
 0x4f6   : > { %7888 = vrot.lane.b32.xlu0 %v20031_v63, %s12052_s12  ;;  %11144 = vmatprep.mubr.msk.bf16.mxu0 %vm995_vm9, %v5900_v45  ;;  %v7548_v38 = vpop.permute.xlu1 %7547  ;;  %v20038_v63 = vld [vmem:[#allocation113_spill] sm:$0xff] }
 0x4f7   : > { %v7656_v59 = vsel %vm840_vm8, %v7632_v12, %v7548_v38 }
 0x4f8   : > { %v5794_v19 = vpop.permute.xlu0 %5793  ;;  %7890 = vrot.lane.b32.xlu1 %v20032_v40, %s12052_s12  ;;  %11284 = vmatprep.mubr.msk.bf16.mxu1 %vm995_vm9, %v7656_v59  ;;  %v12019_v40 = vld [vmem:[%s12123_s14 + $0x30] sm:$0xff]  }
 0x4f9   : > { %v5902_v29 = vsel %vm840_vm8, %v5878_v33, %v5794_v19 }
 0x4fa   : > { %7866 = vrot.lane.b32.xlu0 %v12017_v18, %s12053_s17  ;;  %11145 = vmatmul.mubr.msk.bf16.gmra.mrb[32].mxu0 %vm995_vm9, %v5902_v29  ;;  %v5724_v35 = vpop.permute.xlu1 %5723 }
 0x4fc   : > { %v7550_v51 = vpop.permute.xlu0 %7549  ;;  %6158 = vrot.lane.b32.xlu1 %v20034_v32, %s12047_s15 }
 0x4fd   : > { %v7658_v44 = vsel %vm840_vm8, %v7634_v20, %v7550_v51  ;;  %v20042_v51 = vld [vmem:[#allocation137_spill] sm:$0xff] }
 0x4fe   : > { %7912 = vrot.lane.b32.xlu0 %v20035_v41, %s12051_s23  ;;  %11285 = vmatmul.mubr.msk.bf16.gmra.mrb[32].mxu1 %vm995_vm9, %v7658_v44  ;;  %v5726_v16 = vpop.permute.xlu1 %5725 }
 0x500   : > { %v5748_v43 = vpop.permute.xlu0 %5747  ;;  %7914 = vrot.lane.b32.xlu1 %v20036_v39, %s12051_s23 }
 0x501   : > { %v5827_v24 = vsel %vm765_vm5, %v5724_v35, %v5748_v43 }
 0x502   : > { %6180 = vrot.lane.b32.xlu0 %v20037_v2, %s12048_s16  ;;  %v7480_v42 = vpop.permute.xlu1 %7479  ;;  %v5856_v53 = vsel %vm790_vm6, %v5827_v24, %v20008_v54 }
 0x504   : > { %v5750_v18 = vpop.permute.xlu0 %5749  ;;  %7936 = vrot.lane.b32.xlu1 %v20037_v2, %s12047_s15 }
 0x505   : > { %v5830_v38 = vsel %vm765_vm5, %v5726_v16, %v5750_v18  ;;  %v20043_v16 = vld [vmem:[#allocation151_spill] sm:$0xff] }
 0x506   : > { %6182 = vrot.lane.b32.xlu0 %v20038_v63, %s12048_s16  ;;  %v5772_v22 = vpop.permute.xlu1 %5771  ;;  %v5858_v33 = vsel %vm790_vm6, %v5830_v38, %v20009_v46 }
 0x507   : > { %v5880_v12 = vsel %vm815_vm7, %v5856_v53, %v5772_v22  ;;  %v20046_v22 = vld [vmem:[#allocation165_spill] sm:$0xff] }
 0x508   : > { %v7504_v30 = vpop.permute.xlu0 %7503  ;;  %6112 = vrot.lane.b32.xlu1 %v12018_v26, %s12052_s12 }
 0x509   : > { %v7583_v25 = vsel %vm765_vm5, %v7480_v42, %v7504_v30  ;;  %v20044_v42 = vld [vmem:[#allocation154_spill] sm:$0xff] }
 0x50a   : > { %7938 = vrot.lane.b32.xlu0 %v20038_v63, %s12047_s15  ;;  %v7506_v15 = vpop.permute.xlu1 %7505 }
 0x50c   : > { %v7482_v34 = vpop.permute.xlu0 %7481  ;;  %6114 = vrot.lane.b32.xlu1 %v12019_v40, %s12052_s12 }
 0x50d   : > { %v7586_v49 = vsel %vm765_vm5, %v7482_v34, %v7506_v15  ;;  %v12020_v15 = vld [vmem:[%s12123_s14 + $0x38] sm:$0xff]  }
 0x50e   : > { %6136 = vrot.lane.b32.xlu0 %v20039_v9, %s12051_s23  ;;  %v5774_v21 = vpop.permute.xlu1 %5773 }
 0x50f   : > { %v5882_v13 = vsel %vm815_vm7, %v5858_v33, %v5774_v21  ;;  %v20047_v21 = vld [vmem:[#allocation139_spill] sm:$0xff] }
 0x510   : > { %v7528_v0 = vpop.permute.xlu0 %7527  ;;  %7868 = vrot.lane.b32.xlu1 %v12018_v26, %s12053_s17 }
 0x511   : > { %v7612_v45 = vsel %vm790_vm6, %v7583_v25, %v7528_v0 }
 0x512   : > { %6138 = vrot.lane.b32.xlu0 %v20040_v47, %s12051_s23  ;;  %v7530_v56 = vpop.permute.xlu1 %7529  ;;  %v7636_v54 = vsel %vm815_vm7, %v7612_v45, %v20006_v11 }
 0x513   : > { %v7614_v35 = vsel %vm790_vm6, %v7586_v49, %v7530_v56  ;;  %v20048_v56 = vld [vmem:[#allocation144_spill] sm:$0xff] }
 0x514   : > { %v5796_v1 = vpop.permute.xlu0 %5795  ;;  %6160 = vrot.lane.b32.xlu1 %v20041_v23, %s12047_s15  ;;  %v7638_v46 = vsel %vm815_vm7, %v7614_v35, %v20007_v58  ;;  %v20045_v58 = vld [vmem:[#allocation95_spill] sm:$0xff] }
 0x515   : > { %v5904_v59 = vsel %vm840_vm8, %v5880_v12, %v5796_v1 }
 0x516   : > { %7892 = vrot.lane.b32.xlu0 %v20039_v9, %s12052_s12  ;;  %11148 = vmatprep.mubr.msk.bf16.mxu0 %vm995_vm9, %v5904_v59  ;;  %v7552_v50 = vpop.permute.xlu1 %7551  ;;  %v12021_v9 = vld [vmem:[%s12123_s14 + $0x40] sm:$0xff]  }
 0x517   : > { %v7660_v19 = vsel %vm840_vm8, %v7636_v54, %v7552_v50  ;;  %v20049_v50 = vld [vmem:[#allocation111_spill] sm:$0xff] }
 0x518   : > { %v5798_v29 = vpop.permute.xlu0 %5797  ;;  %7894 = vrot.lane.b32.xlu1 %v20040_v47, %s12052_s12  ;;  %11288 = vmatprep.mubr.msk.bf16.mxu1 %vm995_vm9, %v7660_v19 }
 0x519   : > { %v5906_v52 = vsel %vm840_vm8, %v5882_v13, %v5798_v29 }
 0x51a   : > { %7870 = vrot.lane.b32.xlu0 %v12019_v40, %s12053_s17  ;;  %11149 = vmatmul.mubr.msk.bf16.gmra.mrb[36].mxu0 %vm995_vm9, %v5906_v52  ;;  %v5728_v11 = vpop.permute.xlu1 %5727 }
 0x51c   : > { %v7554_v20 = vpop.permute.xlu0 %7553  ;;  %6162 = vrot.lane.b32.xlu1 %v20042_v51, %s12047_s15 }
 0x51d   : > { %v7662_v44 = vsel %vm840_vm8, %v7638_v46, %v7554_v20  ;;  %v20050_v20 = vld [vmem:[#allocation65_spill] sm:$0xff] }
 0x51e   : > { %7916 = vrot.lane.b32.xlu0 %v20043_v16, %s12051_s23  ;;  %11289 = vmatmul.mubr.msk.bf16.gmra.mrb[36].mxu1 %vm995_vm9, %v7662_v44  ;;  %v5730_v43 = vpop.permute.xlu1 %5729 }
 0x520   : > { %v5752_v2 = vpop.permute.xlu0 %5751  ;;  %7918 = vrot.lane.b32.xlu1 %v20044_v42, %s12051_s23 }
 0x521   : > { %v5833_v0 = vsel %vm765_vm5, %v5728_v11, %v5752_v2 }
 0x522   : > { %6184 = vrot.lane.b32.xlu0 %v20045_v58, %s12048_s16  ;;  %v7484_v18 = vpop.permute.xlu1 %7483  ;;  %v5860_v45 = vsel %vm790_vm6, %v5833_v0, %v20014_v6 }
 0x524   : > { %v5754_v63 = vpop.permute.xlu0 %5753  ;;  %7940 = vrot.lane.b32.xlu1 %v20045_v58, %s12047_s15 }
 0x525   : > { %v5836_v12 = vsel %vm765_vm5, %v5730_v43, %v5754_v63  ;;  %v20051_v43 = vld [vmem:[#allocation153_spill] sm:$0xff] }
 0x526   : > { %6186 = vrot.lane.b32.xlu0 %v20046_v22, %s12048_s16  ;;  %v5776_v30 = vpop.permute.xlu1 %5775  ;;  %v5862_v19 = vsel %vm790_vm6, %v5836_v12, %v20015_v28 }
 0x527   : > { %v5884_v1 = vsel %vm815_vm7, %v5860_v45, %v5776_v30  ;;  %v20054_v30 = vld [vmem:[#allocation167_spill] sm:$0xff] }
 0x528   : > { %v7508_v26 = vpop.permute.xlu0 %7507  ;;  %6116 = vrot.lane.b32.xlu1 %v12020_v15, %s12052_s12 }
 0x529   : > { %v7589_v47 = vsel %vm765_vm5, %v7484_v18, %v7508_v26  ;;  %v20052_v18 = vld [vmem:[#allocation157_spill] sm:$0xff] }
 0x52a   : > { %7942 = vrot.lane.b32.xlu0 %v20046_v22, %s12047_s15  ;;  %v7510_v34 = vpop.permute.xlu1 %7509 }
 0x52c   : > { %v7486_v40 = vpop.permute.xlu0 %7485  ;;  %6118 = vrot.lane.b32.xlu1 %v12021_v9, %s12052_s12 }
 0x52d   : > { %v7592_v13 = vsel %vm765_vm5, %v7486_v40, %v7510_v34  ;;  %v12022_v34 = vld [vmem:[%s12123_s14 + $0x48] sm:$0xff]  }
 0x52e   : > { %6140 = vrot.lane.b32.xlu0 %v20047_v21, %s12051_s23  ;;  %v5778_v24 = vpop.permute.xlu1 %5777 }
 0x52f   : > { %v5886_v29 = vsel %vm815_vm7, %v5862_v19, %v5778_v24  ;;  %v20055_v24 = vld [vmem:[#allocation142_spill] sm:$0xff] }
 0x530   : > { %v7532_v25 = vpop.permute.xlu0 %7531  ;;  %7872 = vrot.lane.b32.xlu1 %v12020_v15, %s12053_s17 }
 0x531   : > { %v7616_v38 = vsel %vm790_vm6, %v7589_v47, %v7532_v25 }
 0x532   : > { %6142 = vrot.lane.b32.xlu0 %v20048_v56, %s12051_s23  ;;  %v7534_v53 = vpop.permute.xlu1 %7533  ;;  %v7640_v6 = vsel %vm815_vm7, %v7616_v38, %v20012_v27 }
 0x533   : > { %v7618_v52 = vsel %vm790_vm6, %v7592_v13, %v7534_v53  ;;  %v20056_v53 = vld [vmem:[#allocation146_spill] sm:$0xff] }
 0x534   : > { %v5800_v59 = vpop.permute.xlu0 %5799  ;;  %6164 = vrot.lane.b32.xlu1 %v20049_v50, %s12047_s15  ;;  %v7642_v28 = vsel %vm815_vm7, %v7618_v52, %v20013_v8  ;;  %v20053_v8 = vld [vmem:[#allocation164_spill] sm:$0xff] }
 0x535   : > { %v5908_v54 = vsel %vm840_vm8, %v5884_v1, %v5800_v59 }
 0x536   : > { %7896 = vrot.lane.b32.xlu0 %v20047_v21, %s12052_s12  ;;  %11152 = vmatprep.mubr.msk.bf16.mxu0 %vm995_vm9, %v5908_v54  ;;  %v7556_v33 = vpop.permute.xlu1 %7555  ;;  %v12023_v21 = vld [vmem:[%s12123_s14 + $0x50] sm:$0xff]  }
 0x537   : > { %v7664_v49 = vsel %vm840_vm8, %v7640_v6, %v7556_v33  ;;  %v20057_v33 = vld [vmem:[#allocation131_spill] sm:$0xff] }
 0x538   : > { %v5802_v35 = vpop.permute.xlu0 %5801  ;;  %7898 = vrot.lane.b32.xlu1 %v20048_v56, %s12052_s12  ;;  %11292 = vmatprep.mubr.msk.bf16.mxu1 %vm995_vm9, %v7664_v49 }
 0x539   : > { %v5910_v11 = vsel %vm840_vm8, %v5886_v29, %v5802_v35 }
 0x53a   : > { %7874 = vrot.lane.b32.xlu0 %v12021_v9, %s12053_s17  ;;  %11153 = vmatmul.mubr.msk.bf16.gmra.mrb[40].mxu0 %vm995_vm9, %v5910_v11  ;;  %v5732_v27 = vpop.permute.xlu1 %5731 }
 0x53c   : > { %v7558_v46 = vpop.permute.xlu0 %7557  ;;  %6166 = vrot.lane.b32.xlu1 %v20050_v20, %s12047_s15 }
 0x53d   : > { %v7666_v44 = vsel %vm840_vm8, %v7642_v28, %v7558_v46  ;;  %v20058_v46 = vld [vmem:[#allocation141_spill] sm:$0xff] }
 0x53e   : > { %7920 = vrot.lane.b32.xlu0 %v20051_v43, %s12051_s23  ;;  %11293 = vmatmul.mubr.msk.bf16.gmra.mrb[40].mxu1 %vm995_vm9, %v7666_v44  ;;  %v5734_v2 = vpop.permute.xlu1 %5733 }
 0x540   : > { %v5756_v58 = vpop.permute.xlu0 %5755  ;;  %7922 = vrot.lane.b32.xlu1 %v20052_v18, %s12051_s23 }
 0x541   : > { %v5839_v25 = vsel %vm765_vm5, %v5732_v27, %v5756_v58 }
 0x542   : > { %6188 = vrot.lane.b32.xlu0 %v20053_v8, %s12048_s16  ;;  %v7488_v63 = vpop.permute.xlu1 %7487  ;;  %v5864_v38 = vsel %vm790_vm6, %v5839_v25, %v20026_v61 }
 0x544   : > { %v5758_v22 = vpop.permute.xlu0 %5757  ;;  %7944 = vrot.lane.b32.xlu1 %v20053_v8, %s12047_s15 }
 0x545   : > { %v5842_v1 = vsel %vm765_vm5, %v5734_v2, %v5758_v22  ;;  %v20059_v2 = vld [vmem:[#allocation155_spill] sm:$0xff] }
 0x546   : > { %6190 = vrot.lane.b32.xlu0 %v20054_v30, %s12048_s16  ;;  %v5780_v26 = vpop.permute.xlu1 %5779  ;;  %v5866_v49 = vsel %vm790_vm6, %v5842_v1, %v20027_v55 }
 0x547   : > { %v5888_v59 = vsel %vm815_vm7, %v5864_v38, %v5780_v26  ;;  %v20062_v26 = vld [vmem:[#allocation170_spill] sm:$0xff] }
 0x548   : > { %v7512_v15 = vpop.permute.xlu0 %7511  ;;  %6120 = vrot.lane.b32.xlu1 %v12022_v34, %s12052_s12 }
 0x549   : > { %v7595_v56 = vsel %vm765_vm5, %v7488_v63, %v7512_v15  ;;  %v20060_v63 = vld [vmem:[#allocation161_spill] sm:$0xff] }
 0x54a   : > { %7946 = vrot.lane.b32.xlu0 %v20054_v30, %s12047_s15  ;;  %v7514_v40 = vpop.permute.xlu1 %7513 }
 0x54c   : > { %v7490_v9 = vpop.permute.xlu0 %7489  ;;  %6122 = vrot.lane.b32.xlu1 %v12023_v21, %s12052_s12 }
 0x54d   : > { %v7598_v29 = vsel %vm765_vm5, %v7490_v9, %v7514_v40  ;;  %v12024_v40 = vld [vmem:[%s12123_s14 + $0x58] sm:$0xff]  }
 0x54e   : > { %6144 = vrot.lane.b32.xlu0 %v20055_v24, %s12051_s23  ;;  %v5782_v0 = vpop.permute.xlu1 %5781 }
 0x54f   : > { %v5890_v35 = vsel %vm815_vm7, %v5866_v49, %v5782_v0  ;;  %v20063_v0 = vld [vmem:[#allocation145_spill] sm:$0xff] }
 0x550   : > { %v7536_v47 = vpop.permute.xlu0 %7535  ;;  %7876 = vrot.lane.b32.xlu1 %v12022_v34, %s12053_s17 }
 0x551   : > { %v7620_v12 = vsel %vm790_vm6, %v7595_v56, %v7536_v47 }
 0x552   : > { %6146 = vrot.lane.b32.xlu0 %v20056_v53, %s12051_s23  ;;  %v7538_v45 = vpop.permute.xlu1 %7537  ;;  %v7644_v61 = vsel %vm815_vm7, %v7620_v12, %v20021_v62 }
 0x553   : > { %v7622_v11 = vsel %vm790_vm6, %v7598_v29, %v7538_v45  ;;  %v20064_v45 = vld [vmem:[#allocation148_spill] sm:$0xff] }
 0x554   : > { %v5804_v54 = vpop.permute.xlu0 %5803  ;;  %6168 = vrot.lane.b32.xlu1 %v20057_v33, %s12047_s15  ;;  %v7646_v55 = vsel %vm815_vm7, %v7622_v11, %v20025_v48  ;;  %v20061_v48 = vld [vmem:[#allocation166_spill] sm:$0xff] }
 0x555   : > { %v5912_v6 = vsel %vm840_vm8, %v5888_v59, %v5804_v54 }
 0x556   : > { %7900 = vrot.lane.b32.xlu0 %v20055_v24, %s12052_s12  ;;  %11156 = vmatprep.mubr.msk.bf16.mxu0 %vm995_vm9, %v5912_v6  ;;  %v7560_v19 = vpop.permute.xlu1 %7559  ;;  %v12025_v24 = vld [vmem:[%s12123_s14 + $0x60] sm:$0xff]  }
 0x557   : > { %v7668_v13 = vsel %vm840_vm8, %v7644_v61, %v7560_v19  ;;  %v20065_v19 = vld [vmem:[#allocation81_spill] sm:$0xff] }
 0x558   : > { %v5806_v52 = vpop.permute.xlu0 %5805  ;;  %7902 = vrot.lane.b32.xlu1 %v20056_v53, %s12052_s12  ;;  %11296 = vmatprep.mubr.msk.bf16.mxu1 %vm995_vm9, %v7668_v13 }
 0x559   : > { %v5914_v27 = vsel %vm840_vm8, %v5890_v35, %v5806_v52 }
 0x55a   : > { %7878 = vrot.lane.b32.xlu0 %v12023_v21, %s12053_s17  ;;  %11157 = vmatmul.mubr.msk.bf16.gmra.mrb[44].mxu0 %vm995_vm9, %v5914_v27  ;;  %v6109_v62 = vpop.permute.xlu1 %6108 }
 0x55c   : > { %v7562_v28 = vpop.permute.xlu0 %7561  ;;  %6170 = vrot.lane.b32.xlu1 %v20058_v46, %s12047_s15 }
 0x55d   : > { %v7670_v44 = vsel %vm840_vm8, %v7646_v55, %v7562_v28  ;;  %v20066_v28 = vld [vmem:[#allocation97_spill] sm:$0xff] }
 0x55e   : > { %7924 = vrot.lane.b32.xlu0 %v20059_v2, %s12051_s23  ;;  %11297 = vmatmul.mubr.msk.bf16.gmra.mrb[44].mxu1 %vm995_vm9, %v7670_v44  ;;  %v6111_v58 = vpop.permute.xlu1 %6110 }
 0x560   : > { %v6133_v8 = vpop.permute.xlu0 %6132  ;;  %7926 = vrot.lane.b32.xlu1 %v20060_v63, %s12051_s23 }
 0x561   : > { %v6206_v47 = vsel %vm765_vm5, %v6109_v62, %v6133_v8 }
 0x562   : > { %6192 = vrot.lane.b32.xlu0 %v20061_v48, %s12048_s16  ;;  %v7865_v22 = vpop.permute.xlu1 %7864  ;;  %v6241_v12 = vsel %vm790_vm6, %v6206_v47, %v20035_v41  ;;  %v20071_v47 = vld [vmem:[#allocation147_spill] sm:$0xff] }
 0x564   : > { %v6135_v30 = vpop.permute.xlu0 %6134  ;;  %7948 = vrot.lane.b32.xlu1 %v20061_v48, %s12047_s15 }
 0x565   : > { %v6209_v59 = vsel %vm765_vm5, %v6111_v58, %v6135_v30  ;;  %v20067_v58 = vld [vmem:[#allocation159_spill] sm:$0xff] }
 0x566   : > { %6194 = vrot.lane.b32.xlu0 %v20062_v26, %s12048_s16  ;;  %v6157_v15 = vpop.permute.xlu1 %6156  ;;  %v6243_v13 = vsel %vm790_vm6, %v6209_v59, %v20036_v39 }
 0x567   : > { %v6265_v54 = vsel %vm815_vm7, %v6241_v12, %v6157_v15  ;;  %v20070_v15 = vld [vmem:[#allocation173_spill] sm:$0xff] }
 0x568   : > { %v7889_v34 = vpop.permute.xlu0 %7888  ;;  %6124 = vrot.lane.b32.xlu1 %v12024_v40, %s12052_s12 }
 0x569   : > { %v7962_v53 = vsel %vm765_vm5, %v7865_v22, %v7889_v34  ;;  %v20068_v22 = vld [vmem:[#allocation105_spill] sm:$0xff] }
 0x56a   : > { %7950 = vrot.lane.b32.xlu0 %v20062_v26, %s12047_s15  ;;  %v7891_v9 = vpop.permute.xlu1 %7890 }
 0x56c   : > { %v7867_v21 = vpop.permute.xlu0 %7866  ;;  %6126 = vrot.lane.b32.xlu1 %v12025_v24, %s12052_s12 }
 0x56d   : > { %v7965_v35 = vsel %vm765_vm5, %v7867_v21, %v7891_v9  ;;  %v12026_v9 = vld [vmem:[%s12123_s14 + $0x68] sm:$0xff]  }
 0x56e   : > { %6148 = vrot.lane.b32.xlu0 %v20063_v0, %s12051_s23  ;;  %v6159_v25 = vpop.permute.xlu1 %6158  ;;  %v11934_v21 = vld [vmem:[%s18767_s1 + $0xa8] sm:$0xff]  }
 0x56f   : > { %v6267_v52 = vsel %vm815_vm7, %v6243_v13, %v6159_v25  ;;  %11188 = vmatprep.subr.bf16.mxu0 %v11934_v21  ;;  %v12027_v25 = vld [vmem:[%s12123_s14 + $0x70] sm:$0xff]   ;;  %v20073_v13 = vld [vmem:[#allocation143_spill] sm:$0xff] }
 0x570   : > { %v7913_v56 = vpop.permute.xlu0 %7912  ;;  %7880 = vrot.lane.b32.xlu1 %v12024_v40, %s12053_s17 }
 0x571   : > { %v7997_v1 = vsel %vm790_vm6, %v7962_v53, %v7913_v56  ;;  %v11935_v53 = vld [vmem:[%s18767_s1 + $0xe4] sm:$0xff]  }
 0x572   : > { %6150 = vrot.lane.b32.xlu0 %v20064_v45, %s12051_s23  ;;  %v7915_v38 = vpop.permute.xlu1 %7914  ;;  %v8021_v41 = vsel %vm815_vm7, %v7997_v1, %v20033_v10  ;;  %11328 = vmatprep.subr.bf16.mxu1 %v11935_v53  ;;  %v20072_v1 = vld [vmem:[#allocation150_spill] sm:$0xff] }
 0x573   : > { %v7999_v27 = vsel %vm790_vm6, %v7965_v35, %v7915_v38 }
 0x574   : > { %v6181_v6 = vpop.permute.xlu0 %6180  ;;  %6172 = vrot.lane.b32.xlu1 %v20065_v19, %s12047_s15  ;;  %v8023_v39 = vsel %vm815_vm7, %v7999_v27, %v20034_v32  ;;  %v20069_v32 = vld [vmem:[#allocation168_spill] sm:$0xff] }
 0x575   : > { %v6289_v61 = vsel %vm840_vm8, %v6265_v54, %v6181_v6 }
 0x576   : > { %7904 = vrot.lane.b32.xlu0 %v20063_v0, %s12052_s12  ;;  %11164 = vmatprep.mubr.msk.bf16.mxu0 %vm995_vm9, %v6289_v61  ;;  %v7937_v49 = vpop.permute.xlu1 %7936 }
 0x577   : > { %v8045_v29 = vsel %vm840_vm8, %v8021_v41, %v7937_v49 }
 0x578   : > { %v6183_v11 = vpop.permute.xlu0 %6182  ;;  %7906 = vrot.lane.b32.xlu1 %v20064_v45, %s12052_s12  ;;  %11304 = vmatprep.mubr.msk.bf16.mxu1 %vm995_vm9, %v8045_v29 }
 0x579   : > { %v6291_v62 = vsel %vm840_vm8, %v6267_v52, %v6183_v11 }
 0x57a   : > { %7882 = vrot.lane.b32.xlu0 %v12025_v24, %s12053_s17  ;;  %11165 = vmatmul.mubr.msk.bf16.vlgmr.msra.gmra.mrb[24].mxu0 %vm995_vm9, %v6291_v62  ;;  %v6113_v10 = vpop.permute.xlu1 %6112 }
 0x57b   : > { %11189 = vmatpush3.bf16.msra.mxu0 %v11934_v21 }
 0x57c   : > { %v7939_v55 = vpop.permute.xlu0 %7938  ;;  %6174 = vrot.lane.b32.xlu1 %v20066_v28, %s12047_s15 }
 0x57d   : > { %v8047_v44 = vsel %vm840_vm8, %v8023_v39, %v7939_v55 }
 0x57e   : > { %7928 = vrot.lane.b32.xlu0 %v20067_v58, %s12051_s23  ;;  %11305 = vmatmul.mubr.msk.bf16.vlgmr.msra.gmra.mrb[24].mxu1 %vm995_vm9, %v8047_v44  ;;  %v6115_v8 = vpop.permute.xlu1 %6114 }
 0x57f   : > { %11329 = vmatpush3.bf16.msra.mxu1 %v11935_v53 }
 0x580   : > { %v6137_v48 = vpop.permute.xlu0 %6136  ;;  %7930 = vrot.lane.b32.xlu1 %v20068_v22, %s12051_s23 }
 0x581   : > { %v6212_v45 = vsel %vm765_vm5, %v6113_v10, %v6137_v48 }
 0x582   : > { %6196 = vrot.lane.b32.xlu0 %v20069_v32, %s12048_s16  ;;  %v7869_v30 = vpop.permute.xlu1 %7868  ;;  %v6245_v54 = vsel %vm790_vm6, %v6212_v45, %v20043_v16 }
 0x584   : > { %v6139_v26 = vpop.permute.xlu0 %6138  ;;  %7952 = vrot.lane.b32.xlu1 %v20069_v32, %s12047_s15  ;;  %v20075_v32 = vld [vmem:[#allocation107_spill] sm:$0xff] }
 0x585   : > { %v6215_v61 = vsel %vm765_vm5, %v6115_v8, %v6139_v26  ;;  %v20074_v8 = vld [vmem:[#allocation79_spill] sm:$0xff] }
 0x586   : > { %6198 = vrot.lane.b32.xlu0 %v20070_v15, %s12048_s16  ;;  %v6161_v34 = vpop.permute.xlu1 %6160  ;;  %v6247_v52 = vsel %vm790_vm6, %v6215_v61, %v20044_v42 }
 0x587   : > { %v6269_v49 = vsel %vm815_vm7, %v6245_v54, %v6161_v34  ;;  %v20077_v34 = vld [vmem:[#allocation172_spill] sm:$0xff] }
 0x588   : > { %v7893_v40 = vpop.permute.xlu0 %7892  ;;  %6128 = vrot.lane.b32.xlu1 %v12026_v9, %s12052_s12 }
 0x589   : > { %v7968_v12 = vsel %vm765_vm5, %v7869_v30, %v7893_v40 }
 0x58a   : > { %7954 = vrot.lane.b32.xlu0 %v20070_v15, %s12047_s15  ;;  %v7895_v24 = vpop.permute.xlu1 %7894  ;;  %v20076_v15 = vld [vmem:[#allocation77_spill] sm:$0xff] }
 0x58c   : > { %v7871_v0 = vpop.permute.xlu0 %7870  ;;  %6130 = vrot.lane.b32.xlu1 %v12027_v25, %s12052_s12 }
 0x58d   : > { %v7971_v27 = vsel %vm765_vm5, %v7871_v0, %v7895_v24  ;;  %v20078_v24 = vld [vmem:[#allocation176_spill] sm:$0xff] }
 0x58e   : > { %6152 = vrot.lane.b32.xlu0 %v20071_v47, %s12051_s23  ;;  %v6163_v56 = vpop.permute.xlu1 %6162 }
 0x58f   : > { %v6271_v62 = vsel %vm815_vm7, %v6247_v52, %v6163_v56  ;;  %v20079_v56 = vld [vmem:[#allocation163_spill] sm:$0xff] }
 0x590   : > { %v7917_v38 = vpop.permute.xlu0 %7916  ;;  %7884 = vrot.lane.b32.xlu1 %v12026_v9, %s12053_s17 }
 0x591   : > { %v8001_v6 = vsel %vm790_vm6, %v7968_v12, %v7917_v38  ;;  %v12028_v12 = vld [vmem:[%s12123_s14 + $0x28] sm:$0xff]  }
 0x592   : > { %6154 = vrot.lane.b32.xlu0 %v20072_v1, %s12051_s23  ;;  %v7919_v59 = vpop.permute.xlu1 %7918  ;;  %v8025_v16 = vsel %vm815_vm7, %v8001_v6, %v20041_v23 }
 0x593   : > { %v8003_v39 = vsel %vm790_vm6, %v7971_v27, %v7919_v59  ;;  %v20082_v27 = vld [vmem:[#allocation193_spill] sm:$0xff] }
 0x594   : > { %v6185_v41 = vpop.permute.xlu0 %6184  ;;  %6176 = vrot.lane.b32.xlu1 %v20073_v13, %s12047_s15  ;;  %v8027_v42 = vsel %vm815_vm7, %v8003_v39, %v20042_v51  ;;  %v11936_v51 = vld [vmem:[%s18767_s1 + $0xb0] ss:$0 sps:$4 sm:$0x33]  }
 0x595   : > { %v6293_v29 = vsel %vm840_vm8, %v6269_v49, %v6185_v41  ;;  %11798 = vmatprep.subr.msk.bf16.mxu0 %vm1020_vm4, %v11936_v51  ;;  %v6747_v9 = vsel %vm1020_vm4, %v11936_v51, 0  ;;  %v20081_v49 = vld [vmem:[#allocation178_spill] sm:$0xff]  ;;  %v20083_v51 = vld [vmem:[#allocation133_spill] sm:$0xff] }
 0x596   : > { %7908 = vrot.lane.b32.xlu0 %v20071_v47, %s12052_s12  ;;  %11168 = vmatprep.mubr.msk.bf16.mxu0 %vm995_vm9, %v6293_v29  ;;  %v7941_v35 = vpop.permute.xlu1 %7940 }
 0x597   : > { %v8049_v11 = vsel %vm840_vm8, %v8025_v16, %v7941_v35  ;;  %11191 = vmatpush3.bf16.msra.mxu0 %v6747_v9 }
 0x598   : > { %v6187_v10 = vpop.permute.xlu0 %6186  ;;  %7910 = vrot.lane.b32.xlu1 %v20072_v1, %s12052_s12  ;;  %11308 = vmatprep.mubr.msk.bf16.mxu1 %vm995_vm9, %v8049_v11  ;;  %v20080_v1 = vld [vmem:[#allocation175_spill] sm:$0xff] }
 0x599   : > { %v6295_v55 = vsel %vm840_vm8, %v6271_v62, %v6187_v10 }
 0x59a   : > { %7886 = vrot.lane.b32.xlu0 %v12027_v25, %s12053_s17  ;;  %11169 = vmatmul.mubr.msk.bf16.gmra.mrb[28].mxu0 %vm995_vm9, %v6295_v55  ;;  %v6117_v23 = vpop.permute.xlu1 %6116  ;;  %v11937_v25 = vld [vmem:[%s18767_s1 + $0xec] ss:$0 sps:$4 sm:$0x33]  }
 0x59b   : > { %11803 = vmatprep.subr.msk.bf16.mxu1 %vm1020_vm4, %v11937_v25  ;;  %v8503_v53 = vsel %vm1020_vm4, %v11937_v25, 0 }
 0x59c   : > { %v7943_v44 = vpop.permute.xlu0 %7942  ;;  %6178 = vrot.lane.b32.xlu1 %v20074_v8, %s12047_s15  ;;  %11331 = vmatpush3.bf16.msra.mxu1 %v8503_v53 }
 0x59d   : > { %v8051_v48 = vsel %vm840_vm8, %v8027_v42, %v7943_v44 }
 0x59e   : > { %7932 = vrot.lane.b32.xlu0 %v20075_v32, %s12051_s23  ;;  %11309 = vmatmul.mubr.msk.bf16.gmra.mrb[28].mxu1 %vm995_vm9, %v8051_v48  ;;  %v6119_v30 = vpop.permute.xlu1 %6118 }
 0x5a0   : > { %v6141_v26 = vpop.permute.xlu0 %6140  ;;  %7934 = vrot.lane.b32.xlu1 %v20076_v15, %s12051_s23 }
 0x5a1   : > { %v6218_v54 = vsel %vm765_vm5, %v6117_v23, %v6141_v26 }
 0x5a2   : > { %6200 = vrot.lane.b32.xlu0 %v20077_v34, %s12048_s16  ;;  %v7873_v40 = vpop.permute.xlu1 %7872  ;;  %v6249_v29 = vsel %vm790_vm6, %v6218_v54, %v20051_v43 }
 0x5a4   : > { %v6143_v21 = vpop.permute.xlu0 %6142  ;;  %7956 = vrot.lane.b32.xlu1 %v20077_v34, %s12047_s15 }
 0x5a5   : > { %v6221_v16 = vsel %vm765_vm5, %v6119_v30, %v6143_v21 }
 0x5a6   : > { %6202 = vrot.lane.b32.xlu0 %v20078_v24, %s12048_s16  ;;  %v6165_v0 = vpop.permute.xlu1 %6164  ;;  %v6251_v39 = vsel %vm790_vm6, %v6221_v16, %v20052_v18 }
 0x5a7   : > { %v6273_v52 = vsel %vm815_vm7, %v6249_v29, %v6165_v0 }
 0x5a8   : > { %v7897_v47 = vpop.permute.xlu0 %7896  ;;  %6505 = vrot.lane.b32.xlu1 %v20079_v56, %s12052_s12 }
 0x5a9   : > { %v7974_v61 = vsel %vm765_vm5, %v7873_v40, %v7897_v47  ;;  %v20084_v40 = vld [vmem:[#allocation183_spill] sm:$0xff] }
 0x5aa   : > { %7958 = vrot.lane.b32.xlu0 %v20078_v24, %s12047_s15  ;;  %v7899_v45 = vpop.permute.xlu1 %7898  ;;  %v20085_v24 = vld [vmem:[#allocation186_spill] sm:$0xff]  ;;  %v20087_v47 = vld [vmem:[#allocation203_spill] sm:$0xff] }
 0x5ac   : > { %v7875_v38 = vpop.permute.xlu0 %7874  ;;  %6507 = vrot.lane.b32.xlu1 %v12028_v12, %s12052_s12 }
 0x5ad   : > { %v7977_v23 = vsel %vm765_vm5, %v7875_v38, %v7899_v45  ;;  %v12029_v45 = vld [vmem:[%s12123_s14 + $0x30] sm:$0xff]  }
 0x5ae   : > { %6529 = vrot.lane.b32.xlu0 %v20080_v1, %s12051_s23  ;;  %v6167_v59 = vpop.permute.xlu1 %6166 }
 0x5af   : > { %v6275_v42 = vsel %vm815_vm7, %v6251_v39, %v6167_v59  ;;  %v20088_v59 = vld [vmem:[#allocation177_spill] sm:$0xff] }
 0x5b0   : > { %v7921_v6 = vpop.permute.xlu0 %7920  ;;  %8261 = vrot.lane.b32.xlu1 %v20079_v56, %s12053_s17 }
 0x5b1   : > { %v8005_v35 = vsel %vm790_vm6, %v7974_v61, %v7921_v6 }
 0x5b2   : > { %6531 = vrot.lane.b32.xlu0 %v20081_v49, %s12051_s23  ;;  %v7923_v41 = vpop.permute.xlu1 %7922  ;;  %v8029_v43 = vsel %vm815_vm7, %v8005_v35, %v20049_v50 }
 0x5b3   : > { %v8007_v48 = vsel %vm790_vm6, %v7977_v23, %v7923_v41  ;;  %v20089_v41 = vld [vmem:[#allocation91_spill] sm:$0xff] }
 0x5b4   : > { %v6189_v11 = vpop.permute.xlu0 %6188  ;;  %6553 = vrot.lane.b32.xlu1 %v20082_v27, %s12047_s15  ;;  %v8031_v18 = vsel %vm815_vm7, %v8007_v48, %v20050_v20  ;;  %v20086_v20 = vld [vmem:[#allocation200_spill] sm:$0xff] }
 0x5b5   : > { %v6297_v62 = vsel %vm840_vm8, %v6273_v52, %v6189_v11 }
 0x5b6   : > { %8285 = vrot.lane.b32.xlu0 %v20080_v1, %s12052_s12  ;;  %11172 = vmatprep.mubr.msk.bf16.mxu0 %vm995_vm9, %v6297_v62  ;;  %v7945_v10 = vpop.permute.xlu1 %7944  ;;  %v12030_v1 = vld [vmem:[%s12123_s14 + $0x38] sm:$0xff]  }
 0x5b7   : > { %v8053_v55 = vsel %vm840_vm8, %v8029_v43, %v7945_v10  ;;  %v20090_v10 = vld [vmem:[#allocation160_spill] sm:$0xff] }
 0x5b8   : > { %v6191_v44 = vpop.permute.xlu0 %6190  ;;  %8287 = vrot.lane.b32.xlu1 %v20081_v49, %s12052_s12  ;;  %11312 = vmatprep.mubr.msk.bf16.mxu1 %vm995_vm9, %v8053_v55 }
 0x5b9   : > { %v6299_v30 = vsel %vm840_vm8, %v6275_v42, %v6191_v44 }
 0x5ba   : > { %8263 = vrot.lane.b32.xlu0 %v12028_v12, %s12053_s17  ;;  %11173 = vmatmul.mubr.msk.bf16.gmra.mrb[32].mxu0 %vm995_vm9, %v6299_v30  ;;  %v6121_v50 = vpop.permute.xlu1 %6120 }
 0x5bc   : > { %v7947_v26 = vpop.permute.xlu0 %7946  ;;  %6555 = vrot.lane.b32.xlu1 %v20083_v51, %s12047_s15 }
 0x5bd   : > { %v8055_v34 = vsel %vm840_vm8, %v8031_v18, %v7947_v26  ;;  %v20091_v26 = vld [vmem:[#allocation127_spill] sm:$0xff] }
 0x5be   : > { %8309 = vrot.lane.b32.xlu0 %v20084_v40, %s12051_s23  ;;  %11313 = vmatmul.mubr.msk.bf16.gmra.mrb[32].mxu1 %vm995_vm9, %v8055_v34  ;;  %v6123_v9 = vpop.permute.xlu1 %6122 }
 0x5c0   : > { %v6145_v21 = vpop.permute.xlu0 %6144  ;;  %8311 = vrot.lane.b32.xlu1 %v20085_v24, %s12051_s23 }
 0x5c1   : > { %v6224_v6 = vsel %vm765_vm5, %v6121_v50, %v6145_v21 }
 0x5c2   : > { %6577 = vrot.lane.b32.xlu0 %v20086_v20, %s12048_s16  ;;  %v7877_v0 = vpop.permute.xlu1 %7876  ;;  %v6253_v35 = vsel %vm790_vm6, %v6224_v6, %v20059_v2  ;;  %v20096_v6 = vld [vmem:[#allocation75_spill] sm:$0xff] }
 0x5c4   : > { %v6147_v25 = vpop.permute.xlu0 %6146  ;;  %8333 = vrot.lane.b32.xlu1 %v20086_v20, %s12047_s15 }
 0x5c5   : > { %v6227_v52 = vsel %vm765_vm5, %v6123_v9, %v6147_v25  ;;  %v20092_v9 = vld [vmem:[#allocation185_spill] sm:$0xff]  ;;  %v20094_v25 = vld [vmem:[#allocation202_spill] sm:$0xff] }
 0x5c6   : > { %6579 = vrot.lane.b32.xlu0 %v20087_v47, %s12048_s16  ;;  %v6169_v56 = vpop.permute.xlu1 %6168  ;;  %v6255_v55 = vsel %vm790_vm6, %v6227_v52, %v20060_v63 }
 0x5c7   : > { %v6277_v11 = vsel %vm815_vm7, %v6253_v35, %v6169_v56  ;;  %v20095_v56 = vld [vmem:[#allocation205_spill] sm:$0xff] }
 0x5c8   : > { %v7901_v53 = vpop.permute.xlu0 %7900  ;;  %6509 = vrot.lane.b32.xlu1 %v12029_v45, %s12052_s12  ;;  %v20097_v35 = vld [vmem:[#allocation129_spill] sm:$0xff] }
 0x5c9   : > { %v7980_v49 = vsel %vm765_vm5, %v7877_v0, %v7901_v53  ;;  %v20093_v0 = vld [vmem:[#allocation188_spill] sm:$0xff] }
 0x5ca   : > { %8335 = vrot.lane.b32.xlu0 %v20087_v47, %s12047_s15  ;;  %v7903_v38 = vpop.permute.xlu1 %7902 }
 0x5cc   : > { %v7879_v12 = vpop.permute.xlu0 %7878  ;;  %6511 = vrot.lane.b32.xlu1 %v12030_v1, %s12052_s12 }
 0x5cd   : > { %v7983_v42 = vsel %vm765_vm5, %v7879_v12, %v7903_v38  ;;  %v12031_v38 = vld [vmem:[%s12123_s14 + $0x40] sm:$0xff]   ;;  %v12054_v12 = vmov 0  }
 0x5ce   : > { %6533 = vrot.lane.b32.xlu0 %v20088_v59, %s12051_s23  ;;  %v6171_v54 = vpop.permute.xlu1 %6170  ;;  %11827 = vset.pattern.permute.xlu1 %v12054_v12 }
 0x5cf   : > { %v6279_v44 = vsel %vm815_vm7, %v6255_v55, %v6171_v54  ;;  %11828 = vset.pattern.permute.xlu0 %v12054_v12  ;;  %v12032_v54 = vld [vmem:[%s12123_s14 + $0x48] sm:$0xff]  }
 0x5d0   : > { %v7925_v61 = vpop.permute.xlu0 %7924  ;;  %8265 = vrot.lane.b32.xlu1 %v12029_v45, %s12053_s17 }
 0x5d1   : > { %v8009_v16 = vsel %vm790_vm6, %v7980_v49, %v7925_v61 }
 0x5d2   : > { %6535 = vrot.lane.b32.xlu0 %v20089_v41, %s12051_s23  ;;  %v7927_v29 = vpop.permute.xlu1 %7926  ;;  %v8033_v2 = vsel %vm815_vm7, %v8009_v16, %v20057_v33 }
 0x5d3   : > { %v8011_v30 = vsel %vm790_vm6, %v7983_v42, %v7927_v29 }
 0x5d4   : > { %v6193_v62 = vpop.permute.xlu0 %6192  ;;  %6557 = vrot.lane.b32.xlu1 %v20090_v10, %s12047_s15  ;;  %v8035_v63 = vsel %vm815_vm7, %v8011_v30, %v20058_v46 }
 0x5d5   : > { %v6301_v43 = vsel %vm840_vm8, %v6277_v11, %v6193_v62 }
 0x5d6   : > { %8289 = vrot.lane.b32.xlu0 %v20088_v59, %s12052_s12  ;;  %11176 = vmatprep.mubr.msk.bf16.mxu0 %vm995_vm9, %v6301_v43  ;;  %v7949_v39 = vpop.permute.xlu1 %7948 }
 0x5d7   : > { %v8057_v23 = vsel %vm840_vm8, %v8033_v2, %v7949_v39  ;;  %v20098_v2 = vld [vmem:[#allocation171_spill] sm:$0xff] }
 0x5d8   : > { %v6195_v48 = vpop.permute.xlu0 %6194  ;;  %8291 = vrot.lane.b32.xlu1 %v20089_v41, %s12052_s12  ;;  %11316 = vmatprep.mubr.msk.bf16.mxu1 %vm995_vm9, %v8057_v23 }
 0x5d9   : > { %v6303_v50 = vsel %vm840_vm8, %v6279_v44, %v6195_v48 }
 0x5da   : > { %8267 = vrot.lane.b32.xlu0 %v12030_v1, %s12053_s17  ;;  %11177 = vmatmul.mubr.msk.bf16.gmra.mrb[36].mxu0 %vm995_vm9, %v6303_v50  ;;  %v6125_v33 = vpop.permute.xlu1 %6124 }
 0x5dc   : > { %v7951_v18 = vpop.permute.xlu0 %7950  ;;  %6559 = vrot.lane.b32.xlu1 %v20091_v26, %s12047_s15 }
 0x5dd   : > { %v8059_v34 = vsel %vm840_vm8, %v8035_v63, %v7951_v18 }
 0x5de   : > { %8313 = vrot.lane.b32.xlu0 %v20092_v9, %s12051_s23  ;;  %11317 = vmatmul.mubr.msk.bf16.gmra.mrb[36].mxu1 %vm995_vm9, %v8059_v34  ;;  %v6127_v21 = vpop.permute.xlu1 %6126  ;;  %v20099_v34 = vld [vmem:[#allocation115_spill] sm:$0xff] }
 0x5e0   : > { %v6149_v20 = vpop.permute.xlu0 %6148  ;;  %8315 = vrot.lane.b32.xlu1 %v20093_v0, %s12051_s23 }
 0x5e1   : > { %v6230_v49 = vsel %vm765_vm5, %v6125_v33, %v6149_v20  ;;  %v20100_v20 = vld [vmem:[#allocation187_spill] sm:$0xff] }
 0x5e2   : > { %6581 = vrot.lane.b32.xlu0 %v20094_v25, %s12048_s16  ;;  %v7881_v46 = vpop.permute.xlu1 %7880  ;;  %v6257_v52 = vsel %vm790_vm6, %v6230_v49, %v20067_v58 }
 0x5e4   : > { %v6151_v47 = vpop.permute.xlu0 %6150  ;;  %8337 = vrot.lane.b32.xlu1 %v20094_v25, %s12047_s15 }
 0x5e5   : > { %v6233_v62 = vsel %vm765_vm5, %v6127_v21, %v6151_v47  ;;  %v20101_v47 = vld [vmem:[#allocation190_spill] sm:$0xff] }
 0x5e6   : > { %6583 = vrot.lane.b32.xlu0 %v20095_v56, %s12048_s16  ;;  %v6173_v53 = vpop.permute.xlu1 %6172  ;;  %v6259_v42 = vsel %vm790_vm6, %v6233_v62, %v20068_v22 }
 0x5e7   : > { %v6281_v43 = vsel %vm815_vm7, %v6257_v52, %v6173_v53 }
 0x5e8   : > { %v7905_v45 = vpop.permute.xlu0 %7904  ;;  %6513 = vrot.lane.b32.xlu1 %v12031_v38, %s12052_s12 }
 0x5e9   : > { %v7986_v29 = vsel %vm765_vm5, %v7881_v46, %v7905_v45  ;;  %v20103_v45 = vld [vmem:[#allocation207_spill] sm:$0xff] }
 0x5ea   : > { %8339 = vrot.lane.b32.xlu0 %v20095_v56, %s12047_s15  ;;  %v7907_v1 = vpop.permute.xlu1 %7906 }
 0x5ec   : > { %v7883_v59 = vpop.permute.xlu0 %7882  ;;  %6515 = vrot.lane.b32.xlu1 %v12032_v54, %s12052_s12 }
 0x5ed   : > { %v7989_v48 = vsel %vm765_vm5, %v7883_v59, %v7907_v1  ;;  %v12033_v1 = vld [vmem:[%s12123_s14 + $0x50] sm:$0xff]  }
 0x5ee   : > { %6537 = vrot.lane.b32.xlu0 %v20096_v6, %s12051_s23  ;;  %v6175_v61 = vpop.permute.xlu1 %6174 }
 0x5ef   : > { %v6283_v30 = vsel %vm815_vm7, %v6259_v42, %v6175_v61  ;;  %v20104_v61 = vld [vmem:[#allocation109_spill] sm:$0xff] }
 0x5f0   : > { %v7929_v41 = vpop.permute.xlu0 %7928  ;;  %8269 = vrot.lane.b32.xlu1 %v12031_v38, %s12053_s17 }
 0x5f1   : > { %v8013_v11 = vsel %vm790_vm6, %v7986_v29, %v7929_v41 }
 0x5f2   : > { %6539 = vrot.lane.b32.xlu0 %v20097_v35, %s12051_s23  ;;  %v7931_v16 = vpop.permute.xlu1 %7930  ;;  %v8037_v58 = vsel %vm815_vm7, %v8013_v11, %v20065_v19 }
 0x5f3   : > { %v8015_v33 = vsel %vm790_vm6, %v7989_v48, %v7931_v16  ;;  %v20105_v16 = vld [vmem:[#allocation180_spill] sm:$0xff] }
 0x5f4   : > { %v6197_v39 = vpop.permute.xlu0 %6196  ;;  %6561 = vrot.lane.b32.xlu1 %v20098_v2, %s12047_s15  ;;  %v8039_v22 = vsel %vm815_vm7, %v8015_v33, %v20066_v28  ;;  %v20102_v28 = vld [vmem:[#allocation204_spill] sm:$0xff] }
 0x5f5   : > { %v6305_v55 = vsel %vm840_vm8, %v6281_v43, %v6197_v39 }
 0x5f6   : > { %8293 = vrot.lane.b32.xlu0 %v20096_v6, %s12052_s12  ;;  %11180 = vmatprep.mubr.msk.bf16.mxu0 %vm995_vm9, %v6305_v55  ;;  %v7953_v23 = vpop.permute.xlu1 %7952  ;;  %v12034_v6 = vld [vmem:[%s12123_s14 + $0x58] sm:$0xff]  }
 0x5f7   : > { %v8061_v44 = vsel %vm840_vm8, %v8037_v58, %v7953_v23  ;;  %v20106_v23 = vld [vmem:[#allocation196_spill] sm:$0xff] }
 0x5f8   : > { %v6199_v50 = vpop.permute.xlu0 %6198  ;;  %8295 = vrot.lane.b32.xlu1 %v20097_v35, %s12052_s12  ;;  %11320 = vmatprep.mubr.msk.bf16.mxu1 %vm995_vm9, %v8061_v44 }
 0x5f9   : > { %v6307_v63 = vsel %vm840_vm8, %v6283_v30, %v6199_v50 }
 0x5fa   : > { %8271 = vrot.lane.b32.xlu0 %v12032_v54, %s12053_s17  ;;  %11181 = vmatmul.mubr.msk.bf16.gmra.mrb[40].mxu0 %vm995_vm9, %v6307_v63  ;;  %v6129_v19 = vpop.permute.xlu1 %6128 }
 0x5fc   : > { %v7955_v18 = vpop.permute.xlu0 %7954  ;;  %6563 = vrot.lane.b32.xlu1 %v20099_v34, %s12047_s15 }
 0x5fd   : > { %v8063_v21 = vsel %vm840_vm8, %v8039_v22, %v7955_v18  ;;  %v20107_v18 = vld [vmem:[#allocation197_spill] sm:$0xff] }
 0x5fe   : > { %8317 = vrot.lane.b32.xlu0 %v20100_v20, %s12051_s23  ;;  %11321 = vmatmul.mubr.msk.bf16.gmra.mrb[40].mxu1 %vm995_vm9, %v8063_v21  ;;  %v6131_v25 = vpop.permute.xlu1 %6130 }
 0x600   : > { %v6153_v46 = vpop.permute.xlu0 %6152  ;;  %8319 = vrot.lane.b32.xlu1 %v20101_v47, %s12051_s23 }
 0x601   : > { %v6236_v41 = vsel %vm765_vm5, %v6129_v19, %v6153_v46 }
 0x602   : > { %6585 = vrot.lane.b32.xlu0 %v20102_v28, %s12048_s16  ;;  %v7885_v56 = vpop.permute.xlu1 %7884  ;;  %v6261_v11 = vsel %vm790_vm6, %v6236_v41, %v20075_v32 }
 0x604   : > { %v6155_v53 = vpop.permute.xlu0 %6154  ;;  %8341 = vrot.lane.b32.xlu1 %v20102_v28, %s12047_s15 }
 0x605   : > { %v6239_v43 = vsel %vm765_vm5, %v6131_v25, %v6155_v53  ;;  %v20108_v25 = vld [vmem:[#allocation189_spill] sm:$0xff] }
 0x606   : > { %6587 = vrot.lane.b32.xlu0 %v20103_v45, %s12048_s16  ;;  %v6177_v38 = vpop.permute.xlu1 %6176  ;;  %v6263_v44 = vsel %vm790_vm6, %v6239_v43, %v20076_v15 }
 0x607   : > { %v6285_v39 = vsel %vm815_vm7, %v6261_v11, %v6177_v38  ;;  %v20111_v38 = vld [vmem:[#allocation209_spill] sm:$0xff] }
 0x608   : > { %v7909_v12 = vpop.permute.xlu0 %7908  ;;  %6517 = vrot.lane.b32.xlu1 %v12033_v1, %s12052_s12 }
 0x609   : > { %v7992_v35 = vsel %vm765_vm5, %v7885_v56, %v7909_v12  ;;  %v20109_v56 = vld [vmem:[#allocation192_spill] sm:$0xff] }
 0x60a   : > { %8343 = vrot.lane.b32.xlu0 %v20103_v45, %s12047_s15  ;;  %v7911_v59 = vpop.permute.xlu1 %7910 }
 0x60c   : > { %v7887_v54 = vpop.permute.xlu0 %7886  ;;  %6519 = vrot.lane.b32.xlu1 %v12034_v6, %s12052_s12 }
 0x60d   : > { %v7995_v30 = vsel %vm765_vm5, %v7887_v54, %v7911_v59  ;;  %v12035_v59 = vld [vmem:[%s12123_s14 + $0x60] sm:$0xff]  }
 0x60e   : > { %6541 = vrot.lane.b32.xlu0 %v20104_v61, %s12051_s23  ;;  %v6179_v49 = vpop.permute.xlu1 %6178 }
 0x60f   : > { %v6287_v50 = vsel %vm815_vm7, %v6263_v44, %v6179_v49  ;;  %v20112_v49 = vld [vmem:[#allocation179_spill] sm:$0xff] }
 0x610   : > { %v7933_v29 = vpop.permute.xlu0 %7932  ;;  %8273 = vrot.lane.b32.xlu1 %v12033_v1, %s12053_s17 }
 0x611   : > { %v8017_v62 = vsel %vm790_vm6, %v7992_v35, %v7933_v29 }
 0x612   : > { %6543 = vrot.lane.b32.xlu0 %v20105_v16, %s12051_s23  ;;  %v7935_v52 = vpop.permute.xlu1 %7934  ;;  %v8041_v32 = vsel %vm815_vm7, %v8017_v62, %v20073_v13 }
 0x613   : > { %v8019_v63 = vsel %vm790_vm6, %v7995_v30, %v7935_v52  ;;  %v20113_v52 = vld [vmem:[#allocation182_spill] sm:$0xff] }
 0x614   : > { %v6201_v55 = vpop.permute.xlu0 %6200  ;;  %6565 = vrot.lane.b32.xlu1 %v20106_v23, %s12047_s15  ;;  %v8043_v15 = vsel %vm815_vm7, %v8019_v63, %v20074_v8  ;;  %v20110_v8 = vld [vmem:[#allocation206_spill] sm:$0xff] }
 0x615   : > { %v6309_v58 = vsel %vm840_vm8, %v6285_v39, %v6201_v55 }
 0x616   : > { %8297 = vrot.lane.b32.xlu0 %v20104_v61, %s12052_s12  ;;  %11184 = vmatprep.mubr.msk.bf16.mxu0 %vm995_vm9, %v6309_v58  ;;  %v7957_v42 = vpop.permute.xlu1 %7956  ;;  %v12036_v61 = vld [vmem:[%s12123_s14 + $0x68] sm:$0xff]  }
 0x617   : > { %v8065_v48 = vsel %vm840_vm8, %v8041_v32, %v7957_v42  ;;  %v20114_v42 = vld [vmem:[#allocation174_spill] sm:$0xff] }
 0x618   : > { %v6203_v33 = vpop.permute.xlu0 %6202  ;;  %8299 = vrot.lane.b32.xlu1 %v20105_v16, %s12052_s12  ;;  %11324 = vmatprep.mubr.msk.bf16.mxu1 %vm995_vm9, %v8065_v48 }
 0x619   : > { %v6311_v19 = vsel %vm840_vm8, %v6287_v50, %v6203_v33 }
 0x61a   : > { %8275 = vrot.lane.b32.xlu0 %v12034_v6, %s12053_s17  ;;  %11185 = vmatmul.mubr.msk.bf16.gmra.mrb[44].mxu0 %vm995_vm9, %v6311_v19  ;;  %v6506_v13 = vpop.permute.xlu1 %6505 }
 0x61c   : > { %v7959_v22 = vpop.permute.xlu0 %7958  ;;  %6567 = vrot.lane.b32.xlu1 %v20107_v18, %s12047_s15 }
 0x61d   : > { %v8067_v21 = vsel %vm840_vm8, %v8043_v15, %v7959_v22  ;;  %v20115_v22 = vld [vmem:[#allocation199_spill] sm:$0xff] }
 0x61e   : > { %8321 = vrot.lane.b32.xlu0 %v20108_v25, %s12051_s23  ;;  %11325 = vmatmul.mubr.msk.bf16.gmra.mrb[44].mxu1 %vm995_vm9, %v8067_v21  ;;  %v6508_v46 = vpop.permute.xlu1 %6507 }
 0x620   : > { %v6530_v28 = vpop.permute.xlu0 %6529  ;;  %8323 = vrot.lane.b32.xlu1 %v20109_v56, %s12051_s23 }
 0x621   : > { %v6603_v29 = vsel %vm765_vm5, %v6506_v13, %v6530_v28 }
 0x622   : > { %6589 = vrot.lane.b32.xlu0 %v20110_v8, %s12048_s16  ;;  %v8262_v53 = vpop.permute.xlu1 %8261  ;;  %v6638_v62 = vsel %vm790_vm6, %v6603_v29, %v20084_v40  ;;  %v20120_v29 = vld [vmem:[#allocation181_spill] sm:$0xff] }
 0x624   : > { %v6532_v45 = vpop.permute.xlu0 %6531  ;;  %8345 = vrot.lane.b32.xlu1 %v20110_v8, %s12047_s15 }
 0x625   : > { %v6606_v39 = vsel %vm765_vm5, %v6508_v46, %v6532_v45  ;;  %v20116_v46 = vld [vmem:[#allocation191_spill] sm:$0xff] }
 0x626   : > { %6591 = vrot.lane.b32.xlu0 %v20111_v38, %s12048_s16  ;;  %v6554_v12 = vpop.permute.xlu1 %6553  ;;  %v6640_v48 = vsel %vm790_vm6, %v6606_v39, %v20085_v24 }
 0x627   : > { %v6662_v55 = vsel %vm815_vm7, %v6638_v62, %v6554_v12  ;;  %v20119_v12 = vld [vmem:[#allocation211_spill] sm:$0xff]  ;;  %v20121_v62 = vld [vmem:[#allocation184_spill] sm:$0xff] }
 0x628   : > { %v8286_v1 = vpop.permute.xlu0 %8285  ;;  %6521 = vrot.lane.b32.xlu1 %v12035_v59, %s12052_s12 }
 0x629   : > { %v8359_v16 = vsel %vm765_vm5, %v8262_v53, %v8286_v1  ;;  %v20117_v53 = vld [vmem:[#allocation156_spill] sm:$0xff] }
 0x62a   : > { %8347 = vrot.lane.b32.xlu0 %v20111_v38, %s12047_s15  ;;  %v8288_v54 = vpop.permute.xlu1 %8287 }
 0x62c   : > { %v8264_v6 = vpop.permute.xlu0 %8263  ;;  %6523 = vrot.lane.b32.xlu1 %v12036_v61, %s12052_s12 }
 0x62d   : > { %v8362_v50 = vsel %vm765_vm5, %v8264_v6, %v8288_v54  ;;  %v12037_v54 = vld [vmem:[%s12123_s14 + $0x70] sm:$0xff]  }
 0x62e   : > { %6545 = vrot.lane.b32.xlu0 %v20112_v49, %s12051_s23  ;;  %v6556_v41 = vpop.permute.xlu1 %6555 }
 0x62f   : > { %v6664_v33 = vsel %vm815_vm7, %v6640_v48, %v6556_v41 }
 0x630   : > { %v8310_v35 = vpop.permute.xlu0 %8309  ;;  %8277 = vrot.lane.b32.xlu1 %v12035_v59, %s12053_s17 }
 0x631   : > { %v8394_v43 = vsel %vm790_vm6, %v8359_v16, %v8310_v35 }
 0x632   : > { %6547 = vrot.lane.b32.xlu0 %v20113_v52, %s12051_s23  ;;  %v8312_v11 = vpop.permute.xlu1 %8311  ;;  %v8418_v40 = vsel %vm815_vm7, %v8394_v43, %v20082_v27 }
 0x633   : > { %v8396_v19 = vsel %vm790_vm6, %v8362_v50, %v8312_v11 }
 0x634   : > { %v6578_v58 = vpop.permute.xlu0 %6577  ;;  %6569 = vrot.lane.b32.xlu1 %v20114_v42, %s12047_s15  ;;  %v8420_v24 = vsel %vm815_vm7, %v8396_v19, %v20083_v51  ;;  %v20118_v51 = vld [vmem:[#allocation208_spill] sm:$0xff] }
 0x635   : > { %v6686_v32 = vsel %vm840_vm8, %v6662_v55, %v6578_v58 }
 0x636   : > { %8301 = vrot.lane.b32.xlu0 %v20112_v49, %s12052_s12  ;;  %11192 = vmatprep.mubr.msk.bf16.mxu0 %vm995_vm9, %v6686_v32  ;;  %v8334_v44 = vpop.permute.xlu1 %8333  ;;  %v12038_v49 = vld [vmem:[%s12123_s14 + $0x78] sm:$0xff]  }
 0x637   : > { %v8442_v30 = vsel %vm840_vm8, %v8418_v40, %v8334_v44  ;;  %v20122_v44 = vld [vmem:[#allocation198_spill] sm:$0xff] }
 0x638   : > { %v6580_v63 = vpop.permute.xlu0 %6579  ;;  %8303 = vrot.lane.b32.xlu1 %v20113_v52, %s12052_s12  ;;  %11332 = vmatprep.mubr.msk.bf16.mxu1 %vm995_vm9, %v8442_v30 }
 0x639   : > { %v6688_v13 = vsel %vm840_vm8, %v6664_v33, %v6580_v63 }
 0x63a   : > { %8279 = vrot.lane.b32.xlu0 %v12036_v61, %s12053_s17  ;;  %11193 = vmatmul.mubr.msk.bf16.vlgmr.msra.gmra.mrb[24].mxu0 %vm995_vm9, %v6688_v13  ;;  %v6510_v27 = vpop.permute.xlu1 %6509 }
 0x63c   : > { %v8336_v15 = vpop.permute.xlu0 %8335  ;;  %6571 = vrot.lane.b32.xlu1 %v20115_v22, %s12047_s15 }
 0x63d   : > { %v8444_v21 = vsel %vm840_vm8, %v8420_v24, %v8336_v15  ;;  %v20123_v15 = vld [vmem:[#allocation201_spill] sm:$0xff] }
 0x63e   : > { %8325 = vrot.lane.b32.xlu0 %v20116_v46, %s12051_s23  ;;  %11333 = vmatmul.mubr.msk.bf16.vlgmr.msra.gmra.mrb[24].mxu1 %vm995_vm9, %v8444_v21  ;;  %v6512_v28 = vpop.permute.xlu1 %6511 }
 0x640   : > { %v6534_v8 = vpop.permute.xlu0 %6533  ;;  %8327 = vrot.lane.b32.xlu1 %v20117_v53, %s12051_s23 }
 0x641   : > { %v6609_v41 = vsel %vm765_vm5, %v6510_v27, %v6534_v8 }
 0x642   : > { %6593 = vrot.lane.b32.xlu0 %v20118_v51, %s12048_s16  ;;  %v8266_v45 = vpop.permute.xlu1 %8265  ;;  %v6642_v11 = vsel %vm790_vm6, %v6609_v41, %v20092_v9  ;;  %v20128_v41 = vld [vmem:[#allocation220_spill] sm:$0xff] }
 0x644   : > { %v6536_v38 = vpop.permute.xlu0 %6535  ;;  %8349 = vrot.lane.b32.xlu1 %v20118_v51, %s12047_s15 }
 0x645   : > { %v6612_v55 = vsel %vm765_vm5, %v6512_v28, %v6536_v38  ;;  %v20124_v28 = vld [vmem:[#allocation158_spill] sm:$0xff] }
 0x646   : > { %6595 = vrot.lane.b32.xlu0 %v20119_v12, %s12048_s16  ;;  %v6558_v1 = vpop.permute.xlu1 %6557  ;;  %v6644_v50 = vsel %vm790_vm6, %v6612_v55, %v20093_v0  ;;  %v20126_v38 = vld [vmem:[#allocation210_spill] sm:$0xff]  ;;  %v9052_v55 = vld [vmem:[%s18773_s7 + $0x10] sm:$0xff] }
 0x647   : > { %v6666_v58 = vsel %vm815_vm7, %v6642_v11, %v6558_v1  ;;  %v9050_v1 = vld [vmem:[%s18773_s7] sm:$0xff] }
 0x648   : > { %v8290_v59 = vpop.permute.xlu0 %8289  ;;  %6525 = vrot.lane.b32.xlu1 %v12037_v54, %s12052_s12  ;;  %v20129_v11 = vld [vmem:[#allocation222_spill] sm:$0xff] }
 0x649   : > { %v8365_v16 = vsel %vm765_vm5, %v8266_v45, %v8290_v59  ;;  %v20125_v45 = vld [vmem:[#allocation194_spill] sm:$0xff]  ;;  %v20127_v59 = vld [vmem:[#allocation212_spill] sm:$0xff] }
 0x64a   : > { %8351 = vrot.lane.b32.xlu0 %v20119_v12, %s12047_s15  ;;  %v8292_v6 = vpop.permute.xlu1 %8291 }
 0x64c   : > { %v8268_v61 = vpop.permute.xlu0 %8267  ;;  %6527 = vrot.lane.b32.xlu1 %v12038_v49, %s12052_s12 }
 0x64d   : > { %v8368_v48 = vsel %vm765_vm5, %v8268_v61, %v8292_v6 }
 0x64e   : > { %6549 = vrot.lane.b32.xlu0 %v20120_v29, %s12051_s23  ;;  %v6560_v35 = vpop.permute.xlu1 %6559 }
 0x64f   : > { %v6668_v63 = vsel %vm815_vm7, %v6644_v50, %v6560_v35 }
 0x650   : > { %v8314_v52 = vpop.permute.xlu0 %8313  ;;  %8281 = vrot.lane.b32.xlu1 %v12037_v54, %s12053_s17 }
 0x651   : > { %v8398_v39 = vsel %vm790_vm6, %v8365_v16, %v8314_v52 }
 0x652   : > { %6551 = vrot.lane.b32.xlu0 %v20121_v62, %s12051_s23  ;;  %v8316_v43 = vpop.permute.xlu1 %8315  ;;  %v8422_v30 = vsel %vm815_vm7, %v8398_v39, %v20090_v10 }
 0x653   : > { %v8400_v13 = vsel %vm790_vm6, %v8368_v48, %v8316_v43 }
 0x654   : > { %v6582_v32 = vpop.permute.xlu0 %6581  ;;  %6573 = vrot.lane.b32.xlu1 %v20122_v44, %s12047_s15  ;;  %v8424_v0 = vsel %vm815_vm7, %v8400_v13, %v20091_v26 }
 0x655   : > { %v6690_v40 = vsel %vm840_vm8, %v6666_v58, %v6582_v32 }
 0x656   : > { %8305 = vrot.lane.b32.xlu0 %v20120_v29, %s12052_s12  ;;  %11196 = vmatprep.mubr.msk.bf16.mxu0 %vm995_vm9, %v6690_v40  ;;  %v8338_v9 = vpop.permute.xlu1 %8337 }
 0x657   : > { %v8446_v33 = vsel %vm840_vm8, %v8422_v30, %v8338_v9 }
 0x658   : > { %v6584_v19 = vpop.permute.xlu0 %6583  ;;  %8307 = vrot.lane.b32.xlu1 %v20121_v62, %s12052_s12  ;;  %11336 = vmatprep.mubr.msk.bf16.mxu1 %vm995_vm9, %v8446_v33  ;;  %v9051_v62 = vld [vmem:[%s18773_s7 + $0x8] sm:$0xff]  ;;  %s11806_s12 = smul.u32 192, %s20215_s10 }
 0x659   : > { %v6692_v27 = vsel %vm840_vm8, %v6668_v63, %v6584_v19 }
 0x65a   : > { %8283 = vrot.lane.b32.xlu0 %v12038_v49, %s12053_s17  ;;  %11197 = vmatmul.mubr.msk.bf16.gmra.mrb[28].mxu0 %vm995_vm9, %v6692_v27  ;;  %v6514_v10 = vpop.permute.xlu1 %6513 }
 0x65c   : > { %v8340_v24 = vpop.permute.xlu0 %8339  ;;  %6575 = vrot.lane.b32.xlu1 %v20123_v15, %s12047_s15 }
 0x65d   : > { %v8448_v21 = vsel %vm840_vm8, %v8424_v0, %v8340_v24 }
 0x65e   : > { %8329 = vrot.lane.b32.xlu0 %v20124_v28, %s12051_s23  ;;  %11337 = vmatmul.mubr.msk.bf16.gmra.mrb[28].mxu1 %vm995_vm9, %v8448_v21  ;;  %v6516_v8 = vpop.permute.xlu1 %6515 }
 0x660   : > { %v6538_v51 = vpop.permute.xlu0 %6537  ;;  %8331 = vrot.lane.b32.xlu1 %v20125_v45, %s12051_s23 }
 0x661   : > { %v6615_v29 = vsel %vm765_vm5, %v6514_v10, %v6538_v51 }
 0x662   : > { %6597 = vrot.lane.b32.xlu0 %v20126_v38, %s12048_s16  ;;  %v8270_v26 = vpop.permute.xlu1 %8269  ;;  %v6646_v43 = vsel %vm790_vm6, %v6615_v29, %v20100_v20 }
 0x664   : > { %v6540_v12 = vpop.permute.xlu0 %6539  ;;  %8353 = vrot.lane.b32.xlu1 %v20126_v38, %s12047_s15 }
 0x665   : > { %v6618_v32 = vsel %vm765_vm5, %v6516_v8, %v6540_v12 }
 0x666   : > { %6599 = vrot.lane.b32.xlu0 %v20127_v59, %s12048_s16  ;;  %v6562_v54 = vpop.permute.xlu1 %6561  ;;  %v6648_v33 = vsel %vm790_vm6, %v6618_v32, %v20101_v47 }
 0x667   : > { %v6670_v40 = vsel %vm815_vm7, %v6646_v43, %v6562_v54 }
 0x668   : > { %v8294_v6 = vpop.permute.xlu0 %8293  ;;  %9076 = vperm.xlu1 %11827, %v9050_v1  }
 0x669   : > { %v8371_v16 = vsel %vm765_vm5, %v8270_v26, %v8294_v6 }
 0x66a   : > { %8355 = vrot.lane.b32.xlu0 %v20127_v59, %s12047_s15  ;;  %v8296_v61 = vpop.permute.xlu1 %8295  ;;  %s18647_s15 = scalar_lea.vmem %s18775_s9, %s11806_s12 }
 0x66c   : > { %v8272_v49 = vpop.permute.xlu0 %8271  ;;  %8682 = vrot.lane.b32.xlu1 %v20128_v41, %s12048_s16 }
 0x66d   : > { %v8374_v30 = vsel %vm765_vm5, %v8272_v49, %v8296_v61 }
 0x66e   : > { %v6564_v35 = vpop.permute.xlu1 %6563  ;;  %9081 = vperm.xlu0 %11828, %v9051_v62  }
 0x66f   : > { %v6672_v19 = vsel %vm815_vm7, %v6648_v33, %v6564_v35 }
 0x670   : > { %v8318_v52 = vpop.permute.xlu0 %8317  ;;  %8684 = vrot.lane.b32.xlu1 %v20129_v11, %s12048_s16 }
 0x671   : > { %v8402_v58 = vsel %vm790_vm6, %v8371_v16, %v8318_v52 }
 0x672   : > { %v8320_v39 = vpop.permute.xlu1 %8319  ;;  %9086 = vperm.xlu0 %11828, %v9052_v55   ;;  %v8426_v50 = vsel %vm815_vm7, %v8402_v58, %v20098_v2 }
 0x673   : > { %v8404_v27 = vsel %vm790_vm6, %v8374_v30, %v8320_v39 }
 0x674   : > { %v6586_v48 = vpop.permute.xlu0 %6585  ;;  %v8428_v2 = vsel %vm815_vm7, %v8404_v27, %v20099_v34 }
 0x675   : > { %v6694_v9 = vsel %vm840_vm8, %v6670_v40, %v6586_v48 }
 0x676   : > { %11200 = vmatprep.mubr.msk.bf16.mxu0 %vm995_vm9, %v6694_v9  ;;  %v8342_v20 = vpop.permute.xlu1 %8341 }
 0x677   : > { %v8450_v63 = vsel %vm840_vm8, %v8426_v50, %v8342_v20 }
 0x678   : > { %v6588_v13 = vpop.permute.xlu0 %6587  ;;  %11340 = vmatprep.mubr.msk.bf16.mxu1 %vm995_vm9, %v8450_v63 }
 0x679   : > { %v6696_v10 = vsel %vm840_vm8, %v6672_v19, %v6588_v13 }
 0x67a   : > { %11201 = vmatmul.mubr.msk.bf16.gmra.mrb[32].mxu0 %vm995_vm9, %v6696_v10  ;;  %v6518_v0 = vpop.permute.xlu1 %6517 }
 0x67c   : > { %v8344_v24 = vpop.permute.xlu0 %8343 }
 0x67d   : > { %v8452_v47 = vsel %vm840_vm8, %v8428_v2, %v8344_v24 }
 0x67e   : > { %11341 = vmatmul.mubr.msk.bf16.gmra.mrb[32].mxu1 %vm995_vm9, %v8452_v47  ;;  %v6520_v21 = vpop.permute.xlu1 %6519 }
 0x680   : > { %v6542_v8 = vpop.permute.xlu0 %6541 }
 0x681   : > { %v6621_v54 = vsel %vm765_vm5, %v6518_v0, %v6542_v8 }
 0x682   : > { %v8274_v51 = vpop.permute.xlu1 %8273  ;;  %v6650_v34 = vsel %vm790_vm6, %v6621_v54, %v20108_v25 }
 0x684   : > { %v6544_v38 = vpop.permute.xlu0 %6543 }
 0x685   : > { %v6624_v35 = vsel %vm765_vm5, %v6520_v21, %v6544_v38 }
 0x686   : > { %v6566_v26 = vpop.permute.xlu1 %6565  ;;  %v6652_v25 = vsel %vm790_vm6, %v6624_v35, %v20109_v56 }
 0x687   : > { %v6674_v16 = vsel %vm815_vm7, %v6650_v34, %v6566_v26 }
 0x688   : > { %v8298_v12 = vpop.permute.xlu0 %8297 }
 0x689   : > { %v8377_v61 = vsel %vm765_vm5, %v8274_v51, %v8298_v12 }
 0x68a   : > { %v8300_v1 = vpop.permute.xlu1 %8299 }
 0x68c   : > { %v8276_v59 = vpop.permute.xlu0 %8275 }
 0x68d   : > { %v8380_v62 = vsel %vm765_vm5, %v8276_v59, %v8300_v1 }
 0x68e   : > { %v6568_v6 = vpop.permute.xlu1 %6567 }
 0x68f   : > { %v6676_v58 = vsel %vm815_vm7, %v6652_v25, %v6568_v6 }
 0x690   : > { %v8322_v49 = vpop.permute.xlu0 %8321 }
 0x691   : > { %v8406_v29 = vsel %vm790_vm6, %v8377_v61, %v8322_v49 }
 0x692   : > { %v8324_v41 = vpop.permute.xlu1 %8323  ;;  %v8430_v39 = vsel %vm815_vm7, %v8406_v29, %v20106_v23 }
 0x693   : > { %v8408_v40 = vsel %vm790_vm6, %v8380_v62, %v8324_v41 }
 0x694   : > { %v6590_v52 = vpop.permute.xlu0 %6589  ;;  %v8432_v23 = vsel %vm815_vm7, %v8408_v40, %v20107_v18 }
 0x695   : > { %v6698_v11 = vsel %vm840_vm8, %v6674_v16, %v6590_v52 }
 0x696   : > { %11204 = vmatprep.mubr.msk.bf16.mxu0 %vm995_vm9, %v6698_v11  ;;  %v8346_v43 = vpop.permute.xlu1 %8345 }
 0x697   : > { %v8454_v55 = vsel %vm840_vm8, %v8430_v39, %v8346_v43 }
 0x698   : > { %v6592_v32 = vpop.permute.xlu0 %6591  ;;  %11344 = vmatprep.mubr.msk.bf16.mxu1 %vm995_vm9, %v8454_v55 }
 0x699   : > { %v6700_v48 = vsel %vm840_vm8, %v6676_v58, %v6592_v32 }
 0x69a   : > { %11205 = vmatmul.mubr.msk.bf16.gmra.mrb[36].mxu0 %vm995_vm9, %v6700_v48  ;;  %v6522_v9 = vpop.permute.xlu1 %6521 }
 0x69c   : > { %v8348_v30 = vpop.permute.xlu0 %8347 }
 0x69d   : > { %v8456_v56 = vsel %vm840_vm8, %v8432_v23, %v8348_v30 }
 0x69e   : > { %11345 = vmatmul.mubr.msk.bf16.gmra.mrb[36].mxu1 %vm995_vm9, %v8456_v56  ;;  %v6524_v20 = vpop.permute.xlu1 %6523 }
 0x6a0   : > { %v6546_v50 = vpop.permute.xlu0 %6545 }
 0x6a1   : > { %v6627_v0 = vsel %vm765_vm5, %v6522_v9, %v6546_v50 }
 0x6a2   : > { %v8278_v33 = vpop.permute.xlu1 %8277  ;;  %v6654_v18 = vsel %vm790_vm6, %v6627_v0, %v20116_v46 }
 0x6a4   : > { %v6548_v63 = vpop.permute.xlu0 %6547 }
 0x6a5   : > { %v6630_v51 = vsel %vm765_vm5, %v6524_v20, %v6548_v63 }
 0x6a6   : > { %v6570_v19 = vpop.permute.xlu1 %6569  ;;  %v6656_v46 = vsel %vm790_vm6, %v6630_v51, %v20117_v53 }
 0x6a7   : > { %v6678_v38 = vsel %vm815_vm7, %v6654_v18, %v6570_v19 }
 0x6a8   : > { %v8302_v13 = vpop.permute.xlu0 %8301 }
 0x6a9   : > { %v8383_v24 = vsel %vm765_vm5, %v8278_v33, %v8302_v13 }
 0x6aa   : > { %v8304_v27 = vpop.permute.xlu1 %8303 }
 0x6ac   : > { %v8280_v10 = vpop.permute.xlu0 %8279 }
 0x6ad   : > { %v8386_v1 = vsel %vm765_vm5, %v8280_v10, %v8304_v27 }
 0x6ae   : > { %v6572_v2 = vpop.permute.xlu1 %6571 }
 0x6af   : > { %v6680_v61 = vsel %vm815_vm7, %v6656_v46, %v6572_v2 }
 0x6b0   : > { %v8326_v47 = vpop.permute.xlu0 %8325 }
 0x6b1   : > { %v8410_v8 = vsel %vm790_vm6, %v8383_v24, %v8326_v47 }
 0x6b2   : > { %v8328_v21 = vpop.permute.xlu1 %8327  ;;  %v8434_v54 = vsel %vm815_vm7, %v8410_v8, %v20114_v42 }
 0x6b3   : > { %v8412_v34 = vsel %vm790_vm6, %v8386_v1, %v8328_v21  ;;  %v20130_v21 = vld [vmem:[#allocation9_spill] sm:$0xff] }
 0x6b4   : > { %v6594_v26 = vpop.permute.xlu0 %6593  ;;  %v8436_v42 = vsel %vm815_vm7, %v8412_v34, %v20115_v22  ;;  %v20133_v34 = vld [vmem:[#allocation68_spill] sm:$0xff] }
 0x6b5   : > { %v6702_v12 = vsel %vm840_vm8, %v6678_v38, %v6594_v26 }
 0x6b6   : > { %11208 = vmatprep.mubr.msk.bf16.mxu0 %vm995_vm9, %v6702_v12  ;;  %v8350_v59 = vpop.permute.xlu1 %8349 }
 0x6b7   : > { %v8458_v6 = vsel %vm840_vm8, %v8434_v54, %v8350_v59  ;;  %v20131_v59 = vld [vmem:[#allocation221_spill] sm:$0xff] }
 0x6b8   : > { %v6596_v49 = vpop.permute.xlu0 %6595  ;;  %11348 = vmatprep.mubr.msk.bf16.mxu1 %vm995_vm9, %v8458_v6  ;;  %v9053_v6 = vld [vmem:[%s18773_s7 + $0x18] sm:$0xff] }
 0x6b9   : > { %v6704_v41 = vsel %vm840_vm8, %v6680_v61, %v6596_v49  ;;  %v20132_v61 = vld [vmem:[#allocation223_spill] sm:$0xff]  ;;  %v9054_v49 = vld [vmem:[%s18773_s7 + $0x20] sm:$0xff] }
 0x6ba   : > { %11209 = vmatmul.mubr.msk.bf16.gmra.mrb[40].mxu0 %vm995_vm9, %v6704_v41  ;;  %v6526_v29 = vpop.permute.xlu1 %6525  ;;  %v9055_v41 = vld [vmem:[%s18773_s7 + $0x28] sm:$0xff] }
 0x6bc   : > { %v8352_v35 = vpop.permute.xlu0 %8351 }
 0x6bd   : > { %v8460_v53 = vsel %vm840_vm8, %v8436_v42, %v8352_v35  ;;  %v20134_v42 = vld [vmem:[#allocation71_spill] sm:$0xff] }
 0x6be   : > { %11349 = vmatmul.mubr.msk.bf16.gmra.mrb[40].mxu1 %vm995_vm9, %v8460_v53  ;;  %v6528_v16 = vpop.permute.xlu1 %6527  ;;  %v9056_v53 = vld [vmem:[%s18773_s7 + $0x30] sm:$0xff] }
 0x6c0   : > { %v6550_v52 = vpop.permute.xlu0 %6549 }
 0x6c1   : > { %v6633_v58 = vsel %vm765_vm5, %v6526_v29, %v6550_v52 }
 0x6c2   : > { %v8282_v11 = vpop.permute.xlu1 %8281  ;;  %v6658_v22 = vsel %vm790_vm6, %v6633_v58, %v20124_v28  ;;  %v20136_v58 = vld [vmem:[#allocation224_spill] sm:$0xff] }
 0x6c4   : > { %v6552_v62 = vpop.permute.xlu0 %6551 }
 0x6c5   : > { %v6636_v30 = vsel %vm765_vm5, %v6528_v16, %v6552_v62 }
 0x6c6   : > { %v6574_v43 = vpop.permute.xlu1 %6573  ;;  %v6660_v28 = vsel %vm790_vm6, %v6636_v30, %v20125_v45 }
 0x6c7   : > { %v6682_v56 = vsel %vm815_vm7, %v6658_v22, %v6574_v43 }
 0x6c8   : > { %v8306_v39 = vpop.permute.xlu0 %8305 }
 0x6c9   : > { %v8389_v40 = vsel %vm765_vm5, %v8282_v11, %v8306_v39 }
 0x6ca   : > { %v8308_v25 = vpop.permute.xlu1 %8307 }
 0x6cc   : > { %v8284_v55 = vpop.permute.xlu0 %8283 }
 0x6cd   : > { %v8392_v33 = vsel %vm765_vm5, %v8284_v55, %v8308_v25  ;;  %v20135_v25 = vld [vmem:[#allocation69_spill] sm:$0xff] }
 0x6ce   : > { %v6576_v32 = vpop.permute.xlu1 %6575  ;;  %v9057_v55 = vld [vmem:[%s18773_s7 + $0x38] sm:$0xff] }
 0x6cf   : > { %v6684_v27 = vsel %vm815_vm7, %v6660_v28, %v6576_v32  ;;  %v9058_v32 = vld [vmem:[%s18773_s7 + $0x40] sm:$0xff] }
 0x6d0   : > { %v8330_v48 = vpop.permute.xlu0 %8329 }
 0x6d1   : > { %v8414_v23 = vsel %vm790_vm6, %v8389_v40, %v8330_v48  ;;  %v9059_v40 = vld [vmem:[%s18773_s7 + $0x48] sm:$0xff] }
 0x6d2   : > { %v8332_v9 = vpop.permute.xlu1 %8331  ;;  %v8438_v19 = vsel %vm815_vm7, %v8414_v23, %v20122_v44 }
 0x6d3   : > { %v8416_v0 = vsel %vm790_vm6, %v8392_v33, %v8332_v9  ;;  %v9060_v9 = vld [vmem:[%s18773_s7 + $0x50] sm:$0xff]  ;;  %v9062_v33 = vld [vmem:[%s18773_s7 + $0x60] sm:$0xff] }
 0x6d4   : > { %v6598_v20 = vpop.permute.xlu0 %6597  ;;  %v8440_v24 = vsel %vm815_vm7, %v8416_v0, %v20123_v15 }
 0x6d5   : > { %v6706_v50 = vsel %vm840_vm8, %v6682_v56, %v6598_v20 }
 0x6d6   : > { %11212 = vmatprep.mubr.msk.bf16.mxu0 %vm995_vm9, %v6706_v50  ;;  %v8354_v63 = vpop.permute.xlu1 %8353 }
 0x6d7   : > { %v8462_v13 = vsel %vm840_vm8, %v8438_v19, %v8354_v63  ;;  %v9064_v19 = vld [vmem:[%s18773_s7 + $0x70] sm:$0xff] }
 0x6d8   : > { %v6600_v10 = vpop.permute.xlu0 %6599  ;;  %11352 = vmatprep.mubr.msk.bf16.mxu1 %vm995_vm9, %v8462_v13 }
 0x6d9   : > { %v6708_v2 = vsel %vm840_vm8, %v6684_v27, %v6600_v10 }
 0x6da   : > { %11213 = vmatmul.mubr.msk.bf16.gmra.mrb[44].mxu0 %vm995_vm9, %v6708_v2  ;;  %v20137_v2 = vld [vmem:[#allocation70_spill] sm:$0xff] }
 0x6dc   : > { %v8356_v44 = vpop.permute.xlu0 %8355 }
 0x6dd   : > { %v8464_v47 = vsel %vm840_vm8, %v8440_v24, %v8356_v44 }
 0x6de   : > { %11353 = vmatmul.mubr.msk.bf16.gmra.mrb[44].mxu1 %vm995_vm9, %v8464_v47  ;;  %v20138_v47 = vld [vmem:[#allocation73_spill] sm:$0xff] }
 0x6e7   : > { %v17910_v45 = vpop.permute.xlu1 %9076 }
 0x6eb   : > { %v8683_v18 = vpop.permute.xlu1 %8682 }
 0x6ec   : > { %v17914_v8 = vsel %vm790_vm6, %v20130_v21, %v8683_v18  ;;  %v9066_v21 = vld [vmem:[%s18773_s7 + $0x80] sm:$0xff] }
 0x6ed   : > { %v9082_v24 = vpop.permute.xlu0 %9081 }
 0x6ef   : > { %v8685_v44 = vpop.permute.xlu1 %8684 }
 0x6f1   : > { %v9087_v18 = vpop.permute.xlu0 %9086 }
 0x70d   : > { %v11194_v51 = vpop.f32.mrb[24].mxu0 }
 0x70e   : > { %v6783_v38 = vpop.f32.mrb[25].mxu0 }
 0x70f   : > { %v11195_v26 = vpop.f32.mrb[26].mxu0  ;;  %8778 = vrot.lane.b32.xlu1 %v6783_v38, %s12050_s18 }
 0x710   : > { %v6786_v12 = vpop.f32.mrb[27].mxu0 }
 0x711   : > { %8780 = vrot.lane.b32.xlu0 %v6786_v12, %s12050_s18  ;;  %v11334_v15 = vpop.f32.mrb[24].mxu1 }
 0x712   : > { %v8539_v1 = vpop.f32.mrb[25].mxu1 }
 0x713   : > { %8686 = vrot.lane.b32.xlu1 %v20131_v59, %s12048_s16  ;;  %v11335_v54 = vpop.f32.mrb[26].mxu1 }
 0x714   : > { %v8542_v46 = vpop.f32.mrb[27].mxu1 }
 0x715   : > { %8874 = vrot.lane.b32.xlu0 %v8539_v1, %s12055_s26 }
 0x717   : > { %8876 = vrot.lane.b32.xlu1 %v8542_v46, %s12055_s26  ;;  %v20141_v46 = vld [vmem:[#allocation4_spill] sm:$0xff] }
 0x719   : > { %9091 = vperm.xlu0 %11828, %v9053_v6  }
 0x71b   : > { %8782 = vrot.lane.b32.xlu1 %v11194_v51, %s12050_s18 }
 0x71d   : > { %8688 = vrot.lane.b32.xlu0 %v20132_v61, %s12048_s16 }
 0x71f   : > { %8878 = vrot.lane.b32.xlu1 %v11334_v15, %s12055_s26 }
 0x721   : > { %9096 = vperm.xlu0 %11828, %v9054_v49  }
 0x723   : > { %8784 = vrot.lane.b32.xlu1 %v11195_v26, %s12050_s18  ;;  %v20139_v26 = vld [vmem:[#allocation213_spill] sm:$0xff] }
 0x724   : > { %v8947_v12 = vsel %vm790_vm6, %v20139_v26, %v8685_v44 }
 0x725   : > { %8690 = vrot.lane.b32.xlu0 %v20133_v34, %s12048_s16 }
 0x727   : > { %8880 = vrot.lane.b32.xlu1 %v11335_v54, %s12055_s26  ;;  %v20140_v54 = vld [vmem:[#allocation76_spill] sm:$0xff] }
 0x729   : > { %9101 = vperm.xlu0 %11828, %v9055_v41  }
 0x72d   : > { %v11198_v29 = vpop.f32.mrb[28].mxu0  ;;  %8692 = vrot.lane.b32.xlu0 %v20134_v42, %s12048_s16 }
 0x72e   : > { %v6799_v35 = vpop.f32.mrb[29].mxu0 }
 0x72f   : > { %v11199_v16 = vpop.f32.mrb[30].mxu0  ;;  %8786 = vrot.lane.b32.xlu1 %v6799_v35, %s12050_s18 }
 0x730   : > { %v6802_v52 = vpop.f32.mrb[31].mxu0 }
 0x731   : > { %9106 = vperm.xlu0 %11828, %v9056_v53   ;;  %v11338_v11 = vpop.f32.mrb[28].mxu1 }
 0x732   : > { %v8555_v62 = vpop.f32.mrb[29].mxu1 }
 0x733   : > { %8882 = vrot.lane.b32.xlu1 %v8555_v62, %s12055_s26  ;;  %v11339_v43 = vpop.f32.mrb[30].mxu1 }
 0x734   : > { %v8558_v39 = vpop.f32.mrb[31].mxu1 }
 0x735   : > { %8694 = vrot.lane.b32.xlu0 %v20135_v25, %s12048_s16 }
 0x737   : > { %8788 = vrot.lane.b32.xlu1 %v6802_v52, %s12050_s18 }
 0x739   : > { %9111 = vperm.xlu0 %11828, %v9057_v55  }
 0x73b   : > { %8884 = vrot.lane.b32.xlu1 %v8558_v39, %s12055_s26 }
 0x73d   : > { %8696 = vrot.lane.b32.xlu0 %v20136_v58, %s12048_s16 }
 0x73f   : > { %8790 = vrot.lane.b32.xlu1 %v11198_v29, %s12050_s18 }
 0x741   : > { %9116 = vperm.xlu0 %11828, %v9058_v32  }
 0x743   : > { %8886 = vrot.lane.b32.xlu1 %v11338_v11, %s12055_s26 }
 0x745   : > { %8698 = vrot.lane.b32.xlu0 %v16825_v36, %s12048_s16 }
 0x747   : > { %8792 = vrot.lane.b32.xlu1 %v11199_v16, %s12050_s18  ;;  %v9068_v16 = vld [vmem:[%s18773_s7 + $0x90] sm:$0xff] }
 0x749   : > { %9121 = vperm.xlu0 %11828, %v9059_v40   ;;  %v20142_v40 = vld [vmem:[#allocation72_spill] sm:$0xff] }
 0x74b   : > { %8888 = vrot.lane.b32.xlu1 %v11339_v43, %s12055_s26 }
 0x74d   : > { %v11202_v48 = vpop.f32.mrb[32].mxu0  ;;  %8700 = vrot.lane.b32.xlu0 %v16837_v57, %s12048_s16  ;;  %v9061_v57 = vld [vmem:[%s18773_s7 + $0x58] sm:$0xff] }
 0x74e   : > { %v6815_v22 = vpop.f32.mrb[33].mxu0 }
 0x74f   : > { %v11203_v23 = vpop.f32.mrb[34].mxu0  ;;  %8794 = vrot.lane.b32.xlu1 %v6815_v22, %s12050_s18 }
 0x750   : > { %v6818_v36 = vpop.f32.mrb[35].mxu0 }
 0x751   : > { %9126 = vperm.xlu0 %11828, %v9060_v9   ;;  %v11342_v30 = vpop.f32.mrb[32].mxu1  ;;  %v9069_v9 = vld [vmem:[%s18773_s7 + $0x98] sm:$0xff] }
 0x752   : > { %v8571_v56 = vpop.f32.mrb[33].mxu1 }
 0x753   : > { %8890 = vrot.lane.b32.xlu1 %v8571_v56, %s12055_s26  ;;  %v11343_v20 = vpop.f32.mrb[34].mxu1 }
 0x754   : > { %v8574_v50 = vpop.f32.mrb[35].mxu1 }
 0x755   : > { %8702 = vrot.lane.b32.xlu0 %v16821_v3, %s12048_s16  ;;  %v9063_v3 = vld [vmem:[%s18773_s7 + $0x68] sm:$0xff] }
 0x757   : > { %8796 = vrot.lane.b32.xlu1 %v6818_v36, %s12050_s18 }
 0x759   : > { %9131 = vperm.xlu0 %11828, %v9061_v57  }
 0x75b   : > { %8892 = vrot.lane.b32.xlu1 %v8574_v50, %s12055_s26 }
 0x75d   : > { %8704 = vrot.lane.b32.xlu0 %v16832_v37, %s12048_s16 }
 0x75f   : > { %8798 = vrot.lane.b32.xlu1 %v11202_v48, %s12050_s18 }
 0x761   : > { %9136 = vperm.xlu0 %11828, %v9062_v33  }
 0x763   : > { %8894 = vrot.lane.b32.xlu1 %v11342_v30, %s12055_s26 }
 0x765   : > { %8706 = vrot.lane.b32.xlu0 %v16855_v14, %s12048_s16 }
 0x767   : > { %8800 = vrot.lane.b32.xlu1 %v11203_v23, %s12050_s18 }
 0x769   : > { %9141 = vperm.xlu0 %11828, %v9063_v3   ;;  %v20143_v3 = vld [vmem:[#allocation8_spill] sm:$0xff] }
 0x76b   : > { %8896 = vrot.lane.b32.xlu1 %v11343_v20, %s12055_s26 }
 0x76d   : > { %v11206_v37 = vpop.f32.mrb[36].mxu0  ;;  %8708 = vrot.lane.b32.xlu0 %v16860_v60, %s12048_s16  ;;  %v9065_v60 = vld [vmem:[%s18773_s7 + $0x78] sm:$0xff] }
 0x76e   : > { %v6831_v63 = vpop.f32.mrb[37].mxu0 }
 0x76f   : > { %v11207_v28 = vpop.f32.mrb[38].mxu0  ;;  %8802 = vrot.lane.b32.xlu1 %v6831_v63, %s12050_s18  ;;  %v20144_v63 = vld [vmem:[#allocation3_spill] sm:$0xff] }
 0x770   : > { %v6834_v14 = vpop.f32.mrb[39].mxu0 }
 0x771   : > { %9146 = vperm.xlu0 %11828, %v9064_v19   ;;  %v11346_v13 = vpop.f32.mrb[36].mxu1 }
 0x772   : > { %v8587_v27 = vpop.f32.mrb[37].mxu1 }
 0x773   : > { %8898 = vrot.lane.b32.xlu1 %v8587_v27, %s12055_s26  ;;  %v11347_v10 = vpop.f32.mrb[38].mxu1 }
 0x774   : > { %v8590_v0 = vpop.f32.mrb[39].mxu1 }
 0x775   : > { %8710 = vrot.lane.b32.xlu0 %v20137_v2, %s12048_s16 }
 0x777   : > { %8804 = vrot.lane.b32.xlu1 %v6834_v14, %s12050_s18 }
 0x779   : > { %9151 = vperm.xlu0 %11828, %v9065_v60  }
 0x77b   : > { %8900 = vrot.lane.b32.xlu1 %v8590_v0, %s12055_s26 }
 0x77d   : > { %8712 = vrot.lane.b32.xlu0 %v20138_v47, %s12048_s16 }
 0x77f   : > { %8806 = vrot.lane.b32.xlu1 %v11206_v37, %s12050_s18 }
 0x781   : > { %v8779_v51 = vpop.permute.xlu1 %8778  ;;  %9156 = vperm.xlu0 %11828, %v9066_v21  }
 0x782   : > { %v8970_v38 = vsel %vm840_vm8, %v17914_v8, %v8779_v51  ;;  %v9067_v8 = vld [vmem:[%s18773_s7 + $0x88] sm:$0xff] }
 0x783   : > { %v8781_v15 = vpop.permute.xlu0 %8780  ;;  %8902 = vrot.lane.b32.xlu1 %v11346_v13, %s12055_s26  ;;  %v9070_v13 = vld [vmem:[%s18773_s7 + $0xa0] sm:$0xff] }
 0x784   : > { %v8971_v1 = vsel %vm840_vm8, %v8947_v12, %v8781_v15 }
 0x785   : > { %v8687_v59 = vpop.permute.xlu1 %8686  ;;  %8714 = vrot.lane.b32.xlu0 %v20140_v54, %s12048_s16  ;;  %v20145_v54 = vld [vmem:[#allocation10_spill] sm:$0xff] }
 0x786   : > { %v8948_v6 = vsel %vm790_vm6, %v20141_v46, %v8687_v59 }
 0x787   : > { %v8875_v61 = vpop.permute.xlu0 %8874  ;;  %8808 = vrot.lane.b32.xlu1 %v11207_v28, %s12050_s18 }
 0x788   : > { %v8995_v49 = vsel %vm8994_vm10, %v8970_v38, %v8875_v61 }
 0x789   : > { %9161 = vperm.xlu0 %11828, %v9067_v8   ;;  %v8877_v34 = vpop.permute.xlu1 %8876 }
 0x78a   : > { %v8996_v41 = vsel %vm8994_vm10, %v8971_v1, %v8877_v34  ;;  %v9071_v34 = vld [vmem:[%s18773_s7 + $0xa8] sm:$0xff] }
 0x78b   : > { %8904 = vrot.lane.b32.xlu1 %v11347_v10, %s12055_s26 }
 0x78d   : > { %v11210_v29 = vpop.f32.mrb[40].mxu0  ;;  %8716 = vrot.lane.b32.xlu0 %v16877_v5, %s12048_s16  ;;  %v8783_v42 = vpop.permute.xlu1 %8782  ;;  %v18045_v5 = vld [vmem:[%s18768_s2] ss:$0 sm:$0xff] }
 0x78e   : > { %v8972_v35 = vsel %vm840_vm8, %v8948_v6, %v8783_v42  ;;  %v6847_v53 = vpop.f32.mrb[41].mxu0  ;;  %v18051_v58 = vadd.f32 %v18045_v5, %v8996_v41  ;;  %v18056_v48 = vadd.f32 %v18045_v5, %v8995_v49 }
 0x78f   : > { %v18038_v52 = vpop.f32.mrb[42].mxu0  ;;  %8810 = vrot.lane.b32.xlu1 %v6847_v53, %s12050_s18 }
 0x790   : > { %v6850_v11 = vpop.f32.mrb[43].mxu0  ;;  %v9195_v36 = vmul.f32 %v9082_v24, %v18051_v58  ;;  %v9194_v56 = vmul.f32 %v17910_v45, %v18056_v48 }
 0x791   : > { %9166 = vperm.xlu0 %11828, %v9068_v16   ;;  %v8879_v62 = vpop.permute.xlu1 %8878  ;;  %v11350_v43 = vpop.f32.mrb[40].mxu1 }
 0x792   : > { %v8997_v39 = vsel %vm8994_vm10, %v8972_v35, %v8879_v62  ;;  %v8603_v25 = vpop.f32.mrb[41].mxu1  ;;  %v9273_v50 = vmul.f32 %v9195_v36, %v9195_v36  ;;  %v9272_v19 = vmul.f32 %v9194_v56, %v9194_v56  ;;  %v9220_v28 = vsel %vm19227_vm11, %v9195_v36, 0.0 }
 0x793   : > { %8906 = vrot.lane.b32.xlu1 %v8603_v25, %s12055_s26  ;;  %v18048_v55 = vpop.f32.mrb[42].mxu1  ;;  %v18059_v22 = vadd.f32 %v18045_v5, %v8997_v39  ;;  %v9219_v10 = vsel %vm19227_vm11, %v9194_v56, 0.0  ;;  %v12056_v35 = vmov 0.0|0.0  }
 0x794   : > { %v8606_v32 = vpop.f32.mrb[43].mxu1  ;;  %v9297_v0 = vsel %vm19227_vm11, %v9273_v50, 0.0  ;;  %v9221_v44 = vadd.f32 %v9220_v28, %v9219_v10  ;;  %11388 = vmatprep.subr.bf16.mxu0 %v12056_v35  ;;  %11394 = vmatprep.subr.bf16.mxu1 %v12056_v35  ;;  %v9350_v50 = vld [vmem:[%s18769_s3 + $0x8] sm:$0xff] }
 0x795   : > { %8718 = vrot.lane.b32.xlu0 %v20142_v40, %s12048_s16  ;;  %v8785_v23 = vpop.permute.xlu1 %8784  ;;  %v9196_v20 = vmul.f32 %v9087_v18, %v18059_v22  ;;  %v9296_v18 = vsel %vm19227_vm11, %v9272_v19, 0.0 }
 0x796   : > { %v9298_v38 = vadd.f32 %v9297_v0, %v9296_v18 }
 0x797   : > { %8812 = vrot.lane.b32.xlu1 %v6850_v11, %s12050_s18  ;;  %v9274_v14 = vmul.f32 %v9196_v20, %v9196_v20  ;;  %v9222_v2 = vsel %vm19227_vm11, %v9196_v20, 0.0 }
 0x798   : > { %v9092_v30 = vpop.permute.xlu0 %9091  ;;  %v9223_v26 = vadd.f32 %v9222_v2, %v9221_v44 }
 0x799   : > { %9171 = vperm.xlu0 %11828, %v9069_v9   ;;  %v8881_v33 = vpop.permute.xlu1 %8880  ;;  %v9299_v21 = vsel %vm19227_vm11, %v9274_v14, 0.0 }
 0x79a   : > { %v9300_v59 = vadd.f32 %v9299_v21, %v9298_v38 }
 0x79b   : > { %8908 = vrot.lane.b32.xlu1 %v8606_v32, %s12055_s26 }
 0x79c   : > { %v8689_v57 = vpop.permute.xlu0 %8688 }
 0x79d   : > { %v8949_v37 = vsel %vm790_vm6, %v20143_v3, %v8689_v57  ;;  %8720 = vrot.lane.b32.xlu0 %v20144_v63, %s12048_s16 }
 0x79e   : > { %v8973_v45 = vsel %vm840_vm8, %v8949_v37, %v8785_v23 }
 0x79f   : > { %v8998_v27 = vsel %vm8994_vm10, %v8973_v45, %v8881_v33  ;;  %8814 = vrot.lane.b32.xlu1 %v11210_v29, %s12050_s18 }
 0x7a0   : > { %v18085_v60 = vadd.f32 %v18045_v5, %v8998_v27  ;;  %v9097_v24 = vpop.permute.xlu0 %9096 }
 0x7a1   : > { %9176 = vperm.xlu0 %11828, %v9070_v13   ;;  %v8787_v47 = vpop.permute.xlu1 %8786 }
 0x7a2   : > { %v9197_v51 = vmul.f32 %v9092_v30, %v18085_v60 }
 0x7a3   : > { %8910 = vrot.lane.b32.xlu1 %v11350_v43, %s12055_s26 }
 0x7a4   : > { %v9275_v12 = vmul.f32 %v9197_v51, %v9197_v51  ;;  %v8691_v15 = vpop.permute.xlu0 %8690  ;;  %v9224_v1 = vsel %vm19227_vm11, %v9197_v51, 0.0  ;;  %v9073_v51 = vld [vmem:[%s18773_s7 + $0xb8] sm:$0xff] }
 0x7a5   : > { %v8950_v46 = vsel %vm790_vm6, %v20145_v54, %v8691_v15  ;;  %8722 = vrot.lane.b32.xlu0 %v16914_v7, %s12048_s16  ;;  %v9225_v6 = vadd.f32 %v9224_v1, %v9223_v26  ;;  %v8883_v8 = vpop.permute.xlu1 %8882 }
 0x7a6   : > { %v8974_v61 = vsel %vm840_vm8, %v8950_v46, %v8787_v47  ;;  %v9301_v49 = vsel %vm19227_vm11, %v9275_v12, 0.0 }
 0x7a7   : > { %v9302_v41 = vadd.f32 %v9301_v49, %v9300_v59  ;;  %v8999_v29 = vsel %vm8994_vm10, %v8974_v61, %v8883_v8  ;;  %8816 = vrot.lane.b32.xlu1 %v18038_v52, %s12050_s18  ;;  %v20146_v52 = vld [vmem:[#allocation12_spill] sm:$0xff]  ;;  %v20148_v8 = vld [vmem:[#allocation13_spill] sm:$0xff] }
 0x7a8   : > { %v18105_v42 = vadd.f32 %v18045_v5, %v8999_v29  ;;  %v9102_v7 = vpop.permute.xlu0 %9101 }
 0x7a9   : > { %9181 = vperm.xlu0 %11828, %v9071_v34   ;;  %v8789_v53 = vpop.permute.xlu1 %8788 }
 0x7aa   : > { %v9198_v16 = vmul.f32 %v9097_v24, %v18105_v42  ;;  %v20147_v24 = vld [vmem:[#allocation11_spill] sm:$0xff] }
 0x7ab   : > { %8912 = vrot.lane.b32.xlu1 %v18048_v55, %s12055_s26  ;;  %v9072_v55 = vld [vmem:[%s18773_s7 + $0xb0] sm:$0xff] }
 0x7ac   : > { %v9226_v11 = vsel %vm19227_vm11, %v9198_v16, 0.0  ;;  %v9276_v62 = vmul.f32 %v9198_v16, %v9198_v16  ;;  %v8693_v43 = vpop.permute.xlu0 %8692 }
 0x7ad   : > { %v9227_v39 = vadd.f32 %v9226_v11, %v9225_v6  ;;  %v8951_v25 = vsel %vm790_vm6, %v20146_v52, %v8693_v43  ;;  %v11214_v32 = vpop.f32.mrb[44].mxu0  ;;  %8724 = vrot.lane.b32.xlu0 %v16926_v17, %s12048_s16  ;;  %v8885_v40 = vpop.permute.xlu1 %8884  ;;  %v9349_v17 = vld [vmem:[%s18769_s3] sm:$0xff] }
 0x7ae   : > { %v9303_v9 = vsel %vm19227_vm11, %v9276_v62, 0.0  ;;  %v8975_v23 = vsel %vm840_vm8, %v8951_v25, %v8789_v53  ;;  %v6863_v36 = vpop.f32.mrb[45].mxu0  ;;  %v11389_v37 = vpack.c.bf16 %v9350_v50, %v9349_v17  ;;  %v9352_v53 = vld [vmem:[%s18769_s3 + $0x18] sm:$0xff] }
 0x7af   : > { %v9304_v30 = vadd.f32 %v9303_v9, %v9302_v41  ;;  %v9000_v56 = vsel %vm8994_vm10, %v8975_v23, %v8885_v40  ;;  %v11215_v20 = vpop.f32.mrb[46].mxu0  ;;  %8818 = vrot.lane.b32.xlu1 %v6863_v36, %s12050_s18  ;;  %v20149_v40 = vld [vmem:[#allocation162_spill] sm:$0xff] }
 0x7b0   : > { %v18129_v57 = vadd.f32 %v18045_v5, %v9000_v56  ;;  %v6866_v33 = vpop.f32.mrb[47].mxu0  ;;  %v9107_v3 = vpop.permute.xlu0 %9106  ;;  %11390 = vmatpush3.bf16.msra.mxu0 %v11389_v37  ;;  %11396 = vmatpush3.bf16.msra.mxu1 %v11389_v37 }
 0x7b1   : > { %9186 = vperm.xlu0 %11828, %v9072_v55   ;;  %v8791_v63 = vpop.permute.xlu1 %8790  ;;  %v11354_v19 = vpop.f32.mrb[44].mxu1  ;;  %11391 = vmatprep.subr.bf16.mxu0 %v12056_v35 }
 0x7b2   : > { %v9199_v28 = vmul.f32 %v9102_v7, %v18129_v57  ;;  %v8619_v14 = vpop.f32.mrb[45].mxu1  ;;  %11397 = vmatprep.subr.bf16.mxu1 %v12056_v35  ;;  %v9351_v35 = vld [vmem:[%s18769_s3 + $0x10] sm:$0xff] }
 0x7b3   : > { %8914 = vrot.lane.b32.xlu1 %v8619_v14, %s12055_s26  ;;  %v11355_v45 = vpop.f32.mrb[46].mxu1  ;;  %v11392_v11 = vpack.c.bf16 %v9352_v53, %v9351_v35  ;;  %v20152_v53 = vld [vmem:[#allocation169_spill] sm:$0xff] }
 0x7b4   : > { %v9228_v13 = vsel %vm19227_vm11, %v9199_v28, 0.0  ;;  %v9277_v27 = vmul.f32 %v9199_v28, %v9199_v28  ;;  %v8695_v10 = vpop.permute.xlu0 %8694  ;;  %v8622_v0 = vpop.f32.mrb[47].mxu1  ;;  %v20150_v28 = vld [vmem:[#allocation226_spill] sm:$0xff] }
 0x7b5   : > { %v9229_v2 = vadd.f32 %v9228_v13, %v9227_v39  ;;  %v8952_v44 = vsel %vm790_vm6, %v20147_v24, %v8695_v10  ;;  %8726 = vrot.lane.b32.xlu0 %v16910_v31, %s12048_s16  ;;  %v8887_v47 = vpop.permute.xlu1 %8886  ;;  %11393 = vmatpush3.bf16.msra.mxu0 %v11392_v11 }
 0x7b6   : > { %v9305_v18 = vsel %vm19227_vm11, %v9277_v27, 0.0  ;;  %v8976_v21 = vsel %vm840_vm8, %v8952_v44, %v8791_v63  ;;  %11399 = vmatpush3.bf16.msra.mxu1 %v11392_v11 }
 0x7b7   : > { %v9306_v38 = vadd.f32 %v9305_v18, %v9304_v30  ;;  %v9001_v26 = vsel %vm8994_vm10, %v8976_v21, %v8887_v47  ;;  %8820 = vrot.lane.b32.xlu1 %v6866_v33, %s12050_s18 }
 0x7b8   : > { %v18146_v12 = vadd.f32 %v18045_v5, %v9001_v26  ;;  %v9112_v15 = vpop.permute.xlu0 %9111  ;;  %v20151_v26 = vld [vmem:[#allocation15_spill] sm:$0xff] }
 0x7b9   : > { %9191 = vperm.xlu0 %11828, %v9073_v51   ;;  %v8793_v31 = vpop.permute.xlu1 %8792 }
 0x7ba   : > { %v9200_v1 = vmul.f32 %v9107_v3, %v18146_v12 }
 0x7bb   : > { %8916 = vrot.lane.b32.xlu1 %v8622_v0, %s12055_s26 }
 0x7bc   : > { %v9230_v59 = vsel %vm19227_vm11, %v9200_v1, 0.0  ;;  %v9278_v54 = vmul.f32 %v9200_v1, %v9200_v1  ;;  %v8697_v46 = vpop.permute.xlu0 %8696  ;;  %v12058_v1 = vmov 0.0  }
 0x7bd   : > { %v9231_v6 = vadd.f32 %v9230_v59, %v9229_v2  ;;  %v8953_v61 = vsel %vm790_vm6, %v20148_v8, %v8697_v46  ;;  %8728 = vrot.lane.b32.xlu0 %v16919_v4, %s12048_s16  ;;  %v8889_v49 = vpop.permute.xlu1 %8888  ;;  %11364 = vmatprep.mubr.msk.f32.mxu0 %vm12057_vm12, %v12058_v1 }
 0x7be   : > { %v9307_v34 = vsel %vm19227_vm11, %v9278_v54, 0.0  ;;  %v8977_v41 = vsel %vm840_vm8, %v8953_v61, %v8793_v31  ;;  %11375 = vmatprep.mubr.msk.f32.mxu1 %vm12057_vm12, %v12058_v1  ;;  %11378 = vmatprep.subr.mxu0 %v12058_v1 }
 0x7bf   : > { %v9308_v29 = vadd.f32 %v9307_v34, %v9306_v38  ;;  %v9002_v7 = vsel %vm8994_vm10, %v8977_v41, %v8889_v49  ;;  %8822 = vrot.lane.b32.xlu1 %v11214_v32, %s12050_s18  ;;  %11383 = vmatprep.subr.mxu1 %v12058_v1 }
 0x7c0   : > { %v18166_v4 = vadd.f32 %v18045_v5, %v9002_v7  ;;  %v9117_v16 = vpop.permute.xlu0 %9116 }
 0x7c1   : > { %8824 = vrot.lane.b32.xlu0 %v11215_v20, %s12050_s18  ;;  %v8795_v62 = vpop.permute.xlu1 %8794 }
 0x7c2   : > { %v9201_v43 = vmul.f32 %v9112_v15, %v18166_v4 }
 0x7c3   : > { %8918 = vrot.lane.b32.xlu1 %v11354_v19, %s12055_s26 }
 0x7c4   : > { %v9232_v39 = vsel %vm19227_vm11, %v9201_v43, 0.0  ;;  %v9279_v52 = vmul.f32 %v9201_v43, %v9201_v43  ;;  %v8699_v25 = vpop.permute.xlu0 %8698 }
 0x7c5   : > { %v9233_v32 = vadd.f32 %v9232_v39, %v9231_v6  ;;  %v8954_v9 = vsel %vm790_vm6, %v20149_v40, %v8699_v25  ;;  %v8891_v23 = vpop.permute.xlu1 %8890 }
 0x7c6   : > { %v9309_v36 = vsel %vm19227_vm11, %v9279_v52, 0.0  ;;  %v8978_v55 = vsel %vm840_vm8, %v8954_v9, %v8795_v62 }
 0x7c7   : > { %v9310_v30 = vadd.f32 %v9309_v36, %v9308_v29  ;;  %v9003_v56 = vsel %vm8994_vm10, %v8978_v55, %v8891_v23  ;;  %8920 = vrot.lane.b32.xlu1 %v11355_v45, %s12055_s26  ;;  %s11805_s26 = smul.u32 96, %s20215_s10 }
 0x7c8   : > { %v18179_v20 = vadd.f32 %v18045_v5, %v9003_v56  ;;  %v9122_v17 = vpop.permute.xlu0 %9121  ;;  %v20153_v56 = vld [vmem:[#allocation214_spill] sm:$0xff] }
 0x7c9   : > { %v8797_v50 = vpop.permute.xlu1 %8796  ;;  %s18361_s20 = scalar_lea.vmem %s18774_s8, %s11805_s26 }
 0x7ca   : > { %v9202_v33 = vmul.f32 %v9117_v16, %v18179_v20 }
 0x7cc   : > { %v9234_v3 = vsel %vm19227_vm11, %v9202_v33, 0.0  ;;  %v9280_v37 = vmul.f32 %v9202_v33, %v9202_v33  ;;  %v8701_v63 = vpop.permute.xlu0 %8700 }
 0x7cd   : > { %v9235_v19 = vadd.f32 %v9234_v3, %v9233_v32  ;;  %v8955_v14 = vsel %vm790_vm6, %v20150_v28, %v8701_v63  ;;  %v8893_v13 = vpop.permute.xlu1 %8892 }
 0x7ce   : > { %v9311_v27 = vsel %vm19227_vm11, %v9280_v37, 0.0  ;;  %v8979_v45 = vsel %vm840_vm8, %v8955_v14, %v8797_v50 }
 0x7cf   : > { %v9312_v10 = vadd.f32 %v9311_v27, %v9310_v30  ;;  %v9004_v0 = vsel %vm8994_vm10, %v8979_v45, %v8893_v13 }
 0x7d0   : > { %v18189_v2 = vadd.f32 %v18045_v5, %v9004_v0  ;;  %v9127_v24 = vpop.permute.xlu0 %9126 }
 0x7d1   : > { %v8799_v44 = vpop.permute.xlu1 %8798 }
 0x7d2   : > { %v9203_v47 = vmul.f32 %v9122_v17, %v18189_v2 }
 0x7d4   : > { %v9236_v18 = vsel %vm19227_vm11, %v9203_v47, 0.0  ;;  %v9281_v21 = vmul.f32 %v9203_v47, %v9203_v47  ;;  %v8703_v51 = vpop.permute.xlu0 %8702 }
 0x7d5   : > { %v9237_v38 = vadd.f32 %v9236_v18, %v9235_v19  ;;  %v8956_v15 = vsel %vm790_vm6, %v20151_v26, %v8703_v51  ;;  %v8895_v31 = vpop.permute.xlu1 %8894 }
 0x7d6   : > { %v9313_v59 = vsel %vm19227_vm11, %v9281_v21, 0.0  ;;  %v8980_v54 = vsel %vm840_vm8, %v8956_v15, %v8799_v44 }
 0x7d7   : > { %v9314_v46 = vadd.f32 %v9313_v59, %v9312_v10  ;;  %v9005_v6 = vsel %vm8994_vm10, %v8980_v54, %v8895_v31 }
 0x7d8   : > { %v18205_v8 = vadd.f32 %v18045_v5, %v9005_v6  ;;  %v9132_v61 = vpop.permute.xlu0 %9131 }
 0x7d9   : > { %v8801_v49 = vpop.permute.xlu1 %8800 }
 0x7da   : > { %v9204_v34 = vmul.f32 %v9127_v24, %v18205_v8  ;;  %v20154_v24 = vld [vmem:[#allocation195_spill] sm:$0xff] }
 0x7dc   : > { %v9238_v41 = vsel %vm19227_vm11, %v9204_v34, 0.0  ;;  %v9282_v29 = vmul.f32 %v9204_v34, %v9204_v34  ;;  %v8705_v7 = vpop.permute.xlu0 %8704 }
 0x7dd   : > { %v9239_v35 = vadd.f32 %v9238_v41, %v9237_v38  ;;  %v8957_v16 = vsel %vm790_vm6, %v20152_v53, %v8705_v7  ;;  %v8897_v11 = vpop.permute.xlu1 %8896 }
 0x7de   : > { %v9315_v62 = vsel %vm19227_vm11, %v9282_v29, 0.0  ;;  %v8981_v43 = vsel %vm840_vm8, %v8957_v16, %v8801_v49  ;;  %v20155_v49 = vld [vmem:[#allocation215_spill] sm:$0xff] }
 0x7df   : > { %v9316_v39 = vadd.f32 %v9315_v62, %v9314_v46  ;;  %v9006_v52 = vsel %vm8994_vm10, %v8981_v43, %v8897_v11 }
 0x7e0   : > { %v18215_v25 = vadd.f32 %v18045_v5, %v9006_v52  ;;  %v9137_v32 = vpop.permute.xlu0 %9136 }
 0x7e1   : > { %v8803_v40 = vpop.permute.xlu1 %8802 }
 0x7e2   : > { %v9205_v9 = vmul.f32 %v9132_v61, %v18215_v25 }
 0x7e4   : > { %v9240_v23 = vsel %vm19227_vm11, %v9205_v9, 0.0  ;;  %v9283_v36 = vmul.f32 %v9205_v9, %v9205_v9  ;;  %v8707_v55 = vpop.permute.xlu0 %8706 }
 0x7e5   : > { %v9241_v30 = vadd.f32 %v9240_v23, %v9239_v35  ;;  %v8958_v17 = vsel %vm790_vm6, %v20153_v56, %v8707_v55  ;;  %v8899_v50 = vpop.permute.xlu1 %8898 }
 0x7e6   : > { %v9317_v33 = vsel %vm19227_vm11, %v9283_v36, 0.0  ;;  %v8982_v3 = vsel %vm840_vm8, %v8958_v17, %v8803_v40 }
 0x7e7   : > { %v9318_v37 = vadd.f32 %v9317_v33, %v9316_v39  ;;  %v9007_v63 = vsel %vm8994_vm10, %v8982_v3, %v8899_v50 }
 0x7e8   : > { %v18225_v19 = vadd.f32 %v18045_v5, %v9007_v63  ;;  %v9142_v28 = vpop.permute.xlu0 %9141 }
 0x7e9   : > { %v8805_v14 = vpop.permute.xlu1 %8804 }
 0x7ea   : > { %v9206_v13 = vmul.f32 %v9137_v32, %v18225_v19 }
 0x7ec   : > { %v9242_v27 = vsel %vm19227_vm11, %v9206_v13, 0.0  ;;  %v9284_v45 = vmul.f32 %v9206_v13, %v9206_v13  ;;  %v8709_v10 = vpop.permute.xlu0 %8708 }
 0x7ed   : > { %v9243_v0 = vadd.f32 %v9242_v27, %v9241_v30  ;;  %v8959_v44 = vsel %vm790_vm6, %v20154_v24, %v8709_v10  ;;  %v8901_v47 = vpop.permute.xlu1 %8900 }
 0x7ee   : > { %v9319_v18 = vsel %vm19227_vm11, %v9284_v45, 0.0  ;;  %v8983_v21 = vsel %vm840_vm8, %v8959_v44, %v8805_v14  ;;  %v20156_v44 = vld [vmem:[#allocation14_spill] sm:$0xff] }
 0x7ef   : > { %v9320_v51 = vadd.f32 %v9319_v18, %v9318_v37  ;;  %v9008_v38 = vsel %vm8994_vm10, %v8983_v21, %v8901_v47  ;;  %v20157_v21 = vld [vmem:[#allocation225_spill] sm:$0xff] }
 0x7f0   : > { %v18235_v26 = vadd.f32 %v18045_v5, %v9008_v38  ;;  %v9147_v15 = vpop.permute.xlu0 %9146 }
 0x7f1   : > { %v8807_v31 = vpop.permute.xlu1 %8806 }
 0x7f2   : > { %v9207_v59 = vmul.f32 %v9142_v28, %v18235_v26 }
 0x7f4   : > { %v9244_v54 = vsel %vm19227_vm11, %v9207_v59, 0.0  ;;  %v9285_v46 = vmul.f32 %v9207_v59, %v9207_v59  ;;  %v8711_v6 = vpop.permute.xlu0 %8710 }
 0x7f5   : > { %v9245_v61 = vadd.f32 %v9244_v54, %v9243_v0  ;;  %v8960_v34 = vsel %vm790_vm6, %v20155_v49, %v8711_v6  ;;  %v8903_v41 = vpop.permute.xlu1 %8902  ;;  %v20158_v54 = vld [vmem:[#allocation216_spill] sm:$0xff] }
 0x7f6   : > { %v9321_v29 = vsel %vm19227_vm11, %v9285_v46, 0.0  ;;  %v8984_v7 = vsel %vm840_vm8, %v8960_v34, %v8807_v31 }
 0x7f7   : > { %v9322_v35 = vadd.f32 %v9321_v29, %v9320_v51  ;;  %v9009_v53 = vsel %vm8994_vm10, %v8984_v7, %v8903_v41 }
 0x7f8   : > { %v18245_v16 = vadd.f32 %v18045_v5, %v9009_v53  ;;  %v9152_v11 = vpop.permute.xlu0 %9151  ;;  %v20160_v53 = vld [vmem:[#allocation227_spill] sm:$0xff] }
 0x7f9   : > { %v8809_v62 = vpop.permute.xlu1 %8808 }
 0x7fa   : > { %v9208_v43 = vmul.f32 %v9147_v15, %v18245_v16 }
 0x7fc   : > { %v9246_v39 = vsel %vm19227_vm11, %v9208_v43, 0.0  ;;  %v9286_v52 = vmul.f32 %v9208_v43, %v9208_v43  ;;  %v8713_v32 = vpop.permute.xlu0 %8712 }
 0x7fd   : > { %v18249_v40 = vadd.f32 %v9246_v39, %v9245_v61  ;;  %v8905_v9 = vpop.permute.xlu1 %8904  ;;  %v8961_v47 = vsel %vm790_vm6, %v20156_v44, %v8713_v32  ;;  %v20159_v61 = vld [vmem:[#allocation217_spill] sm:$0xff]  ;;  %v20161_v32 = vld [vmem:[#allocation218_spill] sm:$0xff] }
 0x7fe   : > { %v9323_v23 = vsel %vm19227_vm11, %v9286_v52, 0.0  ;;  %v8985_v38 = vsel %vm840_vm8, %v8961_v47, %v8809_v62 }
 0x7ff   : > { %v18252_v36 = vadd.f32 %v9323_v23, %v9322_v35  ;;  %v9010_v6 = vsel %vm8994_vm10, %v8985_v38, %v8905_v9 }
 0x800   : > { %v9157_v55 = vpop.permute.xlu0 %9156  ;;  %v18268_v35 = vadd.f32 %v18045_v5, %v9010_v6  ;;  %v20163_v6 = vld [vmem:[#allocation219_spill] sm:$0xff] }
 0x801   : > { %v8811_v30 = vpop.permute.xlu1 %8810 }
 0x804   : > { %v8715_v56 = vpop.permute.xlu0 %8714 }
 0x805   : > { %v8907_v17 = vpop.permute.xlu1 %8906  ;;  %v8962_v51 = vsel %vm790_vm6, %v20157_v21, %v8715_v56 }
 0x806   : > { %v8986_v59 = vsel %vm840_vm8, %v8962_v51, %v8811_v30 }
 0x807   : > { %v9011_v41 = vsel %vm8994_vm10, %v8986_v59, %v8907_v17  ;;  %v9209_v17 = vmul.f32 %v9152_v11, %v18268_v35 }
 0x808   : > { %v9162_v50 = vpop.permute.xlu0 %9161  ;;  %v18274_v39 = vadd.f32 %v18045_v5, %v9011_v41 }
 0x809   : > { %v8813_v33 = vpop.permute.xlu1 %8812 }
 0x80c   : > { %v8717_v3 = vpop.permute.xlu0 %8716 }
 0x80d   : > { %v8909_v37 = vpop.permute.xlu1 %8908  ;;  %v8963_v46 = vsel %vm790_vm6, %v20158_v54, %v8717_v3  ;;  %v20162_v3 = vld [vmem:[#allocation66_spill] sm:$0xff] }
 0x80e   : > { %v8987_v29 = vsel %vm840_vm8, %v8963_v46, %v8813_v33 }
 0x80f   : > { %v9012_v52 = vsel %vm8994_vm10, %v8987_v29, %v8909_v37  ;;  %v9210_v37 = vmul.f32 %v9157_v55, %v18274_v39 }
 0x810   : > { %v9167_v63 = vpop.permute.xlu0 %9166 }
 0x811   : > { %v8815_v28 = vpop.permute.xlu1 %8814 }
 0x814   : > { %v8719_v14 = vpop.permute.xlu0 %8718 }
 0x815   : > { %v8911_v13 = vpop.permute.xlu1 %8910  ;;  %v8964_v49 = vsel %vm790_vm6, %v20159_v61, %v8719_v14 }
 0x816   : > { %v8988_v43 = vsel %vm840_vm8, %v8964_v49, %v8815_v28  ;;  %v18285_v28 = vadd.f32 %v18045_v5, %v9012_v52  ;;  %v9250_v49 = vsel %vm19227_vm11, %v9210_v37, 0.0 }
 0x817   : > { %v9013_v33 = vsel %vm8994_vm10, %v8988_v43, %v8911_v13  ;;  %v9287_v13 = vmul.f32 %v9209_v17, %v9209_v17 }
 0x818   : > { %v9172_v27 = vpop.permute.xlu0 %9171  ;;  %v9211_v38 = vmul.f32 %v9162_v50, %v18285_v28 }
 0x819   : > { %v8817_v45 = vpop.permute.xlu1 %8816  ;;  %v9325_v50 = vsel %vm19227_vm11, %v9287_v13, 0.0 }
 0x81a   : > { %v9289_v29 = vmul.f32 %v9211_v38, %v9211_v38 }
 0x81c   : > { %v8721_v10 = vpop.permute.xlu0 %8720 }
 0x81d   : > { %v8913_v0 = vpop.permute.xlu1 %8912  ;;  %v8965_v62 = vsel %vm790_vm6, %v20160_v53, %v8721_v10 }
 0x81e   : > { %v8989_v30 = vsel %vm840_vm8, %v8965_v62, %v8817_v45  ;;  %v18291_v45 = vadd.f32 %v18045_v5, %v9013_v33 }
 0x81f   : > { %v9014_v44 = vsel %vm8994_vm10, %v8989_v30, %v8913_v0  ;;  %v9248_v0 = vsel %vm19227_vm11, %v9209_v17, 0.0  ;;  %v9329_v17 = vsel %vm19227_vm11, %v9289_v29, 0.0 }
 0x820   : > { %v9177_v24 = vpop.permute.xlu0 %9176  ;;  %v9212_v54 = vmul.f32 %v9167_v63, %v18291_v45  ;;  %v9249_v62 = vadd.f32 %v9248_v0, %v18249_v40 }
 0x821   : > { %v8819_v18 = vpop.permute.xlu1 %8818 }
 0x822   : > { %v9254_v33 = vsel %vm19227_vm11, %v9212_v54, 0.0 }
 0x824   : > { %v8723_v15 = vpop.permute.xlu0 %8722 }
 0x825   : > { %v8915_v31 = vpop.permute.xlu1 %8914  ;;  %v8966_v9 = vsel %vm790_vm6, %v20161_v32, %v8723_v15  ;;  %v18297_v15 = vadd.f32 %v18045_v5, %v9014_v44  ;;  %v9252_v32 = vsel %vm19227_vm11, %v9211_v38, 0.0 }
 0x826   : > { %v8990_v10 = vsel %vm840_vm8, %v8966_v9, %v8819_v18  ;;  %v9288_v18 = vmul.f32 %v9210_v37, %v9210_v37  ;;  %v9290_v9 = vmul.f32 %v9212_v54, %v9212_v54 }
 0x827   : > { %v9015_v51 = vsel %vm8994_vm10, %v8990_v10, %v8915_v31 }
 0x828   : > { %v9182_v34 = vpop.permute.xlu0 %9181  ;;  %v18303_v46 = vadd.f32 %v18045_v5, %v9015_v51  ;;  %v9327_v43 = vsel %vm19227_vm11, %v9288_v18, 0.0  ;;  %v9331_v44 = vsel %vm19227_vm11, %v9290_v9, 0.0 }
 0x829   : > { %v8821_v7 = vpop.permute.xlu1 %8820 }
 0x82c   : > { %v8725_v23 = vpop.permute.xlu0 %8724 }
 0x82d   : > { %v8917_v56 = vpop.permute.xlu1 %8916  ;;  %v8967_v14 = vsel %vm790_vm6, %v20162_v3, %v8725_v23  ;;  %v9214_v23 = vmul.f32 %v9177_v24, %v18303_v46 }
 0x82e   : > { %v8991_v11 = vsel %vm840_vm8, %v8967_v14, %v8821_v7  ;;  %v9213_v7 = vmul.f32 %v9172_v27, %v18297_v15  ;;  %v9326_v27 = vadd.f32 %v9325_v50, %v18252_v36 }
 0x82f   : > { %v9016_v55 = vsel %vm8994_vm10, %v8991_v11, %v8917_v56  ;;  %v9251_v56 = vadd.f32 %v9250_v49, %v9249_v62  ;;  %v9292_v11 = vmul.f32 %v9214_v23, %v9214_v23  ;;  %v9258_v38 = vsel %vm19227_vm11, %v9214_v23, 0.0 }
 0x830   : > { %v9187_v47 = vpop.permute.xlu0 %9186  ;;  %v18312_v53 = vadd.f32 %v18045_v5, %v9016_v55  ;;  %v9291_v3 = vmul.f32 %v9213_v7, %v9213_v7  ;;  %v9328_v14 = vadd.f32 %v9327_v43, %v9326_v27  ;;  %v9256_v24 = vsel %vm19227_vm11, %v9213_v7, 0.0 }
 0x831   : > { %v8823_v21 = vpop.permute.xlu1 %8822  ;;  %v9253_v10 = vadd.f32 %v9252_v32, %v9251_v56 }
 0x832   : > { %v9215_v40 = vmul.f32 %v9182_v34, %v18312_v53  ;;  %v9330_v13 = vadd.f32 %v9329_v17, %v9328_v14  ;;  %v9333_v51 = vsel %vm19227_vm11, %v9291_v3, 0.0  ;;  %v20164_v34 = vld [vmem:[#allocation67_spill] sm:$0xff] }
 0x833   : > { %v9255_v36 = vadd.f32 %v9254_v33, %v9253_v10 }
 0x834   : > { %v8727_v59 = vpop.permute.xlu0 %8726  ;;  %v9293_v18 = vmul.f32 %v9215_v40, %v9215_v40  ;;  %v9332_v55 = vadd.f32 %v9331_v44, %v9330_v13 }
 0x835   : > { %v8968_v61 = vsel %vm790_vm6, %v20163_v6, %v8727_v59  ;;  %v8919_v31 = vpop.permute.xlu1 %8918  ;;  %v9257_v59 = vadd.f32 %v9256_v24, %v9255_v36  ;;  %v9335_v6 = vsel %vm19227_vm11, %v9292_v11, 0.0 }
 0x836   : > { %v8992_v41 = vsel %vm840_vm8, %v8968_v61, %v8823_v21  ;;  %v9260_v61 = vsel %vm19227_vm11, %v9215_v40, 0.0  ;;  %v9334_v49 = vadd.f32 %v9333_v51, %v9332_v55  ;;  %v9337_v7 = vsel %vm19227_vm11, %v9293_v18, 0.0  ;;  %v9506_v55 = vld [vmem:[%s18770_s4] sm:$0xf] }
 0x837   : > { %v9017_v63 = vsel %vm8994_vm10, %v8992_v41, %v8919_v31  ;;  %v9259_v41 = vadd.f32 %v9258_v38, %v9257_v59 }
 0x838   : > { %v9192_v52 = vpop.permute.xlu0 %9191  ;;  %v18320_v30 = vadd.f32 %v18045_v5, %v9017_v63  ;;  %v9336_v43 = vadd.f32 %v9335_v6, %v9334_v49 }
 0x839   : > { %v8921_v50 = vpop.permute.xlu1 %8920  ;;  %v9261_v32 = vadd.f32 %v9260_v61, %v9259_v41  ;;  %v9657_v41 = vlaneseq }
 0x83a   : > { %v9216_v21 = vmul.f32 %v9187_v47, %v18320_v30  ;;  %v9338_v27 = vadd.f32 %v9337_v7, %v9336_v43 }
 0x83c   : > { %v8729_v37 = vpop.permute.xlu0 %8728  ;;  %v9294_v31 = vmul.f32 %v9216_v21, %v9216_v21  ;;  %v9262_v63 = vsel %vm19227_vm11, %v9216_v21, 0.0 }
 0x83d   : > { %v8969_v0 = vsel %vm790_vm6, %v20164_v34, %v8729_v37  ;;  %v9263_v56 = vadd.f32 %v9262_v63, %v9261_v32  ;;  %v9658_v63 = vshrl.u32 %v9657_v41, 7  ;;  %v18364_v32 = vld [vmem:[%s18361_s20] ss:$8 sps:$4 sm:$0xff]  }
 0x83e   : > { %v9339_v9 = vsel %vm19227_vm11, %v9294_v31, 0.0 }
 0x83f   : > { %v9340_v3 = vadd.f32 %v9339_v9, %v9338_v27  ;;  %v9659_v43 = vsub.s32 0, %v9658_v63  ;;  %v18367_v9 = vld [vmem:[%s18361_s20 + $0x4] sm:$0x3]  ;;  %v18373_v27 = vld [vmem:[%s18361_s20 + $0x10] ss:$8 sps:$4 sm:$0xff]  }
 0x840   : > { %v8825_v54 = vpop.permute.xlu0 %8824 }
 0x841   : > { %v8993_v47 = vsel %vm840_vm8, %v8969_v0, %v8825_v54 }
 0x842   : > { %v9018_v29 = vsel %vm8994_vm10, %v8993_v47, %v8921_v50 }
 0x843   : > { %v18340_v62 = vadd.f32 %v18045_v5, %v9018_v29 }
 0x845   : > { %v9217_v23 = vmul.f32 %v9192_v52, %v18340_v62 }
 0x847   : > { %v9264_v17 = vsel %vm19227_vm11, %v9217_v23, 0.0  ;;  %v9295_v33 = vmul.f32 %v9217_v23, %v9217_v23  ;;  %v18370_v23 = vld [vmem:[%s18361_s20 + $0xc] sm:$0x3] }
 0x848   : > { %v9265_v40 = vadd.f32 %v9264_v17, %v9263_v56  ;;  %v18376_v56 = vld [vmem:[%s18361_s20 + $0x14] sm:$0x3]  ;;  %v18379_v17 = vld [vmem:[%s18361_s20 + $0x1c] sm:$0x3] }
 0x849   : > { %v9341_v14 = vsel %vm19227_vm11, %v9295_v33, 0.0  ;;  %v18382_v33 = vld [vmem:[%s18361_s20 + $0x20] ss:$8 sps:$4 sm:$0xff]  }
 0x84a   : > { %v9266_v10 = vrot.slane %v9265_v40, 4  ;;  %v9342_v37 = vadd.f32 %v9341_v14, %v9340_v3  ;;  %v18388_v14 = vld [vmem:[%s18361_s20 + $0x24] sm:$0x3] }
 0x84c   : > { %v9267_v44 = vadd.f32 %v9266_v10, %v9265_v40  ;;  %v9343_v5 = vrot.slane %v9342_v37, 4  ;;  %v18391_v10 = vld [vmem:[%s18361_s20 + $0x2c] sm:$0x3] }
 0x84e   : > { %v9268_v24 = vrot.slane %v9267_v44, 2  ;;  %v9344_v11 = vadd.f32 %v9343_v5, %v9342_v37  ;;  %v18394_v37 = vld [vmem:[%s18361_s20 + $0x30] ss:$8 sps:$4 sm:$0xff]  }
 0x850   : > { %v9269_v21 = vadd.f32 %v9268_v24, %v9267_v44  ;;  %v9345_v13 = vrot.slane %v9344_v11, 2 }
 0x852   : > { %v9270_v36 = vrot.slane %v9269_v21, 1  ;;  %v9346_v51 = vadd.f32 %v9345_v13, %v9344_v11  ;;  %v18404_v13 = vld [vmem:[%s18361_s20 + $0x3c] sm:$0x3] }
 0x854   : > { %v9271_v52 = vadd.f32 %v9270_v36, %v9269_v21  ;;  %v9347_v38 = vrot.slane %v9346_v51, 1  ;;  %v18401_v21 = vld [vmem:[%s18361_s20 + $0x34] sm:$0x3] }
 0x856   : > { %11365 = vmatmul.mubr.msk.f32.vlgmr.msra.gmra.mrb[48].mxu0 %vm19227_vm11, %v9271_v52  ;;  %v9348_v18 = vadd.f32 %v9347_v38, %v9346_v51 }
 0x857   : > { %11380 = vmatprep.mubr.msk.f32.mxu0 %vm12057_vm12, %v12058_v1  ;;  %11379 = vmatpush3.msk.msra.mxu0 %vm9510_vm13, %v9506_v55 }
 0x858   : > { %11376 = vmatmul.mubr.msk.f32.vlgmr.msra.gmra.mrb[48].mxu1 %vm19227_vm11, %v9348_v18 }
 0x859   : > { %11385 = vmatprep.mubr.msk.f32.mxu1 %vm12057_vm12, %v12058_v1  ;;  %11384 = vmatpush3.msk.msra.mxu1 %vm9510_vm13, %v9506_v55 }
 0x929   : > { %v9422_v59 = vpop.f32.mrb[48].mxu0 }
 0x92a   : > { %v9499_v34 = vmul.f32 0.00086805556, %v9422_v59  ;;  %v11366_v0 = vpop.f32.mrb[49].mxu0 }
 0x92b   : > { %v9495_v54 = vpop.f32.mrb[48].mxu1 }
 0x92c   : > { %v9501_v6 = vmul.f32 %v9499_v34, %v9499_v34  ;;  %v9500_v61 = vmul.f32 0.00086805556, %v9495_v54  ;;  %v11377_v31 = vpop.f32.mrb[49].mxu1  ;;  %11381 = vmatmul.mubr.msk.f32.vlgmr.msra.gmra.mrb[50].mxu0 %vm765_vm5, %v9499_v34 }
 0x92e   : > { %v9502_v50 = vsub.f32 %v9500_v61, %v9501_v6 }
 0x930   : > { %v9503_v47 = vmax.f32 %v9502_v50, 0.0 }
 0x932   : > { %v9504_v1 = vadd.f32 1e-05, %v9503_v47 }
 0x934   : > { %11938 = vrsqrt.f32 %v9504_v1 }
 0x93e   : > { %v11939_v49 = vpop.eup %11938 }
 0x93f   : > { %11386 = vmatmul.mubr.msk.f32.vlgmr.msra.gmra.mrb[50].mxu1 %vm765_vm5, %v11939_v49  ;;  %vm9854_vm5 = vcmask 257024  }
 0x9ff   : > { %v9580_v29 = vpop.f32.mrb[50].mxu0 }
 0xa00   : > { %v11382_v7 = vpop.f32.mrb[51].mxu0  ;;  %v18384_v3 = vrot.slane %v9580_v29, %v9659_v43 }
 0xa02   : > { %v9661_v0 = vsub.f32 %v18056_v48, %v18384_v3  ;;  %v9662_v31 = vsub.f32 %v18051_v58, %v18384_v3  ;;  %v9663_v50 = vsub.f32 %v18059_v22, %v18384_v3  ;;  %v9664_v47 = vsub.f32 %v18085_v60, %v18384_v3 }
 0xa03   : > { %v9665_v1 = vsub.f32 %v18105_v42, %v18384_v3  ;;  %v9666_v48 = vsub.f32 %v18129_v57, %v18384_v3  ;;  %v9667_v49 = vsub.f32 %v18146_v12, %v18384_v3  ;;  %v9668_v41 = vsub.f32 %v18166_v4, %v18384_v3 }
 0xa04   : > { %v9669_v58 = vsub.f32 %v18179_v20, %v18384_v3  ;;  %v9670_v22 = vsub.f32 %v18189_v2, %v18384_v3  ;;  %v9671_v60 = vsub.f32 %v18205_v8, %v18384_v3  ;;  %v9672_v42 = vsub.f32 %v18215_v25, %v18384_v3 }
 0xa05   : > { %v9673_v57 = vsub.f32 %v18225_v19, %v18384_v3  ;;  %v9674_v12 = vsub.f32 %v18235_v26, %v18384_v3  ;;  %v9675_v4 = vsub.f32 %v18245_v16, %v18384_v3  ;;  %v9676_v20 = vsub.f32 %v18268_v35, %v18384_v3 }
 0xa06   : > { %v9677_v2 = vsub.f32 %v18274_v39, %v18384_v3  ;;  %v9678_v8 = vsub.f32 %v18285_v28, %v18384_v3  ;;  %v9679_v25 = vsub.f32 %v18291_v45, %v18384_v3  ;;  %v9680_v19 = vsub.f32 %v18297_v15, %v18384_v3 }
 0xa07   : > { %v9681_v16 = vsub.f32 %v18303_v46, %v18384_v3  ;;  %v9682_v35 = vsub.f32 %v18312_v53, %v18384_v3  ;;  %v9683_v39 = vsub.f32 %v18320_v30, %v18384_v3  ;;  %v9684_v28 = vsub.f32 %v18340_v62, %v18384_v3 }
 0xa12   : > { %v9653_v29 = vpop.f32.mrb[50].mxu1 }
 0xa13   : > { %v9688_v26 = vrot.slane %v9653_v29, %v9659_v43  ;;  %v11387_v7 = vpop.f32.mrb[51].mxu1 }
 0xa15   : > { %v9689_v63 = vmul.f32 %v9688_v26, %v9661_v0  ;;  %v9690_v45 = vmul.f32 %v9688_v26, %v9662_v31  ;;  %v9691_v61 = vmul.f32 %v9688_v26, %v9663_v50  ;;  %v9692_v15 = vmul.f32 %v9688_v26, %v9664_v47  ;;  %v18466_v0 = vld [vmem:[%s18361_s20 + $0x40] ss:$8 sps:$4 sm:$0xff]   ;;  %v18469_v31 = vld [vmem:[%s18361_s20 + $0x44] sm:$0x3]  ;;  %v18472_v50 = vld [vmem:[%s18361_s20 + $0x4c] sm:$0x3] }
 0xa16   : > { %v9693_v43 = vmul.f32 %v9688_v26, %v9665_v1  ;;  %v9694_v29 = vmul.f32 %v9688_v26, %v9666_v48  ;;  %v9695_v7 = vmul.f32 %v9688_v26, %v9667_v49  ;;  %v9696_v46 = vmul.f32 %v9688_v26, %v9668_v41  ;;  %v10454_v41 = vld [vmem:[%s18771_s5] ss:$0 sm:$0xff] }
 0xa17   : > { %v9697_v6 = vmul.f32 %v9688_v26, %v9669_v58  ;;  %v9698_v53 = vmul.f32 %v9688_v26, %v9670_v22  ;;  %v9699_v54 = vmul.f32 %v9688_v26, %v9671_v60  ;;  %v9700_v30 = vmul.f32 %v9688_v26, %v9672_v42  ;;  %v18478_v58 = vld [vmem:[%s18361_s20 + $0x50] ss:$8 sps:$4 sm:$0xff]   ;;  %v18481_v22 = vld [vmem:[%s18361_s20 + $0x54] sm:$0x3] }
 0xa18   : > { %v9701_v34 = vmul.f32 %v9688_v26, %v9673_v57  ;;  %v9702_v59 = vmul.f32 %v9688_v26, %v9674_v12  ;;  %v9703_v62 = vmul.f32 %v9688_v26, %v9675_v4  ;;  %v9704_v3 = vmul.f32 %v9688_v26, %v9676_v20  ;;  %20165 = vst [vmem:[#allocation7_spill] sm:$0xff] %v18481_v22 }
 0xa19   : > { %v9705_v47 = vmul.f32 %v9688_v26, %v9677_v2  ;;  %v9706_v1 = vmul.f32 %v9688_v26, %v9678_v8  ;;  %v9707_v48 = vmul.f32 %v9688_v26, %v9679_v25  ;;  %v9708_v49 = vmul.f32 %v9688_v26, %v9680_v19 }
 0xa1a   : > { %v9709_v60 = vmul.f32 %v9688_v26, %v9681_v16  ;;  %v9710_v42 = vmul.f32 %v9688_v26, %v9682_v35  ;;  %v9711_v57 = vmul.f32 %v9688_v26, %v9683_v39  ;;  %v9712_v12 = vmul.f32 %v9688_v26, %v9684_v28 }
 0xa1b   : > { %v9720_v25 = vmul.f32 %v10454_v41, %v9689_v63  ;;  %v9721_v19 = vmul.f32 %v10454_v41, %v9690_v45  ;;  %v9722_v38 = vmul.f32 %v10454_v41, %v9691_v61  ;;  %v9723_v52 = vmul.f32 %v10454_v41, %v9692_v15  ;;  %v10455_v63 = vld [vmem:[%s18772_s6] ss:$0 sm:$0xff] }
 0xa1c   : > { %v9724_v16 = vmul.f32 %v10454_v41, %v9693_v43  ;;  %v9725_v35 = vmul.f32 %v10454_v41, %v9694_v29  ;;  %v9726_v39 = vmul.f32 %v10454_v41, %v9695_v7  ;;  %v9727_v26 = vmul.f32 %v10454_v41, %v9696_v46 }
 0xa1d   : > { %v9728_v28 = vmul.f32 %v10454_v41, %v9697_v6  ;;  %v9729_v4 = vmul.f32 %v10454_v41, %v9698_v53  ;;  %v9730_v51 = vmul.f32 %v10454_v41, %v9699_v54  ;;  %v9731_v20 = vmul.f32 %v10454_v41, %v9700_v30 }
 0xa1e   : > { %v9732_v36 = vmul.f32 %v10454_v41, %v9701_v34  ;;  %v9733_v2 = vmul.f32 %v10454_v41, %v9702_v59  ;;  %v9734_v45 = vmul.f32 %v10454_v41, %v9703_v62  ;;  %v9735_v55 = vmul.f32 %v10454_v41, %v9704_v3 }
 0xa1f   : > { %v9736_v8 = vmul.f32 %v10454_v41, %v9705_v47  ;;  %v9737_v18 = vmul.f32 %v10454_v41, %v9706_v1  ;;  %v9738_v61 = vmul.f32 %v10454_v41, %v9707_v48  ;;  %v9739_v15 = vmul.f32 %v10454_v41, %v9708_v49 }
 0xa20   : > { %v9740_v43 = vmul.f32 %v10454_v41, %v9709_v60  ;;  %v9741_v29 = vmul.f32 %v10454_v41, %v9710_v42  ;;  %v9742_v7 = vmul.f32 %v10454_v41, %v9711_v57  ;;  %v9743_v46 = vmul.f32 %v10454_v41, %v9712_v12 }
 0xa21   : > { %v9751_v6 = vadd.f32 %v10455_v63, %v9720_v25  ;;  %v18492_v53 = vadd.f32 %v10455_v63, %v9721_v19  ;;  %v18494_v54 = vadd.f32 %v10455_v63, %v9722_v38  ;;  %v18496_v59 = vadd.f32 %v10455_v63, %v9723_v52 }
 0xa22   : > { %v18498_v34 = vadd.f32 %v10455_v63, %v9724_v16  ;;  %v18500_v30 = vadd.f32 %v10455_v63, %v9725_v35  ;;  %v18502_v62 = vadd.f32 %v10455_v63, %v9726_v39  ;;  %v18504_v3 = vadd.f32 %v10455_v63, %v9727_v26 }
 0xa23   : > { %v18506_v47 = vadd.f32 %v10455_v63, %v9728_v28  ;;  %v18508_v1 = vadd.f32 %v10455_v63, %v9729_v4  ;;  %v18510_v48 = vadd.f32 %v10455_v63, %v9730_v51  ;;  %v18512_v49 = vadd.f32 %v10455_v63, %v9731_v20 }
 0xa24   : > { %v18514_v38 = vadd.f32 %v10455_v63, %v9732_v36  ;;  %v18516_v52 = vadd.f32 %v10455_v63, %v9733_v2  ;;  %v18518_v41 = vadd.f32 %v10455_v63, %v9734_v45  ;;  %v18520_v60 = vadd.f32 %v10455_v63, %v9735_v55 }
 0xa25   : > { %v18522_v42 = vadd.f32 %v10455_v63, %v9736_v8  ;;  %v18524_v57 = vadd.f32 %v10455_v63, %v9737_v18  ;;  %v18526_v12 = vadd.f32 %v10455_v63, %v9738_v61  ;;  %v18528_v4 = vadd.f32 %v10455_v63, %v9739_v15  ;;  %v18552_v18 = vld [vmem:[%s18361_s20 + $0x5c] sm:$0x3] }
 0xa26   : > { %v18530_v51 = vadd.f32 %v10455_v63, %v9740_v43  ;;  %v18532_v20 = vadd.f32 %v10455_v63, %v9741_v29  ;;  %v18534_v36 = vadd.f32 %v10455_v63, %v9742_v7  ;;  %v18536_v2 = vadd.f32 %v10455_v63, %v9743_v46  ;;  %20166 = vst [vmem:[#allocation57_spill] sm:$0xff] %v18552_v18 }
 0xa27   : > { %vm9775_vm14 = vcmp.ge.f32.partialorder %v9751_v6, 0.0  ;;  %vm9776_vm15 = vcmp.ge.f32.partialorder %v18492_v53, 0.0  ;;  %vm9777_vm0 = vcmp.ge.f32.partialorder %v18494_v54, 0.0  ;;  %vm9778_vm1 = vcmp.ge.f32.partialorder %v18496_v59, 0.0 }
 0xa28   : > { %vm9779_vm2 = vcmp.ge.f32.partialorder %v18498_v34, 0.0  ;;  %vm9780_vm3 = vcmp.ge.f32.partialorder %v18500_v30, 0.0  ;;  %vm9781_vm4 = vcmp.ge.f32.partialorder %v18502_v62, 0.0  ;;  %vm9788_vm12 = vcmp.ge.f32.partialorder %v18516_v52, 0.0 }
 0xa29   : > { %vm9789_vm13 = vcmp.ge.f32.partialorder %v18518_v41, 0.0  ;;  %vm9792_vm6 = vcmp.ge.f32.partialorder %v18524_v57, 0.0  ;;  %vm9793_vm7 = vcmp.ge.f32.partialorder %v18526_v12, 0.0  ;;  %vm9794_vm8 = vcmp.ge.f32.partialorder %v18528_v4, 0.0 }
 0xa2a   : > { %vm9795_vm9 = vcmp.ge.f32.partialorder %v18530_v51, 0.0  ;;  %vm9796_vm10 = vcmp.ge.f32.partialorder %v18532_v20, 0.0  ;;  %v9799_v55 = vmul.f32 0.2, %v9751_v6  ;;  %v9800_v8 = vmul.f32 0.2, %v18492_v53 }
 0xa2b   : > { %v9801_v25 = vmul.f32 0.2, %v18494_v54  ;;  %vm9797_vm11 = vcmp.ge.f32.partialorder %v18534_v36, 0.0  ;;  %v9802_v16 = vmul.f32 0.2, %v18496_v59 }
 0xa2c   : > { %v9803_v35 = vmul.f32 0.2, %v18498_v34  ;;  %v9804_v39 = vmul.f32 0.2, %v18500_v30  ;;  %v9805_v28 = vmul.f32 0.2, %v18502_v62  ;;  %v9823_v61 = vsel %vm9775_vm14, %v9751_v6, %v9799_v55 }
 0xa2d   : > { %v9806_v63 = vmul.f32 0.2, %v18504_v3  ;;  %v9807_v45 = vmul.f32 0.2, %v18506_v47  ;;  %v9808_v15 = vmul.f32 0.2, %v18508_v1  ;;  %v9824_v7 = vsel %vm9776_vm15, %v18492_v53, %v9800_v8 }
 0xa2e   : > { %v9809_v43 = vmul.f32 0.2, %v18510_v48  ;;  %v9810_v29 = vmul.f32 0.2, %v18512_v49  ;;  %v9811_v46 = vmul.f32 0.2, %v18514_v38  ;;  %v9825_v6 = vsel %vm9777_vm0, %v18494_v54, %v9801_v25 }
 0xa2f   : > { %v9812_v26 = vmul.f32 0.2, %v18516_v52  ;;  %v9813_v19 = vmul.f32 0.2, %v18518_v41  ;;  %v9814_v55 = vmul.f32 0.2, %v18520_v60  ;;  %v9826_v53 = vsel %vm9778_vm1, %v18496_v59, %v9802_v16 }
 0xa30   : > { %v9815_v11 = vmul.f32 0.2, %v18522_v42  ;;  %v9816_v24 = vmul.f32 0.2, %v18524_v57  ;;  %v9817_v8 = vmul.f32 0.2, %v18526_v12  ;;  %v9827_v54 = vsel %vm9779_vm2, %v18498_v34, %v9803_v35 }
 0xa31   : > { %v9818_v5 = vmul.f32 0.2, %v18528_v4  ;;  %v9819_v44 = vmul.f32 0.2, %v18530_v51  ;;  %v9820_v25 = vmul.f32 0.2, %v18532_v20  ;;  %v9828_v59 = vsel %vm9780_vm3, %v18500_v30, %v9804_v39 }
 0xa32   : > { %v9821_v40 = vmul.f32 0.2, %v18534_v36  ;;  %v9822_v18 = vmul.f32 0.2, %v18536_v2  ;;  %v9829_v16 = vsel %vm9781_vm4, %v18502_v62, %v9805_v28  ;;  %vm20167_vm14 = vcmp.ge.f32.partialorder %v18504_v3, 0.0 }
 0xa33   : > { %v9830_v22 = vsel %vm20167_vm14, %v18504_v3, %v9806_v63  ;;  %vm20168_vm15 = vcmp.ge.f32.partialorder %v18506_v47, 0.0  ;;  %vm20169_vm0 = vcmp.ge.f32.partialorder %v18508_v1, 0.0  ;;  %vm20170_vm1 = vcmp.ge.f32.partialorder %v18510_v48, 0.0 }
 0xa34   : > { %v9831_v34 = vsel %vm20168_vm15, %v18506_v47, %v9807_v45  ;;  %v9832_v35 = vsel %vm20169_vm0, %v18508_v1, %v9808_v15  ;;  %v9833_v30 = vsel %vm20170_vm1, %v18510_v48, %v9809_v43  ;;  %vm20171_vm2 = vcmp.ge.f32.partialorder %v18512_v49, 0.0 }
 0xa35   : > { %v9834_v62 = vsel %vm20171_vm2, %v18512_v49, %v9810_v29  ;;  %vm20172_vm3 = vcmp.ge.f32.partialorder %v18514_v38, 0.0  ;;  %v9836_v47 = vsel %vm9788_vm12, %v18516_v52, %v9812_v26  ;;  %v9837_v1 = vsel %vm9789_vm13, %v18518_v41, %v9813_v19 }
 0xa36   : > { %v9835_v3 = vsel %vm20172_vm3, %v18514_v38, %v9811_v46  ;;  %vm20173_vm4 = vcmp.ge.f32.partialorder %v18520_v60, 0.0  ;;  %vm20174_vm14 = vcmp.ge.f32.partialorder %v18522_v42, 0.0  ;;  %v9840_v38 = vsel %vm9792_vm6, %v18524_v57, %v9816_v24 }
 0xa37   : > { %v9838_v48 = vsel %vm20173_vm4, %v18520_v60, %v9814_v55  ;;  %v9839_v49 = vsel %vm20174_vm14, %v18522_v42, %v9815_v11  ;;  %v9841_v52 = vsel %vm9793_vm7, %v18526_v12, %v9817_v8  ;;  %v9842_v11 = vsel %vm9794_vm8, %v18528_v4, %v9818_v5 }
 0xa38   : > { %v9843_v24 = vsel %vm9795_vm9, %v18530_v51, %v9819_v44  ;;  %v9844_v41 = vsel %vm9796_vm10, %v18532_v20, %v9820_v25  ;;  %v9845_v60 = vsel %vm9797_vm11, %v18534_v36, %v9821_v40  ;;  %vm20175_vm6 = vcmp.ge.f32.partialorder %v18536_v2, 0.0  ;;  %v20204_v25 = vld [vmem:[#allocation7_spill] sm:$0xff] }
 0xa39   : > { %v9846_v42 = vsel %vm20175_vm6, %v18536_v2, %v9822_v18  ;;  %v20176_v5 = vunpack.c.l.bf16 %v18364_v32  ;;  %v20177_v44 = vunpack.c.l.bf16 %v18367_v9  ;;  %v20178_v4 = vunpack.c.h.bf16 %v18364_v32 }
 0xa3a   : > { %v20179_v20 = vunpack.c.l.bf16 %v18370_v23  ;;  %v20180_v40 = vunpack.c.l.bf16 %v18373_v27  ;;  %v20181_v39 = vunpack.c.l.bf16 %v18376_v56  ;;  %vm20182_vm11 = vcmask 261120  }
 0xa3b   : > { %v9851_v57 = vadd.f32 %v20176_v5, %v9823_v61  ;;  %v9852_v12 = vadd.f32 %v20177_v44, %v9824_v7  ;;  %v9861_v51 = vadd.f32 %v20178_v4, %v9825_v6  ;;  %v20183_v9 = vunpack.c.h.bf16 %v18373_v27  ;;  %vm20187_vm7 = vmmov %vm20182_vm11 }
 0xa3c   : > { %v9862_v19 = vadd.f32 %v20179_v20, %v9826_v53  ;;  %v9871_v36 = vadd.f32 %v20180_v40, %v9827_v54  ;;  %v9872_v2 = vadd.f32 %v20181_v39, %v9828_v59  ;;  %v20184_v23 = vunpack.c.l.bf16 %v18379_v17  ;;  %vm20188_vm8 = vmmov %vm20187_vm7 }
 0xa3d   : > { %9853 = vst.msk [vmem:[%s18647_s15] sm:$0xff] %vm20182_vm11, %v9851_v57  ;;  %v9881_v32 = vadd.f32 %v20183_v9, %v9829_v16  ;;  %v20185_v26 = vunpack.c.l.bf16 %v18382_v33  ;;  %v20186_v56 = vunpack.c.l.bf16 %v18388_v14  ;;  %v20189_v27 = vunpack.c.h.bf16 %v18382_v33  ;;  %vm20193_vm9 = vmmov %vm20187_vm7 }
 0xa3e   : > { %9855 = vst.msk [vmem:[%s18647_s15 + $0x8] sm:$0xf] %vm9854_vm5, %v9852_v12  ;;  %v9882_v18 = vadd.f32 %v20184_v23, %v9830_v22  ;;  %10459 = vst.msk [vmem:[%s18647_s15 + $0x18] sm:$0xf] %vm9854_vm5, %v9862_v19  ;;  %v20190_v22 = vunpack.c.l.bf16 %v18391_v10  ;;  %v20191_v14 = vunpack.c.l.bf16 %v18394_v37  ;;  %v20192_v15 = vunpack.c.l.bf16 %v18401_v21 }
 0xa3f   : > { %v9891_v28 = vadd.f32 %v20185_v26, %v9831_v34  ;;  %v9892_v63 = vadd.f32 %v20186_v56, %v9832_v35  ;;  %10458 = vst.msk [vmem:[%s18647_s15 + $0x10] sm:$0xff] %vm20187_vm7, %v9861_v51  ;;  %v9901_v17 = vadd.f32 %v20189_v27, %v9833_v30  ;;  %vm20194_vm10 = vmmov %vm20187_vm7  ;;  %v20195_v33 = vunpack.c.h.bf16 %v18394_v37  ;;  %v20209_v35 = vld [vmem:[#allocation57_spill] sm:$0xff] }
 0xa40   : > { %10462 = vst.msk [vmem:[%s18647_s15 + $0x20] sm:$0xff] %vm20188_vm8, %v9871_v36  ;;  %v9902_v45 = vadd.f32 %v20190_v22, %v9834_v62  ;;  %v9911_v61 = vadd.f32 %v20191_v14, %v9835_v3  ;;  %v9912_v43 = vadd.f32 %v20192_v15, %v9836_v47  ;;  %v20196_v29 = vunpack.c.l.bf16 %v18404_v13  ;;  %vm20199_vm12 = vmmov %vm20187_vm7 }
 0xa41   : > { %10463 = vst.msk [vmem:[%s18647_s15 + $0x28] sm:$0xf] %vm9854_vm5, %v9872_v2  ;;  %10467 = vst.msk [vmem:[%s18647_s15 + $0x38] sm:$0xf] %vm9854_vm5, %v9882_v18  ;;  %v9921_v10 = vadd.f32 %v20195_v33, %v9837_v1  ;;  %v20197_v21 = vunpack.c.l.bf16 %v18466_v0  ;;  %v20198_v6 = vunpack.c.l.bf16 %v18469_v31  ;;  %v20201_v37 = vunpack.c.h.bf16 %v18466_v0 }
 0xa42   : > { %10466 = vst.msk [vmem:[%s18647_s15 + $0x30] sm:$0xff] %vm20193_vm9, %v9881_v32  ;;  %v9922_v7 = vadd.f32 %v20196_v29, %v9838_v48  ;;  %vm20200_vm13 = vmmov %vm20187_vm7  ;;  %v20202_v31 = vunpack.c.l.bf16 %v18472_v50  ;;  %v20203_v8 = vunpack.c.l.bf16 %v18478_v58  ;;  %v20205_v59 = vunpack.c.l.bf16 %v20204_v25 }
 0xa43   : > { %10470 = vst.msk [vmem:[%s18647_s15 + $0x40] sm:$0xff] %vm20194_vm10, %v9891_v28  ;;  %v9931_v46 = vadd.f32 %v20197_v21, %v9839_v49  ;;  %v9932_v55 = vadd.f32 %v20198_v6, %v9840_v38  ;;  %v9941_v13 = vadd.f32 %v20201_v37, %v9841_v52  ;;  %vm20206_vm15 = vmmov %vm20187_vm7  ;;  %v20208_v0 = vunpack.c.h.bf16 %v18478_v58 }
 0xa44   : > { %10471 = vst.msk [vmem:[%s18647_s15 + $0x48] sm:$0xf] %vm9854_vm5, %v9892_v63  ;;  %10475 = vst.msk [vmem:[%s18647_s15 + $0x58] sm:$0xf] %vm9854_vm5, %v9902_v45  ;;  %v9942_v53 = vadd.f32 %v20202_v31, %v9842_v11  ;;  %v9951_v54 = vadd.f32 %v20203_v8, %v9843_v24  ;;  %v9952_v16 = vadd.f32 %v20205_v59, %v9844_v41  ;;  %v20210_v50 = vunpack.c.l.bf16 %v20209_v35 }
 0xa45   : > { %10474 = vst.msk [vmem:[%s18647_s15 + $0x50] sm:$0xff] %vm20199_vm12, %v9901_v17  ;;  %vm20207_vm0 = vmmov %vm20187_vm7  ;;  %v9961_v34 = vadd.f32 %v20208_v0, %v9845_v60 }
 0xa46   : > { %10478 = vst.msk [vmem:[%s18647_s15 + $0x60] sm:$0xff] %vm20200_vm13, %v9911_v61  ;;  %v9962_v30 = vadd.f32 %v20210_v50, %v9846_v42  ;;  %vm20211_vm1 = vmmov %vm20207_vm0 }
 0xa47   : > { %10479 = vst.msk [vmem:[%s18647_s15 + $0x68] sm:$0xf] %vm9854_vm5, %v9912_v43  ;;  %10483 = vst.msk [vmem:[%s18647_s15 + $0x78] sm:$0xf] %vm9854_vm5, %v9922_v7 }
 0xa48   : > { %10482 = vst.msk [vmem:[%s18647_s15 + $0x70] sm:$0xff] %vm20206_vm15, %v9921_v10  ;;  %vm20212_vm2 = vmmov %vm20207_vm0 }
 0xa49   : > { %10486 = vst.msk [vmem:[%s18647_s15 + $0x80] sm:$0xff] %vm20207_vm0, %v9931_v46  ;;  %vm20213_vm3 = vmmov %vm20207_vm0 }
 0xa4a   : > { %10487 = vst.msk [vmem:[%s18647_s15 + $0x88] sm:$0xf] %vm9854_vm5, %v9932_v55  ;;  %10491 = vst.msk [vmem:[%s18647_s15 + $0x98] sm:$0xf] %vm9854_vm5, %v9942_v53 }
 0xa4b   : > { %10490 = vst.msk [vmem:[%s18647_s15 + $0x90] sm:$0xff] %vm20211_vm1, %v9941_v13 }
 0xa4c   : > { %10494 = vst.msk [vmem:[%s18647_s15 + $0xa0] sm:$0xff] %vm20212_vm2, %v9951_v54 }
 0xa4d   : > { %10495 = vst.msk [vmem:[%s18647_s15 + $0xa8] sm:$0xf] %vm9854_vm5, %v9952_v16  ;;  %10499 = vst.msk [vmem:[%s18647_s15 + $0xb8] sm:$0xf] %vm9854_vm5, %v9962_v30 }
 0xa4e   : > { %10498 = vst.msk [vmem:[%s18647_s15 + $0xb0] sm:$0xff] %vm20213_vm3, %v9961_v34 }
 0xa4f PF: > { %s19_s30 = sadd.s32 1, %s12045_s30  }
 0xa50   : > { %p16_p4 = scmp.ge.s32.totalorder %s19_s30, 4  }
 0xa52   :  { %18 = sbr.rel (!%p16_p4) target bundleno = 1 (0x1), region = 130 }

</bundles_post_ra>
